<compile_context>
chip_gen: v7x
topology: tpu7x:2x2x1
jax: 0.10.0
libtpu: 0.0.40
codegen_flags: <defaults>
</compile_context>

<pallas_src>
import jax
import jax.numpy as jnp
from jax.experimental import pallas as pl
from jax.experimental.pallas import tpu as pltpu

# ---- model hyper-parameters (implied by the PyTorch module) ----
FEATURES = 3
INP_DIM = 32
HIDDEN_DIM = 32

# ---- packed weight/bias slab layout (rows of a (WB_ROWS, 32) f32 array) ----
R_W1 = 0                     # enc1 weight  (32, 32)   rows  0:32
R_W4 = 32                    # dec2 weight  (32, 32)   rows 32:64
R_W2 = 64                    # enc2 weight  (32, 6)    rows 64:96, cols 0:6 (mu | log_var)
R_W3 = 96                    # dec1 weight  (3, 32)    rows 96:99
R_B1 = 99                    # enc1 bias    (32,)      row  99
R_B3 = 100                   # dec1 bias    (32,)      row 100
R_B4 = 101                   # dec2 bias    (32,)      row 101
R_B2 = 102                   # enc2 bias    (6,)       row 102, cols 0:6
WB_ROWS = 104                # padded to a multiple of 8 sublanes
WB_COLS = HIDDEN_DIM         # 32


def _vae_kernel(x_ref, eps_ref, wb_ref, recon_ref, mu_ref, lv_ref):
    x = x_ref[...]                                                    # (TB, 32)

    # enc1 + ReLU : (TB, 32) @ (32, 32) on the MXU
    w1 = wb_ref[R_W1:R_W1 + INP_DIM, :]
    b1 = wb_ref[R_B1:R_B1 + 1, :]
    h1 = jnp.dot(x, w1, preferred_element_type=jnp.float32) + b1
    h1 = jnp.maximum(h1, 0.0)                                         # (TB, 32)

    # enc2 (fused mu|log_var head) : (TB, 32) @ (32, 6) — one MXU push instead of two
    w2 = wb_ref[R_W2:R_W2 + HIDDEN_DIM, 0:2 * FEATURES]
    b2 = wb_ref[R_B2:R_B2 + 1, 0:2 * FEATURES]
    s = jnp.dot(h1, w2, preferred_element_type=jnp.float32) + b2      # (TB, 6)
    mu = s[:, 0:FEATURES]                                             # cols 0:3  (view(-1,2,F)[:,0,:])
    log_var = s[:, FEATURES:2 * FEATURES]                             # cols 3:6  (view(-1,2,F)[:,1,:])

    # reparameterize: z = mu + eps * exp(0.5 * log_var)
    z = mu + eps_ref[...] * jnp.exp(0.5 * log_var)                    # (TB, 3)

    # dec1 + ReLU : K=3 contraction on the (otherwise idle) MXU
    w3 = wb_ref[R_W3:R_W3 + FEATURES, :]
    b3 = wb_ref[R_B3:R_B3 + 1, :]
    h3 = jnp.dot(z, w3, preferred_element_type=jnp.float32) + b3
    h3 = jnp.maximum(h3, 0.0)                                         # (TB, 32)

    # dec2 + sigmoid : (TB, 32) @ (32, 32) on the MXU
    w4 = wb_ref[R_W4:R_W4 + HIDDEN_DIM, :]
    b4 = wb_ref[R_B4:R_B4 + 1, :]
    logits = jnp.dot(h3, w4, preferred_element_type=jnp.float32) + b4
    recon = jax.nn.sigmoid(logits)                                    # (TB, 32)

    # direct per-output stores; no packing slab, no dead lanes
    recon_ref[...] = recon
    mu_ref[...] = mu
    lv_ref[...] = log_var


def _choose_tile_b(B, max_tile=1024):
    """Largest multiple-of-8 divisor of B that is <= max_tile.

    Prefers >= 2 grid steps when free (keeps v7x's second TensorCore busy) and
    falls back to a single full-extent block when B has no suitable divisor, so
    the wrapper never has to pad/copy x or eps.
    """
    if B <= 8 or B % 8 != 0:
        return B
    best = None
    for t in range(8, min(B, max_tile) + 1, 8):
        if B % t == 0:
            best = t
    if best is None:
        return B
    if best == B and (B // 2) % 8 == 0:
        best = B // 2          # split into 2 tiles so both v7x cores get work
    return best


def linear_vae_forward(x, eps, wb, *, max_tile_b=1024):
    """x: (B, INP_DIM) f32; eps: (B, FEATURES) f32; wb: packed (104, 32) slab.

    Returns (reconstruction, mu, log_var) exactly like the PyTorch module.
    """
    B = x.shape[0]
    x = x.astype(jnp.float32)
    eps = eps.astype(jnp.float32)
    wb = wb.astype(jnp.float32)

    tile_b = _choose_tile_b(B, max_tile_b)
    grid = (B // tile_b,)

    in_specs = [
        pl.BlockSpec((tile_b, INP_DIM), lambda i: (i, 0)),       # x       (streamed)
        pl.BlockSpec((tile_b, FEATURES), lambda i: (i, 0)),      # eps     (streamed)
        pl.BlockSpec((WB_ROWS, WB_COLS), lambda i: (0, 0)),      # weights (VMEM-resident)
    ]
    out_specs = [
        pl.BlockSpec((tile_b, INP_DIM), lambda i: (i, 0)),       # recon
        pl.BlockSpec((tile_b, FEATURES), lambda i: (i, 0)),      # mu
        pl.BlockSpec((tile_b, FEATURES), lambda i: (i, 0)),      # log_var
    ]
    out_shape = (
        jax.ShapeDtypeStruct((B, INP_DIM), jnp.float32),
        jax.ShapeDtypeStruct((B, FEATURES), jnp.float32),
        jax.ShapeDtypeStruct((B, FEATURES), jnp.float32),
    )

    recon, mu, log_var = pl.pallas_call(
        _vae_kernel,
        out_shape=out_shape,
        grid_spec=pltpu.PrefetchScalarGridSpec(
            num_scalar_prefetch=0,
            grid=grid,
            in_specs=in_specs,
            out_specs=out_specs,
        ),
        compiler_params=pltpu.CompilerParams(
            # independent batch tiles; on v7x, CORE_PARALLEL would shard the grid
            # across the two TensorCores explicitly — PARALLEL is the portable choice.
            dimension_semantics=(pltpu.PARALLEL,),
        ),
    )(x, eps, wb)
    return recon, mu, log_var


def _init_linear(key, fan_in, fan_out):
    # PyTorch default nn.Linear init: U(-1/sqrt(fan_in), 1/sqrt(fan_in))
    kw, kb = jax.random.split(key)
    bound = 1.0 / (float(fan_in) ** 0.5)
    w = jax.random.uniform(kw, (fan_in, fan_out), jnp.float32, -bound, bound)
    b = jax.random.uniform(kb, (fan_out,), jnp.float32, -bound, bound)
    return w, b


def init_params(key):
    k1, k2, k3, k4 = jax.random.split(key, 4)
    w1, b1 = _init_linear(k1, INP_DIM, HIDDEN_DIM)            # enc1
    w2, b2 = _init_linear(k2, HIDDEN_DIM, 2 * FEATURES)       # enc2 (mu cols 0:F, log_var cols F:2F)
    w3, b3 = _init_linear(k3, FEATURES, HIDDEN_DIM)           # dec1
    w4, b4 = _init_linear(k4, HIDDEN_DIM, INP_DIM)            # dec2
    return dict(w1=w1, b1=b1, w2=w2, b2=b2, w3=w3, b3=b3, w4=w4, b4=b4)


def pack_params(p):
    """Pack all weights/biases into a single (104, 32) f32 slab (done once, offline)."""
    wb = jnp.zeros((WB_ROWS, WB_COLS), jnp.float32)
    wb = wb.at[R_W1:R_W1 + INP_DIM, :HIDDEN_DIM].set(p["w1"])
    wb = wb.at[R_W4:R_W4 + HIDDEN_DIM, :INP_DIM].set(p["w4"])
    wb = wb.at[R_W2:R_W2 + HIDDEN_DIM, :2 * FEATURES].set(p["w2"])
    wb = wb.at[R_W3:R_W3 + FEATURES, :HIDDEN_DIM].set(p["w3"])
    wb = wb.at[R_B1, :HIDDEN_DIM].set(p["b1"])
    wb = wb.at[R_B3, :HIDDEN_DIM].set(p["b3"])
    wb = wb.at[R_B4, :INP_DIM].set(p["b4"])
    wb = wb.at[R_B2, :2 * FEATURES].set(p["b2"])
    return wb


def _reference_forward(x, eps, p):
    h1 = jnp.maximum(x @ p["w1"] + p["b1"], 0.0)
    s = h1 @ p["w2"] + p["b2"]
    mu = s[:, :FEATURES]
    log_var = s[:, FEATURES:]
    z = mu + eps * jnp.exp(0.5 * log_var)
    h3 = jnp.maximum(z @ p["w3"] + p["b3"], 0.0)
    recon = jax.nn.sigmoid(h3 @ p["w4"] + p["b4"])
    return recon, mu, log_var


if __name__ == "__main__":
    BATCH = 2048   # 2 grid steps of 1024 rows; still tiny (<1 MB of activations)

    key = jax.random.PRNGKey(0)
    k_params, k_x, k_eps = jax.random.split(key, 3)

    params = init_params(k_params)
    wb = pack_params(params)
    x = jax.random.normal(k_x, (BATCH, INP_DIM), jnp.float32)
    eps = jax.random.normal(k_eps, (BATCH, FEATURES), jnp.float32)

    recon, mu, log_var = linear_vae_forward(x, eps, wb)
    jax.block_until_ready((recon, mu, log_var))

    # sanity check against a pure-JAX reference
    r_ref, mu_ref, lv_ref = _reference_forward(x, eps, params)
    assert recon.shape == (BATCH, INP_DIM) and mu.shape == (BATCH, FEATURES)
    assert jnp.allclose(recon, r_ref, atol=1e-4), "reconstruction mismatch"
    assert jnp.allclose(mu, mu_ref, atol=1e-4), "mu mismatch"
    assert jnp.allclose(log_var, lv_ref, atol=1e-4), "log_var mismatch"

    print("KERNEL_OK")
</pallas_src>

<mosaic_0001>
module attributes {stable_mosaic.version = 11 : i64} {
  func.func @_vae_kernel(%arg0: i32, %arg1: memref<1024x32xf32, #tpu.memory_space<vmem>>, %arg2: memref<1024x3xf32, #tpu.memory_space<vmem>>, %arg3: memref<104x32xf32, #tpu.memory_space<vmem>>, %arg4: memref<1024x32xf32, #tpu.memory_space<vmem>>, %arg5: memref<1024x3xf32, #tpu.memory_space<vmem>>, %arg6: memref<1024x3xf32, #tpu.memory_space<vmem>>) attributes {dimension_semantics = [#tpu.dimension_semantics<parallel>], iteration_bounds = array<i64: 2>, scalar_prefetch = 0 : i64, scratch_operands = 0 : i64, tpu.core_type = #tpu.core_type<tc>, window_params = [{transform_indices = @transform_0, window_bounds = array<i64: 1024, 32>}, {transform_indices = @transform_1, window_bounds = array<i64: 1024, 3>}, {pipeline_mode = #tpu.pipeline_mode<synchronous>, transform_indices = @transform_2, window_bounds = array<i64: 104, 32>}, {transform_indices = @transform_3, window_bounds = array<i64: 1024, 32>}, {transform_indices = @transform_4, window_bounds = array<i64: 1024, 3>}, {transform_indices = @transform_5, window_bounds = array<i64: 1024, 3>}]} {
    %c0 = arith.constant 0 : index
    %c0_0 = arith.constant 0 : index
    %0 = vector.load %arg1[%c0, %c0_0] : memref<1024x32xf32, #tpu.memory_space<vmem>>, vector<1024x32xf32>
    %c0_1 = arith.constant 0 : index
    %c0_2 = arith.constant 0 : index
    %1 = vector.load %arg3[%c0_1, %c0_2] : memref<104x32xf32, #tpu.memory_space<vmem>>, vector<32x32xf32>
    %c99 = arith.constant 99 : index
    %c0_3 = arith.constant 0 : index
    %2 = vector.load %arg3[%c99, %c0_3] : memref<104x32xf32, #tpu.memory_space<vmem>>, vector<1x32xf32>
    %cst = arith.constant dense<0.000000e+00> : vector<1024x32xf32>
    %3 = tpu.matmul %0, %1, %cst {dimension_numbers = #tpu.dot_dimension_numbers<[1], [0], [0], [1], [0, 0, 1, 1], [], []>} : vector<1024x32xf32>, vector<32x32xf32>, vector<1024x32xf32> -> vector<1024x32xf32>
    %4 = vector.broadcast %2 : vector<1x32xf32> to vector<1024x32xf32>
    %5 = arith.addf %3, %4 : vector<1024x32xf32>
    %cst_4 = arith.constant 0.000000e+00 : f32
    %6 = vector.broadcast %cst_4 : f32 to vector<1024x32xf32>
    %7 = arith.maximumf %5, %6 : vector<1024x32xf32>
    %c64 = arith.constant 64 : index
    %c0_5 = arith.constant 0 : index
    %8 = vector.load %arg3[%c64, %c0_5] : memref<104x32xf32, #tpu.memory_space<vmem>>, vector<32x6xf32>
    %c102 = arith.constant 102 : index
    %c0_6 = arith.constant 0 : index
    %9 = vector.load %arg3[%c102, %c0_6] : memref<104x32xf32, #tpu.memory_space<vmem>>, vector<1x6xf32>
    %cst_7 = arith.constant dense<0.000000e+00> : vector<1024x6xf32>
    %10 = tpu.matmul %7, %8, %cst_7 {dimension_numbers = #tpu.dot_dimension_numbers<[1], [0], [0], [1], [0, 0, 1, 1], [], []>} : vector<1024x32xf32>, vector<32x6xf32>, vector<1024x6xf32> -> vector<1024x6xf32>
    %11 = vector.broadcast %9 : vector<1x6xf32> to vector<1024x6xf32>
    %12 = arith.addf %10, %11 : vector<1024x6xf32>
    %13 = vector.extract_strided_slice %12 {offsets = [0, 0], sizes = [1024, 3], strides = [1, 1]} : vector<1024x6xf32> to vector<1024x3xf32>
    %14 = vector.extract_strided_slice %12 {offsets = [0, 3], sizes = [1024, 3], strides = [1, 1]} : vector<1024x6xf32> to vector<1024x3xf32>
    %c0_8 = arith.constant 0 : index
    %c0_9 = arith.constant 0 : index
    %15 = vector.load %arg2[%c0_8, %c0_9] : memref<1024x3xf32, #tpu.memory_space<vmem>>, vector<1024x3xf32>
    %cst_10 = arith.constant 5.000000e-01 : f32
    %16 = vector.broadcast %cst_10 : f32 to vector<1024x3xf32>
    %17 = arith.mulf %16, %14 : vector<1024x3xf32>
    %18 = math.exp %17 : vector<1024x3xf32>
    %19 = arith.mulf %15, %18 : vector<1024x3xf32>
    %20 = arith.addf %13, %19 : vector<1024x3xf32>
    %c96 = arith.constant 96 : index
    %c0_11 = arith.constant 0 : index
    %21 = vector.load %arg3[%c96, %c0_11] : memref<104x32xf32, #tpu.memory_space<vmem>>, vector<3x32xf32>
    %c100 = arith.constant 100 : index
    %c0_12 = arith.constant 0 : index
    %22 = vector.load %arg3[%c100, %c0_12] : memref<104x32xf32, #tpu.memory_space<vmem>>, vector<1x32xf32>
    %cst_13 = arith.constant dense<0.000000e+00> : vector<1024x32xf32>
    %23 = tpu.matmul %20, %21, %cst_13 {dimension_numbers = #tpu.dot_dimension_numbers<[1], [0], [0], [1], [0, 0, 1, 1], [], []>} : vector<1024x3xf32>, vector<3x32xf32>, vector<1024x32xf32> -> vector<1024x32xf32>
    %24 = vector.broadcast %22 : vector<1x32xf32> to vector<1024x32xf32>
    %25 = arith.addf %23, %24 : vector<1024x32xf32>
    %cst_14 = arith.constant 0.000000e+00 : f32
    %26 = vector.broadcast %cst_14 : f32 to vector<1024x32xf32>
    %27 = arith.maximumf %25, %26 : vector<1024x32xf32>
    %c32 = arith.constant 32 : index
    %c0_15 = arith.constant 0 : index
    %28 = vector.load %arg3[%c32, %c0_15] : memref<104x32xf32, #tpu.memory_space<vmem>>, vector<32x32xf32>
    %c101 = arith.constant 101 : index
    %c0_16 = arith.constant 0 : index
    %29 = vector.load %arg3[%c101, %c0_16] : memref<104x32xf32, #tpu.memory_space<vmem>>, vector<1x32xf32>
    %cst_17 = arith.constant dense<0.000000e+00> : vector<1024x32xf32>
    %30 = tpu.matmul %27, %28, %cst_17 {dimension_numbers = #tpu.dot_dimension_numbers<[1], [0], [0], [1], [0, 0, 1, 1], [], []>} : vector<1024x32xf32>, vector<32x32xf32>, vector<1024x32xf32> -> vector<1024x32xf32>
    %31 = vector.broadcast %29 : vector<1x32xf32> to vector<1024x32xf32>
    %32 = arith.addf %30, %31 : vector<1024x32xf32>
    %33 = arith.negf %32 : vector<1024x32xf32>
    %34 = math.exp %33 : vector<1024x32xf32>
    %cst_18 = arith.constant 1.000000e+00 : f32
    %35 = vector.broadcast %cst_18 : f32 to vector<1024x32xf32>
    %36 = arith.addf %35, %34 : vector<1024x32xf32>
    %37 = arith.divf %35, %36 : vector<1024x32xf32>
    %c0_19 = arith.constant 0 : index
    %c0_20 = arith.constant 0 : index
    %38 = vector.load %arg4[%c0_19, %c0_20] : memref<1024x32xf32, #tpu.memory_space<vmem>>, vector<1024x32xf32>
    tpu.vector_store %arg4[%c0_19, %c0_20], %37 {strides = array<i32>} : memref<1024x32xf32, #tpu.memory_space<vmem>>, vector<1024x32xf32>,
    %c0_21 = arith.constant 0 : index
    %c0_22 = arith.constant 0 : index
    %39 = vector.load %arg5[%c0_21, %c0_22] : memref<1024x3xf32, #tpu.memory_space<vmem>>, vector<1024x3xf32>
    tpu.vector_store %arg5[%c0_21, %c0_22], %13 {strides = array<i32>} : memref<1024x3xf32, #tpu.memory_space<vmem>>, vector<1024x3xf32>,
    %c0_23 = arith.constant 0 : index
    %c0_24 = arith.constant 0 : index
    %40 = vector.load %arg6[%c0_23, %c0_24] : memref<1024x3xf32, #tpu.memory_space<vmem>>, vector<1024x3xf32>
    tpu.vector_store %arg6[%c0_23, %c0_24], %14 {strides = array<i32>} : memref<1024x3xf32, #tpu.memory_space<vmem>>, vector<1024x3xf32>,
    return
  }
  func.func @transform_0(%arg0: i32) -> (i32, i32) {
    %c0_i32 = arith.constant 0 : i32
    %c0_i32_0 = arith.constant 0 : i32
    return %arg0, %c0_i32 : i32, i32
  }
  func.func @transform_1(%arg0: i32) -> (i32, i32) {
    %c0_i32 = arith.constant 0 : i32
    %c0_i32_0 = arith.constant 0 : i32
    return %arg0, %c0_i32 : i32, i32
  }
  func.func @transform_2(%arg0: i32) -> (i32, i32) {
    %c0_i32 = arith.constant 0 : i32
    %c0_i32_0 = arith.constant 0 : i32
    %c0_i32_1 = arith.constant 0 : i32
    return %c0_i32, %c0_i32_0 : i32, i32
  }
  func.func @transform_3(%arg0: i32) -> (i32, i32) {
    %c0_i32 = arith.constant 0 : i32
    %c0_i32_0 = arith.constant 0 : i32
    return %arg0, %c0_i32 : i32, i32
  }
  func.func @transform_4(%arg0: i32) -> (i32, i32) {
    %c0_i32 = arith.constant 0 : i32
    %c0_i32_0 = arith.constant 0 : i32
    return %arg0, %c0_i32 : i32, i32
  }
  func.func @transform_5(%arg0: i32) -> (i32, i32) {
    %c0_i32 = arith.constant 0 : i32
    %c0_i32_0 = arith.constant 0 : i32
    return %arg0, %c0_i32 : i32, i32
  }
}

</mosaic_0001>

<bundles_post_ra>
// kernel: tpu_custom_call.1
= control target key start
LH: loop header
LB: loop body
LE: loop exit
PB: predicated region body
PF: predicated region fallthrough
CT: control target
= control target key end

     0   :  { %s10963_s18 = smov 0   ;;  %s14167_s0 = inlined_call_operand.vmem [shape: f32[2048,32], index: 0, kind: input, shape index: {}]   ;;  %s14168_s1 = inlined_call_operand.vmem [shape: f32[2048,3], index: 1, kind: input, shape index: {}]   ;;  %s14169_s2 = inlined_call_operand.vmem [shape: f32[104,32], index: 2, kind: input, shape index: {}]   ;;  %s14170_s3 = inlined_call_operand.vmem [shape: f32[2048,32], index: 3, kind: output, shape index: {0}]   ;;  %s14171_s4 = inlined_call_operand.vmem [shape: f32[2048,3], index: 4, kind: output, shape index: {1}]   ;;  %s14172_s5 = inlined_call_operand.vmem [shape: f32[2048,3], index: 5, kind: output, shape index: {2}]  }
   0x1 LB: > { %s8136_s19 = sadd.s32 4294967295, %s10930_s18   ;;  %p8140_p0 = scmp.ge.s32.totalorder %s10930_s18, 1  ;;  %s10930_s18 = sphi %s10963_s18, %s16_s18  }
   0x2   : > { %p204_p1 = scmp.lt.s32.totalorder %s10930_s18, 3 }
   0x4   : > { %p205_p2 = pnand %p8140_p0, %p204_p1 }
   0x6   : > { %208 = sbr.rel (%p205_p2) target bundleno = 1311 (0x51f), region = 32 }
   0xd   : > { %v405_v0 = vld [vmem:[%s14169_s2] sm:$0xff]  ;;  %v406_v1 = vld [vmem:[%s14169_s2 + $0x8] sm:$0xff]  ;;  %v407_v2 = vld [vmem:[%s14169_s2 + $0x10] sm:$0xff]  ;;  %s8141_s26 = sshll.u32 %s8136_s19, 7  ;;  %vm414_vm0 = vcmask 261120   ;;  %vm4401_vm1 = vcmask 1042432  }
   0xe   : > { %v10117_v3 = vpack.c.bf16 %v406_v1, %v405_v0  ;;  %v408_v4 = vld [vmem:[%s14169_s2 + $0x18] sm:$0xff]  ;;  %p248_p3 = scmp.lt.s32.totalorder %s8141_s26, 255  ;;  %v1632_v49 = vld [vmem:[%s14169_s2 + $0x40] sm:$0xff]  ;;  %v1633_v50 = vld [vmem:[%s14169_s2 + $0x48] sm:$0xff]  ;;  %vm4016_vm2 = vcmask 23552   ;;  %s10932_s8 = smov 125  }
   0xf   : > { %v10121_v5 = vpack.c.bf16 %v408_v4, %v407_v2  ;;  %v10125_v51 = vpack.c.bf16 %v1633_v50, %v1632_v49  ;;  %v1634_v54 = vld [vmem:[%s14169_s2 + $0x50] sm:$0xff]  ;;  %v1635_v55 = vld [vmem:[%s14169_s2 + $0x58] sm:$0xff] }
  0x10   : > { %10118 = vmatprep.subr.bf16.mxu0 %v10117_v3  ;;  %s14519_s26 = smov (!%p248_p3, %s8141_s26), 255  ;;  %v10129_v57 = vpack.c.bf16 %v1635_v55, %v1634_v54 }
  0x11   : > { %10120 = vmatpush3.bf16.msra.mxu0 %v10117_v3  ;;  %s10983_s29 = sshll.u32 %s14519_s26, 3  ;;  %10126 = vmatprep.subr.bf16.mxu1 %v10125_v51 }
  0x12   : > { %10122 = vmatprep.subr.bf16.mxu0 %v10121_v5  ;;  %s10989_s7 = scalar_lea.vmem %s14167_s0, %s10983_s29  ;;  %10128 = vmatpush3.bf16.msra.mxu1 %v10125_v51  ;;  %s11498_s30 = scalar_lea.vmem %s14171_s4, %s10983_s29 }
  0x13   : > { %v277_v6 = vld [vmem:[%s10989_s7] sm:$0xff]  ;;  %v278_v7 = vld [vmem:[%s10989_s7 + $0x8] sm:$0xff]  ;;  %v279_v8 = vld [vmem:[%s10989_s7 + $0x10] sm:$0xff]  ;;  %10130 = vmatprep.subr.bf16.mxu1 %v10129_v57  ;;  %s12063_s17 = scalar_lea.vmem %s14168_s1, %s10983_s29  ;;  %s13125_s25 = scalar_lea.vmem %s14172_s5, %s10983_s29 }
  0x14   : > { %9331 = vmatprep.mubr.msk.f32.mxu0 %vm414_vm0, %v277_v6  ;;  %v280_v9 = vld [vmem:[%s10989_s7 + $0x18] sm:$0xff]  ;;  %v281_v10 = vld [vmem:[%s10989_s7 + $0x20] sm:$0xff]  ;;  %v282_v11 = vld [vmem:[%s10989_s7 + $0x28] sm:$0xff] }
  0x15   : > { %10124 = vmatpush3.bf16.msra.mxu0 %v10121_v5  ;;  %v283_v12 = vld [vmem:[%s10989_s7 + $0x30] sm:$0xff]  ;;  %v284_v13 = vld [vmem:[%s10989_s7 + $0x38] sm:$0xff]  ;;  %v285_v14 = vld [vmem:[%s10989_s7 + $0x40] sm:$0xff] }
  0x16   : > { %v286_v15 = vld [vmem:[%s10989_s7 + $0x48] sm:$0xff]  ;;  %v287_v16 = vld [vmem:[%s10989_s7 + $0x50] sm:$0xff]  ;;  %v288_v17 = vld [vmem:[%s10989_s7 + $0x58] sm:$0xff]  ;;  %10132 = vmatpush3.bf16.msra.mxu1 %v10129_v57 }
  0x17   : > { %v289_v18 = vld [vmem:[%s10989_s7 + $0x60] sm:$0xff]  ;;  %v290_v19 = vld [vmem:[%s10989_s7 + $0x68] sm:$0xff]  ;;  %v291_v20 = vld [vmem:[%s10989_s7 + $0x70] sm:$0xff] }
  0x18   : > { %9332 = vmatmul.mubr.msk.f32.vlgmr.msra.gmra.mrb[0].mxu0 %vm414_vm0, %v278_v7  ;;  %v292_v21 = vld [vmem:[%s10989_s7 + $0x78] sm:$0xff]  ;;  %v293_v22 = vld [vmem:[%s10989_s7 + $0x80] sm:$0xff]  ;;  %v294_v23 = vld [vmem:[%s10989_s7 + $0x88] sm:$0xff] }
  0x19   : > { %9334 = vmatprep.mubr.msk.f32.mxu0 %vm414_vm0, %v279_v8  ;;  %v295_v24 = vld [vmem:[%s10989_s7 + $0x90] sm:$0xff]  ;;  %v296_v25 = vld [vmem:[%s10989_s7 + $0x98] sm:$0xff]  ;;  %v297_v26 = vld [vmem:[%s10989_s7 + $0xa0] sm:$0xff] }
  0x1a   : > { %v298_v27 = vld [vmem:[%s10989_s7 + $0xa8] sm:$0xff]  ;;  %v299_v28 = vld [vmem:[%s10989_s7 + $0xb0] sm:$0xff]  ;;  %v300_v29 = vld [vmem:[%s10989_s7 + $0xb8] sm:$0xff] }
  0x1b   : > { %v301_v30 = vld [vmem:[%s10989_s7 + $0xc0] sm:$0xff]  ;;  %v302_v31 = vld [vmem:[%s10989_s7 + $0xc8] sm:$0xff]  ;;  %v303_v32 = vld [vmem:[%s10989_s7 + $0xd0] sm:$0xff] }
  0x1c   : > { %9335 = vmatmul.mubr.msk.f32.gmra.mrb[2].mxu0 %vm414_vm0, %v280_v9  ;;  %v304_v33 = vld [vmem:[%s10989_s7 + $0xd8] sm:$0xff]  ;;  %v305_v34 = vld [vmem:[%s10989_s7 + $0xe0] sm:$0xff]  ;;  %v306_v35 = vld [vmem:[%s10989_s7 + $0xe8] sm:$0xff] }
  0x1d   : > { %9337 = vmatprep.mubr.msk.f32.mxu0 %vm414_vm0, %v281_v10  ;;  %v307_v36 = vld [vmem:[%s10989_s7 + $0xf0] sm:$0xff]  ;;  %v308_v37 = vld [vmem:[%s10989_s7 + $0xf8] sm:$0xff]  ;;  %v309_v38 = vld [vmem:[%s10989_s7 + $0x100] sm:$0xff] }
  0x1e   : > { %v310_v39 = vld [vmem:[%s10989_s7 + $0x108] sm:$0xff]  ;;  %v311_v40 = vld [vmem:[%s10989_s7 + $0x110] sm:$0xff]  ;;  %v312_v41 = vld [vmem:[%s10989_s7 + $0x118] sm:$0xff] }
  0x1f   : > { %v313_v42 = vld [vmem:[%s10989_s7 + $0x120] sm:$0xff]  ;;  %v314_v43 = vld [vmem:[%s10989_s7 + $0x128] sm:$0xff]  ;;  %v315_v44 = vld [vmem:[%s10989_s7 + $0x130] sm:$0xff] }
  0x20   : > { %9338 = vmatmul.mubr.msk.f32.gmra.mrb[4].mxu0 %vm414_vm0, %v282_v11  ;;  %v316_v45 = vld [vmem:[%s10989_s7 + $0x138] sm:$0xff]  ;;  %v317_v46 = vld [vmem:[%s10989_s7 + $0x140] sm:$0xff]  ;;  %v318_v47 = vld [vmem:[%s10989_s7 + $0x148] sm:$0xff] }
  0x21   : > { %9340 = vmatprep.mubr.msk.f32.mxu0 %vm414_vm0, %v283_v12  ;;  %v319_v48 = vld [vmem:[%s10989_s7 + $0x150] sm:$0xff]  ;;  %v320_v52 = vld [vmem:[%s10989_s7 + $0x158] sm:$0xff]  ;;  %v321_v53 = vld [vmem:[%s10989_s7 + $0x160] sm:$0xff] }
  0x22   : > { %v322_v56 = vld [vmem:[%s10989_s7 + $0x168] sm:$0xff]  ;;  %v323_v58 = vld [vmem:[%s10989_s7 + $0x170] sm:$0xff]  ;;  %v324_v59 = vld [vmem:[%s10989_s7 + $0x178] sm:$0xff] }
  0x23   : > { %v325_v60 = vld [vmem:[%s10989_s7 + $0x180] sm:$0xff]  ;;  %v326_v61 = vld [vmem:[%s10989_s7 + $0x188] sm:$0xff]  ;;  %v327_v62 = vld [vmem:[%s10989_s7 + $0x190] sm:$0xff] }
  0x24   : > { %9341 = vmatmul.mubr.msk.f32.gmra.mrb[6].mxu0 %vm414_vm0, %v284_v13  ;;  %v328_v63 = vld [vmem:[%s10989_s7 + $0x198] sm:$0xff]  ;;  %v329_v0 = vld [vmem:[%s10989_s7 + $0x1a0] sm:$0xff]  ;;  %v330_v1 = vld [vmem:[%s10989_s7 + $0x1a8] sm:$0xff] }
  0x25   : > { %9343 = vmatprep.mubr.msk.f32.mxu0 %vm414_vm0, %v285_v14  ;;  %v331_v2 = vld [vmem:[%s10989_s7 + $0x1b0] sm:$0xff]  ;;  %v332_v3 = vld [vmem:[%s10989_s7 + $0x1b8] sm:$0xff]  ;;  %v333_v4 = vld [vmem:[%s10989_s7 + $0x1c0] sm:$0xff] }
  0x26   : > { %v334_v5 = vld [vmem:[%s10989_s7 + $0x1c8] sm:$0xff]  ;;  %v335_v6 = vld [vmem:[%s10989_s7 + $0x1d0] sm:$0xff]  ;;  %v336_v7 = vld [vmem:[%s10989_s7 + $0x1d8] sm:$0xff] }
  0x27   : > { %v337_v8 = vld [vmem:[%s10989_s7 + $0x1e0] sm:$0xff]  ;;  %v338_v9 = vld [vmem:[%s10989_s7 + $0x1e8] sm:$0xff]  ;;  %v339_v10 = vld [vmem:[%s10989_s7 + $0x1f0] sm:$0xff] }
  0x28   : > { %9344 = vmatmul.mubr.msk.f32.gmra.mrb[8].mxu0 %vm414_vm0, %v286_v15  ;;  %v340_v11 = vld [vmem:[%s10989_s7 + $0x1f8] sm:$0xff]  ;;  %v341_v12 = vld [vmem:[%s10989_s7 + $0x200] sm:$0xff]  ;;  %v342_v13 = vld [vmem:[%s10989_s7 + $0x208] sm:$0xff] }
  0x29   : > { %9346 = vmatprep.mubr.msk.f32.mxu0 %vm414_vm0, %v287_v16  ;;  %v343_v14 = vld [vmem:[%s10989_s7 + $0x210] sm:$0xff]  ;;  %v344_v15 = vld [vmem:[%s10989_s7 + $0x218] sm:$0xff]  ;;  %v345_v16 = vld [vmem:[%s10989_s7 + $0x220] sm:$0xff] }
  0x2a   : > { %v377_v49 = vld [vmem:[%s10989_s7 + $0x320] sm:$0xff]  ;;  %v378_v50 = vld [vmem:[%s10989_s7 + $0x328] sm:$0xff]  ;;  %v379_v51 = vld [vmem:[%s10989_s7 + $0x330] sm:$0xff] }
  0x2b   : > { %v382_v54 = vld [vmem:[%s10989_s7 + $0x348] sm:$0xff]  ;;  %v383_v55 = vld [vmem:[%s10989_s7 + $0x350] sm:$0xff]  ;;  %v384_v57 = vld [vmem:[%s10989_s7 + $0x358] sm:$0xff] }
  0x2c   : > { %9347 = vmatmul.mubr.msk.f32.gmra.mrb[10].mxu0 %vm414_vm0, %v288_v17  ;;  %v346_v17 = vld [vmem:[%s10989_s7 + $0x228] sm:$0xff] }
  0x2d   : > { %9349 = vmatprep.mubr.msk.f32.mxu0 %vm414_vm0, %v289_v18  ;;  %v347_v18 = vld [vmem:[%s10989_s7 + $0x230] sm:$0xff] }
  0x30   : > { %9350 = vmatmul.mubr.msk.f32.gmra.mrb[12].mxu0 %vm414_vm0, %v290_v19  ;;  %v348_v19 = vld [vmem:[%s10989_s7 + $0x238] sm:$0xff] }
  0x31   : > { %9352 = vmatprep.mubr.msk.f32.mxu0 %vm414_vm0, %v291_v20  ;;  %v349_v20 = vld [vmem:[%s10989_s7 + $0x240] sm:$0xff] }
  0x34   : > { %9353 = vmatmul.mubr.msk.f32.gmra.mrb[14].mxu0 %vm414_vm0, %v292_v21  ;;  %v350_v21 = vld [vmem:[%s10989_s7 + $0x248] sm:$0xff] }
  0x35   : > { %9355 = vmatprep.mubr.msk.f32.mxu0 %vm414_vm0, %v293_v22  ;;  %v351_v22 = vld [vmem:[%s10989_s7 + $0x250] sm:$0xff] }
  0x38   : > { %9356 = vmatmul.mubr.msk.f32.gmra.mrb[16].mxu0 %vm414_vm0, %v294_v23  ;;  %v352_v23 = vld [vmem:[%s10989_s7 + $0x258] sm:$0xff] }
  0x39   : > { %9358 = vmatprep.mubr.msk.f32.mxu0 %vm414_vm0, %v295_v24  ;;  %v353_v24 = vld [vmem:[%s10989_s7 + $0x260] sm:$0xff] }
  0x3c   : > { %9359 = vmatmul.mubr.msk.f32.gmra.mrb[18].mxu0 %vm414_vm0, %v296_v25  ;;  %v354_v25 = vld [vmem:[%s10989_s7 + $0x268] sm:$0xff] }
  0x3d   : > { %9361 = vmatprep.mubr.msk.f32.mxu0 %vm414_vm0, %v297_v26  ;;  %v355_v26 = vld [vmem:[%s10989_s7 + $0x270] sm:$0xff] }
  0x40   : > { %9362 = vmatmul.mubr.msk.f32.gmra.mrb[20].mxu0 %vm414_vm0, %v298_v27  ;;  %v356_v27 = vld [vmem:[%s10989_s7 + $0x278] sm:$0xff] }
  0x41   : > { %9364 = vmatprep.mubr.msk.f32.mxu0 %vm414_vm0, %v299_v28  ;;  %v357_v28 = vld [vmem:[%s10989_s7 + $0x280] sm:$0xff] }
  0x44   : > { %9365 = vmatmul.mubr.msk.f32.gmra.mrb[22].mxu0 %vm414_vm0, %v300_v29  ;;  %v358_v29 = vld [vmem:[%s10989_s7 + $0x288] sm:$0xff] }
  0x45   : > { %9367 = vmatprep.mubr.msk.f32.mxu0 %vm414_vm0, %v301_v30  ;;  %v359_v30 = vld [vmem:[%s10989_s7 + $0x290] sm:$0xff] }
  0x48   : > { %9368 = vmatmul.mubr.msk.f32.gmra.mrb[24].mxu0 %vm414_vm0, %v302_v31  ;;  %v360_v31 = vld [vmem:[%s10989_s7 + $0x298] sm:$0xff] }
  0x49   : > { %9370 = vmatprep.mubr.msk.f32.mxu0 %vm414_vm0, %v303_v32  ;;  %v361_v32 = vld [vmem:[%s10989_s7 + $0x2a0] sm:$0xff] }
  0x4c   : > { %9371 = vmatmul.mubr.msk.f32.gmra.mrb[26].mxu0 %vm414_vm0, %v304_v33  ;;  %v362_v33 = vld [vmem:[%s10989_s7 + $0x2a8] sm:$0xff] }
  0x4d   : > { %9373 = vmatprep.mubr.msk.f32.mxu0 %vm414_vm0, %v305_v34  ;;  %v363_v34 = vld [vmem:[%s10989_s7 + $0x2b0] sm:$0xff] }
  0x50   : > { %9374 = vmatmul.mubr.msk.f32.gmra.mrb[28].mxu0 %vm414_vm0, %v306_v35  ;;  %v364_v35 = vld [vmem:[%s10989_s7 + $0x2b8] sm:$0xff] }
  0x51   : > { %9376 = vmatprep.mubr.msk.f32.mxu0 %vm414_vm0, %v307_v36  ;;  %v365_v36 = vld [vmem:[%s10989_s7 + $0x2c0] sm:$0xff] }
  0x54   : > { %9377 = vmatmul.mubr.msk.f32.gmra.mrb[30].mxu0 %vm414_vm0, %v308_v37  ;;  %v366_v37 = vld [vmem:[%s10989_s7 + $0x2c8] sm:$0xff] }
  0x55   : > { %9379 = vmatprep.mubr.msk.f32.mxu0 %vm414_vm0, %v309_v38  ;;  %v367_v38 = vld [vmem:[%s10989_s7 + $0x2d0] sm:$0xff] }
  0x58   : > { %9380 = vmatmul.mubr.msk.f32.gmra.mrb[32].mxu0 %vm414_vm0, %v310_v39  ;;  %v368_v39 = vld [vmem:[%s10989_s7 + $0x2d8] sm:$0xff] }
  0x59   : > { %9382 = vmatprep.mubr.msk.f32.mxu0 %vm414_vm0, %v311_v40  ;;  %v369_v40 = vld [vmem:[%s10989_s7 + $0x2e0] sm:$0xff] }
  0x5c   : > { %9383 = vmatmul.mubr.msk.f32.gmra.mrb[34].mxu0 %vm414_vm0, %v312_v41  ;;  %v370_v41 = vld [vmem:[%s10989_s7 + $0x2e8] sm:$0xff] }
  0x5d   : > { %9385 = vmatprep.mubr.msk.f32.mxu0 %vm414_vm0, %v313_v42  ;;  %v371_v42 = vld [vmem:[%s10989_s7 + $0x2f0] sm:$0xff] }
  0x60   : > { %9386 = vmatmul.mubr.msk.f32.gmra.mrb[36].mxu0 %vm414_vm0, %v314_v43  ;;  %v372_v43 = vld [vmem:[%s10989_s7 + $0x2f8] sm:$0xff] }
  0x61   : > { %9388 = vmatprep.mubr.msk.f32.mxu0 %vm414_vm0, %v315_v44  ;;  %v373_v44 = vld [vmem:[%s10989_s7 + $0x300] sm:$0xff] }
  0x64   : > { %9389 = vmatmul.mubr.msk.f32.gmra.mrb[38].mxu0 %vm414_vm0, %v316_v45  ;;  %v4010_v45 = vld [vmem:[%s14169_s2 + $0x60] sm:$0x7] }
  0x65   : > { %9391 = vmatprep.mubr.msk.f32.mxu0 %vm414_vm0, %v317_v46  ;;  %9723 = vmatprep.subr.msk.mxu0 %vm4401_vm1, %v4010_v45  ;;  %v374_v46 = vld [vmem:[%s10989_s7 + $0x308] sm:$0xff] }
  0x66   : > { %9724 = vmatpush3.msk.msra.mxu0 %vm4401_vm1, %v4010_v45 }
  0x68   : > { %9392 = vmatmul.mubr.msk.f32.gmra.mrb[40].mxu0 %vm414_vm0, %v318_v47  ;;  %v375_v47 = vld [vmem:[%s10989_s7 + $0x310] sm:$0xff] }
  0x69   : > { %9394 = vmatprep.mubr.msk.f32.mxu0 %vm414_vm0, %v319_v48  ;;  %v376_v48 = vld [vmem:[%s10989_s7 + $0x318] sm:$0xff] }
  0x6c   : > { %9395 = vmatmul.mubr.msk.f32.gmra.mrb[42].mxu0 %vm414_vm0, %v320_v52  ;;  %v380_v52 = vld [vmem:[%s10989_s7 + $0x338] sm:$0xff] }
  0x6d   : > { %9397 = vmatprep.mubr.msk.f32.mxu0 %vm414_vm0, %v321_v53  ;;  %v381_v53 = vld [vmem:[%s10989_s7 + $0x340] sm:$0xff] }
  0x70   : > { %9398 = vmatmul.mubr.msk.f32.gmra.mrb[44].mxu0 %vm414_vm0, %v322_v56  ;;  %v11222_v56 = vld [vmem:[%s14169_s2 + $0x63] ss:$0 sm:$0xff] }
  0x71   : > { %9400 = vmatprep.mubr.msk.f32.mxu0 %vm414_vm0, %v323_v58  ;;  %v385_v58 = vld [vmem:[%s10989_s7 + $0x360] sm:$0xff] }
  0x74   : > { %9401 = vmatmul.mubr.msk.f32.gmra.mrb[46].mxu0 %vm414_vm0, %v324_v59 }
  0x75   : > { %9403 = vmatprep.mubr.msk.f32.mxu0 %vm414_vm0, %v325_v60 }
  0x78   : > { %9404 = vmatmul.mubr.msk.f32.gmra.mrb[48].mxu0 %vm414_vm0, %v326_v61 }
  0x79   : > { %9406 = vmatprep.mubr.msk.f32.mxu0 %vm414_vm0, %v327_v62 }
  0x7c   : > { %9407 = vmatmul.mubr.msk.f32.gmra.mrb[50].mxu0 %vm414_vm0, %v328_v63  ;;  %v386_v63 = vld [vmem:[%s10989_s7 + $0x368] sm:$0xff] }
  0x7d   : > { %9409 = vmatprep.mubr.msk.f32.mxu0 %vm414_vm0, %v329_v0  ;;  %v387_v0 = vld [vmem:[%s10989_s7 + $0x370] sm:$0xff] }
  0x80   : > { %9410 = vmatmul.mubr.msk.f32.gmra.mrb[52].mxu0 %vm414_vm0, %v330_v1 }
  0x81   : > { %9412 = vmatprep.mubr.msk.f32.mxu0 %vm414_vm0, %v331_v2 }
  0x84   : > { %9413 = vmatmul.mubr.msk.f32.gmra.mrb[54].mxu0 %vm414_vm0, %v332_v3 }
  0x85   : > { %9415 = vmatprep.mubr.msk.f32.mxu0 %vm414_vm0, %v333_v4 }
  0x88   : > { %9416 = vmatmul.mubr.msk.f32.gmra.mrb[56].mxu0 %vm414_vm0, %v334_v5 }
  0x89   : > { %9418 = vmatprep.mubr.msk.f32.mxu0 %vm414_vm0, %v335_v6 }
  0x8c   : > { %9419 = vmatmul.mubr.msk.f32.gmra.mrb[58].mxu0 %vm414_vm0, %v336_v7  ;;  %v388_v7 = vld [vmem:[%s10989_s7 + $0x378] sm:$0xff] }
  0x8d   : > { %9421 = vmatprep.mubr.msk.f32.mxu0 %vm414_vm0, %v337_v8  ;;  %v389_v8 = vld [vmem:[%s10989_s7 + $0x380] sm:$0xff] }
  0x90   : > { %9422 = vmatmul.mubr.msk.f32.gmra.mrb[60].mxu0 %vm414_vm0, %v338_v9 }
  0x91   : > { %9424 = vmatprep.mubr.msk.f32.mxu0 %vm414_vm0, %v339_v10 }
  0x94   : > { %9425 = vmatmul.mubr.msk.f32.gmra.mrb[62].mxu0 %vm414_vm0, %v340_v11 }
  0x95   : > { %9427 = vmatprep.mubr.msk.f32.mxu0 %vm414_vm0, %v341_v12 }
  0x98   : > { %9428 = vmatmul.mubr.msk.f32.gmra.mrb[64].mxu0 %vm414_vm0, %v342_v13 }
  0x99   : > { %9430 = vmatprep.mubr.msk.f32.mxu0 %vm414_vm0, %v343_v14 }
  0x9c   : > { %9431 = vmatmul.mubr.msk.f32.gmra.mrb[66].mxu0 %vm414_vm0, %v344_v15  ;;  %v390_v15 = vld [vmem:[%s10989_s7 + $0x388] sm:$0xff] }
  0x9d   : > { %9433 = vmatprep.mubr.msk.f32.mxu0 %vm414_vm0, %v345_v16 }
  0xa0   : > { %9434 = vmatmul.mubr.msk.f32.gmra.mrb[68].mxu0 %vm414_vm0, %v346_v17  ;;  %v391_v17 = vld [vmem:[%s10989_s7 + $0x390] sm:$0xff] }
  0xa1   : > { %9436 = vmatprep.mubr.msk.f32.mxu0 %vm414_vm0, %v347_v18 }
  0xa4   : > { %9437 = vmatmul.mubr.msk.f32.gmra.mrb[70].mxu0 %vm414_vm0, %v348_v19 }
  0xa5   : > { %9439 = vmatprep.mubr.msk.f32.mxu0 %vm414_vm0, %v349_v20 }
  0xa8   : > { %9440 = vmatmul.mubr.msk.f32.gmra.mrb[72].mxu0 %vm414_vm0, %v350_v21 }
  0xa9   : > { %9442 = vmatprep.mubr.msk.f32.mxu0 %vm414_vm0, %v351_v22 }
  0xac   : > { %9443 = vmatmul.mubr.msk.f32.gmra.mrb[74].mxu0 %vm414_vm0, %v352_v23  ;;  %v392_v23 = vld [vmem:[%s10989_s7 + $0x398] sm:$0xff] }
  0xad   : > { %9445 = vmatprep.mubr.msk.f32.mxu0 %vm414_vm0, %v353_v24 }
  0xb0   : > { %9446 = vmatmul.mubr.msk.f32.gmra.mrb[76].mxu0 %vm414_vm0, %v354_v25  ;;  %v393_v25 = vld [vmem:[%s10989_s7 + $0x3a0] sm:$0xff] }
  0xb1   : > { %9448 = vmatprep.mubr.msk.f32.mxu0 %vm414_vm0, %v355_v26 }
  0xb4   : > { %9449 = vmatmul.mubr.msk.f32.gmra.mrb[78].mxu0 %vm414_vm0, %v356_v27 }
  0xb5   : > { %9451 = vmatprep.mubr.msk.f32.mxu0 %vm414_vm0, %v357_v28 }
  0xb8   : > { %9452 = vmatmul.mubr.msk.f32.gmra.mrb[80].mxu0 %vm414_vm0, %v358_v29 }
  0xb9   : > { %9454 = vmatprep.mubr.msk.f32.mxu0 %vm414_vm0, %v359_v30 }
  0xbc   : > { %9455 = vmatmul.mubr.msk.f32.gmra.mrb[82].mxu0 %vm414_vm0, %v360_v31  ;;  %v394_v31 = vld [vmem:[%s10989_s7 + $0x3a8] sm:$0xff] }
  0xbd   : > { %9457 = vmatprep.mubr.msk.f32.mxu0 %vm414_vm0, %v361_v32 }
  0xc0   : > { %9458 = vmatmul.mubr.msk.f32.gmra.mrb[84].mxu0 %vm414_vm0, %v362_v33  ;;  %v395_v33 = vld [vmem:[%s10989_s7 + $0x3b0] sm:$0xff] }
  0xc1   : > { %9460 = vmatprep.mubr.msk.f32.mxu0 %vm414_vm0, %v363_v34 }
  0xc4   : > { %9461 = vmatmul.mubr.msk.f32.gmra.mrb[86].mxu0 %vm414_vm0, %v364_v35 }
  0xc5   : > { %9463 = vmatprep.mubr.msk.f32.mxu0 %vm414_vm0, %v365_v36 }
  0xc8   : > { %9464 = vmatmul.mubr.msk.f32.gmra.mrb[88].mxu0 %vm414_vm0, %v366_v37 }
  0xc9   : > { %9466 = vmatprep.mubr.msk.f32.mxu0 %vm414_vm0, %v367_v38 }
  0xcc   : > { %9467 = vmatmul.mubr.msk.f32.gmra.mrb[90].mxu0 %vm414_vm0, %v368_v39  ;;  %v396_v39 = vld [vmem:[%s10989_s7 + $0x3b8] sm:$0xff] }
  0xcd   : > { %9469 = vmatprep.mubr.msk.f32.mxu0 %vm414_vm0, %v369_v40 }
  0xd0   : > { %9470 = vmatmul.mubr.msk.f32.gmra.mrb[92].mxu0 %vm414_vm0, %v370_v41  ;;  %v397_v41 = vld [vmem:[%s10989_s7 + $0x3c0] sm:$0xff] }
  0xd1   : > { %9472 = vmatprep.mubr.msk.f32.mxu0 %vm414_vm0, %v371_v42 }
  0xd4   : > { %9473 = vmatmul.mubr.msk.f32.gmra.mrb[94].mxu0 %vm414_vm0, %v372_v43 }
  0xd5   : > { %9475 = vmatprep.mubr.msk.f32.mxu0 %vm414_vm0, %v373_v44 }
  0xd8   : > { %9476 = vmatmul.mubr.msk.f32.gmra.mrb[96].mxu0 %vm414_vm0, %v374_v46 }
  0xd9   : > { %9478 = vmatprep.mubr.msk.f32.mxu0 %vm414_vm0, %v375_v47  ;;  %v398_v47 = vld [vmem:[%s10989_s7 + $0x3c8] sm:$0xff] }
  0xdc   : > { %9479 = vmatmul.mubr.msk.f32.gmra.mrb[98].mxu0 %vm414_vm0, %v376_v48 }
  0xdd   : > { %9481 = vmatprep.mubr.msk.f32.mxu0 %vm414_vm0, %v377_v49  ;;  %v399_v49 = vld [vmem:[%s10989_s7 + $0x3d0] sm:$0xff] }
  0xe0   : > { %9482 = vmatmul.mubr.msk.f32.gmra.mrb[100].mxu0 %vm414_vm0, %v378_v50 }
  0xe1   : > { %9484 = vmatprep.mubr.msk.f32.mxu0 %vm414_vm0, %v379_v51 }
  0xe4   : > { %9485 = vmatmul.mubr.msk.f32.gmra.mrb[102].mxu0 %vm414_vm0, %v380_v52 }
  0xe5   : > { %9487 = vmatprep.mubr.msk.f32.mxu0 %vm414_vm0, %v381_v53 }
  0xe8   : > { %9488 = vmatmul.mubr.msk.f32.gmra.mrb[104].mxu0 %vm414_vm0, %v382_v54 }
  0xe9   : > { %9490 = vmatprep.mubr.msk.f32.mxu0 %vm414_vm0, %v383_v55  ;;  %v400_v55 = vld [vmem:[%s10989_s7 + $0x3d8] sm:$0xff] }
  0xeb   : > { %v9333_v59 = vpop.f32.mrb[0].mxu0 }
  0xec   : > { %v871_v60 = vadd.f32 %v9333_v59, %v11222_v56  ;;  %v865_v61 = vpop.f32.mrb[1].mxu0  ;;  %9491 = vmatmul.mubr.msk.f32.gmra.mrb[106].mxu0 %vm414_vm0, %v384_v57 }
  0xed   : > { %v866_v62 = vadd.f32 %v11222_v56, %v865_v61  ;;  %9493 = vmatprep.mubr.msk.f32.mxu0 %vm414_vm0, %v385_v58  ;;  %v401_v58 = vld [vmem:[%s10989_s7 + $0x3e0] sm:$0xff] }
  0xee   : > { %v1505_v3 = vmax.f32 %v871_v60, 0.0 }
  0xef   : > { %v1504_v1 = vmax.f32 %v866_v62, 0.0  ;;  %v9336_v2 = vpop.f32.mrb[2].mxu0 }
  0xf0   : > { %v881_v4 = vadd.f32 %v9336_v2, %v11222_v56  ;;  %v875_v5 = vpop.f32.mrb[3].mxu0  ;;  %9494 = vmatmul.mubr.msk.f32.gmra.mrb[108].mxu0 %vm414_vm0, %v386_v63  ;;  %v403_v2 = vld [vmem:[%s10989_s7 + $0x3f0] sm:$0xff] }
  0xf1   : > { %v876_v6 = vadd.f32 %v11222_v56, %v875_v5  ;;  %9531 = vmatprep.mubr.msk.f32.mxu1 %vm414_vm0, %v1504_v1  ;;  %9496 = vmatprep.mubr.msk.f32.mxu0 %vm414_vm0, %v387_v0  ;;  %v402_v0 = vld [vmem:[%s10989_s7 + $0x3e8] sm:$0xff] }
  0xf2   : > { %9532 = vmatmul.mubr.msk.f32.vlgmr.msra.gmra.mrb[0].mxu1 %vm414_vm0, %v1505_v3  ;;  %v1507_v11 = vmax.f32 %v881_v4, 0.0 }
  0xf3   : > { %v1506_v9 = vmax.f32 %v876_v6, 0.0  ;;  %v9339_v10 = vpop.f32.mrb[4].mxu0 }
  0xf4   : > { %v891_v12 = vadd.f32 %v9339_v10, %v11222_v56  ;;  %v885_v13 = vpop.f32.mrb[5].mxu0  ;;  %9497 = vmatmul.mubr.msk.f32.gmra.mrb[110].mxu0 %vm414_vm0, %v388_v7 }
  0xf5   : > { %v886_v14 = vadd.f32 %v11222_v56, %v885_v13  ;;  %9534 = vmatprep.mubr.msk.f32.mxu1 %vm414_vm0, %v1506_v9  ;;  %9499 = vmatprep.mubr.msk.f32.mxu0 %vm414_vm0, %v389_v8  ;;  %v404_v8 = vld [vmem:[%s10989_s7 + $0x3f8] sm:$0xff] }
  0xf6   : > { %v1509_v16 = vmax.f32 %v891_v12, 0.0  ;;  %9535 = vmatmul.mubr.msk.f32.gmra.mrb[2].mxu1 %vm414_vm0, %v1507_v11 }
  0xf7   : > { %v1508_v18 = vmax.f32 %v886_v14, 0.0  ;;  %v9342_v19 = vpop.f32.mrb[6].mxu0 }
  0xf8   : > { %v901_v20 = vadd.f32 %v9342_v19, %v11222_v56  ;;  %v895_v21 = vpop.f32.mrb[7].mxu0  ;;  %9500 = vmatmul.mubr.msk.f32.gmra.mrb[112].mxu0 %vm414_vm0, %v390_v15 }
  0xf9   : > { %v896_v22 = vadd.f32 %v11222_v56, %v895_v21  ;;  %9537 = vmatprep.mubr.msk.f32.mxu1 %vm414_vm0, %v1508_v18  ;;  %9502 = vmatprep.mubr.msk.f32.mxu0 %vm414_vm0, %v391_v17 }
  0xfa   : > { %v1511_v24 = vmax.f32 %v901_v20, 0.0  ;;  %9538 = vmatmul.mubr.msk.f32.gmra.mrb[4].mxu1 %vm414_vm0, %v1509_v16 }
  0xfb   : > { %v1510_v26 = vmax.f32 %v896_v22, 0.0  ;;  %v9345_v27 = vpop.f32.mrb[8].mxu0 }
  0xfc   : > { %v911_v28 = vadd.f32 %v9345_v27, %v11222_v56  ;;  %v905_v29 = vpop.f32.mrb[9].mxu0  ;;  %9503 = vmatmul.mubr.msk.f32.gmra.mrb[114].mxu0 %vm414_vm0, %v392_v23 }
  0xfd   : > { %v906_v30 = vadd.f32 %v11222_v56, %v905_v29  ;;  %9540 = vmatprep.mubr.msk.f32.mxu1 %vm414_vm0, %v1510_v26  ;;  %9505 = vmatprep.mubr.msk.f32.mxu0 %vm414_vm0, %v393_v25 }
  0xfe   : > { %v1513_v32 = vmax.f32 %v911_v28, 0.0  ;;  %9541 = vmatmul.mubr.msk.f32.gmra.mrb[6].mxu1 %vm414_vm0, %v1511_v24 }
  0xff   : > { %v1512_v34 = vmax.f32 %v906_v30, 0.0  ;;  %v9348_v35 = vpop.f32.mrb[10].mxu0 }
 0x100   : > { %v921_v36 = vadd.f32 %v9348_v35, %v11222_v56  ;;  %v915_v37 = vpop.f32.mrb[11].mxu0  ;;  %9506 = vmatmul.mubr.msk.f32.gmra.mrb[116].mxu0 %vm414_vm0, %v394_v31 }
 0x101   : > { %v916_v38 = vadd.f32 %v11222_v56, %v915_v37  ;;  %9543 = vmatprep.mubr.msk.f32.mxu1 %vm414_vm0, %v1512_v34  ;;  %9508 = vmatprep.mubr.msk.f32.mxu0 %vm414_vm0, %v395_v33 }
 0x102   : > { %v1515_v40 = vmax.f32 %v921_v36, 0.0  ;;  %9544 = vmatmul.mubr.msk.f32.gmra.mrb[8].mxu1 %vm414_vm0, %v1513_v32 }
 0x103   : > { %v1514_v42 = vmax.f32 %v916_v38, 0.0  ;;  %v9351_v43 = vpop.f32.mrb[12].mxu0 }
 0x104   : > { %v931_v44 = vadd.f32 %v9351_v43, %v11222_v56  ;;  %v925_v45 = vpop.f32.mrb[13].mxu0  ;;  %9509 = vmatmul.mubr.msk.f32.gmra.mrb[118].mxu0 %vm414_vm0, %v396_v39 }
 0x105   : > { %v926_v46 = vadd.f32 %v11222_v56, %v925_v45  ;;  %9546 = vmatprep.mubr.msk.f32.mxu1 %vm414_vm0, %v1514_v42  ;;  %9511 = vmatprep.mubr.msk.f32.mxu0 %vm414_vm0, %v397_v41 }
 0x106   : > { %v1517_v48 = vmax.f32 %v931_v44, 0.0  ;;  %9547 = vmatmul.mubr.msk.f32.gmra.mrb[10].mxu1 %vm414_vm0, %v1515_v40 }
 0x107   : > { %v1516_v50 = vmax.f32 %v926_v46, 0.0  ;;  %v9354_v51 = vpop.f32.mrb[14].mxu0 }
 0x108   : > { %v941_v52 = vadd.f32 %v9354_v51, %v11222_v56  ;;  %v935_v53 = vpop.f32.mrb[15].mxu0  ;;  %9512 = vmatmul.mubr.msk.f32.gmra.mrb[120].mxu0 %vm414_vm0, %v398_v47 }
 0x109   : > { %v936_v54 = vadd.f32 %v11222_v56, %v935_v53  ;;  %9549 = vmatprep.mubr.msk.f32.mxu1 %vm414_vm0, %v1516_v50  ;;  %9514 = vmatprep.mubr.msk.f32.mxu0 %vm414_vm0, %v399_v49 }
 0x10a   : > { %v1519_v57 = vmax.f32 %v941_v52, 0.0  ;;  %9550 = vmatmul.mubr.msk.f32.gmra.mrb[12].mxu1 %vm414_vm0, %v1517_v48 }
 0x10b   : > { %v1518_v59 = vmax.f32 %v936_v54, 0.0  ;;  %v9357_v60 = vpop.f32.mrb[16].mxu0 }
 0x10c   : > { %v951_v61 = vadd.f32 %v9357_v60, %v11222_v56  ;;  %v945_v62 = vpop.f32.mrb[17].mxu0  ;;  %9515 = vmatmul.mubr.msk.f32.gmra.mrb[122].mxu0 %vm414_vm0, %v400_v55 }
 0x10d   : > { %v946_v63 = vadd.f32 %v11222_v56, %v945_v62  ;;  %9552 = vmatprep.mubr.msk.f32.mxu1 %vm414_vm0, %v1518_v59  ;;  %9517 = vmatprep.mubr.msk.f32.mxu0 %vm414_vm0, %v401_v58 }
 0x10e   : > { %v1521_v1 = vmax.f32 %v951_v61, 0.0  ;;  %9553 = vmatmul.mubr.msk.f32.gmra.mrb[14].mxu1 %vm414_vm0, %v1519_v57 }
 0x10f   : > { %v1520_v3 = vmax.f32 %v946_v63, 0.0  ;;  %v9360_v4 = vpop.f32.mrb[18].mxu0 }
 0x110   : > { %v961_v5 = vadd.f32 %v9360_v4, %v11222_v56  ;;  %v955_v6 = vpop.f32.mrb[19].mxu0  ;;  %9518 = vmatmul.mubr.msk.f32.gmra.mrb[124].mxu0 %vm414_vm0, %v402_v0 }
 0x111   : > { %v956_v7 = vadd.f32 %v11222_v56, %v955_v6  ;;  %9555 = vmatprep.mubr.msk.f32.mxu1 %vm414_vm0, %v1520_v3  ;;  %9520 = vmatprep.mubr.msk.f32.mxu0 %vm414_vm0, %v403_v2 }
 0x112   : > { %v1523_v9 = vmax.f32 %v961_v5, 0.0  ;;  %9556 = vmatmul.mubr.msk.f32.gmra.mrb[16].mxu1 %vm414_vm0, %v1521_v1 }
 0x113   : > { %v1522_v10 = vmax.f32 %v956_v7, 0.0  ;;  %v9363_v11 = vpop.f32.mrb[20].mxu0 }
 0x114   : > { %v971_v12 = vadd.f32 %v9363_v11, %v11222_v56  ;;  %v965_v13 = vpop.f32.mrb[21].mxu0  ;;  %9521 = vmatmul.mubr.msk.f32.gmra.mrb[126].mxu0 %vm414_vm0, %v404_v8 }
 0x115   : > { %v966_v14 = vadd.f32 %v11222_v56, %v965_v13  ;;  %9558 = vmatprep.mubr.msk.f32.mxu1 %vm414_vm0, %v1522_v10 }
 0x116   : > { %v1525_v15 = vmax.f32 %v971_v12, 0.0  ;;  %9559 = vmatmul.mubr.msk.f32.gmra.mrb[18].mxu1 %vm414_vm0, %v1523_v9 }
 0x117   : > { %v1524_v16 = vmax.f32 %v966_v14, 0.0  ;;  %v9366_v17 = vpop.f32.mrb[22].mxu0 }
 0x118   : > { %v981_v18 = vadd.f32 %v9366_v17, %v11222_v56  ;;  %v975_v19 = vpop.f32.mrb[23].mxu0 }
 0x119   : > { %v976_v20 = vadd.f32 %v11222_v56, %v975_v19  ;;  %9561 = vmatprep.mubr.msk.f32.mxu1 %vm414_vm0, %v1524_v16 }
 0x11a   : > { %v1527_v21 = vmax.f32 %v981_v18, 0.0  ;;  %9562 = vmatmul.mubr.msk.f32.gmra.mrb[20].mxu1 %vm414_vm0, %v1525_v15 }
 0x11b   : > { %v1526_v22 = vmax.f32 %v976_v20, 0.0  ;;  %v9369_v23 = vpop.f32.mrb[24].mxu0 }
 0x11c   : > { %v991_v24 = vadd.f32 %v9369_v23, %v11222_v56  ;;  %v985_v25 = vpop.f32.mrb[25].mxu0 }
 0x11d   : > { %v986_v26 = vadd.f32 %v11222_v56, %v985_v25  ;;  %9564 = vmatprep.mubr.msk.f32.mxu1 %vm414_vm0, %v1526_v22 }
 0x11e   : > { %v1529_v27 = vmax.f32 %v991_v24, 0.0  ;;  %9565 = vmatmul.mubr.msk.f32.gmra.mrb[22].mxu1 %vm414_vm0, %v1527_v21 }
 0x11f   : > { %v1528_v28 = vmax.f32 %v986_v26, 0.0  ;;  %v9372_v29 = vpop.f32.mrb[26].mxu0 }
 0x120   : > { %v1001_v30 = vadd.f32 %v9372_v29, %v11222_v56  ;;  %v995_v31 = vpop.f32.mrb[27].mxu0 }
 0x121   : > { %v996_v32 = vadd.f32 %v11222_v56, %v995_v31  ;;  %9567 = vmatprep.mubr.msk.f32.mxu1 %vm414_vm0, %v1528_v28 }
 0x122   : > { %v1531_v33 = vmax.f32 %v1001_v30, 0.0  ;;  %9568 = vmatmul.mubr.msk.f32.gmra.mrb[24].mxu1 %vm414_vm0, %v1529_v27 }
 0x123   : > { %v1530_v34 = vmax.f32 %v996_v32, 0.0  ;;  %v9375_v35 = vpop.f32.mrb[28].mxu0 }
 0x124   : > { %v1011_v36 = vadd.f32 %v9375_v35, %v11222_v56  ;;  %v1005_v37 = vpop.f32.mrb[29].mxu0 }
 0x125   : > { %v1006_v38 = vadd.f32 %v11222_v56, %v1005_v37  ;;  %9570 = vmatprep.mubr.msk.f32.mxu1 %vm414_vm0, %v1530_v34 }
 0x126   : > { %v1533_v39 = vmax.f32 %v1011_v36, 0.0  ;;  %9571 = vmatmul.mubr.msk.f32.gmra.mrb[26].mxu1 %vm414_vm0, %v1531_v33 }
 0x127   : > { %v1532_v40 = vmax.f32 %v1006_v38, 0.0  ;;  %v9378_v41 = vpop.f32.mrb[30].mxu0 }
 0x128   : > { %v1021_v42 = vadd.f32 %v9378_v41, %v11222_v56  ;;  %v1015_v43 = vpop.f32.mrb[31].mxu0 }
 0x129   : > { %v1016_v44 = vadd.f32 %v11222_v56, %v1015_v43  ;;  %9573 = vmatprep.mubr.msk.f32.mxu1 %vm414_vm0, %v1532_v40 }
 0x12a   : > { %v1535_v45 = vmax.f32 %v1021_v42, 0.0  ;;  %9574 = vmatmul.mubr.msk.f32.gmra.mrb[28].mxu1 %vm414_vm0, %v1533_v39 }
 0x12b   : > { %v1534_v46 = vmax.f32 %v1016_v44, 0.0  ;;  %v9381_v47 = vpop.f32.mrb[32].mxu0 }
 0x12c   : > { %v1031_v48 = vadd.f32 %v9381_v47, %v11222_v56  ;;  %v1025_v49 = vpop.f32.mrb[33].mxu0 }
 0x12d   : > { %v1026_v50 = vadd.f32 %v11222_v56, %v1025_v49  ;;  %9576 = vmatprep.mubr.msk.f32.mxu1 %vm414_vm0, %v1534_v46 }
 0x12e   : > { %v1537_v51 = vmax.f32 %v1031_v48, 0.0  ;;  %9577 = vmatmul.mubr.msk.f32.gmra.mrb[30].mxu1 %vm414_vm0, %v1535_v45 }
 0x12f   : > { %v1536_v52 = vmax.f32 %v1026_v50, 0.0  ;;  %v9384_v53 = vpop.f32.mrb[34].mxu0 }
 0x130   : > { %v1041_v54 = vadd.f32 %v9384_v53, %v11222_v56  ;;  %v1035_v55 = vpop.f32.mrb[35].mxu0 }
 0x131   : > { %v1036_v57 = vadd.f32 %v11222_v56, %v1035_v55  ;;  %9579 = vmatprep.mubr.msk.f32.mxu1 %vm414_vm0, %v1536_v52 }
 0x132   : > { %v1539_v58 = vmax.f32 %v1041_v54, 0.0  ;;  %9580 = vmatmul.mubr.msk.f32.gmra.mrb[32].mxu1 %vm414_vm0, %v1537_v51 }
 0x133   : > { %v1538_v59 = vmax.f32 %v1036_v57, 0.0  ;;  %v9387_v60 = vpop.f32.mrb[36].mxu0 }
 0x134   : > { %v1051_v61 = vadd.f32 %v9387_v60, %v11222_v56  ;;  %v1045_v62 = vpop.f32.mrb[37].mxu0 }
 0x135   : > { %v1046_v63 = vadd.f32 %v11222_v56, %v1045_v62  ;;  %9582 = vmatprep.mubr.msk.f32.mxu1 %vm414_vm0, %v1538_v59 }
 0x136   : > { %v1541_v0 = vmax.f32 %v1051_v61, 0.0  ;;  %9583 = vmatmul.mubr.msk.f32.gmra.mrb[34].mxu1 %vm414_vm0, %v1539_v58 }
 0x137   : > { %v1540_v1 = vmax.f32 %v1046_v63, 0.0  ;;  %v9390_v2 = vpop.f32.mrb[38].mxu0 }
 0x138   : > { %v1061_v3 = vadd.f32 %v9390_v2, %v11222_v56  ;;  %v1055_v4 = vpop.f32.mrb[39].mxu0 }
 0x139   : > { %v1056_v5 = vadd.f32 %v11222_v56, %v1055_v4  ;;  %9585 = vmatprep.mubr.msk.f32.mxu1 %vm414_vm0, %v1540_v1 }
 0x13a   : > { %v1543_v6 = vmax.f32 %v1061_v3, 0.0  ;;  %9586 = vmatmul.mubr.msk.f32.gmra.mrb[36].mxu1 %vm414_vm0, %v1541_v0 }
 0x13b   : > { %v1542_v7 = vmax.f32 %v1056_v5, 0.0  ;;  %v9393_v8 = vpop.f32.mrb[40].mxu0 }
 0x13c   : > { %v1071_v9 = vadd.f32 %v9393_v8, %v11222_v56  ;;  %v1065_v10 = vpop.f32.mrb[41].mxu0 }
 0x13d   : > { %v1066_v11 = vadd.f32 %v11222_v56, %v1065_v10  ;;  %9588 = vmatprep.mubr.msk.f32.mxu1 %vm414_vm0, %v1542_v7 }
 0x13e   : > { %v1545_v12 = vmax.f32 %v1071_v9, 0.0  ;;  %9589 = vmatmul.mubr.msk.f32.gmra.mrb[38].mxu1 %vm414_vm0, %v1543_v6 }
 0x13f   : > { %v1544_v13 = vmax.f32 %v1066_v11, 0.0  ;;  %v9396_v14 = vpop.f32.mrb[42].mxu0 }
 0x140   : > { %v1081_v15 = vadd.f32 %v9396_v14, %v11222_v56  ;;  %v1075_v16 = vpop.f32.mrb[43].mxu0 }
 0x141   : > { %v1076_v17 = vadd.f32 %v11222_v56, %v1075_v16  ;;  %9591 = vmatprep.mubr.msk.f32.mxu1 %vm414_vm0, %v1544_v13 }
 0x142   : > { %v1547_v18 = vmax.f32 %v1081_v15, 0.0  ;;  %9592 = vmatmul.mubr.msk.f32.gmra.mrb[40].mxu1 %vm414_vm0, %v1545_v12 }
 0x143   : > { %v1546_v19 = vmax.f32 %v1076_v17, 0.0  ;;  %v9399_v20 = vpop.f32.mrb[44].mxu0 }
 0x144   : > { %v1091_v21 = vadd.f32 %v9399_v20, %v11222_v56  ;;  %v1085_v22 = vpop.f32.mrb[45].mxu0 }
 0x145   : > { %v1086_v23 = vadd.f32 %v11222_v56, %v1085_v22  ;;  %9594 = vmatprep.mubr.msk.f32.mxu1 %vm414_vm0, %v1546_v19 }
 0x146   : > { %v1549_v24 = vmax.f32 %v1091_v21, 0.0  ;;  %9595 = vmatmul.mubr.msk.f32.gmra.mrb[42].mxu1 %vm414_vm0, %v1547_v18 }
 0x147   : > { %v1548_v25 = vmax.f32 %v1086_v23, 0.0  ;;  %v9402_v26 = vpop.f32.mrb[46].mxu0 }
 0x148   : > { %v1101_v27 = vadd.f32 %v9402_v26, %v11222_v56  ;;  %v1095_v28 = vpop.f32.mrb[47].mxu0 }
 0x149   : > { %v1096_v29 = vadd.f32 %v11222_v56, %v1095_v28  ;;  %9597 = vmatprep.mubr.msk.f32.mxu1 %vm414_vm0, %v1548_v25 }
 0x14a   : > { %v1551_v30 = vmax.f32 %v1101_v27, 0.0  ;;  %9598 = vmatmul.mubr.msk.f32.gmra.mrb[44].mxu1 %vm414_vm0, %v1549_v24 }
 0x14b   : > { %v1550_v31 = vmax.f32 %v1096_v29, 0.0  ;;  %v9405_v32 = vpop.f32.mrb[48].mxu0 }
 0x14c   : > { %v1111_v33 = vadd.f32 %v9405_v32, %v11222_v56  ;;  %v1105_v34 = vpop.f32.mrb[49].mxu0 }
 0x14d   : > { %v1106_v35 = vadd.f32 %v11222_v56, %v1105_v34  ;;  %9600 = vmatprep.mubr.msk.f32.mxu1 %vm414_vm0, %v1550_v31 }
 0x14e   : > { %v1553_v36 = vmax.f32 %v1111_v33, 0.0  ;;  %9601 = vmatmul.mubr.msk.f32.gmra.mrb[46].mxu1 %vm414_vm0, %v1551_v30 }
 0x14f   : > { %v1552_v37 = vmax.f32 %v1106_v35, 0.0  ;;  %v9408_v38 = vpop.f32.mrb[50].mxu0 }
 0x150   : > { %v1121_v39 = vadd.f32 %v9408_v38, %v11222_v56  ;;  %v1115_v40 = vpop.f32.mrb[51].mxu0 }
 0x151   : > { %v1116_v41 = vadd.f32 %v11222_v56, %v1115_v40  ;;  %9603 = vmatprep.mubr.msk.f32.mxu1 %vm414_vm0, %v1552_v37 }
 0x152   : > { %v1555_v42 = vmax.f32 %v1121_v39, 0.0  ;;  %9604 = vmatmul.mubr.msk.f32.gmra.mrb[48].mxu1 %vm414_vm0, %v1553_v36 }
 0x153   : > { %v1554_v43 = vmax.f32 %v1116_v41, 0.0  ;;  %v9411_v44 = vpop.f32.mrb[52].mxu0 }
 0x154   : > { %v1131_v45 = vadd.f32 %v9411_v44, %v11222_v56  ;;  %v1125_v46 = vpop.f32.mrb[53].mxu0 }
 0x155   : > { %v1126_v47 = vadd.f32 %v11222_v56, %v1125_v46  ;;  %9606 = vmatprep.mubr.msk.f32.mxu1 %vm414_vm0, %v1554_v43 }
 0x156   : > { %v1557_v48 = vmax.f32 %v1131_v45, 0.0  ;;  %9607 = vmatmul.mubr.msk.f32.gmra.mrb[50].mxu1 %vm414_vm0, %v1555_v42 }
 0x157   : > { %v1556_v49 = vmax.f32 %v1126_v47, 0.0  ;;  %v9414_v50 = vpop.f32.mrb[54].mxu0 }
 0x158   : > { %v1141_v51 = vadd.f32 %v9414_v50, %v11222_v56  ;;  %v1135_v52 = vpop.f32.mrb[55].mxu0 }
 0x159   : > { %v1136_v53 = vadd.f32 %v11222_v56, %v1135_v52  ;;  %9609 = vmatprep.mubr.msk.f32.mxu1 %vm414_vm0, %v1556_v49 }
 0x15a   : > { %v1559_v54 = vmax.f32 %v1141_v51, 0.0  ;;  %9610 = vmatmul.mubr.msk.f32.gmra.mrb[52].mxu1 %vm414_vm0, %v1557_v48 }
 0x15b   : > { %v1558_v55 = vmax.f32 %v1136_v53, 0.0  ;;  %v9417_v57 = vpop.f32.mrb[56].mxu0 }
 0x15c   : > { %v1151_v58 = vadd.f32 %v9417_v57, %v11222_v56  ;;  %v1145_v59 = vpop.f32.mrb[57].mxu0 }
 0x15d   : > { %v1146_v60 = vadd.f32 %v11222_v56, %v1145_v59  ;;  %9612 = vmatprep.mubr.msk.f32.mxu1 %vm414_vm0, %v1558_v55 }
 0x15e   : > { %v1561_v61 = vmax.f32 %v1151_v58, 0.0  ;;  %9613 = vmatmul.mubr.msk.f32.gmra.mrb[54].mxu1 %vm414_vm0, %v1559_v54 }
 0x15f   : > { %v1560_v62 = vmax.f32 %v1146_v60, 0.0  ;;  %v9420_v63 = vpop.f32.mrb[58].mxu0 }
 0x160   : > { %v1161_v0 = vadd.f32 %v9420_v63, %v11222_v56  ;;  %v1155_v1 = vpop.f32.mrb[59].mxu0 }
 0x161   : > { %v1156_v2 = vadd.f32 %v11222_v56, %v1155_v1  ;;  %9615 = vmatprep.mubr.msk.f32.mxu1 %vm414_vm0, %v1560_v62 }
 0x162   : > { %v1563_v3 = vmax.f32 %v1161_v0, 0.0  ;;  %9616 = vmatmul.mubr.msk.f32.gmra.mrb[56].mxu1 %vm414_vm0, %v1561_v61 }
 0x163   : > { %v1562_v4 = vmax.f32 %v1156_v2, 0.0  ;;  %v9423_v5 = vpop.f32.mrb[60].mxu0 }
 0x164   : > { %v1171_v6 = vadd.f32 %v9423_v5, %v11222_v56  ;;  %v1165_v7 = vpop.f32.mrb[61].mxu0 }
 0x165   : > { %v1166_v8 = vadd.f32 %v11222_v56, %v1165_v7  ;;  %9618 = vmatprep.mubr.msk.f32.mxu1 %vm414_vm0, %v1562_v4 }
 0x166   : > { %v1565_v9 = vmax.f32 %v1171_v6, 0.0  ;;  %9619 = vmatmul.mubr.msk.f32.gmra.mrb[58].mxu1 %vm414_vm0, %v1563_v3 }
 0x167   : > { %v1564_v10 = vmax.f32 %v1166_v8, 0.0  ;;  %v9426_v11 = vpop.f32.mrb[62].mxu0 }
 0x168   : > { %v1181_v12 = vadd.f32 %v9426_v11, %v11222_v56  ;;  %v1175_v13 = vpop.f32.mrb[63].mxu0 }
 0x169   : > { %v1176_v14 = vadd.f32 %v11222_v56, %v1175_v13  ;;  %9621 = vmatprep.mubr.msk.f32.mxu1 %vm414_vm0, %v1564_v10 }
 0x16a   : > { %v1567_v15 = vmax.f32 %v1181_v12, 0.0  ;;  %9622 = vmatmul.mubr.msk.f32.gmra.mrb[60].mxu1 %vm414_vm0, %v1565_v9 }
 0x16b   : > { %v1566_v16 = vmax.f32 %v1176_v14, 0.0  ;;  %v9429_v17 = vpop.f32.mrb[64].mxu0 }
 0x16c   : > { %v1191_v18 = vadd.f32 %v9429_v17, %v11222_v56  ;;  %v1185_v19 = vpop.f32.mrb[65].mxu0 }
 0x16d   : > { %v1186_v20 = vadd.f32 %v11222_v56, %v1185_v19  ;;  %9624 = vmatprep.mubr.msk.f32.mxu1 %vm414_vm0, %v1566_v16 }
 0x16e   : > { %v1569_v21 = vmax.f32 %v1191_v18, 0.0  ;;  %9625 = vmatmul.mubr.msk.f32.gmra.mrb[62].mxu1 %vm414_vm0, %v1567_v15 }
 0x16f   : > { %v1568_v22 = vmax.f32 %v1186_v20, 0.0  ;;  %v9432_v23 = vpop.f32.mrb[66].mxu0 }
 0x170   : > { %v1201_v24 = vadd.f32 %v9432_v23, %v11222_v56  ;;  %v1195_v25 = vpop.f32.mrb[67].mxu0 }
 0x171   : > { %v1196_v26 = vadd.f32 %v11222_v56, %v1195_v25  ;;  %9627 = vmatprep.mubr.msk.f32.mxu1 %vm414_vm0, %v1568_v22 }
 0x172   : > { %v1571_v27 = vmax.f32 %v1201_v24, 0.0  ;;  %9628 = vmatmul.mubr.msk.f32.gmra.mrb[64].mxu1 %vm414_vm0, %v1569_v21 }
 0x173   : > { %v1570_v28 = vmax.f32 %v1196_v26, 0.0  ;;  %v9435_v29 = vpop.f32.mrb[68].mxu0 }
 0x174   : > { %v1211_v30 = vadd.f32 %v9435_v29, %v11222_v56  ;;  %v1205_v31 = vpop.f32.mrb[69].mxu0 }
 0x175   : > { %v1206_v32 = vadd.f32 %v11222_v56, %v1205_v31  ;;  %9630 = vmatprep.mubr.msk.f32.mxu1 %vm414_vm0, %v1570_v28 }
 0x176   : > { %v1573_v33 = vmax.f32 %v1211_v30, 0.0  ;;  %9631 = vmatmul.mubr.msk.f32.gmra.mrb[66].mxu1 %vm414_vm0, %v1571_v27 }
 0x177   : > { %v1572_v34 = vmax.f32 %v1206_v32, 0.0  ;;  %v9438_v35 = vpop.f32.mrb[70].mxu0 }
 0x178   : > { %v1221_v36 = vadd.f32 %v9438_v35, %v11222_v56  ;;  %v1215_v37 = vpop.f32.mrb[71].mxu0 }
 0x179   : > { %v1216_v38 = vadd.f32 %v11222_v56, %v1215_v37  ;;  %9633 = vmatprep.mubr.msk.f32.mxu1 %vm414_vm0, %v1572_v34 }
 0x17a   : > { %v1575_v39 = vmax.f32 %v1221_v36, 0.0  ;;  %9634 = vmatmul.mubr.msk.f32.gmra.mrb[68].mxu1 %vm414_vm0, %v1573_v33 }
 0x17b   : > { %v1574_v40 = vmax.f32 %v1216_v38, 0.0  ;;  %v9441_v41 = vpop.f32.mrb[72].mxu0 }
 0x17c   : > { %v1231_v42 = vadd.f32 %v9441_v41, %v11222_v56  ;;  %v1225_v43 = vpop.f32.mrb[73].mxu0 }
 0x17d   : > { %v1226_v44 = vadd.f32 %v11222_v56, %v1225_v43  ;;  %9636 = vmatprep.mubr.msk.f32.mxu1 %vm414_vm0, %v1574_v40 }
 0x17e   : > { %v1577_v45 = vmax.f32 %v1231_v42, 0.0  ;;  %9637 = vmatmul.mubr.msk.f32.gmra.mrb[70].mxu1 %vm414_vm0, %v1575_v39 }
 0x17f   : > { %v1576_v46 = vmax.f32 %v1226_v44, 0.0  ;;  %v9444_v47 = vpop.f32.mrb[74].mxu0 }
 0x180   : > { %v1241_v48 = vadd.f32 %v9444_v47, %v11222_v56  ;;  %v1235_v49 = vpop.f32.mrb[75].mxu0 }
 0x181   : > { %v1236_v50 = vadd.f32 %v11222_v56, %v1235_v49  ;;  %9639 = vmatprep.mubr.msk.f32.mxu1 %vm414_vm0, %v1576_v46 }
 0x182   : > { %v1579_v51 = vmax.f32 %v1241_v48, 0.0  ;;  %9640 = vmatmul.mubr.msk.f32.gmra.mrb[72].mxu1 %vm414_vm0, %v1577_v45 }
 0x183   : > { %v1578_v52 = vmax.f32 %v1236_v50, 0.0  ;;  %v9447_v53 = vpop.f32.mrb[76].mxu0 }
 0x184   : > { %v1251_v54 = vadd.f32 %v9447_v53, %v11222_v56  ;;  %v1245_v55 = vpop.f32.mrb[77].mxu0 }
 0x185   : > { %v1246_v57 = vadd.f32 %v11222_v56, %v1245_v55  ;;  %9642 = vmatprep.mubr.msk.f32.mxu1 %vm414_vm0, %v1578_v52 }
 0x186   : > { %v1581_v58 = vmax.f32 %v1251_v54, 0.0  ;;  %9643 = vmatmul.mubr.msk.f32.gmra.mrb[74].mxu1 %vm414_vm0, %v1579_v51 }
 0x187   : > { %v1580_v59 = vmax.f32 %v1246_v57, 0.0  ;;  %v9450_v60 = vpop.f32.mrb[78].mxu0 }
 0x188   : > { %v1261_v61 = vadd.f32 %v9450_v60, %v11222_v56  ;;  %v1255_v62 = vpop.f32.mrb[79].mxu0 }
 0x189   : > { %v1256_v63 = vadd.f32 %v11222_v56, %v1255_v62  ;;  %9645 = vmatprep.mubr.msk.f32.mxu1 %vm414_vm0, %v1580_v59  ;;  %v5239_v62 = vld [vmem:[%s14169_s2 + $0x28] sm:$0xff] }
 0x18a   : > { %v1583_v0 = vmax.f32 %v1261_v61, 0.0  ;;  %9646 = vmatmul.mubr.msk.f32.gmra.mrb[76].mxu1 %vm414_vm0, %v1581_v58  ;;  %v5238_v61 = vld [vmem:[%s14169_s2 + $0x20] sm:$0xff] }
 0x18b   : > { %v1582_v1 = vmax.f32 %v1256_v63, 0.0  ;;  %v9453_v2 = vpop.f32.mrb[80].mxu0 }
 0x18c   : > { %v1271_v3 = vadd.f32 %v9453_v2, %v11222_v56  ;;  %v1265_v4 = vpop.f32.mrb[81].mxu0 }
 0x18d   : > { %v1266_v5 = vadd.f32 %v11222_v56, %v1265_v4  ;;  %9648 = vmatprep.mubr.msk.f32.mxu1 %vm414_vm0, %v1582_v1 }
 0x18e   : > { %v1585_v6 = vmax.f32 %v1271_v3, 0.0  ;;  %9649 = vmatmul.mubr.msk.f32.gmra.mrb[78].mxu1 %vm414_vm0, %v1583_v0  ;;  %v10133_v0 = vpack.c.bf16 %v5239_v62, %v5238_v61 }
 0x18f   : > { %v1584_v7 = vmax.f32 %v1266_v5, 0.0  ;;  %v9456_v8 = vpop.f32.mrb[82].mxu0 }
 0x190   : > { %v1281_v9 = vadd.f32 %v9456_v8, %v11222_v56  ;;  %v1275_v10 = vpop.f32.mrb[83].mxu0  ;;  %10134 = vmatprep.subr.bf16.mxu1 %v10133_v0 }
 0x191   : > { %v1276_v11 = vadd.f32 %v11222_v56, %v1275_v10  ;;  %9651 = vmatprep.mubr.msk.f32.mxu1 %vm414_vm0, %v1584_v7  ;;  %10136 = vmatpush3.bf16.msra.mxu1 %v10133_v0 }
 0x192   : > { %v1587_v12 = vmax.f32 %v1281_v9, 0.0  ;;  %9652 = vmatmul.mubr.msk.f32.gmra.mrb[80].mxu1 %vm414_vm0, %v1585_v6 }
 0x193   : > { %v1586_v13 = vmax.f32 %v1276_v11, 0.0  ;;  %v9459_v14 = vpop.f32.mrb[84].mxu0 }
 0x194   : > { %v1291_v15 = vadd.f32 %v9459_v14, %v11222_v56  ;;  %v1285_v16 = vpop.f32.mrb[85].mxu0 }
 0x195   : > { %v1286_v17 = vadd.f32 %v11222_v56, %v1285_v16  ;;  %9654 = vmatprep.mubr.msk.f32.mxu1 %vm414_vm0, %v1586_v13 }
 0x196   : > { %v1589_v18 = vmax.f32 %v1291_v15, 0.0  ;;  %9655 = vmatmul.mubr.msk.f32.gmra.mrb[82].mxu1 %vm414_vm0, %v1587_v12 }
 0x197   : > { %v1588_v19 = vmax.f32 %v1286_v17, 0.0  ;;  %v9462_v20 = vpop.f32.mrb[86].mxu0 }
 0x198   : > { %v1301_v21 = vadd.f32 %v9462_v20, %v11222_v56  ;;  %v1295_v22 = vpop.f32.mrb[87].mxu0 }
 0x199   : > { %v1296_v23 = vadd.f32 %v11222_v56, %v1295_v22  ;;  %9657 = vmatprep.mubr.msk.f32.mxu1 %vm414_vm0, %v1588_v19 }
 0x19a   : > { %v1591_v24 = vmax.f32 %v1301_v21, 0.0  ;;  %9658 = vmatmul.mubr.msk.f32.gmra.mrb[84].mxu1 %vm414_vm0, %v1589_v18 }
 0x19b   : > { %v1590_v25 = vmax.f32 %v1296_v23, 0.0  ;;  %v9465_v26 = vpop.f32.mrb[88].mxu0 }
 0x19c   : > { %v1311_v27 = vadd.f32 %v9465_v26, %v11222_v56  ;;  %v1305_v28 = vpop.f32.mrb[89].mxu0 }
 0x19d   : > { %v1306_v29 = vadd.f32 %v11222_v56, %v1305_v28  ;;  %9660 = vmatprep.mubr.msk.f32.mxu1 %vm414_vm0, %v1590_v25 }
 0x19e   : > { %v1593_v30 = vmax.f32 %v1311_v27, 0.0  ;;  %9661 = vmatmul.mubr.msk.f32.gmra.mrb[86].mxu1 %vm414_vm0, %v1591_v24  ;;  %v11490_v27 = vld [vmem:[%s14169_s2 + $0x66] ss:$0 sm:$0xff] }
 0x19f   : > { %v1592_v31 = vmax.f32 %v1306_v29, 0.0  ;;  %v9468_v32 = vpop.f32.mrb[90].mxu0 }
 0x1a0   : > { %v1321_v33 = vadd.f32 %v9468_v32, %v11222_v56  ;;  %v1315_v34 = vpop.f32.mrb[91].mxu0 }
 0x1a1   : > { %v1316_v35 = vadd.f32 %v11222_v56, %v1315_v34  ;;  %9663 = vmatprep.mubr.msk.f32.mxu1 %vm414_vm0, %v1592_v31 }
 0x1a2   : > { %v1595_v36 = vmax.f32 %v1321_v33, 0.0  ;;  %9664 = vmatmul.mubr.msk.f32.gmra.mrb[88].mxu1 %vm414_vm0, %v1593_v30 }
 0x1a3   : > { %v1594_v37 = vmax.f32 %v1316_v35, 0.0  ;;  %v9471_v38 = vpop.f32.mrb[92].mxu0 }
 0x1a4   : > { %v1331_v39 = vadd.f32 %v9471_v38, %v11222_v56  ;;  %v1325_v40 = vpop.f32.mrb[93].mxu0 }
 0x1a5   : > { %v1326_v41 = vadd.f32 %v11222_v56, %v1325_v40  ;;  %9666 = vmatprep.mubr.msk.f32.mxu1 %vm414_vm0, %v1594_v37 }
 0x1a6   : > { %v1597_v42 = vmax.f32 %v1331_v39, 0.0  ;;  %9667 = vmatmul.mubr.msk.f32.gmra.mrb[90].mxu1 %vm414_vm0, %v1595_v36 }
 0x1a7   : > { %v1596_v43 = vmax.f32 %v1326_v41, 0.0  ;;  %v9474_v44 = vpop.f32.mrb[94].mxu0 }
 0x1a8   : > { %v1341_v45 = vadd.f32 %v9474_v44, %v11222_v56  ;;  %v1335_v46 = vpop.f32.mrb[95].mxu0 }
 0x1a9   : > { %v1336_v47 = vadd.f32 %v11222_v56, %v1335_v46  ;;  %9669 = vmatprep.mubr.msk.f32.mxu1 %vm414_vm0, %v1596_v43 }
 0x1aa   : > { %v1599_v48 = vmax.f32 %v1341_v45, 0.0  ;;  %9670 = vmatmul.mubr.msk.f32.gmra.mrb[92].mxu1 %vm414_vm0, %v1597_v42 }
 0x1ab   : > { %v1598_v49 = vmax.f32 %v1336_v47, 0.0  ;;  %v9477_v50 = vpop.f32.mrb[96].mxu0 }
 0x1ac   : > { %v1351_v51 = vadd.f32 %v9477_v50, %v11222_v56  ;;  %v1345_v52 = vpop.f32.mrb[97].mxu0 }
 0x1ad   : > { %v1346_v53 = vadd.f32 %v11222_v56, %v1345_v52  ;;  %9672 = vmatprep.mubr.msk.f32.mxu1 %vm414_vm0, %v1598_v49  ;;  %v11533_v52 = vld [vmem:[%s14169_s2 + $0x63] ss:$0 sm:$0xff] }
 0x1ae   : > { %v1601_v54 = vmax.f32 %v1351_v51, 0.0  ;;  %9673 = vmatmul.mubr.msk.f32.gmra.mrb[94].mxu1 %vm414_vm0, %v1599_v48 }
 0x1af   : > { %v1600_v55 = vmax.f32 %v1346_v53, 0.0  ;;  %v9480_v57 = vpop.f32.mrb[98].mxu0 }
 0x1b0   : > { %v1361_v58 = vadd.f32 %v9480_v57, %v11222_v56  ;;  %v1355_v59 = vpop.f32.mrb[99].mxu0 }
 0x1b1   : > { %v1356_v60 = vadd.f32 %v11222_v56, %v1355_v59  ;;  %9675 = vmatprep.mubr.msk.f32.mxu1 %vm414_vm0, %v1600_v55 }
 0x1b2   : > { %v1603_v63 = vmax.f32 %v1361_v58, 0.0  ;;  %9676 = vmatmul.mubr.msk.f32.gmra.mrb[96].mxu1 %vm414_vm0, %v1601_v54 }
 0x1b3   : > { %v1602_v1 = vmax.f32 %v1356_v60, 0.0  ;;  %v9483_v2 = vpop.f32.mrb[100].mxu0 }
 0x1b4   : > { %v1371_v3 = vadd.f32 %v9483_v2, %v11222_v56  ;;  %v1365_v4 = vpop.f32.mrb[101].mxu0 }
 0x1b5   : > { %v1366_v5 = vadd.f32 %v11222_v56, %v1365_v4  ;;  %9678 = vmatprep.mubr.msk.f32.mxu1 %vm414_vm0, %v1602_v1 }
 0x1b6   : > { %v1605_v6 = vmax.f32 %v1371_v3, 0.0  ;;  %9679 = vmatmul.mubr.msk.f32.gmra.mrb[98].mxu1 %vm414_vm0, %v1603_v63 }
 0x1b7   : > { %v1604_v7 = vmax.f32 %v1366_v5, 0.0  ;;  %v9486_v8 = vpop.f32.mrb[102].mxu0 }
 0x1b8   : > { %v1381_v9 = vadd.f32 %v9486_v8, %v11222_v56  ;;  %v1375_v10 = vpop.f32.mrb[103].mxu0 }
 0x1b9   : > { %v1376_v11 = vadd.f32 %v11222_v56, %v1375_v10  ;;  %9681 = vmatprep.mubr.msk.f32.mxu1 %vm414_vm0, %v1604_v7 }
 0x1ba   : > { %v1607_v12 = vmax.f32 %v1381_v9, 0.0  ;;  %9682 = vmatmul.mubr.msk.f32.gmra.mrb[100].mxu1 %vm414_vm0, %v1605_v6 }
 0x1bb   : > { %v1606_v13 = vmax.f32 %v1376_v11, 0.0  ;;  %v9489_v14 = vpop.f32.mrb[104].mxu0 }
 0x1bc   : > { %v1391_v15 = vadd.f32 %v9489_v14, %v11222_v56  ;;  %v1385_v16 = vpop.f32.mrb[105].mxu0 }
 0x1bd   : > { %v1386_v17 = vadd.f32 %v11222_v56, %v1385_v16  ;;  %9684 = vmatprep.mubr.msk.f32.mxu1 %vm414_vm0, %v1606_v13 }
 0x1be   : > { %v1609_v18 = vmax.f32 %v1391_v15, 0.0  ;;  %9685 = vmatmul.mubr.msk.f32.gmra.mrb[102].mxu1 %vm414_vm0, %v1607_v12 }
 0x1bf   : > { %v1608_v19 = vmax.f32 %v1386_v17, 0.0  ;;  %v9492_v20 = vpop.f32.mrb[106].mxu0 }
 0x1c0   : > { %v1401_v21 = vadd.f32 %v9492_v20, %v11222_v56  ;;  %v1395_v22 = vpop.f32.mrb[107].mxu0 }
 0x1c1   : > { %v1396_v23 = vadd.f32 %v11222_v56, %v1395_v22  ;;  %9687 = vmatprep.mubr.msk.f32.mxu1 %vm414_vm0, %v1608_v19 }
 0x1c2   : > { %v1611_v24 = vmax.f32 %v1401_v21, 0.0  ;;  %9688 = vmatmul.mubr.msk.f32.gmra.mrb[104].mxu1 %vm414_vm0, %v1609_v18 }
 0x1c3   : > { %v1610_v25 = vmax.f32 %v1396_v23, 0.0  ;;  %v9495_v26 = vpop.f32.mrb[108].mxu0 }
 0x1c4   : > { %v1411_v28 = vadd.f32 %v9495_v26, %v11222_v56  ;;  %v1405_v29 = vpop.f32.mrb[109].mxu0 }
 0x1c5   : > { %v1406_v30 = vadd.f32 %v11222_v56, %v1405_v29  ;;  %v9533_v31 = vpop.f32.mrb[0].mxu1  ;;  %9690 = vmatprep.mubr.msk.f32.mxu1 %vm414_vm0, %v1610_v25 }
 0x1c6   : > { %v1613_v32 = vmax.f32 %v1411_v28, 0.0  ;;  %v11502_v33 = vadd.f32 %v9533_v31, %v11490_v27  ;;  %v2091_v34 = vpop.f32.mrb[1].mxu1  ;;  %9691 = vmatmul.mubr.msk.f32.gmra.mrb[106].mxu1 %vm414_vm0, %v1611_v24 }
 0x1c7   : > { %v1612_v35 = vmax.f32 %v1406_v30, 0.0  ;;  %v11506_v36 = vadd.f32 %v11490_v27, %v2091_v34  ;;  %v9498_v37 = vpop.f32.mrb[110].mxu0 }
 0x1c8   : > { %v2859_v38 = vmul.f32 0.5, %v11502_v33  ;;  %7233 = vst.msk [vmem:[%s11498_s30 + $0x8] sm:$0xff] %vm4016_vm2, %v11502_v33  ;;  %v1421_v39 = vadd.f32 %v9498_v37, %v11222_v56  ;;  %v1415_v40 = vpop.f32.mrb[111].mxu0 }
 0x1c9   : > { %14305 = vst [vmem:[#allocation2_spill] sm:$0xff] %v11506_v36  ;;  %v2858_v41 = vmul.f32 0.5, %v11506_v36  ;;  %7232 = vst.msk [vmem:[%s11498_s30] sm:$0xff] %vm4016_vm2, %v11506_v36  ;;  %v1416_v42 = vadd.f32 %v11222_v56, %v1415_v40  ;;  %v9536_v43 = vpop.f32.mrb[2].mxu1  ;;  %9693 = vmatprep.mubr.msk.f32.mxu1 %vm414_vm0, %v1612_v35 }
 0x1ca   : > { %v1615_v44 = vmax.f32 %v1421_v39, 0.0  ;;  %v11520_v45 = vadd.f32 %v9536_v43, %v11490_v27  ;;  %v2101_v46 = vpop.f32.mrb[3].mxu1  ;;  %9694 = vmatmul.mubr.msk.f32.gmra.mrb[108].mxu1 %vm414_vm0, %v1613_v32  ;;  %v2988_v51 = vmul.f32 1.442695, %v2859_v38 }
 0x1cb   : > { %v2986_v47 = vmul.f32 1.442695, %v2858_v41  ;;  %v1614_v48 = vmax.f32 %v1416_v42, 0.0  ;;  %v11524_v49 = vadd.f32 %v11490_v27, %v2101_v46  ;;  %v9501_v50 = vpop.f32.mrb[112].mxu0 }
 0x1cc   : > { %14306 = vst [vmem:[#allocation3_spill] sm:$0xff] %v11520_v45  ;;  %v2861_v56 = vmul.f32 0.5, %v11520_v45  ;;  %7235 = vst.msk [vmem:[%s11498_s30 + $0x18] sm:$0xff] %vm4016_vm2, %v11520_v45  ;;  %v1431_v53 = vadd.f32 %v11533_v52, %v9501_v50  ;;  %v1425_v54 = vpop.f32.mrb[113].mxu0 }
 0x1cd   : > { %14307 = vst [vmem:[#allocation4_spill] sm:$0xff] %v11524_v49  ;;  %10150 = vpow2.f32 %v2986_v47  ;;  %v2860_v55 = vmul.f32 0.5, %v11524_v49  ;;  %7234 = vst.msk [vmem:[%s11498_s30 + $0x10] sm:$0xff] %vm4016_vm2, %v11524_v49  ;;  %v1426_v57 = vadd.f32 %v11533_v52, %v1425_v54  ;;  %v9539_v58 = vpop.f32.mrb[4].mxu1  ;;  %9696 = vmatprep.mubr.msk.f32.mxu1 %vm414_vm0, %v1614_v48 }
 0x1ce   : > { %v1617_v59 = vmax.f32 %v1431_v53, 0.0  ;;  %v11543_v60 = vadd.f32 %v9539_v58, %v11490_v27  ;;  %v2111_v61 = vpop.f32.mrb[5].mxu1  ;;  %9697 = vmatmul.mubr.msk.f32.gmra.mrb[110].mxu1 %vm414_vm0, %v1615_v44  ;;  %10152 = vpow2.f32 %v2988_v51  ;;  %v2992_v2 = vmul.f32 1.442695, %v2861_v56 }
 0x1cf   : > { %v2990_v62 = vmul.f32 1.442695, %v2860_v55  ;;  %v1616_v63 = vmax.f32 %v1426_v57, 0.0  ;;  %v11547_v0 = vadd.f32 %v11490_v27, %v2111_v61  ;;  %v9504_v1 = vpop.f32.mrb[114].mxu0 }
 0x1d0   : > { %14308 = vst [vmem:[#allocation5_spill] sm:$0xff] %v11543_v60  ;;  %v2863_v3 = vmul.f32 0.5, %v11543_v60  ;;  %7237 = vst.msk [vmem:[%s11498_s30 + $0x28] sm:$0xff] %vm4016_vm2, %v11543_v60  ;;  %v1441_v4 = vadd.f32 %v11533_v52, %v9504_v1  ;;  %v1435_v5 = vpop.f32.mrb[115].mxu0 }
 0x1d1   : > { %14309 = vst [vmem:[#allocation6_spill] sm:$0xff] %v11547_v0  ;;  %10154 = vpow2.f32 %v2990_v62  ;;  %v2862_v6 = vmul.f32 0.5, %v11547_v0  ;;  %7236 = vst.msk [vmem:[%s11498_s30 + $0x20] sm:$0xff] %vm4016_vm2, %v11547_v0  ;;  %v1436_v7 = vadd.f32 %v11533_v52, %v1435_v5  ;;  %v9542_v8 = vpop.f32.mrb[6].mxu1  ;;  %9699 = vmatprep.mubr.msk.f32.mxu1 %vm414_vm0, %v1616_v63 }
 0x1d2   : > { %v1619_v9 = vmax.f32 %v1441_v4, 0.0  ;;  %v11561_v10 = vadd.f32 %v9542_v8, %v11490_v27  ;;  %v2121_v11 = vpop.f32.mrb[7].mxu1  ;;  %9700 = vmatmul.mubr.msk.f32.gmra.mrb[112].mxu1 %vm414_vm0, %v1617_v59  ;;  %10156 = vpow2.f32 %v2992_v2  ;;  %v2996_v16 = vmul.f32 1.442695, %v2863_v3 }
 0x1d3   : > { %v2994_v12 = vmul.f32 1.442695, %v2862_v6  ;;  %v1618_v13 = vmax.f32 %v1436_v7, 0.0  ;;  %v11565_v14 = vadd.f32 %v11490_v27, %v2121_v11  ;;  %v9507_v15 = vpop.f32.mrb[116].mxu0 }
 0x1d4   : > { %14310 = vst [vmem:[#allocation7_spill] sm:$0xff] %v11561_v10  ;;  %v2865_v17 = vmul.f32 0.5, %v11561_v10  ;;  %7239 = vst.msk [vmem:[%s11498_s30 + $0x38] sm:$0xff] %vm4016_vm2, %v11561_v10  ;;  %v1451_v18 = vadd.f32 %v11533_v52, %v9507_v15  ;;  %v1445_v19 = vpop.f32.mrb[117].mxu0 }
 0x1d5   : > { %14311 = vst [vmem:[#allocation8_spill] sm:$0xff] %v11565_v14  ;;  %10158 = vpow2.f32 %v2994_v12  ;;  %v2864_v20 = vmul.f32 0.5, %v11565_v14  ;;  %7238 = vst.msk [vmem:[%s11498_s30 + $0x30] sm:$0xff] %vm4016_vm2, %v11565_v14  ;;  %v1446_v21 = vadd.f32 %v11533_v52, %v1445_v19  ;;  %v9545_v22 = vpop.f32.mrb[8].mxu1  ;;  %9702 = vmatprep.mubr.msk.f32.mxu1 %vm414_vm0, %v1618_v13 }
 0x1d6   : > { %v1621_v23 = vmax.f32 %v1451_v18, 0.0  ;;  %v11579_v24 = vadd.f32 %v9545_v22, %v11490_v27  ;;  %v2131_v25 = vpop.f32.mrb[9].mxu1  ;;  %9703 = vmatmul.mubr.msk.f32.gmra.mrb[114].mxu1 %vm414_vm0, %v1619_v9  ;;  %10160 = vpow2.f32 %v2996_v16  ;;  %v3000_v32 = vmul.f32 1.442695, %v2865_v17 }
 0x1d7   : > { %v10151_v26 = vpop.eup %10150  ;;  %v2998_v28 = vmul.f32 1.442695, %v2864_v20  ;;  %v1620_v29 = vmax.f32 %v1446_v21, 0.0  ;;  %v11583_v30 = vadd.f32 %v11490_v27, %v2131_v25  ;;  %v9510_v31 = vpop.f32.mrb[118].mxu0 }
 0x1d8   : > { %14312 = vst [vmem:[#allocation9_spill] sm:$0xff] %v11579_v24  ;;  %v2867_v34 = vmul.f32 0.5, %v11579_v24  ;;  %7241 = vst.msk [vmem:[%s11498_s30 + $0x48] sm:$0xff] %vm4016_vm2, %v11579_v24  ;;  %v1461_v35 = vadd.f32 %v11533_v52, %v9510_v31  ;;  %v1455_v37 = vpop.f32.mrb[119].mxu0  ;;  %3370 = vrot.lane.b32.xlu0 %v10151_v26, %s10932_s8  ;;  %v10153_v41 = vpop.eup %10152 }
 0x1d9   : > { %14313 = vst [vmem:[#allocation10_spill] sm:$0xff] %v11583_v30  ;;  %10162 = vpow2.f32 %v2998_v28  ;;  %v2866_v38 = vmul.f32 0.5, %v11583_v30  ;;  %7240 = vst.msk [vmem:[%s11498_s30 + $0x40] sm:$0xff] %vm4016_vm2, %v11583_v30  ;;  %v1456_v39 = vadd.f32 %v11533_v52, %v1455_v37  ;;  %v9548_v40 = vpop.f32.mrb[10].mxu1  ;;  %9705 = vmatprep.mubr.msk.f32.mxu1 %vm414_vm0, %v1620_v29 }
 0x1da   : > { %v1623_v42 = vmax.f32 %v1461_v35, 0.0  ;;  %v11598_v43 = vadd.f32 %v9548_v40, %v11490_v27  ;;  %v2141_v44 = vpop.f32.mrb[11].mxu1  ;;  %9706 = vmatmul.mubr.msk.f32.gmra.mrb[116].mxu1 %vm414_vm0, %v1621_v23  ;;  %10164 = vpow2.f32 %v3000_v32  ;;  %v3004_v56 = vmul.f32 1.442695, %v2867_v34 }
 0x1db   : > { %v10155_v46 = vpop.eup %10154  ;;  %v3002_v47 = vmul.f32 1.442695, %v2866_v38  ;;  %v1622_v48 = vmax.f32 %v1456_v39, 0.0  ;;  %v11602_v50 = vadd.f32 %v11490_v27, %v2141_v44  ;;  %v9513_v51 = vpop.f32.mrb[120].mxu0 }
 0x1dc   : > { %14314 = vst [vmem:[#allocation11_spill] sm:$0xff] %v11598_v43  ;;  %v2869_v53 = vmul.f32 0.5, %v11598_v43  ;;  %7243 = vst.msk [vmem:[%s11498_s30 + $0x58] sm:$0xff] %vm4016_vm2, %v11598_v43  ;;  %v1471_v54 = vadd.f32 %v11533_v52, %v9513_v51  ;;  %v1465_v55 = vpop.f32.mrb[121].mxu0  ;;  %3374 = vrot.lane.b32.xlu1 %v10155_v46, %s10932_s8  ;;  %3372 = vrot.lane.b32.xlu0 %v10153_v41, %s10932_s8  ;;  %v10157_v61 = vpop.eup %10156 }
 0x1dd   : > { %14315 = vst [vmem:[#allocation12_spill] sm:$0xff] %v11602_v50  ;;  %10166 = vpow2.f32 %v3002_v47  ;;  %v2868_v57 = vmul.f32 0.5, %v11602_v50  ;;  %7242 = vst.msk [vmem:[%s11498_s30 + $0x50] sm:$0xff] %vm4016_vm2, %v11602_v50  ;;  %v1466_v58 = vadd.f32 %v11533_v52, %v1465_v55  ;;  %v9551_v59 = vpop.f32.mrb[12].mxu1  ;;  %9708 = vmatprep.mubr.msk.f32.mxu1 %vm414_vm0, %v1622_v48 }
 0x1de   : > { %v1625_v62 = vmax.f32 %v1471_v54, 0.0  ;;  %v11618_v63 = vadd.f32 %v9551_v59, %v11490_v27  ;;  %v2151_v1 = vpop.f32.mrb[13].mxu1  ;;  %9709 = vmatmul.mubr.msk.f32.gmra.mrb[118].mxu1 %vm414_vm0, %v1623_v42  ;;  %10168 = vpow2.f32 %v3004_v56  ;;  %v3008_v7 = vmul.f32 1.442695, %v2869_v53 }
 0x1df   : > { %v10159_v2 = vpop.eup %10158  ;;  %v3006_v3 = vmul.f32 1.442695, %v2868_v57  ;;  %v1624_v4 = vmax.f32 %v1466_v58, 0.0  ;;  %v11622_v5 = vadd.f32 %v11490_v27, %v2151_v1  ;;  %v9516_v6 = vpop.f32.mrb[122].mxu0 }
 0x1e0   : > { %14316 = vst [vmem:[#allocation13_spill] sm:$0xff] %v11618_v63  ;;  %v2871_v8 = vmul.f32 0.5, %v11618_v63  ;;  %7245 = vst.msk [vmem:[%s11498_s30 + $0x68] sm:$0xff] %vm4016_vm2, %v11618_v63  ;;  %v1481_v9 = vadd.f32 %v11533_v52, %v9516_v6  ;;  %v1475_v11 = vpop.f32.mrb[123].mxu0  ;;  %3376 = vrot.lane.b32.xlu1 %v10157_v61, %s10932_s8  ;;  %3378 = vrot.lane.b32.xlu0 %v10159_v2, %s10932_s8  ;;  %v10161_v16 = vpop.eup %10160 }
 0x1e1   : > { %14317 = vst [vmem:[#allocation14_spill] sm:$0xff] %v11622_v5  ;;  %10170 = vpow2.f32 %v3006_v3  ;;  %v2870_v12 = vmul.f32 0.5, %v11622_v5  ;;  %7244 = vst.msk [vmem:[%s11498_s30 + $0x60] sm:$0xff] %vm4016_vm2, %v11622_v5  ;;  %v1476_v13 = vadd.f32 %v11533_v52, %v1475_v11  ;;  %v9554_v15 = vpop.f32.mrb[14].mxu1  ;;  %9711 = vmatprep.mubr.msk.f32.mxu1 %vm414_vm0, %v1624_v4 }
 0x1e2   : > { %v1627_v17 = vmax.f32 %v1481_v9, 0.0  ;;  %v11638_v18 = vadd.f32 %v9554_v15, %v11490_v27  ;;  %v2161_v19 = vpop.f32.mrb[15].mxu1  ;;  %9712 = vmatmul.mubr.msk.f32.gmra.mrb[120].mxu1 %vm414_vm0, %v1625_v62  ;;  %10172 = vpow2.f32 %v3008_v7  ;;  %v3012_v26 = vmul.f32 1.442695, %v2871_v8 }
 0x1e3   : > { %v10163_v20 = vpop.eup %10162  ;;  %v3010_v21 = vmul.f32 1.442695, %v2870_v12  ;;  %v1626_v22 = vmax.f32 %v1476_v13, 0.0  ;;  %v11642_v23 = vadd.f32 %v11490_v27, %v2161_v19  ;;  %v9519_v25 = vpop.f32.mrb[124].mxu0 }
 0x1e4   : > { %14318 = vst [vmem:[#allocation15_spill] sm:$0xff] %v11638_v18  ;;  %v2873_v28 = vmul.f32 0.5, %v11638_v18  ;;  %7247 = vst.msk [vmem:[%s11498_s30 + $0x78] sm:$0xff] %vm4016_vm2, %v11638_v18  ;;  %v1491_v29 = vadd.f32 %v11533_v52, %v9519_v25  ;;  %v1485_v31 = vpop.f32.mrb[125].mxu0  ;;  %3380 = vrot.lane.b32.xlu1 %v10161_v16, %s10932_s8  ;;  %3382 = vrot.lane.b32.xlu0 %v10163_v20, %s10932_s8  ;;  %v10165_v37 = vpop.eup %10164 }
 0x1e5   : > { %14319 = vst [vmem:[#allocation16_spill] sm:$0xff] %v11642_v23  ;;  %10174 = vpow2.f32 %v3010_v21  ;;  %v2872_v32 = vmul.f32 0.5, %v11642_v23  ;;  %7246 = vst.msk [vmem:[%s11498_s30 + $0x70] sm:$0xff] %vm4016_vm2, %v11642_v23  ;;  %v1486_v34 = vadd.f32 %v11533_v52, %v1485_v31  ;;  %v9557_v35 = vpop.f32.mrb[16].mxu1  ;;  %9714 = vmatprep.mubr.msk.f32.mxu1 %vm414_vm0, %v1626_v22 }
 0x1e6   : > { %v1629_v38 = vmax.f32 %v1491_v29, 0.0  ;;  %v11658_v39 = vadd.f32 %v9557_v35, %v11490_v27  ;;  %v2171_v40 = vpop.f32.mrb[17].mxu1  ;;  %9715 = vmatmul.mubr.msk.f32.gmra.mrb[122].mxu1 %vm414_vm0, %v1627_v17  ;;  %10176 = vpow2.f32 %v3012_v26  ;;  %v3016_v48 = vmul.f32 1.442695, %v2873_v28 }
 0x1e7   : > { %v10167_v41 = vpop.eup %10166  ;;  %v3014_v42 = vmul.f32 1.442695, %v2872_v32  ;;  %v1628_v44 = vmax.f32 %v1486_v34, 0.0  ;;  %v11662_v46 = vadd.f32 %v11490_v27, %v2171_v40  ;;  %v9522_v47 = vpop.f32.mrb[126].mxu0 }
 0x1e8   : > { %14320 = vst [vmem:[#allocation17_spill] sm:$0xff] %v11658_v39  ;;  %v2875_v51 = vmul.f32 0.5, %v11658_v39  ;;  %7249 = vst.msk [vmem:[%s11498_s30 + $0x88] sm:$0xff] %vm4016_vm2, %v11658_v39  ;;  %v1501_v56 = vadd.f32 %v11533_v52, %v9522_v47  ;;  %v1495_v53 = vpop.f32.mrb[127].mxu0  ;;  %3384 = vrot.lane.b32.xlu1 %v10165_v37, %s10932_s8  ;;  %3386 = vrot.lane.b32.xlu0 %v10167_v41, %s10932_s8  ;;  %v10169_v58 = vpop.eup %10168 }
 0x1e9   : > { %14321 = vst [vmem:[#allocation18_spill] sm:$0xff] %v11662_v46  ;;  %10178 = vpow2.f32 %v3014_v42  ;;  %v2874_v54 = vmul.f32 0.5, %v11662_v46  ;;  %7248 = vst.msk [vmem:[%s11498_s30 + $0x80] sm:$0xff] %vm4016_vm2, %v11662_v46  ;;  %v1496_v55 = vadd.f32 %v11533_v52, %v1495_v53  ;;  %v9560_v57 = vpop.f32.mrb[18].mxu1  ;;  %9717 = vmatprep.mubr.msk.f32.mxu1 %vm414_vm0, %v1628_v44 }
 0x1ea   : > { %v1631_v59 = vmax.f32 %v1501_v56, 0.0  ;;  %v11678_v61 = vadd.f32 %v9560_v57, %v11490_v27  ;;  %v2181_v62 = vpop.f32.mrb[19].mxu1  ;;  %9718 = vmatmul.mubr.msk.f32.gmra.mrb[124].mxu1 %vm414_vm0, %v1629_v38  ;;  %10180 = vpow2.f32 %v3016_v48  ;;  %v3020_v52 = vmul.f32 1.442695, %v2875_v51 }
 0x1eb   : > { %v10171_v1 = vpop.eup %10170  ;;  %v3018_v2 = vmul.f32 1.442695, %v2874_v54  ;;  %v1630_v3 = vmax.f32 %v1496_v55, 0.0  ;;  %v11682_v4 = vadd.f32 %v11490_v27, %v2181_v62 }
 0x1ec   : > { %14322 = vst [vmem:[#allocation19_spill] sm:$0xff] %v11678_v61  ;;  %v2877_v6 = vmul.f32 0.5, %v11678_v61  ;;  %7251 = vst.msk [vmem:[%s11498_s30 + $0x98] sm:$0xff] %vm4016_vm2, %v11678_v61  ;;  %3388 = vrot.lane.b32.xlu1 %v10169_v58, %s10932_s8  ;;  %3390 = vrot.lane.b32.xlu0 %v10171_v1, %s10932_s8  ;;  %v10173_v9 = vpop.eup %10172 }
 0x1ed   : > { %14323 = vst [vmem:[#allocation20_spill] sm:$0xff] %v11682_v4  ;;  %10182 = vpow2.f32 %v3018_v2  ;;  %v2876_v7 = vmul.f32 0.5, %v11682_v4  ;;  %7250 = vst.msk [vmem:[%s11498_s30 + $0x90] sm:$0xff] %vm4016_vm2, %v11682_v4  ;;  %v9563_v8 = vpop.f32.mrb[20].mxu1  ;;  %9720 = vmatprep.mubr.msk.f32.mxu1 %vm414_vm0, %v1630_v3 }
 0x1ee   : > { %v11696_v11 = vadd.f32 %v9563_v8, %v11490_v27  ;;  %v2191_v12 = vpop.f32.mrb[21].mxu1  ;;  %9721 = vmatmul.mubr.msk.f32.gmra.mrb[126].mxu1 %vm414_vm0, %v1631_v59  ;;  %10184 = vpow2.f32 %v3020_v52  ;;  %v3024_v17 = vmul.f32 1.442695, %v2877_v6 }
 0x1ef   : > { %v10175_v13 = vpop.eup %10174  ;;  %v3022_v15 = vmul.f32 1.442695, %v2876_v7  ;;  %v11700_v16 = vadd.f32 %v11490_v27, %v2191_v12 }
 0x1f0   : > { %14324 = vst [vmem:[#allocation21_spill] sm:$0xff] %v11696_v11  ;;  %v2879_v19 = vmul.f32 0.5, %v11696_v11  ;;  %7253 = vst.msk [vmem:[%s11498_s30 + $0xa8] sm:$0xff] %vm4016_vm2, %v11696_v11  ;;  %3392 = vrot.lane.b32.xlu1 %v10173_v9, %s10932_s8  ;;  %3394 = vrot.lane.b32.xlu0 %v10175_v13, %s10932_s8  ;;  %v10177_v22 = vpop.eup %10176 }
 0x1f1   : > { %14325 = vst [vmem:[#allocation22_spill] sm:$0xff] %v11700_v16  ;;  %10186 = vpow2.f32 %v3022_v15  ;;  %v2878_v20 = vmul.f32 0.5, %v11700_v16  ;;  %7252 = vst.msk [vmem:[%s11498_s30 + $0xa0] sm:$0xff] %vm4016_vm2, %v11700_v16  ;;  %v9566_v21 = vpop.f32.mrb[22].mxu1 }
 0x1f2   : > { %v11713_v25 = vadd.f32 %v9566_v21, %v11490_v27  ;;  %v2201_v26 = vpop.f32.mrb[23].mxu1  ;;  %10188 = vpow2.f32 %v3024_v17  ;;  %v3028_v32 = vmul.f32 1.442695, %v2879_v19 }
 0x1f3   : > { %v10179_v28 = vpop.eup %10178  ;;  %v3026_v29 = vmul.f32 1.442695, %v2878_v20  ;;  %v11716_v31 = vadd.f32 %v11490_v27, %v2201_v26 }
 0x1f4   : > { %14326 = vst [vmem:[#allocation23_spill] sm:$0xff] %v11713_v25  ;;  %v2881_v34 = vmul.f32 0.5, %v11713_v25  ;;  %7255 = vst.msk [vmem:[%s11498_s30 + $0xb8] sm:$0xff] %vm4016_vm2, %v11713_v25  ;;  %3396 = vrot.lane.b32.xlu1 %v10177_v22, %s10932_s8  ;;  %3398 = vrot.lane.b32.xlu0 %v10179_v28, %s10932_s8  ;;  %v10181_v38 = vpop.eup %10180 }
 0x1f5   : > { %14327 = vst [vmem:[#allocation24_spill] sm:$0xff] %v11716_v31  ;;  %10190 = vpow2.f32 %v3026_v29  ;;  %v2880_v35 = vmul.f32 0.5, %v11716_v31  ;;  %7254 = vst.msk [vmem:[%s11498_s30 + $0xb0] sm:$0xff] %vm4016_vm2, %v11716_v31  ;;  %v9569_v37 = vpop.f32.mrb[24].mxu1 }
 0x1f6   : > { %v11729_v40 = vadd.f32 %v9569_v37, %v11490_v27  ;;  %v2211_v41 = vpop.f32.mrb[25].mxu1  ;;  %10192 = vpow2.f32 %v3028_v32  ;;  %v3032_v48 = vmul.f32 1.442695, %v2881_v34 }
 0x1f7   : > { %v10183_v42 = vpop.eup %10182  ;;  %v3030_v44 = vmul.f32 1.442695, %v2880_v35  ;;  %v11732_v47 = vadd.f32 %v11490_v27, %v2211_v41 }
 0x1f8   : > { %14328 = vst [vmem:[#allocation25_spill] sm:$0xff] %v11729_v40  ;;  %v2883_v51 = vmul.f32 0.5, %v11729_v40  ;;  %7257 = vst.msk [vmem:[%s11498_s30 + $0xc8] sm:$0xff] %vm4016_vm2, %v11729_v40  ;;  %3400 = vrot.lane.b32.xlu1 %v10181_v38, %s10932_s8  ;;  %3402 = vrot.lane.b32.xlu0 %v10183_v42, %s10932_s8  ;;  %v10185_v54 = vpop.eup %10184 }
 0x1f9   : > { %14329 = vst [vmem:[#allocation26_spill] sm:$0xff] %v11732_v47  ;;  %10194 = vpow2.f32 %v3030_v44  ;;  %v2882_v56 = vmul.f32 0.5, %v11732_v47  ;;  %7256 = vst.msk [vmem:[%s11498_s30 + $0xc0] sm:$0xff] %vm4016_vm2, %v11732_v47  ;;  %v9572_v53 = vpop.f32.mrb[26].mxu1 }
 0x1fa   : > { %v11745_v55 = vadd.f32 %v9572_v53, %v11490_v27  ;;  %v2221_v57 = vpop.f32.mrb[27].mxu1  ;;  %10196 = vpow2.f32 %v3032_v48  ;;  %v3036_v1 = vmul.f32 1.442695, %v2883_v51 }
 0x1fb   : > { %v10187_v58 = vpop.eup %10186  ;;  %v3034_v59 = vmul.f32 1.442695, %v2882_v56  ;;  %v11748_v62 = vadd.f32 %v11490_v27, %v2221_v57 }
 0x1fc   : > { %14330 = vst [vmem:[#allocation27_spill] sm:$0xff] %v11745_v55  ;;  %v2885_v2 = vmul.f32 0.5, %v11745_v55  ;;  %7259 = vst.msk [vmem:[%s11498_s30 + $0xd8] sm:$0xff] %vm4016_vm2, %v11745_v55  ;;  %3404 = vrot.lane.b32.xlu1 %v10185_v54, %s10932_s8  ;;  %3406 = vrot.lane.b32.xlu0 %v10187_v58, %s10932_s8  ;;  %v10189_v6 = vpop.eup %10188 }
 0x1fd   : > { %14331 = vst [vmem:[#allocation28_spill] sm:$0xff] %v11748_v62  ;;  %10198 = vpow2.f32 %v3034_v59  ;;  %v2884_v3 = vmul.f32 0.5, %v11748_v62  ;;  %7258 = vst.msk [vmem:[%s11498_s30 + $0xd0] sm:$0xff] %vm4016_vm2, %v11748_v62  ;;  %v9575_v52 = vpop.f32.mrb[28].mxu1 }
 0x1fe   : > { %v11761_v7 = vadd.f32 %v9575_v52, %v11490_v27  ;;  %v2231_v8 = vpop.f32.mrb[29].mxu1  ;;  %10200 = vpow2.f32 %v3036_v1  ;;  %v3040_v15 = vmul.f32 1.442695, %v2885_v2 }
 0x1ff   : > { %v10191_v9 = vpop.eup %10190  ;;  %v3038_v12 = vmul.f32 1.442695, %v2884_v3  ;;  %v11764_v13 = vadd.f32 %v11490_v27, %v2231_v8 }
 0x200   : > { %14332 = vst [vmem:[#allocation29_spill] sm:$0xff] %v11761_v7  ;;  %v2887_v17 = vmul.f32 0.5, %v11761_v7  ;;  %7261 = vst.msk [vmem:[%s11498_s30 + $0xe8] sm:$0xff] %vm4016_vm2, %v11761_v7  ;;  %3408 = vrot.lane.b32.xlu1 %v10189_v6, %s10932_s8  ;;  %3410 = vrot.lane.b32.xlu0 %v10191_v9, %s10932_s8  ;;  %v10193_v21 = vpop.eup %10192 }
 0x201   : > { %14333 = vst [vmem:[#allocation30_spill] sm:$0xff] %v11764_v13  ;;  %10202 = vpow2.f32 %v3038_v12  ;;  %v2886_v19 = vmul.f32 0.5, %v11764_v13  ;;  %7260 = vst.msk [vmem:[%s11498_s30 + $0xe0] sm:$0xff] %vm4016_vm2, %v11764_v13  ;;  %v9578_v20 = vpop.f32.mrb[30].mxu1 }
 0x202   : > { %v11777_v22 = vadd.f32 %v9578_v20, %v11490_v27  ;;  %v2241_v26 = vpop.f32.mrb[31].mxu1  ;;  %10204 = vpow2.f32 %v3040_v15  ;;  %v3044_v34 = vmul.f32 1.442695, %v2887_v17 }
 0x203   : > { %v10195_v28 = vpop.eup %10194  ;;  %v3042_v29 = vmul.f32 1.442695, %v2886_v19  ;;  %v11780_v32 = vadd.f32 %v11490_v27, %v2241_v26 }
 0x204   : > { %14334 = vst [vmem:[#allocation31_spill] sm:$0xff] %v11777_v22  ;;  %v2889_v35 = vmul.f32 0.5, %v11777_v22  ;;  %7263 = vst.msk [vmem:[%s11498_s30 + $0xf8] sm:$0xff] %vm4016_vm2, %v11777_v22  ;;  %3412 = vrot.lane.b32.xlu1 %v10193_v21, %s10932_s8  ;;  %3414 = vrot.lane.b32.xlu0 %v10195_v28, %s10932_s8  ;;  %v10197_v41 = vpop.eup %10196 }
 0x205   : > { %10206 = vpow2.f32 %v3042_v29  ;;  %v2888_v37 = vmul.f32 0.5, %v11780_v32  ;;  %7262 = vst.msk [vmem:[%s11498_s30 + $0xf0] sm:$0xff] %vm4016_vm2, %v11780_v32  ;;  %v9581_v38 = vpop.f32.mrb[32].mxu1 }
 0x206   : > { %v11793_v42 = vadd.f32 %v9581_v38, %v11490_v27  ;;  %v2251_v44 = vpop.f32.mrb[33].mxu1  ;;  %10208 = vpow2.f32 %v3044_v34  ;;  %v3048_v53 = vmul.f32 1.442695, %v2889_v35 }
 0x207   : > { %v10199_v48 = vpop.eup %10198  ;;  %v3046_v51 = vmul.f32 1.442695, %v2888_v37  ;;  %v11796_v56 = vadd.f32 %v11490_v27, %v2251_v44 }
 0x208   : > { %14335 = vst [vmem:[#allocation32_spill] sm:$0xff] %v11793_v42  ;;  %v2891_v54 = vmul.f32 0.5, %v11793_v42  ;;  %7265 = vst.msk [vmem:[%s11498_s30 + $0x108] sm:$0xff] %vm4016_vm2, %v11793_v42  ;;  %3416 = vrot.lane.b32.xlu1 %v10197_v41, %s10932_s8  ;;  %3418 = vrot.lane.b32.xlu0 %v10199_v48, %s10932_s8  ;;  %v10201_v59 = vpop.eup %10200 }
 0x209   : > { %14336 = vst [vmem:[#allocation33_spill] sm:$0xff] %v11796_v56  ;;  %10210 = vpow2.f32 %v3046_v51  ;;  %v2890_v57 = vmul.f32 0.5, %v11796_v56  ;;  %7264 = vst.msk [vmem:[%s11498_s30 + $0x100] sm:$0xff] %vm4016_vm2, %v11796_v56  ;;  %v9584_v58 = vpop.f32.mrb[34].mxu1 }
 0x20a   : > { %v11809_v1 = vadd.f32 %v9584_v58, %v11490_v27  ;;  %v2261_v2 = vpop.f32.mrb[35].mxu1  ;;  %10212 = vpow2.f32 %v3048_v53  ;;  %v3052_v8 = vmul.f32 1.442695, %v2891_v54 }
 0x20b   : > { %v10203_v3 = vpop.eup %10202  ;;  %v3050_v52 = vmul.f32 1.442695, %v2890_v57  ;;  %v11812_v6 = vadd.f32 %v11490_v27, %v2261_v2 }
 0x20c   : > { %14337 = vst [vmem:[#allocation34_spill] sm:$0xff] %v11809_v1  ;;  %v2893_v9 = vmul.f32 0.5, %v11809_v1  ;;  %7267 = vst.msk [vmem:[%s11498_s30 + $0x118] sm:$0xff] %vm4016_vm2, %v11809_v1  ;;  %3420 = vrot.lane.b32.xlu1 %v10201_v59, %s10932_s8  ;;  %3422 = vrot.lane.b32.xlu0 %v10203_v3, %s10932_s8  ;;  %v10205_v17 = vpop.eup %10204 }
 0x20d   : > { %14338 = vst [vmem:[#allocation35_spill] sm:$0xff] %v11812_v6  ;;  %10214 = vpow2.f32 %v3050_v52  ;;  %v2892_v12 = vmul.f32 0.5, %v11812_v6  ;;  %7266 = vst.msk [vmem:[%s11498_s30 + $0x110] sm:$0xff] %vm4016_vm2, %v11812_v6  ;;  %v9587_v15 = vpop.f32.mrb[36].mxu1 }
 0x20e   : > { %v11825_v19 = vadd.f32 %v9587_v15, %v11490_v27  ;;  %v2271_v20 = vpop.f32.mrb[37].mxu1  ;;  %10216 = vpow2.f32 %v3052_v8  ;;  %v3056_v29 = vmul.f32 1.442695, %v2893_v9 }
 0x20f   : > { %v10207_v21 = vpop.eup %10206  ;;  %v3054_v26 = vmul.f32 1.442695, %v2892_v12  ;;  %v11828_v28 = vadd.f32 %v11490_v27, %v2271_v20 }
 0x210   : > { %14339 = vst [vmem:[#allocation36_spill] sm:$0xff] %v11825_v19  ;;  %v2895_v34 = vmul.f32 0.5, %v11825_v19  ;;  %7269 = vst.msk [vmem:[%s11498_s30 + $0x128] sm:$0xff] %vm4016_vm2, %v11825_v19  ;;  %3424 = vrot.lane.b32.xlu1 %v10205_v17, %s10932_s8  ;;  %3426 = vrot.lane.b32.xlu0 %v10207_v21, %s10932_s8  ;;  %v10209_v38 = vpop.eup %10208 }
 0x211   : > { %14340 = vst [vmem:[#allocation37_spill] sm:$0xff] %v11828_v28  ;;  %10218 = vpow2.f32 %v3054_v26  ;;  %v2894_v35 = vmul.f32 0.5, %v11828_v28  ;;  %7268 = vst.msk [vmem:[%s11498_s30 + $0x120] sm:$0xff] %vm4016_vm2, %v11828_v28  ;;  %v9590_v37 = vpop.f32.mrb[38].mxu1 }
 0x212   : > { %v11841_v41 = vadd.f32 %v9590_v37, %v11490_v27  ;;  %v2281_v44 = vpop.f32.mrb[39].mxu1  ;;  %10220 = vpow2.f32 %v3056_v29  ;;  %v3060_v54 = vmul.f32 1.442695, %v2895_v34 }
 0x213   : > { %v10211_v48 = vpop.eup %10210  ;;  %v3058_v51 = vmul.f32 1.442695, %v2894_v35  ;;  %v11844_v53 = vadd.f32 %v11490_v27, %v2281_v44 }
 0x214   : > { %14341 = vst [vmem:[#allocation38_spill] sm:$0xff] %v11841_v41  ;;  %v2897_v57 = vmul.f32 0.5, %v11841_v41  ;;  %7271 = vst.msk [vmem:[%s11498_s30 + $0x138] sm:$0xff] %vm4016_vm2, %v11841_v41  ;;  %3428 = vrot.lane.b32.xlu1 %v10209_v38, %s10932_s8  ;;  %3430 = vrot.lane.b32.xlu0 %v10211_v48, %s10932_s8  ;;  %v10213_v2 = vpop.eup %10212 }
 0x215   : > { %14342 = vst [vmem:[#allocation39_spill] sm:$0xff] %v11844_v53  ;;  %10222 = vpow2.f32 %v3058_v51  ;;  %v2896_v58 = vmul.f32 0.5, %v11844_v53  ;;  %7270 = vst.msk [vmem:[%s11498_s30 + $0x130] sm:$0xff] %vm4016_vm2, %v11844_v53  ;;  %v9593_v59 = vpop.f32.mrb[40].mxu1 }
 0x216   : > { %v11857_v3 = vadd.f32 %v9593_v59, %v11490_v27  ;;  %v2291_v52 = vpop.f32.mrb[41].mxu1  ;;  %10224 = vpow2.f32 %v3060_v54  ;;  %v3064_v15 = vmul.f32 1.442695, %v2897_v57 }
 0x217   : > { %v10215_v8 = vpop.eup %10214  ;;  %v3062_v9 = vmul.f32 1.442695, %v2896_v58  ;;  %v11860_v12 = vadd.f32 %v11490_v27, %v2291_v52 }
 0x218   : > { %14343 = vst [vmem:[#allocation40_spill] sm:$0xff] %v11857_v3  ;;  %v2899_v17 = vmul.f32 0.5, %v11857_v3  ;;  %7273 = vst.msk [vmem:[%s11498_s30 + $0x148] sm:$0xff] %vm4016_vm2, %v11857_v3  ;;  %3432 = vrot.lane.b32.xlu1 %v10213_v2, %s10932_s8  ;;  %3434 = vrot.lane.b32.xlu0 %v10215_v8, %s10932_s8  ;;  %v10217_v26 = vpop.eup %10216 }
 0x219   : > { %14344 = vst [vmem:[#allocation41_spill] sm:$0xff] %v11860_v12  ;;  %10226 = vpow2.f32 %v3062_v9  ;;  %v2898_v20 = vmul.f32 0.5, %v11860_v12  ;;  %7272 = vst.msk [vmem:[%s11498_s30 + $0x140] sm:$0xff] %vm4016_vm2, %v11860_v12  ;;  %v9596_v21 = vpop.f32.mrb[42].mxu1 }
 0x21a   : > { %v11873_v29 = vadd.f32 %v9596_v21, %v11490_v27  ;;  %v2301_v34 = vpop.f32.mrb[43].mxu1  ;;  %10228 = vpow2.f32 %v3064_v15  ;;  %v3068_v44 = vmul.f32 1.442695, %v2899_v17 }
 0x21b   : > { %v10219_v35 = vpop.eup %10218  ;;  %v3066_v37 = vmul.f32 1.442695, %v2898_v20  ;;  %v11876_v38 = vadd.f32 %v11490_v27, %v2301_v34 }
 0x21c   : > { %14345 = vst [vmem:[#allocation42_spill] sm:$0xff] %v11873_v29  ;;  %v2901_v48 = vmul.f32 0.5, %v11873_v29  ;;  %7275 = vst.msk [vmem:[%s11498_s30 + $0x158] sm:$0xff] %vm4016_vm2, %v11873_v29  ;;  %3436 = vrot.lane.b32.xlu1 %v10217_v26, %s10932_s8  ;;  %3438 = vrot.lane.b32.xlu0 %v10219_v35, %s10932_s8  ;;  %v10221_v57 = vpop.eup %10220 }
 0x21d   : > { %14346 = vst [vmem:[#allocation43_spill] sm:$0xff] %v11876_v38  ;;  %10230 = vpow2.f32 %v3066_v37  ;;  %v2900_v51 = vmul.f32 0.5, %v11876_v38  ;;  %7274 = vst.msk [vmem:[%s11498_s30 + $0x150] sm:$0xff] %vm4016_vm2, %v11876_v38  ;;  %v9599_v54 = vpop.f32.mrb[44].mxu1 }
 0x21e   : > { %v11889_v58 = vadd.f32 %v9599_v54, %v11490_v27  ;;  %v2311_v59 = vpop.f32.mrb[45].mxu1  ;;  %10232 = vpow2.f32 %v3068_v44  ;;  %v3072_v9 = vmul.f32 1.442695, %v2901_v48 }
 0x21f   : > { %v10223_v2 = vpop.eup %10222  ;;  %v3070_v52 = vmul.f32 1.442695, %v2900_v51  ;;  %v11892_v8 = vadd.f32 %v11490_v27, %v2311_v59 }
 0x220   : > { %14347 = vst [vmem:[#allocation44_spill] sm:$0xff] %v11889_v58  ;;  %v2903_v15 = vmul.f32 0.5, %v11889_v58  ;;  %7277 = vst.msk [vmem:[%s11498_s30 + $0x168] sm:$0xff] %vm4016_vm2, %v11889_v58  ;;  %3440 = vrot.lane.b32.xlu1 %v10221_v57, %s10932_s8  ;;  %3442 = vrot.lane.b32.xlu0 %v10223_v2, %s10932_s8  ;;  %v10225_v21 = vpop.eup %10224 }
 0x221   : > { %14348 = vst [vmem:[#allocation45_spill] sm:$0xff] %v11892_v8  ;;  %10234 = vpow2.f32 %v3070_v52  ;;  %v2902_v17 = vmul.f32 0.5, %v11892_v8  ;;  %7276 = vst.msk [vmem:[%s11498_s30 + $0x160] sm:$0xff] %vm4016_vm2, %v11892_v8  ;;  %v9602_v20 = vpop.f32.mrb[46].mxu1 }
 0x222   : > { %v11905_v26 = vadd.f32 %v9602_v20, %v11490_v27  ;;  %v2321_v34 = vpop.f32.mrb[47].mxu1  ;;  %10236 = vpow2.f32 %v3072_v9  ;;  %v3076_v48 = vmul.f32 1.442695, %v2903_v15 }
 0x223   : > { %v10227_v35 = vpop.eup %10226  ;;  %v3074_v37 = vmul.f32 1.442695, %v2902_v17  ;;  %v11908_v44 = vadd.f32 %v11490_v27, %v2321_v34 }
 0x224   : > { %14349 = vst [vmem:[#allocation46_spill] sm:$0xff] %v11905_v26  ;;  %v2905_v51 = vmul.f32 0.5, %v11905_v26  ;;  %7279 = vst.msk [vmem:[%s11498_s30 + $0x178] sm:$0xff] %vm4016_vm2, %v11905_v26  ;;  %3444 = vrot.lane.b32.xlu1 %v10225_v21, %s10932_s8  ;;  %3446 = vrot.lane.b32.xlu0 %v10227_v35, %s10932_s8  ;;  %v10229_v59 = vpop.eup %10228 }
 0x225   : > { %14350 = vst [vmem:[#allocation47_spill] sm:$0xff] %v11908_v44  ;;  %10238 = vpow2.f32 %v3074_v37  ;;  %v2904_v54 = vmul.f32 0.5, %v11908_v44  ;;  %7278 = vst.msk [vmem:[%s11498_s30 + $0x170] sm:$0xff] %vm4016_vm2, %v11908_v44  ;;  %v9605_v57 = vpop.f32.mrb[48].mxu1 }
 0x226   : > { %v11921_v2 = vadd.f32 %v9605_v57, %v11490_v27  ;;  %v2331_v52 = vpop.f32.mrb[49].mxu1  ;;  %10240 = vpow2.f32 %v3076_v48  ;;  %v3080_v20 = vmul.f32 1.442695, %v2905_v51 }
 0x227   : > { %v10231_v9 = vpop.eup %10230  ;;  %v3078_v15 = vmul.f32 1.442695, %v2904_v54  ;;  %v11924_v17 = vadd.f32 %v11490_v27, %v2331_v52 }
 0x228   : > { %14351 = vst [vmem:[#allocation48_spill] sm:$0xff] %v11921_v2  ;;  %v2907_v21 = vmul.f32 0.5, %v11921_v2  ;;  %7281 = vst.msk [vmem:[%s11498_s30 + $0x188] sm:$0xff] %vm4016_vm2, %v11921_v2  ;;  %3448 = vrot.lane.b32.xlu1 %v10229_v59, %s10932_s8  ;;  %3450 = vrot.lane.b32.xlu0 %v10231_v9, %s10932_s8  ;;  %v10233_v37 = vpop.eup %10232 }
 0x229   : > { %14352 = vst [vmem:[#allocation49_spill] sm:$0xff] %v11924_v17  ;;  %10242 = vpow2.f32 %v3078_v15  ;;  %v2906_v34 = vmul.f32 0.5, %v11924_v17  ;;  %7280 = vst.msk [vmem:[%s11498_s30 + $0x180] sm:$0xff] %vm4016_vm2, %v11924_v17  ;;  %v9608_v35 = vpop.f32.mrb[50].mxu1 }
 0x22a   : > { %v11937_v48 = vadd.f32 %v9608_v35, %v11490_v27  ;;  %v2341_v51 = vpop.f32.mrb[51].mxu1  ;;  %10244 = vpow2.f32 %v3080_v20  ;;  %v3084_v59 = vmul.f32 1.442695, %v2907_v21 }
 0x22b   : > { %v10235_v54 = vpop.eup %10234  ;;  %v3082_v57 = vmul.f32 1.442695, %v2906_v34  ;;  %v11940_v52 = vadd.f32 %v11490_v27, %v2341_v51 }
 0x22c   : > { %14353 = vst [vmem:[#allocation50_spill] sm:$0xff] %v11937_v48  ;;  %v2909_v9 = vmul.f32 0.5, %v11937_v48  ;;  %7283 = vst.msk [vmem:[%s11498_s30 + $0x198] sm:$0xff] %vm4016_vm2, %v11937_v48  ;;  %3452 = vrot.lane.b32.xlu1 %v10233_v37, %s10932_s8  ;;  %3454 = vrot.lane.b32.xlu0 %v10235_v54, %s10932_s8  ;;  %v10237_v20 = vpop.eup %10236 }
 0x22d   : > { %14354 = vst [vmem:[#allocation51_spill] sm:$0xff] %v11940_v52  ;;  %10246 = vpow2.f32 %v3082_v57  ;;  %v2908_v15 = vmul.f32 0.5, %v11940_v52  ;;  %7282 = vst.msk [vmem:[%s11498_s30 + $0x190] sm:$0xff] %vm4016_vm2, %v11940_v52  ;;  %v9611_v34 = vpop.f32.mrb[52].mxu1 }
 0x22e   : > { %v11953_v21 = vadd.f32 %v9611_v34, %v11490_v27  ;;  %v2351_v35 = vpop.f32.mrb[53].mxu1  ;;  %10248 = vpow2.f32 %v3084_v59  ;;  %v3088_v37 = vmul.f32 1.442695, %v2909_v9  ;;  %v5240_v59 = vld [vmem:[%s14169_s2 + $0x30] sm:$0xff]  ;;  %v5241_v9 = vld [vmem:[%s14169_s2 + $0x38] sm:$0xff] }
 0x22f   : > { %v10239_v51 = vpop.eup %10238  ;;  %v3086_v48 = vmul.f32 1.442695, %v2908_v15  ;;  %v11956_v2 = vadd.f32 %v11490_v27, %v2351_v35  ;;  %v10137_v35 = vpack.c.bf16 %v5241_v9, %v5240_v59 }
 0x230   : > { %14355 = vst [vmem:[#allocation52_spill] sm:$0xff] %v11953_v21  ;;  %v2911_v54 = vmul.f32 0.5, %v11953_v21  ;;  %7285 = vst.msk [vmem:[%s11498_s30 + $0x1a8] sm:$0xff] %vm4016_vm2, %v11953_v21  ;;  %3456 = vrot.lane.b32.xlu1 %v10237_v20, %s10932_s8  ;;  %3458 = vrot.lane.b32.xlu0 %v10239_v51, %s10932_s8  ;;  %v10241_v34 = vpop.eup %10240 }
 0x231   : > { %14356 = vst [vmem:[#allocation53_spill] sm:$0xff] %v11956_v2  ;;  %10250 = vpow2.f32 %v3086_v48  ;;  %v2910_v57 = vmul.f32 0.5, %v11956_v2  ;;  %7284 = vst.msk [vmem:[%s11498_s30 + $0x1a0] sm:$0xff] %vm4016_vm2, %v11956_v2  ;;  %v9614_v15 = vpop.f32.mrb[54].mxu1  ;;  %10138 = vmatprep.subr.bf16.mxu1 %v10137_v35 }
 0x232   : > { %v11975_v20 = vadd.f32 %v9614_v15, %v11490_v27  ;;  %v2361_v48 = vpop.f32.mrb[55].mxu1  ;;  %10252 = vpow2.f32 %v3088_v37  ;;  %v3092_v52 = vmul.f32 1.442695, %v2911_v54  ;;  %v11993_v54 = vld [vmem:[%s14169_s2 + $0x66] ss:$0 sm:$0xff]  ;;  %10140 = vmatpush3.bf16.msra.mxu1 %v10137_v35 }
 0x233   : > { %v10243_v51 = vpop.eup %10242  ;;  %v3090_v21 = vmul.f32 1.442695, %v2910_v57  ;;  %v11978_v2 = vadd.f32 %v11490_v27, %v2361_v48 }
 0x234   : > { %14357 = vst [vmem:[#allocation54_spill] sm:$0xff] %v11975_v20  ;;  %v2913_v17 = vmul.f32 0.5, %v11975_v20  ;;  %7287 = vst.msk [vmem:[%s11498_s30 + $0x1b8] sm:$0xff] %vm4016_vm2, %v11975_v20  ;;  %3460 = vrot.lane.b32.xlu1 %v10241_v34, %s10932_s8  ;;  %3462 = vrot.lane.b32.xlu0 %v10243_v51, %s10932_s8  ;;  %v10245_v37 = vpop.eup %10244 }
 0x235   : > { %14358 = vst [vmem:[#allocation55_spill] sm:$0xff] %v11978_v2  ;;  %10254 = vpow2.f32 %v3090_v21  ;;  %v2912_v15 = vmul.f32 0.5, %v11978_v2  ;;  %7286 = vst.msk [vmem:[%s11498_s30 + $0x1b0] sm:$0xff] %vm4016_vm2, %v11978_v2  ;;  %v9617_v27 = vpop.f32.mrb[56].mxu1 }
 0x236   : > { %v11996_v57 = vadd.f32 %v11993_v54, %v9617_v27  ;;  %v2371_v59 = vpop.f32.mrb[57].mxu1  ;;  %10256 = vpow2.f32 %v3092_v52  ;;  %v3096_v48 = vmul.f32 1.442695, %v2913_v17 }
 0x237   : > { %v10247_v21 = vpop.eup %10246  ;;  %v3094_v9 = vmul.f32 1.442695, %v2912_v15  ;;  %v11999_v34 = vadd.f32 %v11993_v54, %v2371_v59 }
 0x238   : > { %14359 = vst [vmem:[#allocation56_spill] sm:$0xff] %v11996_v57  ;;  %v2915_v51 = vmul.f32 0.5, %v11996_v57  ;;  %7289 = vst.msk [vmem:[%s11498_s30 + $0x1c8] sm:$0xff] %vm4016_vm2, %v11996_v57  ;;  %3464 = vrot.lane.b32.xlu1 %v10245_v37, %s10932_s8  ;;  %3466 = vrot.lane.b32.xlu0 %v10247_v21, %s10932_s8  ;;  %v10249_v52 = vpop.eup %10248 }
 0x239   : > { %14360 = vst [vmem:[#allocation57_spill] sm:$0xff] %v11999_v34  ;;  %10258 = vpow2.f32 %v3094_v9  ;;  %v2914_v35 = vmul.f32 0.5, %v11999_v34  ;;  %7288 = vst.msk [vmem:[%s11498_s30 + $0x1c0] sm:$0xff] %vm4016_vm2, %v11999_v34  ;;  %v9620_v15 = vpop.f32.mrb[58].mxu1 }
 0x23a   : > { %v12012_v17 = vadd.f32 %v11993_v54, %v9620_v15  ;;  %v2381_v27 = vpop.f32.mrb[59].mxu1  ;;  %10260 = vpow2.f32 %v3096_v48  ;;  %v3100_v37 = vmul.f32 1.442695, %v2915_v51 }
 0x23b   : > { %v10251_v59 = vpop.eup %10250  ;;  %v3098_v57 = vmul.f32 1.442695, %v2914_v35  ;;  %v12015_v20 = vadd.f32 %v11993_v54, %v2381_v27 }
 0x23c   : > { %14361 = vst [vmem:[#allocation58_spill] sm:$0xff] %v12012_v17  ;;  %v2917_v21 = vmul.f32 0.5, %v12012_v17  ;;  %7291 = vst.msk [vmem:[%s11498_s30 + $0x1d8] sm:$0xff] %vm4016_vm2, %v12012_v17  ;;  %3468 = vrot.lane.b32.xlu1 %v10249_v52, %s10932_s8  ;;  %3470 = vrot.lane.b32.xlu0 %v10251_v59, %s10932_s8  ;;  %v10253_v48 = vpop.eup %10252 }
 0x23d   : > { %14362 = vst [vmem:[#allocation59_spill] sm:$0xff] %v12015_v20  ;;  %10262 = vpow2.f32 %v3098_v57  ;;  %v2916_v9 = vmul.f32 0.5, %v12015_v20  ;;  %7290 = vst.msk [vmem:[%s11498_s30 + $0x1d0] sm:$0xff] %vm4016_vm2, %v12015_v20  ;;  %v9623_v35 = vpop.f32.mrb[60].mxu1 }
 0x23e   : > { %v12028_v51 = vadd.f32 %v11993_v54, %v9623_v35  ;;  %v2391_v15 = vpop.f32.mrb[61].mxu1  ;;  %10264 = vpow2.f32 %v3100_v37  ;;  %v3104_v52 = vmul.f32 1.442695, %v2917_v21 }
 0x23f   : > { %v10255_v27 = vpop.eup %10254  ;;  %v3102_v17 = vmul.f32 1.442695, %v2916_v9  ;;  %v12031_v34 = vadd.f32 %v11993_v54, %v2391_v15 }
 0x240   : > { %14363 = vst [vmem:[#allocation60_spill] sm:$0xff] %v12028_v51  ;;  %v2919_v57 = vmul.f32 0.5, %v12028_v51  ;;  %7293 = vst.msk [vmem:[%s11498_s30 + $0x1e8] sm:$0xff] %vm4016_vm2, %v12028_v51  ;;  %3472 = vrot.lane.b32.xlu1 %v10253_v48, %s10932_s8  ;;  %3474 = vrot.lane.b32.xlu0 %v10255_v27, %s10932_s8  ;;  %v10257_v37 = vpop.eup %10256 }
 0x241   : > { %14364 = vst [vmem:[#allocation61_spill] sm:$0xff] %v12031_v34  ;;  %10266 = vpow2.f32 %v3102_v17  ;;  %v2918_v59 = vmul.f32 0.5, %v12031_v34  ;;  %7292 = vst.msk [vmem:[%s11498_s30 + $0x1e0] sm:$0xff] %vm4016_vm2, %v12031_v34  ;;  %v9626_v9 = vpop.f32.mrb[62].mxu1  ;;  %v2730_v34 = vld [vmem:[%s12063_s17] sm:$0xff] }
 0x242   : > { %v12044_v21 = vadd.f32 %v11993_v54, %v9626_v9  ;;  %v2401_v35 = vpop.f32.mrb[63].mxu1  ;;  %10268 = vpow2.f32 %v3104_v52  ;;  %v3108_v17 = vmul.f32 1.442695, %v2919_v57 }
 0x243   : > { %v10259_v15 = vpop.eup %10258  ;;  %v3106_v51 = vmul.f32 1.442695, %v2918_v59  ;;  %v12047_v48 = vadd.f32 %v11993_v54, %v2401_v35 }
 0x244   : > { %14365 = vst [vmem:[#allocation62_spill] sm:$0xff] %v12044_v21  ;;  %v2921_v27 = vmul.f32 0.5, %v12044_v21  ;;  %7295 = vst.msk [vmem:[%s11498_s30 + $0x1f8] sm:$0xff] %vm4016_vm2, %v12044_v21  ;;  %3476 = vrot.lane.b32.xlu1 %v10257_v37, %s10932_s8  ;;  %3478 = vrot.lane.b32.xlu0 %v10259_v15, %s10932_s8  ;;  %v10261_v52 = vpop.eup %10260 }
 0x245   : > { %14366 = vst [vmem:[#allocation63_spill] sm:$0xff] %v12047_v48  ;;  %10270 = vpow2.f32 %v3106_v51  ;;  %v2920_v9 = vmul.f32 0.5, %v12047_v48  ;;  %7294 = vst.msk [vmem:[%s11498_s30 + $0x1f0] sm:$0xff] %vm4016_vm2, %v12047_v48  ;;  %v9629_v59 = vpop.f32.mrb[64].mxu1 }
 0x246   : > { %v12066_v57 = vadd.f32 %v11993_v54, %v9629_v59  ;;  %v2411_v37 = vpop.f32.mrb[65].mxu1  ;;  %10272 = vpow2.f32 %v3108_v17  ;;  %v3112_v21 = vmul.f32 1.442695, %v2921_v27 }
 0x247   : > { %v10263_v35 = vpop.eup %10262  ;;  %v3110_v51 = vmul.f32 1.442695, %v2920_v9  ;;  %v12069_v15 = vadd.f32 %v11993_v54, %v2411_v37 }
 0x248   : > { %14367 = vst [vmem:[#allocation64_spill] sm:$0xff] %v12066_v57  ;;  %v2923_v48 = vmul.f32 0.5, %v12066_v57  ;;  %7297 = vst.msk [vmem:[%s11498_s30 + $0x208] sm:$0xff] %vm4016_vm2, %v12066_v57  ;;  %3480 = vrot.lane.b32.xlu1 %v10261_v52, %s10932_s8  ;;  %3482 = vrot.lane.b32.xlu0 %v10263_v35, %s10932_s8  ;;  %v10265_v27 = vpop.eup %10264 }
 0x249   : > { %14368 = vst [vmem:[#allocation65_spill] sm:$0xff] %v12069_v15  ;;  %10274 = vpow2.f32 %v3110_v51  ;;  %v2922_v59 = vmul.f32 0.5, %v12069_v15  ;;  %7296 = vst.msk [vmem:[%s11498_s30 + $0x200] sm:$0xff] %vm4016_vm2, %v12069_v15  ;;  %v9632_v17 = vpop.f32.mrb[66].mxu1 }
 0x24a   : > { %v12083_v9 = vadd.f32 %v11993_v54, %v9632_v17  ;;  %v2421_v37 = vpop.f32.mrb[67].mxu1  ;;  %v3371_v57 = vpop.permute.xlu0 %3370  ;;  %10276 = vpow2.f32 %v3112_v21  ;;  %v3116_v2 = vmul.f32 1.442695, %v2923_v48  ;;  %v2732_v17 = vld [vmem:[%s12063_s17 + $0x10] sm:$0xff]  ;;  %v2731_v48 = vld [vmem:[%s12063_s17 + $0x8] sm:$0xff] }
 0x24b   : > { %v10267_v52 = vpop.eup %10266  ;;  %v3114_v35 = vmul.f32 1.442695, %v2922_v59  ;;  %v12086_v20 = vadd.f32 %v11993_v54, %v2421_v37  ;;  %v3754_v51 = vmul.f32 %v3371_v57, %v2730_v34 }
 0x24c   : > { %14369 = vst [vmem:[#allocation66_spill] sm:$0xff] %v12083_v9  ;;  %v2925_v15 = vmul.f32 0.5, %v12083_v9  ;;  %7299 = vst.msk [vmem:[%s11498_s30 + $0x218] sm:$0xff] %vm4016_vm2, %v12083_v9  ;;  %3484 = vrot.lane.b32.xlu1 %v10265_v27, %s10932_s8  ;;  %3486 = vrot.lane.b32.xlu0 %v10267_v52, %s10932_s8  ;;  %v10269_v57 = vpop.eup %10268 }
 0x24d   : > { %14370 = vst [vmem:[#allocation67_spill] sm:$0xff] %v12086_v20  ;;  %10278 = vpow2.f32 %v3114_v35  ;;  %v2924_v26 = vmul.f32 0.5, %v12086_v20  ;;  %7298 = vst.msk [vmem:[%s11498_s30 + $0x210] sm:$0xff] %vm4016_vm2, %v12086_v20  ;;  %v3882_v34 = vadd.f32 %v3754_v51, %v11506_v36  ;;  %v9635_v21 = vpop.f32.mrb[68].mxu1 }
 0x24e   : > { %v12102_v59 = vadd.f32 %v11993_v54, %v9635_v21  ;;  %v2431_v27 = vpop.f32.mrb[69].mxu1  ;;  %v3375_v37 = vpop.permute.xlu1 %3374  ;;  %10280 = vpow2.f32 %v3116_v2  ;;  %v3120_v51 = vmul.f32 1.442695, %v2925_v15 }
 0x24f   : > { %v10271_v52 = vpop.eup %10270  ;;  %v3118_v35 = vmul.f32 1.442695, %v2924_v26  ;;  %v12105_v9 = vadd.f32 %v11993_v54, %v2431_v27  ;;  %v3756_v44 = vmul.f32 %v3375_v37, %v2732_v17  ;;  %v3373_v20 = vpop.permute.xlu0 %3372  ;;  %9725 = vmatprep.mubr.msk.f32.mxu0 %vm4016_vm2, %v3882_v34  ;;  %v2733_v26 = vld [vmem:[%s12063_s17 + $0x18] sm:$0xff]  ;;  %v2734_v34 = vld [vmem:[%s12063_s17 + $0x20] sm:$0xff] }
 0x250   : > { %14371 = vst [vmem:[#allocation68_spill] sm:$0xff] %v12102_v59  ;;  %v2927_v36 = vmul.f32 0.5, %v12102_v59  ;;  %7301 = vst.msk [vmem:[%s11498_s30 + $0x228] sm:$0xff] %vm4016_vm2, %v12102_v59  ;;  %v3755_v21 = vmul.f32 %v3373_v20, %v2731_v48  ;;  %3488 = vrot.lane.b32.xlu1 %v10269_v57, %s10932_s8  ;;  %3490 = vrot.lane.b32.xlu0 %v10271_v52, %s10932_s8  ;;  %v10273_v27 = vpop.eup %10272 }
 0x251   : > { %14372 = vst [vmem:[#allocation69_spill] sm:$0xff] %v12105_v9  ;;  %10282 = vpow2.f32 %v3118_v35  ;;  %v2926_v17 = vmul.f32 0.5, %v12105_v9  ;;  %7300 = vst.msk [vmem:[%s11498_s30 + $0x220] sm:$0xff] %vm4016_vm2, %v12105_v9  ;;  %v3884_v2 = vadd.f32 %v3756_v44, %v11524_v49  ;;  %v9638_v15 = vpop.f32.mrb[70].mxu1 }
 0x252   : > { %v3883_v37 = vadd.f32 %v3755_v21, %v11502_v33  ;;  %v12123_v20 = vadd.f32 %v11993_v54, %v9638_v15  ;;  %v2441_v48 = vpop.f32.mrb[71].mxu1  ;;  %v3377_v57 = vpop.permute.xlu1 %3376  ;;  %10284 = vpow2.f32 %v3120_v51  ;;  %v3124_v49 = vmul.f32 1.442695, %v2927_v36  ;;  %v2735_v15 = vld [vmem:[%s12063_s17 + $0x28] sm:$0xff] }
 0x253   : > { %v10275_v52 = vpop.eup %10274  ;;  %v3122_v35 = vmul.f32 1.442695, %v2926_v17  ;;  %v12126_v59 = vadd.f32 %v11993_v54, %v2441_v48  ;;  %v3757_v9 = vmul.f32 %v3377_v57, %v2733_v26  ;;  %v3379_v44 = vpop.permute.xlu0 %3378  ;;  %v2736_v26 = vld [vmem:[%s12063_s17 + $0x30] sm:$0xff] }
 0x254   : > { %14373 = vst [vmem:[#allocation70_spill] sm:$0xff] %v12123_v20  ;;  %v2929_v58 = vmul.f32 0.5, %v12123_v20  ;;  %7303 = vst.msk [vmem:[%s11498_s30 + $0x238] sm:$0xff] %vm4016_vm2, %v12123_v20  ;;  %v3758_v21 = vmul.f32 %v3379_v44, %v2734_v34  ;;  %9726 = vmatmul.mubr.msk.f32.vlgmr.msra.gmra.mrb[128].mxu0 %vm4016_vm2, %v3883_v37  ;;  %3492 = vrot.lane.b32.xlu1 %v10273_v27, %s10932_s8  ;;  %v10277_v34 = vpop.eup %10276 }
 0x255   : > { %10286 = vpow2.f32 %v3122_v35  ;;  %v2928_v17 = vmul.f32 0.5, %v12126_v59  ;;  %7302 = vst.msk [vmem:[%s11498_s30 + $0x230] sm:$0xff] %vm4016_vm2, %v12126_v59  ;;  %v3885_v51 = vadd.f32 %v3757_v9, %v11520_v45  ;;  %3494 = vrot.lane.b32.xlu0 %v10275_v52, %s10932_s8  ;;  %9728 = vmatprep.mubr.msk.f32.mxu0 %vm4016_vm2, %v3884_v2  ;;  %v9641_v36 = vpop.f32.mrb[72].mxu1 }
 0x256   : > { %v3886_v37 = vadd.f32 %v3758_v21, %v11547_v0  ;;  %v12145_v27 = vadd.f32 %v11993_v54, %v9641_v36  ;;  %v2451_v48 = vpop.f32.mrb[73].mxu1  ;;  %v3381_v57 = vpop.permute.xlu1 %3380  ;;  %10288 = vpow2.f32 %v3124_v49  ;;  %v3128_v45 = vmul.f32 1.442695, %v2929_v58  ;;  %v2737_v36 = vld [vmem:[%s12063_s17 + $0x38] sm:$0xff] }
 0x257   : > { %v10279_v35 = vpop.eup %10278  ;;  %v3126_v44 = vmul.f32 1.442695, %v2928_v17  ;;  %v12148_v9 = vadd.f32 %v11993_v54, %v2451_v48  ;;  %v3759_v52 = vmul.f32 %v3381_v57, %v2735_v15  ;;  %v3383_v2 = vpop.permute.xlu0 %3382  ;;  %v2738_v15 = vld [vmem:[%s12063_s17 + $0x40] sm:$0xff] }
 0x258   : > { %v2931_v20 = vmul.f32 0.5, %v12145_v27  ;;  %7305 = vst.msk [vmem:[%s11498_s30 + $0x248] sm:$0xff] %vm4016_vm2, %v12145_v27  ;;  %v3760_v21 = vmul.f32 %v3383_v2, %v2736_v26  ;;  %9729 = vmatmul.mubr.msk.f32.gmra.mrb[130].mxu0 %vm4016_vm2, %v3885_v51  ;;  %3496 = vrot.lane.b32.xlu1 %v10277_v34, %s10932_s8  ;;  %v10281_v26 = vpop.eup %10280 }
 0x259   : > { %10290 = vpow2.f32 %v3126_v44  ;;  %v2930_v17 = vmul.f32 0.5, %v12148_v9  ;;  %7304 = vst.msk [vmem:[%s11498_s30 + $0x240] sm:$0xff] %vm4016_vm2, %v12148_v9  ;;  %v3887_v49 = vadd.f32 %v3759_v52, %v11543_v60  ;;  %3498 = vrot.lane.b32.xlu0 %v10279_v35, %s10932_s8  ;;  %9731 = vmatprep.mubr.msk.f32.mxu0 %vm4016_vm2, %v3886_v37  ;;  %v9644_v58 = vpop.f32.mrb[74].mxu1 }
 0x25a   : > { %v3888_v51 = vadd.f32 %v3760_v21, %v11565_v14  ;;  %v12167_v34 = vadd.f32 %v11993_v54, %v9644_v58  ;;  %v2461_v48 = vpop.f32.mrb[75].mxu1  ;;  %v3385_v57 = vpop.permute.xlu1 %3384  ;;  %10292 = vpow2.f32 %v3128_v45  ;;  %v3132_v60 = vmul.f32 1.442695, %v2931_v20  ;;  %v2739_v58 = vld [vmem:[%s12063_s17 + $0x48] sm:$0xff] }
 0x25b   : > { %v10283_v44 = vpop.eup %10282  ;;  %v3130_v2 = vmul.f32 1.442695, %v2930_v17  ;;  %v12170_v52 = vadd.f32 %v11993_v54, %v2461_v48  ;;  %v3761_v35 = vmul.f32 %v3385_v57, %v2737_v36  ;;  %v3387_v37 = vpop.permute.xlu0 %3386  ;;  %v2740_v36 = vld [vmem:[%s12063_s17 + $0x50] sm:$0xff] }
 0x25c   : > { %v2933_v0 = vmul.f32 0.5, %v12167_v34  ;;  %7307 = vst.msk [vmem:[%s11498_s30 + $0x258] sm:$0xff] %vm4016_vm2, %v12167_v34  ;;  %v3762_v21 = vmul.f32 %v3387_v37, %v2738_v15  ;;  %9732 = vmatmul.mubr.msk.f32.gmra.mrb[132].mxu0 %vm4016_vm2, %v3887_v49  ;;  %3500 = vrot.lane.b32.xlu1 %v10281_v26, %s10932_s8  ;;  %v10285_v15 = vpop.eup %10284 }
 0x25d   : > { %10294 = vpow2.f32 %v3130_v2  ;;  %v2932_v17 = vmul.f32 0.5, %v12170_v52  ;;  %7306 = vst.msk [vmem:[%s11498_s30 + $0x250] sm:$0xff] %vm4016_vm2, %v12170_v52  ;;  %v3889_v45 = vadd.f32 %v3761_v35, %v11561_v10  ;;  %3502 = vrot.lane.b32.xlu0 %v10283_v44, %s10932_s8  ;;  %9734 = vmatprep.mubr.msk.f32.mxu0 %vm4016_vm2, %v3888_v51  ;;  %v9647_v20 = vpop.f32.mrb[76].mxu1 }
 0x25e   : > { %v3890_v49 = vadd.f32 %v3762_v21, %v11583_v30  ;;  %v12189_v26 = vadd.f32 %v11993_v54, %v9647_v20  ;;  %v2471_v48 = vpop.f32.mrb[77].mxu1  ;;  %v3389_v57 = vpop.permute.xlu1 %3388  ;;  %10296 = vpow2.f32 %v3132_v60  ;;  %v3136_v10 = vmul.f32 1.442695, %v2933_v0  ;;  %v2741_v20 = vld [vmem:[%s12063_s17 + $0x58] sm:$0xff] }
 0x25f   : > { %v10287_v2 = vpop.eup %10286  ;;  %v3134_v37 = vmul.f32 1.442695, %v2932_v17  ;;  %v12192_v35 = vadd.f32 %v11993_v54, %v2471_v48  ;;  %v3763_v44 = vmul.f32 %v3389_v57, %v2739_v58  ;;  %v3391_v51 = vpop.permute.xlu0 %3390  ;;  %v2742_v58 = vld [vmem:[%s12063_s17 + $0x60] sm:$0xff] }
 0x260   : > { %v2935_v14 = vmul.f32 0.5, %v12189_v26  ;;  %7309 = vst.msk [vmem:[%s11498_s30 + $0x268] sm:$0xff] %vm4016_vm2, %v12189_v26  ;;  %v3764_v21 = vmul.f32 %v3391_v51, %v2740_v36  ;;  %9735 = vmatmul.mubr.msk.f32.gmra.mrb[134].mxu0 %vm4016_vm2, %v3889_v45  ;;  %3504 = vrot.lane.b32.xlu1 %v10285_v15, %s10932_s8  ;;  %v10289_v36 = vpop.eup %10288 }
 0x261   : > { %10298 = vpow2.f32 %v3134_v37  ;;  %v2934_v17 = vmul.f32 0.5, %v12192_v35  ;;  %7308 = vst.msk [vmem:[%s11498_s30 + $0x260] sm:$0xff] %vm4016_vm2, %v12192_v35  ;;  %v3891_v60 = vadd.f32 %v3763_v44, %v11579_v24  ;;  %3506 = vrot.lane.b32.xlu0 %v10287_v2, %s10932_s8  ;;  %9737 = vmatprep.mubr.msk.f32.mxu0 %vm4016_vm2, %v3890_v49  ;;  %v9650_v0 = vpop.f32.mrb[78].mxu1 }
 0x262   : > { %v3892_v45 = vadd.f32 %v3764_v21, %v11602_v50  ;;  %v12211_v15 = vadd.f32 %v11993_v54, %v9650_v0  ;;  %v2481_v48 = vpop.f32.mrb[79].mxu1  ;;  %v3393_v57 = vpop.permute.xlu1 %3392  ;;  %10300 = vpow2.f32 %v3136_v10  ;;  %v3140_v24 = vmul.f32 1.442695, %v2935_v14  ;;  %v2743_v0 = vld [vmem:[%s12063_s17 + $0x68] sm:$0xff] }
 0x263   : > { %v10291_v37 = vpop.eup %10290  ;;  %v3138_v51 = vmul.f32 1.442695, %v2934_v17  ;;  %v12214_v44 = vadd.f32 %v11993_v54, %v2481_v48  ;;  %v3765_v2 = vmul.f32 %v3393_v57, %v2741_v20  ;;  %v3395_v49 = vpop.permute.xlu0 %3394  ;;  %v2744_v20 = vld [vmem:[%s12063_s17 + $0x70] sm:$0xff] }
 0x264   : > { %v2937_v30 = vmul.f32 0.5, %v12211_v15  ;;  %7311 = vst.msk [vmem:[%s11498_s30 + $0x278] sm:$0xff] %vm4016_vm2, %v12211_v15  ;;  %v3766_v21 = vmul.f32 %v3395_v49, %v2742_v58  ;;  %9738 = vmatmul.mubr.msk.f32.gmra.mrb[136].mxu0 %vm4016_vm2, %v3891_v60  ;;  %3508 = vrot.lane.b32.xlu1 %v10289_v36, %s10932_s8  ;;  %v10293_v58 = vpop.eup %10292 }
 0x265   : > { %10302 = vpow2.f32 %v3138_v51  ;;  %v2936_v17 = vmul.f32 0.5, %v12214_v44  ;;  %7310 = vst.msk [vmem:[%s11498_s30 + $0x270] sm:$0xff] %vm4016_vm2, %v12214_v44  ;;  %v3893_v10 = vadd.f32 %v3765_v2, %v11598_v43  ;;  %3510 = vrot.lane.b32.xlu0 %v10291_v37, %s10932_s8  ;;  %9740 = vmatprep.mubr.msk.f32.mxu0 %vm4016_vm2, %v3892_v45  ;;  %v9653_v14 = vpop.f32.mrb[80].mxu1 }
 0x266   : > { %v3894_v60 = vadd.f32 %v3766_v21, %v11622_v5  ;;  %v12233_v36 = vadd.f32 %v11993_v54, %v9653_v14  ;;  %v2491_v48 = vpop.f32.mrb[81].mxu1  ;;  %v3397_v57 = vpop.permute.xlu1 %3396  ;;  %10304 = vpow2.f32 %v3140_v24  ;;  %v3144_v43 = vmul.f32 1.442695, %v2937_v30  ;;  %v2745_v14 = vld [vmem:[%s12063_s17 + $0x78] sm:$0xff] }
 0x267   : > { %v10295_v51 = vpop.eup %10294  ;;  %v3142_v49 = vmul.f32 1.442695, %v2936_v17  ;;  %v12236_v2 = vadd.f32 %v11993_v54, %v2491_v48  ;;  %v3767_v37 = vmul.f32 %v3397_v57, %v2743_v0  ;;  %v3399_v45 = vpop.permute.xlu0 %3398  ;;  %v2746_v0 = vld [vmem:[%s12063_s17 + $0x80] sm:$0xff] }
 0x268   : > { %v2939_v50 = vmul.f32 0.5, %v12233_v36  ;;  %7313 = vst.msk [vmem:[%s11498_s30 + $0x288] sm:$0xff] %vm4016_vm2, %v12233_v36  ;;  %v3768_v21 = vmul.f32 %v3399_v45, %v2744_v20  ;;  %9741 = vmatmul.mubr.msk.f32.gmra.mrb[138].mxu0 %vm4016_vm2, %v3893_v10  ;;  %3512 = vrot.lane.b32.xlu1 %v10293_v58, %s10932_s8  ;;  %v10297_v20 = vpop.eup %10296 }
 0x269   : > { %10306 = vpow2.f32 %v3142_v49  ;;  %v2938_v17 = vmul.f32 0.5, %v12236_v2  ;;  %7312 = vst.msk [vmem:[%s11498_s30 + $0x280] sm:$0xff] %vm4016_vm2, %v12236_v2  ;;  %v3895_v24 = vadd.f32 %v3767_v37, %v11618_v63  ;;  %3514 = vrot.lane.b32.xlu0 %v10295_v51, %s10932_s8  ;;  %9743 = vmatprep.mubr.msk.f32.mxu0 %vm4016_vm2, %v3894_v60  ;;  %v9656_v30 = vpop.f32.mrb[82].mxu1 }
 0x26a   : > { %v3896_v10 = vadd.f32 %v3768_v21, %v11642_v23  ;;  %v12255_v58 = vadd.f32 %v11993_v54, %v9656_v30  ;;  %v2501_v48 = vpop.f32.mrb[83].mxu1  ;;  %v3401_v57 = vpop.permute.xlu1 %3400  ;;  %10308 = vpow2.f32 %v3144_v43  ;;  %v3148_v63 = vmul.f32 1.442695, %v2939_v50  ;;  %v2747_v30 = vld [vmem:[%s12063_s17 + $0x88] sm:$0xff] }
 0x26b   : > { %v10299_v49 = vpop.eup %10298  ;;  %v3146_v45 = vmul.f32 1.442695, %v2938_v17  ;;  %v12258_v37 = vadd.f32 %v11993_v54, %v2501_v48  ;;  %v3769_v51 = vmul.f32 %v3401_v57, %v2745_v14  ;;  %v3403_v60 = vpop.permute.xlu0 %3402  ;;  %v2748_v14 = vld [vmem:[%s12063_s17 + $0x90] sm:$0xff] }
 0x26c   : > { %v2941_v5 = vmul.f32 0.5, %v12255_v58  ;;  %7315 = vst.msk [vmem:[%s11498_s30 + $0x298] sm:$0xff] %vm4016_vm2, %v12255_v58  ;;  %v3770_v21 = vmul.f32 %v3403_v60, %v2746_v0  ;;  %9744 = vmatmul.mubr.msk.f32.gmra.mrb[140].mxu0 %vm4016_vm2, %v3895_v24  ;;  %3516 = vrot.lane.b32.xlu1 %v10297_v20, %s10932_s8  ;;  %v10301_v0 = vpop.eup %10300 }
 0x26d   : > { %10310 = vpow2.f32 %v3146_v45  ;;  %v2940_v17 = vmul.f32 0.5, %v12258_v37  ;;  %7314 = vst.msk [vmem:[%s11498_s30 + $0x290] sm:$0xff] %vm4016_vm2, %v12258_v37  ;;  %v3897_v43 = vadd.f32 %v3769_v51, %v11638_v18  ;;  %3518 = vrot.lane.b32.xlu0 %v10299_v49, %s10932_s8  ;;  %9746 = vmatprep.mubr.msk.f32.mxu0 %vm4016_vm2, %v3896_v10  ;;  %v9659_v50 = vpop.f32.mrb[84].mxu1 }
 0x26e   : > { %v3898_v24 = vadd.f32 %v3770_v21, %v11662_v46  ;;  %v12277_v20 = vadd.f32 %v11993_v54, %v9659_v50  ;;  %v2511_v48 = vpop.f32.mrb[85].mxu1  ;;  %v3405_v57 = vpop.permute.xlu1 %3404  ;;  %10312 = vpow2.f32 %v3148_v63  ;;  %v3152_v18 = vmul.f32 1.442695, %v2941_v5  ;;  %v2749_v50 = vld [vmem:[%s12063_s17 + $0x98] sm:$0xff] }
 0x26f   : > { %v10303_v45 = vpop.eup %10302  ;;  %v3150_v60 = vmul.f32 1.442695, %v2940_v17  ;;  %v12280_v51 = vadd.f32 %v11993_v54, %v2511_v48  ;;  %v3771_v49 = vmul.f32 %v3405_v57, %v2747_v30  ;;  %v3407_v10 = vpop.permute.xlu0 %3406  ;;  %v2750_v30 = vld [vmem:[%s12063_s17 + $0xa0] sm:$0xff] }
 0x270   : > { %v2943_v23 = vmul.f32 0.5, %v12277_v20  ;;  %7317 = vst.msk [vmem:[%s11498_s30 + $0x2a8] sm:$0xff] %vm4016_vm2, %v12277_v20  ;;  %v3772_v21 = vmul.f32 %v3407_v10, %v2748_v14  ;;  %9747 = vmatmul.mubr.msk.f32.gmra.mrb[142].mxu0 %vm4016_vm2, %v3897_v43  ;;  %3520 = vrot.lane.b32.xlu1 %v10301_v0, %s10932_s8  ;;  %v10305_v14 = vpop.eup %10304 }
 0x271   : > { %10314 = vpow2.f32 %v3150_v60  ;;  %v2942_v17 = vmul.f32 0.5, %v12280_v51  ;;  %7316 = vst.msk [vmem:[%s11498_s30 + $0x2a0] sm:$0xff] %vm4016_vm2, %v12280_v51  ;;  %v3899_v63 = vadd.f32 %v3771_v49, %v11658_v39  ;;  %3522 = vrot.lane.b32.xlu0 %v10303_v45, %s10932_s8  ;;  %9749 = vmatprep.mubr.msk.f32.mxu0 %vm4016_vm2, %v3898_v24  ;;  %v9662_v5 = vpop.f32.mrb[86].mxu1 }
 0x272   : > { %v3900_v43 = vadd.f32 %v3772_v21, %v11682_v4  ;;  %v12299_v0 = vadd.f32 %v11993_v54, %v9662_v5  ;;  %v2521_v48 = vpop.f32.mrb[87].mxu1  ;;  %v3409_v57 = vpop.permute.xlu1 %3408  ;;  %10316 = vpow2.f32 %v3152_v18  ;;  %v3156_v39 = vmul.f32 1.442695, %v2943_v23  ;;  %v2751_v5 = vld [vmem:[%s12063_s17 + $0xa8] sm:$0xff] }
 0x273   : > { %v10307_v60 = vpop.eup %10306  ;;  %v3154_v10 = vmul.f32 1.442695, %v2942_v17  ;;  %v12302_v49 = vadd.f32 %v11993_v54, %v2521_v48  ;;  %v3773_v45 = vmul.f32 %v3409_v57, %v2749_v50  ;;  %v3411_v24 = vpop.permute.xlu0 %3410  ;;  %v2752_v50 = vld [vmem:[%s12063_s17 + $0xb0] sm:$0xff] }
 0x274   : > { %v2945_v46 = vmul.f32 0.5, %v12299_v0  ;;  %7319 = vst.msk [vmem:[%s11498_s30 + $0x2b8] sm:$0xff] %vm4016_vm2, %v12299_v0  ;;  %v3774_v21 = vmul.f32 %v3411_v24, %v2750_v30  ;;  %9750 = vmatmul.mubr.msk.f32.gmra.mrb[144].mxu0 %vm4016_vm2, %v3899_v63  ;;  %3524 = vrot.lane.b32.xlu1 %v10305_v14, %s10932_s8  ;;  %v10309_v30 = vpop.eup %10308 }
 0x275   : > { %10318 = vpow2.f32 %v3154_v10  ;;  %v2944_v17 = vmul.f32 0.5, %v12302_v49  ;;  %7318 = vst.msk [vmem:[%s11498_s30 + $0x2b0] sm:$0xff] %vm4016_vm2, %v12302_v49  ;;  %v3901_v18 = vadd.f32 %v3773_v45, %v11678_v61  ;;  %3526 = vrot.lane.b32.xlu0 %v10307_v60, %s10932_s8  ;;  %9752 = vmatprep.mubr.msk.f32.mxu0 %vm4016_vm2, %v3900_v43  ;;  %v9665_v23 = vpop.f32.mrb[88].mxu1 }
 0x276   : > { %v3902_v63 = vadd.f32 %v3774_v21, %v11700_v16  ;;  %v12321_v14 = vadd.f32 %v11993_v54, %v9665_v23  ;;  %v2531_v48 = vpop.f32.mrb[89].mxu1  ;;  %v3413_v57 = vpop.permute.xlu1 %3412  ;;  %10320 = vpow2.f32 %v3156_v39  ;;  %v3160_v61 = vmul.f32 1.442695, %v2945_v46  ;;  %v2753_v23 = vld [vmem:[%s12063_s17 + $0xb8] sm:$0xff] }
 0x277   : > { %v10311_v10 = vpop.eup %10310  ;;  %v3158_v24 = vmul.f32 1.442695, %v2944_v17  ;;  %v12324_v45 = vadd.f32 %v11993_v54, %v2531_v48  ;;  %v3775_v60 = vmul.f32 %v3413_v57, %v2751_v5  ;;  %v3415_v43 = vpop.permute.xlu0 %3414  ;;  %v2754_v5 = vld [vmem:[%s12063_s17 + $0xc0] sm:$0xff] }
 0x278   : > { %v2947_v4 = vmul.f32 0.5, %v12321_v14  ;;  %7321 = vst.msk [vmem:[%s11498_s30 + $0x2c8] sm:$0xff] %vm4016_vm2, %v12321_v14  ;;  %v3776_v21 = vmul.f32 %v3415_v43, %v2752_v50  ;;  %9753 = vmatmul.mubr.msk.f32.gmra.mrb[146].mxu0 %vm4016_vm2, %v3901_v18  ;;  %3528 = vrot.lane.b32.xlu1 %v10309_v30, %s10932_s8  ;;  %v10313_v50 = vpop.eup %10312 }
 0x279   : > { %10322 = vpow2.f32 %v3158_v24  ;;  %v2946_v17 = vmul.f32 0.5, %v12324_v45  ;;  %7320 = vst.msk [vmem:[%s11498_s30 + $0x2c0] sm:$0xff] %vm4016_vm2, %v12324_v45  ;;  %v3903_v39 = vadd.f32 %v3775_v60, %v11696_v11  ;;  %3530 = vrot.lane.b32.xlu0 %v10311_v10, %s10932_s8  ;;  %9755 = vmatprep.mubr.msk.f32.mxu0 %vm4016_vm2, %v3902_v63  ;;  %v9668_v46 = vpop.f32.mrb[90].mxu1 }
 0x27a   : > { %v3904_v18 = vadd.f32 %v3776_v21, %v11716_v31  ;;  %v12343_v30 = vadd.f32 %v11993_v54, %v9668_v46  ;;  %v2541_v48 = vpop.f32.mrb[91].mxu1  ;;  %v3417_v57 = vpop.permute.xlu1 %3416  ;;  %10324 = vpow2.f32 %v3160_v61  ;;  %v3164_v11 = vmul.f32 1.442695, %v2947_v4  ;;  %v2755_v46 = vld [vmem:[%s12063_s17 + $0xc8] sm:$0xff] }
 0x27b   : > { %v10315_v24 = vpop.eup %10314  ;;  %v3162_v43 = vmul.f32 1.442695, %v2946_v17  ;;  %v12346_v60 = vadd.f32 %v11993_v54, %v2541_v48  ;;  %v3777_v10 = vmul.f32 %v3417_v57, %v2753_v23  ;;  %v3419_v63 = vpop.permute.xlu0 %3418  ;;  %v2756_v23 = vld [vmem:[%s12063_s17 + $0xd0] sm:$0xff] }
 0x27c   : > { %v2949_v16 = vmul.f32 0.5, %v12343_v30  ;;  %7323 = vst.msk [vmem:[%s11498_s30 + $0x2d8] sm:$0xff] %vm4016_vm2, %v12343_v30  ;;  %v3778_v21 = vmul.f32 %v3419_v63, %v2754_v5  ;;  %9756 = vmatmul.mubr.msk.f32.gmra.mrb[148].mxu0 %vm4016_vm2, %v3903_v39  ;;  %3532 = vrot.lane.b32.xlu1 %v10313_v50, %s10932_s8  ;;  %v10317_v5 = vpop.eup %10316 }
 0x27d   : > { %10326 = vpow2.f32 %v3162_v43  ;;  %v2948_v17 = vmul.f32 0.5, %v12346_v60  ;;  %7322 = vst.msk [vmem:[%s11498_s30 + $0x2d0] sm:$0xff] %vm4016_vm2, %v12346_v60  ;;  %v3905_v61 = vadd.f32 %v3777_v10, %v11713_v25  ;;  %3534 = vrot.lane.b32.xlu0 %v10315_v24, %s10932_s8  ;;  %9758 = vmatprep.mubr.msk.f32.mxu0 %vm4016_vm2, %v3904_v18  ;;  %v9671_v4 = vpop.f32.mrb[92].mxu1 }
 0x27e   : > { %v3906_v39 = vadd.f32 %v3778_v21, %v11732_v47  ;;  %v12365_v50 = vadd.f32 %v11993_v54, %v9671_v4  ;;  %v2551_v48 = vpop.f32.mrb[93].mxu1  ;;  %v3421_v57 = vpop.permute.xlu1 %3420  ;;  %10328 = vpow2.f32 %v3164_v11  ;;  %v3168_v25 = vmul.f32 1.442695, %v2949_v16  ;;  %v2757_v4 = vld [vmem:[%s12063_s17 + $0xd8] sm:$0xff] }
 0x27f   : > { %v10319_v43 = vpop.eup %10318  ;;  %v3166_v63 = vmul.f32 1.442695, %v2948_v17  ;;  %v12368_v10 = vadd.f32 %v11993_v54, %v2551_v48  ;;  %v3779_v24 = vmul.f32 %v3421_v57, %v2755_v46  ;;  %v3423_v18 = vpop.permute.xlu0 %3422  ;;  %v2758_v46 = vld [vmem:[%s12063_s17 + $0xe0] sm:$0xff] }
 0x280   : > { %v2951_v31 = vmul.f32 0.5, %v12365_v50  ;;  %7325 = vst.msk [vmem:[%s11498_s30 + $0x2e8] sm:$0xff] %vm4016_vm2, %v12365_v50  ;;  %v3780_v21 = vmul.f32 %v3423_v18, %v2756_v23  ;;  %9759 = vmatmul.mubr.msk.f32.gmra.mrb[150].mxu0 %vm4016_vm2, %v3905_v61  ;;  %3536 = vrot.lane.b32.xlu1 %v10317_v5, %s10932_s8  ;;  %v10321_v23 = vpop.eup %10320 }
 0x281   : > { %10330 = vpow2.f32 %v3166_v63  ;;  %v2950_v17 = vmul.f32 0.5, %v12368_v10  ;;  %7324 = vst.msk [vmem:[%s11498_s30 + $0x2e0] sm:$0xff] %vm4016_vm2, %v12368_v10  ;;  %v3907_v11 = vadd.f32 %v3779_v24, %v11729_v40  ;;  %3538 = vrot.lane.b32.xlu0 %v10319_v43, %s10932_s8  ;;  %9761 = vmatprep.mubr.msk.f32.mxu0 %vm4016_vm2, %v3906_v39  ;;  %v9674_v16 = vpop.f32.mrb[94].mxu1 }
 0x282   : > { %v3908_v61 = vadd.f32 %v3780_v21, %v11748_v62  ;;  %v12387_v5 = vadd.f32 %v11993_v54, %v9674_v16  ;;  %v2561_v48 = vpop.f32.mrb[95].mxu1  ;;  %v3425_v57 = vpop.permute.xlu1 %3424  ;;  %10332 = vpow2.f32 %v3168_v25  ;;  %v3172_v40 = vmul.f32 1.442695, %v2951_v31  ;;  %v2759_v16 = vld [vmem:[%s12063_s17 + $0xe8] sm:$0xff] }
 0x283   : > { %v10323_v63 = vpop.eup %10322  ;;  %v3170_v18 = vmul.f32 1.442695, %v2950_v17  ;;  %v12390_v24 = vadd.f32 %v11993_v54, %v2561_v48  ;;  %v3781_v43 = vmul.f32 %v3425_v57, %v2757_v4  ;;  %v3427_v39 = vpop.permute.xlu0 %3426  ;;  %v2760_v4 = vld [vmem:[%s12063_s17 + $0xf0] sm:$0xff] }
 0x284   : > { %v2953_v47 = vmul.f32 0.5, %v12387_v5  ;;  %7327 = vst.msk [vmem:[%s11498_s30 + $0x2f8] sm:$0xff] %vm4016_vm2, %v12387_v5  ;;  %v3782_v21 = vmul.f32 %v3427_v39, %v2758_v46  ;;  %9762 = vmatmul.mubr.msk.f32.gmra.mrb[152].mxu0 %vm4016_vm2, %v3907_v11  ;;  %3540 = vrot.lane.b32.xlu1 %v10321_v23, %s10932_s8  ;;  %v10325_v46 = vpop.eup %10324 }
 0x285   : > { %10334 = vpow2.f32 %v3170_v18  ;;  %v2952_v17 = vmul.f32 0.5, %v12390_v24  ;;  %7326 = vst.msk [vmem:[%s11498_s30 + $0x2f0] sm:$0xff] %vm4016_vm2, %v12390_v24  ;;  %v3909_v25 = vadd.f32 %v3781_v43, %v11745_v55  ;;  %3542 = vrot.lane.b32.xlu0 %v10323_v63, %s10932_s8  ;;  %9764 = vmatprep.mubr.msk.f32.mxu0 %vm4016_vm2, %v3908_v61  ;;  %v9677_v31 = vpop.f32.mrb[96].mxu1 }
 0x286   : > { %v3910_v11 = vadd.f32 %v3782_v21, %v11764_v13  ;;  %v12409_v23 = vadd.f32 %v11993_v54, %v9677_v31  ;;  %v2571_v48 = vpop.f32.mrb[97].mxu1  ;;  %v3429_v57 = vpop.permute.xlu1 %3428  ;;  %10336 = vpow2.f32 %v3172_v40  ;;  %v3176_v55 = vmul.f32 1.442695, %v2953_v47  ;;  %v2761_v31 = vld [vmem:[%s12063_s17 + $0xf8] sm:$0xff] }
 0x287   : > { %v10327_v18 = vpop.eup %10326  ;;  %v3174_v39 = vmul.f32 1.442695, %v2952_v17  ;;  %v12412_v43 = vadd.f32 %v11993_v54, %v2571_v48  ;;  %v3783_v63 = vmul.f32 %v3429_v57, %v2759_v16  ;;  %v3431_v61 = vpop.permute.xlu0 %3430  ;;  %v2762_v16 = vld [vmem:[%s12063_s17 + $0x100] sm:$0xff] }
 0x288   : > { %v2955_v62 = vmul.f32 0.5, %v12409_v23  ;;  %7329 = vst.msk [vmem:[%s11498_s30 + $0x308] sm:$0xff] %vm4016_vm2, %v12409_v23  ;;  %v3784_v21 = vmul.f32 %v3431_v61, %v2760_v4  ;;  %9765 = vmatmul.mubr.msk.f32.gmra.mrb[154].mxu0 %vm4016_vm2, %v3909_v25  ;;  %3544 = vrot.lane.b32.xlu1 %v10325_v46, %s10932_s8  ;;  %v10329_v4 = vpop.eup %10328 }
 0x289   : > { %10338 = vpow2.f32 %v3174_v39  ;;  %v2954_v17 = vmul.f32 0.5, %v12412_v43  ;;  %7328 = vst.msk [vmem:[%s11498_s30 + $0x300] sm:$0xff] %vm4016_vm2, %v12412_v43  ;;  %v3911_v40 = vadd.f32 %v3783_v63, %v11761_v7  ;;  %3546 = vrot.lane.b32.xlu0 %v10327_v18, %s10932_s8  ;;  %9767 = vmatprep.mubr.msk.f32.mxu0 %vm4016_vm2, %v3910_v11  ;;  %v9680_v47 = vpop.f32.mrb[98].mxu1 }
 0x28a   : > { %v3912_v25 = vadd.f32 %v3784_v21, %v11780_v32  ;;  %v12431_v46 = vadd.f32 %v11993_v54, %v9680_v47  ;;  %v2581_v48 = vpop.f32.mrb[99].mxu1  ;;  %v3433_v57 = vpop.permute.xlu1 %3432  ;;  %10340 = vpow2.f32 %v3176_v55  ;;  %v3180_v7 = vmul.f32 1.442695, %v2955_v62  ;;  %v2763_v47 = vld [vmem:[%s12063_s17 + $0x108] sm:$0xff] }
 0x28b   : > { %v10331_v39 = vpop.eup %10330  ;;  %v3178_v61 = vmul.f32 1.442695, %v2954_v17  ;;  %v12434_v63 = vadd.f32 %v11993_v54, %v2581_v48  ;;  %v3785_v18 = vmul.f32 %v3433_v57, %v2761_v31  ;;  %v3435_v11 = vpop.permute.xlu0 %3434  ;;  %v2764_v31 = vld [vmem:[%s12063_s17 + $0x110] sm:$0xff] }
 0x28c   : > { %v2957_v13 = vmul.f32 0.5, %v12431_v46  ;;  %7331 = vst.msk [vmem:[%s11498_s30 + $0x318] sm:$0xff] %vm4016_vm2, %v12431_v46  ;;  %v3786_v21 = vmul.f32 %v3435_v11, %v2762_v16  ;;  %9768 = vmatmul.mubr.msk.f32.gmra.mrb[156].mxu0 %vm4016_vm2, %v3911_v40  ;;  %3548 = vrot.lane.b32.xlu1 %v10329_v4, %s10932_s8  ;;  %v10333_v17 = vpop.eup %10332  ;;  %v12455_v16 = vld [vmem:[%s14169_s2 + $0x66] ss:$0 sm:$0xff] }
 0x28d   : > { %10342 = vpow2.f32 %v3178_v61  ;;  %v2956_v54 = vmul.f32 0.5, %v12434_v63  ;;  %7330 = vst.msk [vmem:[%s11498_s30 + $0x310] sm:$0xff] %vm4016_vm2, %v12434_v63  ;;  %v3913_v55 = vadd.f32 %v3785_v18, %v11777_v22  ;;  %3550 = vrot.lane.b32.xlu0 %v10331_v39, %s10932_s8  ;;  %9770 = vmatprep.mubr.msk.f32.mxu0 %vm4016_vm2, %v3912_v25  ;;  %v9683_v62 = vpop.f32.mrb[100].mxu1  ;;  %v2765_v22 = vld [vmem:[%s12063_s17 + $0x118] sm:$0xff] }
 0x28e   : > { %v3914_v40 = vadd.f32 %v3786_v21, %v11796_v56  ;;  %v12458_v4 = vadd.f32 %v12455_v16, %v9683_v62  ;;  %v2591_v48 = vpop.f32.mrb[101].mxu1  ;;  %v3437_v57 = vpop.permute.xlu1 %3436  ;;  %10344 = vpow2.f32 %v3180_v7  ;;  %v3184_v21 = vmul.f32 1.442695, %v2957_v13 }
 0x28f   : > { %v10335_v39 = vpop.eup %10334  ;;  %v3182_v25 = vmul.f32 1.442695, %v2956_v54  ;;  %v12461_v61 = vadd.f32 %v12455_v16, %v2591_v48  ;;  %v3787_v18 = vmul.f32 %v3437_v57, %v2763_v47  ;;  %v3439_v11 = vpop.permute.xlu0 %3438  ;;  %v2766_v47 = vld [vmem:[%s12063_s17 + $0x120] sm:$0xff] }
 0x290   : > { %14374 = vst [vmem:[#allocation71_spill] sm:$0xff] %v12458_v4  ;;  %v2959_v56 = vmul.f32 0.5, %v12458_v4  ;;  %7333 = vst.msk [vmem:[%s11498_s30 + $0x328] sm:$0xff] %vm4016_vm2, %v12458_v4  ;;  %v3788_v62 = vmul.f32 %v3439_v11, %v2764_v31  ;;  %9771 = vmatmul.mubr.msk.f32.gmra.mrb[158].mxu0 %vm4016_vm2, %v3913_v55  ;;  %3552 = vrot.lane.b32.xlu1 %v10333_v17, %s10932_s8  ;;  %v10337_v31 = vpop.eup %10336 }
 0x291   : > { %10346 = vpow2.f32 %v3182_v25  ;;  %v2958_v54 = vmul.f32 0.5, %v12461_v61  ;;  %7332 = vst.msk [vmem:[%s11498_s30 + $0x320] sm:$0xff] %vm4016_vm2, %v12461_v61  ;;  %v3915_v7 = vadd.f32 %v3787_v18, %v11793_v42  ;;  %3554 = vrot.lane.b32.xlu0 %v10335_v39, %s10932_s8  ;;  %9773 = vmatprep.mubr.msk.f32.mxu0 %vm4016_vm2, %v3914_v40  ;;  %v9686_v13 = vpop.f32.mrb[102].mxu1 }
 0x292   : > { %v3916_v55 = vadd.f32 %v3788_v62, %v11812_v6  ;;  %v12480_v17 = vadd.f32 %v12455_v16, %v9686_v13  ;;  %v2601_v48 = vpop.f32.mrb[103].mxu1  ;;  %v3441_v57 = vpop.permute.xlu1 %3440  ;;  %10348 = vpow2.f32 %v3184_v21  ;;  %v3188_v42 = vmul.f32 1.442695, %v2959_v56  ;;  %v2767_v13 = vld [vmem:[%s12063_s17 + $0x128] sm:$0xff]  ;;  %v2768_v21 = vld [vmem:[%s12063_s17 + $0x130] sm:$0xff] }
 0x293   : > { %v10339_v25 = vpop.eup %10338  ;;  %v3186_v11 = vmul.f32 1.442695, %v2958_v54  ;;  %v12483_v18 = vadd.f32 %v12455_v16, %v2601_v48  ;;  %v3789_v39 = vmul.f32 %v3441_v57, %v2765_v22  ;;  %v3443_v40 = vpop.permute.xlu0 %3442 }
 0x294   : > { %v2961_v4 = vmul.f32 0.5, %v12480_v17  ;;  %7335 = vst.msk [vmem:[%s11498_s30 + $0x338] sm:$0xff] %vm4016_vm2, %v12480_v17  ;;  %v3790_v62 = vmul.f32 %v3443_v40, %v2766_v47  ;;  %9774 = vmatmul.mubr.msk.f32.gmra.mrb[160].mxu0 %vm4016_vm2, %v3915_v7  ;;  %3556 = vrot.lane.b32.xlu1 %v10337_v31, %s10932_s8  ;;  %v10341_v47 = vpop.eup %10340 }
 0x295   : > { %10350 = vpow2.f32 %v3186_v11  ;;  %v2960_v54 = vmul.f32 0.5, %v12483_v18  ;;  %7334 = vst.msk [vmem:[%s11498_s30 + $0x330] sm:$0xff] %vm4016_vm2, %v12483_v18  ;;  %v3917_v22 = vadd.f32 %v3789_v39, %v11809_v1  ;;  %3558 = vrot.lane.b32.xlu0 %v10339_v25, %s10932_s8  ;;  %9776 = vmatprep.mubr.msk.f32.mxu0 %vm4016_vm2, %v3916_v55  ;;  %v9689_v56 = vpop.f32.mrb[104].mxu1 }
 0x296   : > { %v3918_v7 = vadd.f32 %v3790_v62, %v11828_v28  ;;  %v12502_v31 = vadd.f32 %v12455_v16, %v9689_v56  ;;  %v2611_v48 = vpop.f32.mrb[105].mxu1  ;;  %v3445_v57 = vpop.permute.xlu1 %3444  ;;  %10352 = vpow2.f32 %v3188_v42  ;;  %v3192_v1 = vmul.f32 1.442695, %v2961_v4  ;;  %v2769_v56 = vld [vmem:[%s12063_s17 + $0x138] sm:$0xff] }
 0x297   : > { %v10343_v11 = vpop.eup %10342  ;;  %v3190_v40 = vmul.f32 1.442695, %v2960_v54  ;;  %v12505_v39 = vadd.f32 %v12455_v16, %v2611_v48  ;;  %v3791_v25 = vmul.f32 %v3445_v57, %v2767_v13  ;;  %v3447_v55 = vpop.permute.xlu0 %3446  ;;  %v2770_v13 = vld [vmem:[%s12063_s17 + $0x140] sm:$0xff] }
 0x298   : > { %14375 = vst [vmem:[#allocation72_spill] sm:$0xff] %v12502_v31  ;;  %v2963_v6 = vmul.f32 0.5, %v12502_v31  ;;  %7337 = vst.msk [vmem:[%s11498_s30 + $0x348] sm:$0xff] %vm4016_vm2, %v12502_v31  ;;  %v3792_v62 = vmul.f32 %v3447_v55, %v2768_v21  ;;  %9777 = vmatmul.mubr.msk.f32.gmra.mrb[162].mxu0 %vm4016_vm2, %v3917_v22  ;;  %3560 = vrot.lane.b32.xlu1 %v10341_v47, %s10932_s8  ;;  %v10345_v21 = vpop.eup %10344 }
 0x299   : > { %10354 = vpow2.f32 %v3190_v40  ;;  %v2962_v54 = vmul.f32 0.5, %v12505_v39  ;;  %7336 = vst.msk [vmem:[%s11498_s30 + $0x340] sm:$0xff] %vm4016_vm2, %v12505_v39  ;;  %v3919_v42 = vadd.f32 %v3791_v25, %v11825_v19  ;;  %3562 = vrot.lane.b32.xlu0 %v10343_v11, %s10932_s8  ;;  %9779 = vmatprep.mubr.msk.f32.mxu0 %vm4016_vm2, %v3918_v7  ;;  %v9692_v4 = vpop.f32.mrb[106].mxu1 }
 0x29a   : > { %v3920_v22 = vadd.f32 %v3792_v62, %v11844_v53  ;;  %v12524_v47 = vadd.f32 %v12455_v16, %v9692_v4  ;;  %v2621_v48 = vpop.f32.mrb[107].mxu1  ;;  %v3449_v57 = vpop.permute.xlu1 %3448  ;;  %10356 = vpow2.f32 %v3192_v1  ;;  %v3196_v19 = vmul.f32 1.442695, %v2963_v6  ;;  %v2771_v4 = vld [vmem:[%s12063_s17 + $0x148] sm:$0xff] }
 0x29b   : > { %v10347_v40 = vpop.eup %10346  ;;  %v3194_v55 = vmul.f32 1.442695, %v2962_v54  ;;  %v12527_v25 = vadd.f32 %v12455_v16, %v2621_v48  ;;  %v3793_v11 = vmul.f32 %v3449_v57, %v2769_v56  ;;  %v3451_v7 = vpop.permute.xlu0 %3450  ;;  %v2772_v56 = vld [vmem:[%s12063_s17 + $0x150] sm:$0xff] }
 0x29c   : > { %14376 = vst [vmem:[#allocation73_spill] sm:$0xff] %v12524_v47  ;;  %v2965_v28 = vmul.f32 0.5, %v12524_v47  ;;  %7339 = vst.msk [vmem:[%s11498_s30 + $0x358] sm:$0xff] %vm4016_vm2, %v12524_v47  ;;  %v3794_v62 = vmul.f32 %v3451_v7, %v2770_v13  ;;  %9780 = vmatmul.mubr.msk.f32.gmra.mrb[164].mxu0 %vm4016_vm2, %v3919_v42  ;;  %3564 = vrot.lane.b32.xlu1 %v10345_v21, %s10932_s8  ;;  %v10349_v13 = vpop.eup %10348 }
 0x29d   : > { %14377 = vst [vmem:[#allocation74_spill] sm:$0xff] %v12527_v25  ;;  %10358 = vpow2.f32 %v3194_v55  ;;  %v2964_v54 = vmul.f32 0.5, %v12527_v25  ;;  %7338 = vst.msk [vmem:[%s11498_s30 + $0x350] sm:$0xff] %vm4016_vm2, %v12527_v25  ;;  %v3921_v1 = vadd.f32 %v3793_v11, %v11841_v41  ;;  %3566 = vrot.lane.b32.xlu0 %v10347_v40, %s10932_s8  ;;  %9782 = vmatprep.mubr.msk.f32.mxu0 %vm4016_vm2, %v3920_v22  ;;  %v9695_v6 = vpop.f32.mrb[108].mxu1 }
 0x29e   : > { %v3922_v42 = vadd.f32 %v3794_v62, %v11860_v12  ;;  %v12546_v21 = vadd.f32 %v12455_v16, %v9695_v6  ;;  %v2631_v48 = vpop.f32.mrb[109].mxu1  ;;  %v3453_v57 = vpop.permute.xlu1 %3452  ;;  %10360 = vpow2.f32 %v3196_v19  ;;  %v3200_v41 = vmul.f32 1.442695, %v2965_v28  ;;  %v2773_v6 = vld [vmem:[%s12063_s17 + $0x158] sm:$0xff] }
 0x29f   : > { %v10351_v55 = vpop.eup %10350  ;;  %v3198_v7 = vmul.f32 1.442695, %v2964_v54  ;;  %v12549_v11 = vadd.f32 %v12455_v16, %v2631_v48  ;;  %v3795_v40 = vmul.f32 %v3453_v57, %v2771_v4  ;;  %v3455_v22 = vpop.permute.xlu0 %3454  ;;  %v2774_v4 = vld [vmem:[%s12063_s17 + $0x160] sm:$0xff] }
 0x2a0   : > { %14378 = vst [vmem:[#allocation75_spill] sm:$0xff] %v12546_v21  ;;  %v2967_v53 = vmul.f32 0.5, %v12546_v21  ;;  %7341 = vst.msk [vmem:[%s11498_s30 + $0x368] sm:$0xff] %vm4016_vm2, %v12546_v21  ;;  %v3796_v62 = vmul.f32 %v3455_v22, %v2772_v56  ;;  %9783 = vmatmul.mubr.msk.f32.gmra.mrb[166].mxu0 %vm4016_vm2, %v3921_v1  ;;  %3568 = vrot.lane.b32.xlu1 %v10349_v13, %s10932_s8  ;;  %v10353_v56 = vpop.eup %10352 }
 0x2a1   : > { %14379 = vst [vmem:[#allocation76_spill] sm:$0xff] %v12549_v11  ;;  %10362 = vpow2.f32 %v3198_v7  ;;  %v2966_v54 = vmul.f32 0.5, %v12549_v11  ;;  %7340 = vst.msk [vmem:[%s11498_s30 + $0x360] sm:$0xff] %vm4016_vm2, %v12549_v11  ;;  %v3923_v19 = vadd.f32 %v3795_v40, %v11857_v3  ;;  %3570 = vrot.lane.b32.xlu0 %v10351_v55, %s10932_s8  ;;  %9785 = vmatprep.mubr.msk.f32.mxu0 %vm4016_vm2, %v3922_v42  ;;  %v9698_v28 = vpop.f32.mrb[110].mxu1 }
 0x2a2   : > { %v3924_v1 = vadd.f32 %v3796_v62, %v11876_v38  ;;  %v12568_v13 = vadd.f32 %v12455_v16, %v9698_v28  ;;  %v2641_v48 = vpop.f32.mrb[111].mxu1  ;;  %v3457_v57 = vpop.permute.xlu1 %3456  ;;  %10364 = vpow2.f32 %v3200_v41  ;;  %v3204_v3 = vmul.f32 1.442695, %v2967_v53  ;;  %v2775_v28 = vld [vmem:[%s12063_s17 + $0x168] sm:$0xff] }
 0x2a3   : > { %v10355_v7 = vpop.eup %10354  ;;  %v3202_v22 = vmul.f32 1.442695, %v2966_v54  ;;  %v12571_v40 = vadd.f32 %v12455_v16, %v2641_v48  ;;  %v3797_v55 = vmul.f32 %v3457_v57, %v2773_v6  ;;  %v3459_v42 = vpop.permute.xlu0 %3458  ;;  %v2776_v6 = vld [vmem:[%s12063_s17 + $0x170] sm:$0xff] }
 0x2a4   : > { %14380 = vst [vmem:[#allocation77_spill] sm:$0xff] %v12568_v13  ;;  %v2969_v12 = vmul.f32 0.5, %v12568_v13  ;;  %7343 = vst.msk [vmem:[%s11498_s30 + $0x378] sm:$0xff] %vm4016_vm2, %v12568_v13  ;;  %v3798_v62 = vmul.f32 %v3459_v42, %v2774_v4  ;;  %9786 = vmatmul.mubr.msk.f32.gmra.mrb[168].mxu0 %vm4016_vm2, %v3923_v19  ;;  %3572 = vrot.lane.b32.xlu1 %v10353_v56, %s10932_s8  ;;  %v10357_v4 = vpop.eup %10356 }
 0x2a5   : > { %10366 = vpow2.f32 %v3202_v22  ;;  %v2968_v54 = vmul.f32 0.5, %v12571_v40  ;;  %7342 = vst.msk [vmem:[%s11498_s30 + $0x370] sm:$0xff] %vm4016_vm2, %v12571_v40  ;;  %v3925_v41 = vadd.f32 %v3797_v55, %v11873_v29  ;;  %3574 = vrot.lane.b32.xlu0 %v10355_v7, %s10932_s8  ;;  %9788 = vmatprep.mubr.msk.f32.mxu0 %vm4016_vm2, %v3924_v1  ;;  %v9701_v53 = vpop.f32.mrb[112].mxu1 }
 0x2a6   : > { %v3926_v19 = vadd.f32 %v3798_v62, %v11892_v8  ;;  %v12590_v56 = vadd.f32 %v12455_v16, %v9701_v53  ;;  %v2651_v48 = vpop.f32.mrb[113].mxu1  ;;  %v3461_v57 = vpop.permute.xlu1 %3460  ;;  %10368 = vpow2.f32 %v3204_v3  ;;  %v3208_v29 = vmul.f32 1.442695, %v2969_v12  ;;  %v2777_v53 = vld [vmem:[%s12063_s17 + $0x178] sm:$0xff] }
 0x2a7   : > { %v10359_v22 = vpop.eup %10358  ;;  %v3206_v42 = vmul.f32 1.442695, %v2968_v54  ;;  %v12593_v55 = vadd.f32 %v12455_v16, %v2651_v48  ;;  %v3799_v7 = vmul.f32 %v3461_v57, %v2775_v28  ;;  %v3463_v1 = vpop.permute.xlu0 %3462  ;;  %v14383_v28 = vld [vmem:[#allocation44_spill] sm:$0xff] }
 0x2a8   : > { %14381 = vst [vmem:[#allocation78_spill] sm:$0xff] %v12590_v56  ;;  %v2971_v38 = vmul.f32 0.5, %v12590_v56  ;;  %7345 = vst.msk [vmem:[%s11498_s30 + $0x388] sm:$0xff] %vm4016_vm2, %v12590_v56  ;;  %v3800_v62 = vmul.f32 %v3463_v1, %v2776_v6  ;;  %9789 = vmatmul.mubr.msk.f32.gmra.mrb[170].mxu0 %vm4016_vm2, %v3925_v41  ;;  %3576 = vrot.lane.b32.xlu1 %v10357_v4, %s10932_s8  ;;  %v2778_v6 = vld [vmem:[%s12063_s17 + $0x180] sm:$0xff]  ;;  %v10361_v48 = vpop.eup %10360  ;;  %v14384_v41 = vld [vmem:[#allocation47_spill] sm:$0xff] }
 0x2a9   : > { %14382 = vst [vmem:[#allocation79_spill] sm:$0xff] %v12593_v55  ;;  %10370 = vpow2.f32 %v3206_v42  ;;  %v2970_v54 = vmul.f32 0.5, %v12593_v55  ;;  %7344 = vst.msk [vmem:[%s11498_s30 + $0x380] sm:$0xff] %vm4016_vm2, %v12593_v55  ;;  %v3927_v3 = vadd.f32 %v3799_v7, %v14383_v28  ;;  %3578 = vrot.lane.b32.xlu0 %v10359_v22, %s10932_s8  ;;  %9791 = vmatprep.mubr.msk.f32.mxu0 %vm4016_vm2, %v3926_v19  ;;  %v9704_v12 = vpop.f32.mrb[114].mxu1 }
 0x2aa   : > { %v3928_v57 = vadd.f32 %v3800_v62, %v14384_v41  ;;  %v12612_v4 = vadd.f32 %v12455_v16, %v9704_v12  ;;  %v2661_v42 = vpop.f32.mrb[115].mxu1  ;;  %v3465_v1 = vpop.permute.xlu1 %3464  ;;  %10372 = vpow2.f32 %v3208_v29  ;;  %v3212_v28 = vmul.f32 1.442695, %v2971_v38  ;;  %v2779_v12 = vld [vmem:[%s12063_s17 + $0x188] sm:$0xff] }
 0x2ab   : > { %v10363_v8 = vpop.eup %10362  ;;  %v3210_v56 = vmul.f32 1.442695, %v2970_v54  ;;  %v12615_v7 = vadd.f32 %v12455_v16, %v2661_v42  ;;  %v3801_v22 = vmul.f32 %v3465_v1, %v2777_v53  ;;  %v3467_v19 = vpop.permute.xlu0 %3466  ;;  %v14387_v53 = vld [vmem:[#allocation46_spill] sm:$0xff] }
 0x2ac   : > { %14385 = vst [vmem:[#allocation80_spill] sm:$0xff] %v12612_v4  ;;  %v2973_v55 = vmul.f32 0.5, %v12612_v4  ;;  %7347 = vst.msk [vmem:[%s11498_s30 + $0x398] sm:$0xff] %vm4016_vm2, %v12612_v4  ;;  %v3802_v62 = vmul.f32 %v3467_v19, %v2778_v6  ;;  %9792 = vmatmul.mubr.msk.f32.gmra.mrb[172].mxu0 %vm4016_vm2, %v3927_v3  ;;  %3580 = vrot.lane.b32.xlu1 %v10361_v48, %s10932_s8  ;;  %v2780_v6 = vld [vmem:[%s12063_s17 + $0x190] sm:$0xff]  ;;  %v10365_v42 = vpop.eup %10364  ;;  %v14388_v3 = vld [vmem:[#allocation49_spill] sm:$0xff] }
 0x2ad   : > { %14386 = vst [vmem:[#allocation81_spill] sm:$0xff] %v12615_v7  ;;  %10374 = vpow2.f32 %v3210_v56  ;;  %v2972_v54 = vmul.f32 0.5, %v12615_v7  ;;  %7346 = vst.msk [vmem:[%s11498_s30 + $0x390] sm:$0xff] %vm4016_vm2, %v12615_v7  ;;  %v3929_v29 = vadd.f32 %v3801_v22, %v14387_v53  ;;  %3582 = vrot.lane.b32.xlu0 %v10363_v8, %s10932_s8  ;;  %9794 = vmatprep.mubr.msk.f32.mxu0 %vm4016_vm2, %v3928_v57  ;;  %v9707_v38 = vpop.f32.mrb[116].mxu1 }
 0x2ae   : > { %v3930_v1 = vadd.f32 %v3802_v62, %v14388_v3  ;;  %v12634_v56 = vadd.f32 %v12455_v16, %v9707_v38  ;;  %v2671_v48 = vpop.f32.mrb[117].mxu1  ;;  %v3469_v19 = vpop.permute.xlu1 %3468  ;;  %10376 = vpow2.f32 %v3212_v28  ;;  %v3216_v53 = vmul.f32 1.442695, %v2973_v55  ;;  %v2781_v38 = vld [vmem:[%s12063_s17 + $0x198] sm:$0xff] }
 0x2af   : > { %v10367_v41 = vpop.eup %10366  ;;  %v3214_v4 = vmul.f32 1.442695, %v2972_v54  ;;  %v12637_v22 = vadd.f32 %v12455_v16, %v2671_v48  ;;  %v3803_v8 = vmul.f32 %v3469_v19, %v2779_v12  ;;  %v3471_v57 = vpop.permute.xlu0 %3470  ;;  %v14391_v12 = vld [vmem:[#allocation48_spill] sm:$0xff] }
 0x2b0   : > { %14389 = vst [vmem:[#allocation82_spill] sm:$0xff] %v12634_v56  ;;  %v2975_v7 = vmul.f32 0.5, %v12634_v56  ;;  %7349 = vst.msk [vmem:[%s11498_s30 + $0x3a8] sm:$0xff] %vm4016_vm2, %v12634_v56  ;;  %v3804_v62 = vmul.f32 %v3471_v57, %v2780_v6  ;;  %9795 = vmatmul.mubr.msk.f32.gmra.mrb[174].mxu0 %vm4016_vm2, %v3929_v29  ;;  %3584 = vrot.lane.b32.xlu1 %v10365_v42, %s10932_s8  ;;  %v2782_v6 = vld [vmem:[%s12063_s17 + $0x1a0] sm:$0xff]  ;;  %v10369_v48 = vpop.eup %10368  ;;  %v14392_v29 = vld [vmem:[#allocation51_spill] sm:$0xff] }
 0x2b1   : > { %14390 = vst [vmem:[#allocation83_spill] sm:$0xff] %v12637_v22  ;;  %10378 = vpow2.f32 %v3214_v4  ;;  %v2974_v54 = vmul.f32 0.5, %v12637_v22  ;;  %7348 = vst.msk [vmem:[%s11498_s30 + $0x3a0] sm:$0xff] %vm4016_vm2, %v12637_v22  ;;  %v3931_v28 = vadd.f32 %v3803_v8, %v14391_v12  ;;  %3586 = vrot.lane.b32.xlu0 %v10367_v41, %s10932_s8  ;;  %9797 = vmatprep.mubr.msk.f32.mxu0 %vm4016_vm2, %v3930_v1  ;;  %v9710_v55 = vpop.f32.mrb[118].mxu1 }
 0x2b2   : > { %v3932_v19 = vadd.f32 %v3804_v62, %v14392_v29  ;;  %v12656_v4 = vadd.f32 %v12455_v16, %v9710_v55  ;;  %v2681_v42 = vpop.f32.mrb[119].mxu1  ;;  %v3473_v57 = vpop.permute.xlu1 %3472  ;;  %10380 = vpow2.f32 %v3216_v53  ;;  %v3220_v12 = vmul.f32 1.442695, %v2975_v7  ;;  %v2783_v55 = vld [vmem:[%s12063_s17 + $0x1a8] sm:$0xff] }
 0x2b3   : > { %v10371_v3 = vpop.eup %10370  ;;  %v3218_v56 = vmul.f32 1.442695, %v2974_v54  ;;  %v12659_v8 = vadd.f32 %v12455_v16, %v2681_v42  ;;  %v3805_v41 = vmul.f32 %v3473_v57, %v2781_v38  ;;  %v3475_v1 = vpop.permute.xlu0 %3474  ;;  %v14395_v38 = vld [vmem:[#allocation50_spill] sm:$0xff] }
 0x2b4   : > { %14393 = vst [vmem:[#allocation84_spill] sm:$0xff] %v12656_v4  ;;  %v2977_v22 = vmul.f32 0.5, %v12656_v4  ;;  %7351 = vst.msk [vmem:[%s11498_s30 + $0x3b8] sm:$0xff] %vm4016_vm2, %v12656_v4  ;;  %v3806_v62 = vmul.f32 %v3475_v1, %v2782_v6  ;;  %9798 = vmatmul.mubr.msk.f32.gmra.mrb[176].mxu0 %vm4016_vm2, %v3931_v28  ;;  %3588 = vrot.lane.b32.xlu1 %v10369_v48, %s10932_s8  ;;  %v2784_v6 = vld [vmem:[%s12063_s17 + $0x1b0] sm:$0xff]  ;;  %v10373_v42 = vpop.eup %10372  ;;  %v14396_v28 = vld [vmem:[#allocation53_spill] sm:$0xff] }
 0x2b5   : > { %14394 = vst [vmem:[#allocation85_spill] sm:$0xff] %v12659_v8  ;;  %10382 = vpow2.f32 %v3218_v56  ;;  %v2976_v54 = vmul.f32 0.5, %v12659_v8  ;;  %7350 = vst.msk [vmem:[%s11498_s30 + $0x3b0] sm:$0xff] %vm4016_vm2, %v12659_v8  ;;  %v3933_v53 = vadd.f32 %v3805_v41, %v14395_v38  ;;  %3590 = vrot.lane.b32.xlu0 %v10371_v3, %s10932_s8  ;;  %9800 = vmatprep.mubr.msk.f32.mxu0 %vm4016_vm2, %v3932_v19  ;;  %v9713_v7 = vpop.f32.mrb[120].mxu1 }
 0x2b6   : > { %v3934_v57 = vadd.f32 %v3806_v62, %v14396_v28  ;;  %v12678_v56 = vadd.f32 %v12455_v16, %v9713_v7  ;;  %v2691_v48 = vpop.f32.mrb[121].mxu1  ;;  %v3477_v1 = vpop.permute.xlu1 %3476  ;;  %10384 = vpow2.f32 %v3220_v12  ;;  %v3224_v38 = vmul.f32 1.442695, %v2977_v22  ;;  %v2785_v7 = vld [vmem:[%s12063_s17 + $0x1b8] sm:$0xff] }
 0x2b7   : > { %v10375_v29 = vpop.eup %10374  ;;  %v3222_v4 = vmul.f32 1.442695, %v2976_v54  ;;  %v12681_v41 = vadd.f32 %v12455_v16, %v2691_v48  ;;  %v3807_v3 = vmul.f32 %v3477_v1, %v2783_v55  ;;  %v3479_v19 = vpop.permute.xlu0 %3478  ;;  %v14399_v55 = vld [vmem:[#allocation52_spill] sm:$0xff] }
 0x2b8   : > { %14397 = vst [vmem:[#allocation86_spill] sm:$0xff] %v12678_v56  ;;  %v2979_v8 = vmul.f32 0.5, %v12678_v56  ;;  %7353 = vst.msk [vmem:[%s11498_s30 + $0x3c8] sm:$0xff] %vm4016_vm2, %v12678_v56  ;;  %v3808_v62 = vmul.f32 %v3479_v19, %v2784_v6  ;;  %9801 = vmatmul.mubr.msk.f32.gmra.mrb[178].mxu0 %vm4016_vm2, %v3933_v53  ;;  %3592 = vrot.lane.b32.xlu1 %v10373_v42, %s10932_s8  ;;  %v2786_v6 = vld [vmem:[%s12063_s17 + $0x1c0] sm:$0xff]  ;;  %v10377_v48 = vpop.eup %10376  ;;  %v14400_v53 = vld [vmem:[#allocation55_spill] sm:$0xff] }
 0x2b9   : > { %14398 = vst [vmem:[#allocation87_spill] sm:$0xff] %v12681_v41  ;;  %10386 = vpow2.f32 %v3222_v4  ;;  %v2978_v54 = vmul.f32 0.5, %v12681_v41  ;;  %7352 = vst.msk [vmem:[%s11498_s30 + $0x3c0] sm:$0xff] %vm4016_vm2, %v12681_v41  ;;  %v3935_v12 = vadd.f32 %v3807_v3, %v14399_v55  ;;  %3594 = vrot.lane.b32.xlu0 %v10375_v29, %s10932_s8  ;;  %9803 = vmatprep.mubr.msk.f32.mxu0 %vm4016_vm2, %v3934_v57  ;;  %v9716_v22 = vpop.f32.mrb[122].mxu1 }
 0x2ba   : > { %v3936_v1 = vadd.f32 %v3808_v62, %v14400_v53  ;;  %v12700_v4 = vadd.f32 %v12455_v16, %v9716_v22  ;;  %v2701_v42 = vpop.f32.mrb[123].mxu1  ;;  %v3481_v19 = vpop.permute.xlu1 %3480  ;;  %10388 = vpow2.f32 %v3224_v38  ;;  %v3228_v55 = vmul.f32 1.442695, %v2979_v8  ;;  %v2787_v22 = vld [vmem:[%s12063_s17 + $0x1c8] sm:$0xff] }
 0x2bb   : > { %v10379_v28 = vpop.eup %10378  ;;  %v3226_v56 = vmul.f32 1.442695, %v2978_v54  ;;  %v12703_v3 = vadd.f32 %v12455_v16, %v2701_v42  ;;  %v3809_v29 = vmul.f32 %v3481_v19, %v2785_v7  ;;  %v3483_v57 = vpop.permute.xlu0 %3482  ;;  %v14403_v7 = vld [vmem:[#allocation54_spill] sm:$0xff] }
 0x2bc   : > { %14401 = vst [vmem:[#allocation88_spill] sm:$0xff] %v12700_v4  ;;  %v2981_v41 = vmul.f32 0.5, %v12700_v4  ;;  %7355 = vst.msk [vmem:[%s11498_s30 + $0x3d8] sm:$0xff] %vm4016_vm2, %v12700_v4  ;;  %v3810_v62 = vmul.f32 %v3483_v57, %v2786_v6  ;;  %9804 = vmatmul.mubr.msk.f32.gmra.mrb[180].mxu0 %vm4016_vm2, %v3935_v12  ;;  %3596 = vrot.lane.b32.xlu1 %v10377_v48, %s10932_s8  ;;  %v2788_v6 = vld [vmem:[%s12063_s17 + $0x1d0] sm:$0xff]  ;;  %v10381_v42 = vpop.eup %10380  ;;  %v14404_v12 = vld [vmem:[#allocation57_spill] sm:$0xff] }
 0x2bd   : > { %14402 = vst [vmem:[#allocation89_spill] sm:$0xff] %v12703_v3  ;;  %10390 = vpow2.f32 %v3226_v56  ;;  %v2980_v54 = vmul.f32 0.5, %v12703_v3  ;;  %7354 = vst.msk [vmem:[%s11498_s30 + $0x3d0] sm:$0xff] %vm4016_vm2, %v12703_v3  ;;  %v3937_v38 = vadd.f32 %v3809_v29, %v14403_v7  ;;  %3598 = vrot.lane.b32.xlu0 %v10379_v28, %s10932_s8  ;;  %9806 = vmatprep.mubr.msk.f32.mxu0 %vm4016_vm2, %v3936_v1  ;;  %v9719_v8 = vpop.f32.mrb[124].mxu1 }
 0x2be   : > { %v3938_v19 = vadd.f32 %v3810_v62, %v14404_v12  ;;  %v12722_v56 = vadd.f32 %v12455_v16, %v9719_v8  ;;  %v2711_v48 = vpop.f32.mrb[125].mxu1  ;;  %v3485_v57 = vpop.permute.xlu1 %3484  ;;  %10392 = vpow2.f32 %v3228_v55  ;;  %v3232_v7 = vmul.f32 1.442695, %v2981_v41  ;;  %v2789_v8 = vld [vmem:[%s12063_s17 + $0x1d8] sm:$0xff] }
 0x2bf   : > { %v10383_v53 = vpop.eup %10382  ;;  %v3230_v4 = vmul.f32 1.442695, %v2980_v54  ;;  %v12725_v29 = vadd.f32 %v12455_v16, %v2711_v48  ;;  %v3811_v28 = vmul.f32 %v3485_v57, %v2787_v22  ;;  %v3487_v1 = vpop.permute.xlu0 %3486  ;;  %v14407_v22 = vld [vmem:[#allocation56_spill] sm:$0xff] }
 0x2c0   : > { %14405 = vst [vmem:[#allocation90_spill] sm:$0xff] %v12722_v56  ;;  %v2983_v3 = vmul.f32 0.5, %v12722_v56  ;;  %7357 = vst.msk [vmem:[%s11498_s30 + $0x3e8] sm:$0xff] %vm4016_vm2, %v12722_v56  ;;  %v3812_v62 = vmul.f32 %v3487_v1, %v2788_v6  ;;  %9807 = vmatmul.mubr.msk.f32.gmra.mrb[182].mxu0 %vm4016_vm2, %v3937_v38  ;;  %3600 = vrot.lane.b32.xlu1 %v10381_v42, %s10932_s8  ;;  %v2790_v6 = vld [vmem:[%s12063_s17 + $0x1e0] sm:$0xff]  ;;  %v10385_v48 = vpop.eup %10384  ;;  %v14408_v38 = vld [vmem:[#allocation59_spill] sm:$0xff] }
 0x2c1   : > { %14406 = vst [vmem:[#allocation91_spill] sm:$0xff] %v12725_v29  ;;  %10394 = vpow2.f32 %v3230_v4  ;;  %v2982_v54 = vmul.f32 0.5, %v12725_v29  ;;  %7356 = vst.msk [vmem:[%s11498_s30 + $0x3e0] sm:$0xff] %vm4016_vm2, %v12725_v29  ;;  %v3939_v55 = vadd.f32 %v3811_v28, %v14407_v22  ;;  %3602 = vrot.lane.b32.xlu0 %v10383_v53, %s10932_s8  ;;  %9809 = vmatprep.mubr.msk.f32.mxu0 %vm4016_vm2, %v3938_v19  ;;  %v9722_v41 = vpop.f32.mrb[126].mxu1 }
 0x2c2   : > { %v3940_v42 = vadd.f32 %v3812_v62, %v14408_v38  ;;  %v12744_v4 = vadd.f32 %v12455_v16, %v9722_v41  ;;  %v2721_v57 = vpop.f32.mrb[127].mxu1  ;;  %v3489_v1 = vpop.permute.xlu1 %3488  ;;  %10396 = vpow2.f32 %v3232_v7  ;;  %v3236_v22 = vmul.f32 1.442695, %v2983_v3  ;;  %v2791_v41 = vld [vmem:[%s12063_s17 + $0x1e8] sm:$0xff]  ;;  %v2792_v7 = vld [vmem:[%s12063_s17 + $0x1f0] sm:$0xff] }
 0x2c3   : > { %v10387_v12 = vpop.eup %10386  ;;  %v3234_v56 = vmul.f32 1.442695, %v2982_v54  ;;  %v12747_v28 = vadd.f32 %v12455_v16, %v2721_v57  ;;  %v3813_v53 = vmul.f32 %v3489_v1, %v2789_v8  ;;  %v3491_v19 = vpop.permute.xlu0 %3490  ;;  %v14410_v8 = vld [vmem:[#allocation58_spill] sm:$0xff] }
 0x2c4   : > { %14409 = vst [vmem:[#allocation92_spill] sm:$0xff] %v12744_v4  ;;  %7359 = vst.msk [vmem:[%s11498_s30 + $0x3f8] sm:$0xff] %vm4016_vm2, %v12744_v4  ;;  %v3814_v62 = vmul.f32 %v3491_v19, %v2790_v6  ;;  %9810 = vmatmul.mubr.msk.f32.gmra.mrb[184].mxu0 %vm4016_vm2, %v3939_v55  ;;  %3604 = vrot.lane.b32.xlu1 %v10385_v48, %s10932_s8  ;;  %v2985_v54 = vmul.f32 0.5, %v12744_v4  ;;  %v10389_v55 = vpop.eup %10388  ;;  %v14411_v6 = vld [vmem:[#allocation61_spill] sm:$0xff] }
 0x2c5   : > { %10398 = vpow2.f32 %v3234_v56  ;;  %v2984_v16 = vmul.f32 0.5, %v12747_v28  ;;  %7358 = vst.msk [vmem:[%s11498_s30 + $0x3f0] sm:$0xff] %vm4016_vm2, %v12747_v28  ;;  %v3941_v3 = vadd.f32 %v3813_v53, %v14410_v8  ;;  %3606 = vrot.lane.b32.xlu0 %v10387_v12, %s10932_s8  ;;  %9812 = vmatprep.mubr.msk.f32.mxu0 %vm4016_vm2, %v3940_v42  ;;  %v2793_v53 = vld [vmem:[%s12063_s17 + $0x1f8] sm:$0xff]  ;;  %v14412_v42 = vld [vmem:[#allocation60_spill] sm:$0xff] }
 0x2c6   : > { %v3942_v48 = vadd.f32 %v3814_v62, %v14411_v6  ;;  %v3493_v56 = vpop.permute.xlu1 %3492  ;;  %10400 = vpow2.f32 %v3236_v22  ;;  %v3240_v12 = vmul.f32 1.442695, %v2985_v54  ;;  %v2794_v62 = vld [vmem:[%s12063_s17 + $0x200] sm:$0xff]  ;;  %v2795_v54 = vld [vmem:[%s12063_s17 + $0x208] sm:$0xff] }
 0x2c7   : > { %v10391_v57 = vpop.eup %10390  ;;  %v3238_v1 = vmul.f32 1.442695, %v2984_v16  ;;  %v3815_v19 = vmul.f32 %v3493_v56, %v2791_v41  ;;  %v3495_v38 = vpop.permute.xlu0 %3494  ;;  %v14413_v16 = vld [vmem:[#allocation63_spill] sm:$0xff] }
 0x2c8   : > { %v3816_v4 = vmul.f32 %v3495_v38, %v2792_v7  ;;  %9813 = vmatmul.mubr.msk.f32.gmra.mrb[186].mxu0 %vm4016_vm2, %v3941_v3  ;;  %3608 = vrot.lane.b32.xlu1 %v10389_v55, %s10932_s8  ;;  %v10393_v41 = vpop.eup %10392 }
 0x2c9   : > { %10402 = vpow2.f32 %v3238_v1  ;;  %v3943_v8 = vadd.f32 %v3815_v19, %v14412_v42  ;;  %3610 = vrot.lane.b32.xlu0 %v10391_v57, %s10932_s8  ;;  %9815 = vmatprep.mubr.msk.f32.mxu0 %vm4016_vm2, %v3942_v48  ;;  %v14414_v57 = vld [vmem:[#allocation62_spill] sm:$0xff]  ;;  %v14415_v19 = vld [vmem:[#allocation65_spill] sm:$0xff] }
 0x2ca   : > { %v3944_v22 = vadd.f32 %v3816_v4, %v14413_v16  ;;  %v3497_v38 = vpop.permute.xlu1 %3496  ;;  %10404 = vpow2.f32 %v3240_v12  ;;  %v2796_v4 = vld [vmem:[%s12063_s17 + $0x210] sm:$0xff]  ;;  %v2797_v12 = vld [vmem:[%s12063_s17 + $0x218] sm:$0xff] }
 0x2cb   : > { %v10395_v7 = vpop.eup %10394  ;;  %v3817_v3 = vmul.f32 %v3497_v38, %v2793_v53  ;;  %v3499_v56 = vpop.permute.xlu0 %3498 }
 0x2cc   : > { %v3818_v55 = vmul.f32 %v3499_v56, %v2794_v62  ;;  %9816 = vmatmul.mubr.msk.f32.gmra.mrb[188].mxu0 %vm4016_vm2, %v3943_v8  ;;  %3612 = vrot.lane.b32.xlu1 %v10393_v41, %s10932_s8  ;;  %v10397_v48 = vpop.eup %10396  ;;  %v14416_v41 = vld [vmem:[#allocation64_spill] sm:$0xff] }
 0x2cd   : > { %v3945_v1 = vadd.f32 %v3817_v3, %v14414_v57  ;;  %3614 = vrot.lane.b32.xlu0 %v10395_v7, %s10932_s8  ;;  %9818 = vmatprep.mubr.msk.f32.mxu0 %vm4016_vm2, %v3944_v22  ;;  %v2798_v22 = vld [vmem:[%s12063_s17 + $0x220] sm:$0xff] }
 0x2ce   : > { %v3946_v53 = vadd.f32 %v3818_v55, %v14415_v19  ;;  %v3501_v38 = vpop.permute.xlu1 %3500  ;;  %v14417_v55 = vld [vmem:[#allocation67_spill] sm:$0xff] }
 0x2cf   : > { %v10399_v62 = vpop.eup %10398  ;;  %v3819_v56 = vmul.f32 %v3501_v38, %v2795_v54  ;;  %v3503_v8 = vpop.permute.xlu0 %3502 }
 0x2d0   : > { %v3820_v16 = vmul.f32 %v3503_v8, %v2796_v4  ;;  %9819 = vmatmul.mubr.msk.f32.gmra.mrb[190].mxu0 %vm4016_vm2, %v3945_v1  ;;  %3616 = vrot.lane.b32.xlu1 %v10397_v48, %s10932_s8  ;;  %v10401_v3 = vpop.eup %10400  ;;  %v2799_v48 = vld [vmem:[%s12063_s17 + $0x228] sm:$0xff] }
 0x2d1   : > { %v3947_v7 = vadd.f32 %v3819_v56, %v14416_v41  ;;  %3618 = vrot.lane.b32.xlu0 %v10399_v62, %s10932_s8  ;;  %9821 = vmatprep.mubr.msk.f32.mxu0 %vm4016_vm2, %v3946_v53  ;;  %v14418_v56 = vld [vmem:[#allocation66_spill] sm:$0xff]  ;;  %v2800_v53 = vld [vmem:[%s12063_s17 + $0x230] sm:$0xff] }
 0x2d2   : > { %v3948_v19 = vadd.f32 %v3820_v16, %v14417_v55  ;;  %v3505_v54 = vpop.permute.xlu1 %3504  ;;  %v14419_v16 = vld [vmem:[#allocation69_spill] sm:$0xff] }
 0x2d3   : > { %v10403_v38 = vpop.eup %10402  ;;  %v3821_v4 = vmul.f32 %v3505_v54, %v2797_v12  ;;  %v3507_v8 = vpop.permute.xlu0 %3506 }
 0x2d4   : > { %v3822_v1 = vmul.f32 %v3507_v8, %v2798_v22  ;;  %9822 = vmatmul.mubr.msk.f32.gmra.mrb[192].mxu0 %vm4016_vm2, %v3947_v7  ;;  %3620 = vrot.lane.b32.xlu1 %v10401_v3, %s10932_s8  ;;  %v10405_v12 = vpop.eup %10404  ;;  %v2801_v7 = vld [vmem:[%s12063_s17 + $0x238] sm:$0xff]  ;;  %v14420_v3 = vld [vmem:[#allocation68_spill] sm:$0xff] }
 0x2d5   : > { %v3949_v62 = vadd.f32 %v3821_v4, %v14418_v56  ;;  %3622 = vrot.lane.b32.xlu0 %v10403_v38, %s10932_s8  ;;  %9824 = vmatprep.mubr.msk.f32.mxu0 %vm4016_vm2, %v3948_v19  ;;  %v14421_v38 = vld [vmem:[#allocation2_spill] sm:$0xff] }
 0x2d6   : > { %v3950_v55 = vadd.f32 %v3822_v1, %v14419_v16  ;;  %v3509_v41 = vpop.permute.xlu1 %3508  ;;  %v2802_v19 = vld [vmem:[%s12063_s17 + $0x240] sm:$0xff] }
 0x2d7   : > { %v3823_v54 = vmul.f32 %v3509_v41, %v2799_v48  ;;  %v3511_v22 = vpop.permute.xlu0 %3510 }
 0x2d8   : > { %v3824_v8 = vmul.f32 %v3511_v22, %v2800_v53  ;;  %9825 = vmatmul.mubr.msk.f32.gmra.mrb[194].mxu0 %vm4016_vm2, %v3949_v62  ;;  %3624 = vrot.lane.b32.xlu1 %v10405_v12, %s10932_s8  ;;  %v2803_v62 = vld [vmem:[%s12063_s17 + $0x248] sm:$0xff]  ;;  %v14422_v12 = vld [vmem:[#allocation70_spill] sm:$0xff]  ;;  %v14423_v22 = vld [vmem:[#allocation4_spill] sm:$0xff] }
 0x2d9   : > { %v3951_v4 = vadd.f32 %v3823_v54, %v14420_v3  ;;  %7488 = vrot.lane.b32.xlu0 %v14421_v38, %s10932_s8  ;;  %9827 = vmatprep.mubr.msk.f32.mxu0 %vm4016_vm2, %v3950_v55  ;;  %v2804_v55 = vld [vmem:[%s12063_s17 + $0x250] sm:$0xff] }
 0x2da   : > { %v3952_v1 = vadd.f32 %v3824_v8, %v12126_v59  ;;  %v3513_v41 = vpop.permute.xlu1 %3512 }
 0x2db   : > { %v3825_v48 = vmul.f32 %v3513_v41, %v2801_v7  ;;  %v3515_v16 = vpop.permute.xlu0 %3514 }
 0x2dc   : > { %v3826_v53 = vmul.f32 %v3515_v16, %v2802_v19  ;;  %9828 = vmatmul.mubr.msk.f32.gmra.mrb[196].mxu0 %vm4016_vm2, %v3951_v4  ;;  %7490 = vrot.lane.b32.xlu1 %v11502_v33, %s10932_s8  ;;  %v14424_v33 = vld [vmem:[#allocation3_spill] sm:$0xff]  ;;  %v2805_v19 = vld [vmem:[%s12063_s17 + $0x258] sm:$0xff] }
 0x2dd   : > { %v3953_v54 = vadd.f32 %v3825_v48, %v14422_v12  ;;  %7492 = vrot.lane.b32.xlu0 %v14423_v22, %s10932_s8  ;;  %9830 = vmatprep.mubr.msk.f32.mxu0 %vm4016_vm2, %v3952_v1  ;;  %v14425_v48 = vld [vmem:[#allocation6_spill] sm:$0xff] }
 0x2de   : > { %v3954_v8 = vadd.f32 %v3826_v53, %v12148_v9  ;;  %v3517_v7 = vpop.permute.xlu1 %3516  ;;  %v2806_v1 = vld [vmem:[%s12063_s17 + $0x260] sm:$0xff] }
 0x2df   : > { %v3827_v38 = vmul.f32 %v3517_v7, %v2803_v62  ;;  %v3519_v16 = vpop.permute.xlu0 %3518  ;;  %v14426_v7 = vld [vmem:[#allocation5_spill] sm:$0xff] }
 0x2e0   : > { %v3828_v4 = vmul.f32 %v3519_v16, %v2804_v55  ;;  %9831 = vmatmul.mubr.msk.f32.gmra.mrb[198].mxu0 %vm4016_vm2, %v3953_v54  ;;  %7494 = vrot.lane.b32.xlu1 %v14424_v33, %s10932_s8  ;;  %v2807_v16 = vld [vmem:[%s12063_s17 + $0x268] sm:$0xff]  ;;  %v14427_v33 = vld [vmem:[#allocation8_spill] sm:$0xff] }
 0x2e1   : > { %v3955_v41 = vadd.f32 %v3827_v38, %v12145_v27  ;;  %7496 = vrot.lane.b32.xlu0 %v14425_v48, %s10932_s8  ;;  %9833 = vmatprep.mubr.msk.f32.mxu0 %vm4016_vm2, %v3954_v8  ;;  %v2808_v8 = vld [vmem:[%s12063_s17 + $0x270] sm:$0xff] }
 0x2e2   : > { %v3956_v53 = vadd.f32 %v3828_v4, %v12170_v52  ;;  %v3521_v62 = vpop.permute.xlu1 %3520 }
 0x2e3   : > { %v3829_v22 = vmul.f32 %v3521_v62, %v2805_v19  ;;  %v3523_v55 = vpop.permute.xlu0 %3522  ;;  %v14428_v62 = vld [vmem:[#allocation7_spill] sm:$0xff] }
 0x2e4   : > { %v3830_v54 = vmul.f32 %v3523_v55, %v2806_v1  ;;  %9834 = vmatmul.mubr.msk.f32.gmra.mrb[200].mxu0 %vm4016_vm2, %v3955_v41  ;;  %7498 = vrot.lane.b32.xlu1 %v14426_v7, %s10932_s8  ;;  %v2809_v55 = vld [vmem:[%s12063_s17 + $0x278] sm:$0xff]  ;;  %v14429_v7 = vld [vmem:[#allocation10_spill] sm:$0xff] }
 0x2e5   : > { %v3957_v38 = vadd.f32 %v3829_v22, %v12167_v34  ;;  %7500 = vrot.lane.b32.xlu0 %v14427_v33, %s10932_s8  ;;  %9836 = vmatprep.mubr.msk.f32.mxu0 %vm4016_vm2, %v3956_v53  ;;  %v2810_v53 = vld [vmem:[%s12063_s17 + $0x280] sm:$0xff] }
 0x2e6   : > { %v3958_v4 = vadd.f32 %v3830_v54, %v12192_v35  ;;  %v3525_v19 = vpop.permute.xlu1 %3524 }
 0x2e7   : > { %v3831_v48 = vmul.f32 %v3525_v19, %v2807_v16  ;;  %v3527_v1 = vpop.permute.xlu0 %3526  ;;  %v14430_v19 = vld [vmem:[#allocation9_spill] sm:$0xff] }
 0x2e8   : > { %v3832_v41 = vmul.f32 %v3527_v1, %v2808_v8  ;;  %9837 = vmatmul.mubr.msk.f32.gmra.mrb[202].mxu0 %vm4016_vm2, %v3957_v38  ;;  %7502 = vrot.lane.b32.xlu1 %v14428_v62, %s10932_s8  ;;  %v2811_v1 = vld [vmem:[%s12063_s17 + $0x288] sm:$0xff]  ;;  %v14431_v62 = vld [vmem:[#allocation12_spill] sm:$0xff] }
 0x2e9   : > { %v3959_v22 = vadd.f32 %v3831_v48, %v12189_v26  ;;  %7504 = vrot.lane.b32.xlu0 %v14429_v7, %s10932_s8  ;;  %9839 = vmatprep.mubr.msk.f32.mxu0 %vm4016_vm2, %v3958_v4  ;;  %v2812_v4 = vld [vmem:[%s12063_s17 + $0x290] sm:$0xff] }
 0x2ea   : > { %v3960_v54 = vadd.f32 %v3832_v41, %v12214_v44  ;;  %v3529_v16 = vpop.permute.xlu1 %3528 }
 0x2eb   : > { %v3833_v33 = vmul.f32 %v3529_v16, %v2809_v55  ;;  %v3531_v8 = vpop.permute.xlu0 %3530  ;;  %v14432_v16 = vld [vmem:[#allocation11_spill] sm:$0xff] }
 0x2ec   : > { %v3834_v38 = vmul.f32 %v3531_v8, %v2810_v53  ;;  %9840 = vmatmul.mubr.msk.f32.gmra.mrb[204].mxu0 %vm4016_vm2, %v3959_v22  ;;  %7506 = vrot.lane.b32.xlu1 %v14430_v19, %s10932_s8  ;;  %v2813_v8 = vld [vmem:[%s12063_s17 + $0x298] sm:$0xff]  ;;  %v14433_v19 = vld [vmem:[#allocation14_spill] sm:$0xff] }
 0x2ed   : > { %v3961_v48 = vadd.f32 %v3833_v33, %v12211_v15  ;;  %7508 = vrot.lane.b32.xlu0 %v14431_v62, %s10932_s8  ;;  %9842 = vmatprep.mubr.msk.f32.mxu0 %vm4016_vm2, %v3960_v54  ;;  %v2814_v54 = vld [vmem:[%s12063_s17 + $0x2a0] sm:$0xff] }
 0x2ee   : > { %v3962_v41 = vadd.f32 %v3834_v38, %v12236_v2  ;;  %v3533_v55 = vpop.permute.xlu1 %3532 }
 0x2ef   : > { %v3835_v7 = vmul.f32 %v3533_v55, %v2811_v1  ;;  %v3535_v53 = vpop.permute.xlu0 %3534  ;;  %v14434_v55 = vld [vmem:[#allocation13_spill] sm:$0xff] }
 0x2f0   : > { %v3836_v22 = vmul.f32 %v3535_v53, %v2812_v4  ;;  %9843 = vmatmul.mubr.msk.f32.gmra.mrb[206].mxu0 %vm4016_vm2, %v3961_v48  ;;  %7510 = vrot.lane.b32.xlu1 %v14432_v16, %s10932_s8  ;;  %v2815_v53 = vld [vmem:[%s12063_s17 + $0x2a8] sm:$0xff]  ;;  %v14435_v16 = vld [vmem:[#allocation16_spill] sm:$0xff] }
 0x2f1   : > { %v3963_v33 = vadd.f32 %v3835_v7, %v12233_v36  ;;  %7512 = vrot.lane.b32.xlu0 %v14433_v19, %s10932_s8  ;;  %9845 = vmatprep.mubr.msk.f32.mxu0 %vm4016_vm2, %v3962_v41  ;;  %v2816_v41 = vld [vmem:[%s12063_s17 + $0x2b0] sm:$0xff] }
 0x2f2   : > { %v3964_v38 = vadd.f32 %v3836_v22, %v12258_v37  ;;  %v3537_v1 = vpop.permute.xlu1 %3536 }
 0x2f3   : > { %v3837_v62 = vmul.f32 %v3537_v1, %v2813_v8  ;;  %v3539_v4 = vpop.permute.xlu0 %3538  ;;  %v14436_v1 = vld [vmem:[#allocation15_spill] sm:$0xff] }
 0x2f4   : > { %v3838_v48 = vmul.f32 %v3539_v4, %v2814_v54  ;;  %9846 = vmatmul.mubr.msk.f32.gmra.mrb[208].mxu0 %vm4016_vm2, %v3963_v33  ;;  %7514 = vrot.lane.b32.xlu1 %v14434_v55, %s10932_s8  ;;  %v2817_v4 = vld [vmem:[%s12063_s17 + $0x2b8] sm:$0xff]  ;;  %v14437_v55 = vld [vmem:[#allocation18_spill] sm:$0xff] }
 0x2f5   : > { %v3965_v7 = vadd.f32 %v3837_v62, %v12255_v58  ;;  %7516 = vrot.lane.b32.xlu0 %v14435_v16, %s10932_s8  ;;  %9848 = vmatprep.mubr.msk.f32.mxu0 %vm4016_vm2, %v3964_v38  ;;  %v2818_v38 = vld [vmem:[%s12063_s17 + $0x2c0] sm:$0xff] }
 0x2f6   : > { %v3966_v22 = vadd.f32 %v3838_v48, %v12280_v51  ;;  %v3541_v8 = vpop.permute.xlu1 %3540 }
 0x2f7   : > { %v3839_v19 = vmul.f32 %v3541_v8, %v2815_v53  ;;  %v3543_v54 = vpop.permute.xlu0 %3542  ;;  %v14438_v8 = vld [vmem:[#allocation17_spill] sm:$0xff] }
 0x2f8   : > { %v3840_v33 = vmul.f32 %v3543_v54, %v2816_v41  ;;  %9849 = vmatmul.mubr.msk.f32.gmra.mrb[210].mxu0 %vm4016_vm2, %v3965_v7  ;;  %7518 = vrot.lane.b32.xlu1 %v14436_v1, %s10932_s8  ;;  %v2819_v54 = vld [vmem:[%s12063_s17 + $0x2c8] sm:$0xff]  ;;  %v14439_v1 = vld [vmem:[#allocation20_spill] sm:$0xff] }
 0x2f9   : > { %v3967_v62 = vadd.f32 %v3839_v19, %v12277_v20  ;;  %7520 = vrot.lane.b32.xlu0 %v14437_v55, %s10932_s8  ;;  %9851 = vmatprep.mubr.msk.f32.mxu0 %vm4016_vm2, %v3966_v22  ;;  %v2820_v22 = vld [vmem:[%s12063_s17 + $0x2d0] sm:$0xff] }
 0x2fa   : > { %v3968_v48 = vadd.f32 %v3840_v33, %v12302_v49  ;;  %v3545_v53 = vpop.permute.xlu1 %3544 }
 0x2fb   : > { %v3841_v16 = vmul.f32 %v3545_v53, %v2817_v4  ;;  %v3547_v41 = vpop.permute.xlu0 %3546  ;;  %v14440_v53 = vld [vmem:[#allocation19_spill] sm:$0xff] }
 0x2fc   : > { %v3842_v7 = vmul.f32 %v3547_v41, %v2818_v38  ;;  %9852 = vmatmul.mubr.msk.f32.gmra.mrb[212].mxu0 %vm4016_vm2, %v3967_v62  ;;  %7522 = vrot.lane.b32.xlu1 %v14438_v8, %s10932_s8  ;;  %v2821_v41 = vld [vmem:[%s12063_s17 + $0x2d8] sm:$0xff]  ;;  %v14441_v8 = vld [vmem:[#allocation22_spill] sm:$0xff] }
 0x2fd   : > { %v3969_v19 = vadd.f32 %v3841_v16, %v12299_v0  ;;  %7524 = vrot.lane.b32.xlu0 %v14439_v1, %s10932_s8  ;;  %9854 = vmatprep.mubr.msk.f32.mxu0 %vm4016_vm2, %v3968_v48  ;;  %v2822_v48 = vld [vmem:[%s12063_s17 + $0x2e0] sm:$0xff] }
 0x2fe   : > { %v3970_v33 = vadd.f32 %v3842_v7, %v12324_v45  ;;  %v3549_v4 = vpop.permute.xlu1 %3548 }
 0x2ff   : > { %v3843_v55 = vmul.f32 %v3549_v4, %v2819_v54  ;;  %v3551_v38 = vpop.permute.xlu0 %3550  ;;  %v14442_v4 = vld [vmem:[#allocation21_spill] sm:$0xff] }
 0x300   : > { %v3844_v62 = vmul.f32 %v3551_v38, %v2820_v22  ;;  %9855 = vmatmul.mubr.msk.f32.gmra.mrb[214].mxu0 %vm4016_vm2, %v3969_v19  ;;  %7526 = vrot.lane.b32.xlu1 %v14440_v53, %s10932_s8  ;;  %v2823_v38 = vld [vmem:[%s12063_s17 + $0x2e8] sm:$0xff]  ;;  %v14443_v53 = vld [vmem:[#allocation24_spill] sm:$0xff] }
 0x301   : > { %v3971_v16 = vadd.f32 %v3843_v55, %v12321_v14  ;;  %7528 = vrot.lane.b32.xlu0 %v14441_v8, %s10932_s8  ;;  %9857 = vmatprep.mubr.msk.f32.mxu0 %vm4016_vm2, %v3970_v33  ;;  %v2824_v33 = vld [vmem:[%s12063_s17 + $0x2f0] sm:$0xff] }
 0x302   : > { %v3972_v7 = vadd.f32 %v3844_v62, %v12346_v60  ;;  %v3553_v54 = vpop.permute.xlu1 %3552 }
 0x303   : > { %v3845_v1 = vmul.f32 %v3553_v54, %v2821_v41  ;;  %v3555_v22 = vpop.permute.xlu0 %3554  ;;  %v14444_v54 = vld [vmem:[#allocation23_spill] sm:$0xff] }
 0x304   : > { %v3846_v19 = vmul.f32 %v3555_v22, %v2822_v48  ;;  %9858 = vmatmul.mubr.msk.f32.gmra.mrb[216].mxu0 %vm4016_vm2, %v3971_v16  ;;  %7530 = vrot.lane.b32.xlu1 %v14442_v4, %s10932_s8  ;;  %v2825_v22 = vld [vmem:[%s12063_s17 + $0x2f8] sm:$0xff]  ;;  %v14445_v4 = vld [vmem:[#allocation26_spill] sm:$0xff] }
 0x305   : > { %v3973_v55 = vadd.f32 %v3845_v1, %v12343_v30  ;;  %7532 = vrot.lane.b32.xlu0 %v14443_v53, %s10932_s8  ;;  %9860 = vmatprep.mubr.msk.f32.mxu0 %vm4016_vm2, %v3972_v7  ;;  %v2826_v7 = vld [vmem:[%s12063_s17 + $0x300] sm:$0xff] }
 0x306   : > { %v3974_v62 = vadd.f32 %v3846_v19, %v12368_v10  ;;  %v3557_v41 = vpop.permute.xlu1 %3556 }
 0x307   : > { %v3847_v8 = vmul.f32 %v3557_v41, %v2823_v38  ;;  %v3559_v48 = vpop.permute.xlu0 %3558  ;;  %v14446_v41 = vld [vmem:[#allocation25_spill] sm:$0xff] }
 0x308   : > { %v3848_v16 = vmul.f32 %v3559_v48, %v2824_v33  ;;  %9861 = vmatmul.mubr.msk.f32.gmra.mrb[218].mxu0 %vm4016_vm2, %v3973_v55  ;;  %7534 = vrot.lane.b32.xlu1 %v14444_v54, %s10932_s8  ;;  %v2827_v48 = vld [vmem:[%s12063_s17 + $0x308] sm:$0xff]  ;;  %v14447_v54 = vld [vmem:[#allocation28_spill] sm:$0xff] }
 0x309   : > { %v3975_v1 = vadd.f32 %v3847_v8, %v12365_v50  ;;  %7536 = vrot.lane.b32.xlu0 %v14445_v4, %s10932_s8  ;;  %9863 = vmatprep.mubr.msk.f32.mxu0 %vm4016_vm2, %v3974_v62  ;;  %v2828_v62 = vld [vmem:[%s12063_s17 + $0x310] sm:$0xff] }
 0x30a   : > { %v3976_v19 = vadd.f32 %v3848_v16, %v12390_v24  ;;  %v3561_v38 = vpop.permute.xlu1 %3560 }
 0x30b   : > { %v3849_v53 = vmul.f32 %v3561_v38, %v2825_v22  ;;  %v3563_v33 = vpop.permute.xlu0 %3562  ;;  %v14448_v38 = vld [vmem:[#allocation27_spill] sm:$0xff] }
 0x30c   : > { %v3850_v55 = vmul.f32 %v3563_v33, %v2826_v7  ;;  %9864 = vmatmul.mubr.msk.f32.gmra.mrb[220].mxu0 %vm4016_vm2, %v3975_v1  ;;  %7538 = vrot.lane.b32.xlu1 %v14446_v41, %s10932_s8  ;;  %v2829_v33 = vld [vmem:[%s12063_s17 + $0x318] sm:$0xff]  ;;  %v14449_v41 = vld [vmem:[#allocation30_spill] sm:$0xff] }
 0x30d   : > { %v3977_v8 = vadd.f32 %v3849_v53, %v12387_v5  ;;  %7540 = vrot.lane.b32.xlu0 %v14447_v54, %s10932_s8  ;;  %9866 = vmatprep.mubr.msk.f32.mxu0 %vm4016_vm2, %v3976_v19  ;;  %v2830_v19 = vld [vmem:[%s12063_s17 + $0x320] sm:$0xff] }
 0x30e   : > { %v3978_v16 = vadd.f32 %v3850_v55, %v12412_v43  ;;  %v3565_v22 = vpop.permute.xlu1 %3564 }
 0x30f   : > { %v3851_v4 = vmul.f32 %v3565_v22, %v2827_v48  ;;  %v3567_v7 = vpop.permute.xlu0 %3566  ;;  %v14450_v22 = vld [vmem:[#allocation29_spill] sm:$0xff] }
 0x310   : > { %v3852_v1 = vmul.f32 %v3567_v7, %v2828_v62  ;;  %9867 = vmatmul.mubr.msk.f32.gmra.mrb[222].mxu0 %vm4016_vm2, %v3977_v8  ;;  %7542 = vrot.lane.b32.xlu1 %v14448_v38, %s10932_s8  ;;  %v2831_v7 = vld [vmem:[%s12063_s17 + $0x328] sm:$0xff] }
 0x311   : > { %v3979_v53 = vadd.f32 %v3851_v4, %v12409_v23  ;;  %7544 = vrot.lane.b32.xlu0 %v14449_v41, %s10932_s8  ;;  %9869 = vmatprep.mubr.msk.f32.mxu0 %vm4016_vm2, %v3978_v16  ;;  %v2832_v16 = vld [vmem:[%s12063_s17 + $0x330] sm:$0xff] }
 0x312   : > { %v3980_v55 = vadd.f32 %v3852_v1, %v12434_v63  ;;  %v3569_v48 = vpop.permute.xlu1 %3568 }
 0x313   : > { %v3853_v54 = vmul.f32 %v3569_v48, %v2829_v33  ;;  %v3571_v62 = vpop.permute.xlu0 %3570  ;;  %v2833_v48 = vld [vmem:[%s12063_s17 + $0x338] sm:$0xff] }
 0x314   : > { %v3854_v8 = vmul.f32 %v3571_v62, %v2830_v19  ;;  %9870 = vmatmul.mubr.msk.f32.gmra.mrb[224].mxu0 %vm4016_vm2, %v3979_v53  ;;  %7546 = vrot.lane.b32.xlu1 %v14450_v22, %s10932_s8  ;;  %v14451_v19 = vld [vmem:[#allocation31_spill] sm:$0xff] }
 0x315   : > { %v3981_v4 = vadd.f32 %v3853_v54, %v12431_v46  ;;  %7548 = vrot.lane.b32.xlu0 %v11780_v32, %s10932_s8  ;;  %9872 = vmatprep.mubr.msk.f32.mxu0 %vm4016_vm2, %v3980_v55  ;;  %v14452_v54 = vld [vmem:[#allocation71_spill] sm:$0xff]  ;;  %v14453_v32 = vld [vmem:[#allocation33_spill] sm:$0xff]  ;;  %v2834_v55 = vld [vmem:[%s12063_s17 + $0x340] sm:$0xff] }
 0x316   : > { %v3982_v1 = vadd.f32 %v3854_v8, %v12461_v61  ;;  %v3573_v38 = vpop.permute.xlu1 %3572 }
 0x317   : > { %v3855_v33 = vmul.f32 %v3573_v38, %v2831_v7  ;;  %v3575_v41 = vpop.permute.xlu0 %3574  ;;  %v14454_v38 = vld [vmem:[#allocation32_spill] sm:$0xff] }
 0x318   : > { %v3856_v53 = vmul.f32 %v3575_v41, %v2832_v16  ;;  %9873 = vmatmul.mubr.msk.f32.gmra.mrb[226].mxu0 %vm4016_vm2, %v3981_v4  ;;  %7550 = vrot.lane.b32.xlu1 %v14451_v19, %s10932_s8  ;;  %v2835_v41 = vld [vmem:[%s12063_s17 + $0x348] sm:$0xff] }
 0x319   : > { %v3983_v62 = vadd.f32 %v3855_v33, %v14452_v54  ;;  %7552 = vrot.lane.b32.xlu0 %v14453_v32, %s10932_s8  ;;  %9875 = vmatprep.mubr.msk.f32.mxu0 %vm4016_vm2, %v3982_v1  ;;  %v14455_v19 = vld [vmem:[#allocation35_spill] sm:$0xff]  ;;  %v2836_v1 = vld [vmem:[%s12063_s17 + $0x350] sm:$0xff] }
 0x31a   : > { %v3984_v8 = vadd.f32 %v3856_v53, %v12483_v18  ;;  %v3577_v22 = vpop.permute.xlu1 %3576 }
 0x31b   : > { %v3857_v7 = vmul.f32 %v3577_v22, %v2833_v48  ;;  %v3579_v16 = vpop.permute.xlu0 %3578  ;;  %v14456_v22 = vld [vmem:[#allocation34_spill] sm:$0xff] }
 0x31c   : > { %v3858_v4 = vmul.f32 %v3579_v16, %v2834_v55  ;;  %9876 = vmatmul.mubr.msk.f32.gmra.mrb[228].mxu0 %vm4016_vm2, %v3983_v62  ;;  %7554 = vrot.lane.b32.xlu1 %v14454_v38, %s10932_s8  ;;  %v2837_v16 = vld [vmem:[%s12063_s17 + $0x358] sm:$0xff] }
 0x31d   : > { %v3985_v33 = vadd.f32 %v3857_v7, %v12480_v17  ;;  %7556 = vrot.lane.b32.xlu0 %v14455_v19, %s10932_s8  ;;  %9878 = vmatprep.mubr.msk.f32.mxu0 %vm4016_vm2, %v3984_v8  ;;  %v14457_v38 = vld [vmem:[#allocation37_spill] sm:$0xff]  ;;  %v2838_v8 = vld [vmem:[%s12063_s17 + $0x360] sm:$0xff] }
 0x31e   : > { %v3986_v53 = vadd.f32 %v3858_v4, %v12505_v39  ;;  %v3581_v48 = vpop.permute.xlu1 %3580 }
 0x31f   : > { %v3859_v32 = vmul.f32 %v3581_v48, %v2835_v41  ;;  %v3583_v55 = vpop.permute.xlu0 %3582 }
 0x320   : > { %v3860_v62 = vmul.f32 %v3583_v55, %v2836_v1  ;;  %9879 = vmatmul.mubr.msk.f32.gmra.mrb[230].mxu0 %vm4016_vm2, %v3985_v33  ;;  %7558 = vrot.lane.b32.xlu1 %v14456_v22, %s10932_s8  ;;  %v14458_v33 = vld [vmem:[#allocation36_spill] sm:$0xff]  ;;  %v2839_v55 = vld [vmem:[%s12063_s17 + $0x368] sm:$0xff] }
 0x321   : > { %v3987_v7 = vadd.f32 %v3859_v32, %v12502_v31  ;;  %7560 = vrot.lane.b32.xlu0 %v14457_v38, %s10932_s8  ;;  %9881 = vmatprep.mubr.msk.f32.mxu0 %vm4016_vm2, %v3986_v53  ;;  %v14459_v22 = vld [vmem:[#allocation39_spill] sm:$0xff]  ;;  %v12997_v53 = vld [vmem:[%s14169_s2 + $0x64] ss:$0 sm:$0xff] }
 0x322   : > { %v3988_v4 = vadd.f32 %v3860_v62, %v12527_v25  ;;  %v3585_v41 = vpop.permute.xlu1 %3584  ;;  %v2840_v62 = vld [vmem:[%s12063_s17 + $0x370] sm:$0xff] }
 0x323   : > { %v3861_v19 = vmul.f32 %v3585_v41, %v2837_v16  ;;  %v3587_v1 = vpop.permute.xlu0 %3586 }
 0x324   : > { %v3862_v48 = vmul.f32 %v3587_v1, %v2838_v8  ;;  %9882 = vmatmul.mubr.msk.f32.gmra.mrb[232].mxu0 %vm4016_vm2, %v3987_v7  ;;  %7562 = vrot.lane.b32.xlu1 %v14458_v33, %s10932_s8 }
 0x325   : > { %v3989_v32 = vadd.f32 %v3861_v19, %v12524_v47  ;;  %7564 = vrot.lane.b32.xlu0 %v14459_v22, %s10932_s8  ;;  %9884 = vmatprep.mubr.msk.f32.mxu0 %vm4016_vm2, %v3988_v4  ;;  %v14460_v4 = vld [vmem:[#allocation38_spill] sm:$0xff]  ;;  %v2841_v22 = vld [vmem:[%s12063_s17 + $0x378] sm:$0xff] }
 0x326   : > { %v3990_v16 = vadd.f32 %v3862_v48, %v12549_v11  ;;  %v3589_v7 = vpop.permute.xlu1 %3588  ;;  %v14461_v48 = vld [vmem:[#allocation41_spill] sm:$0xff] }
 0x327   : > { %v3863_v38 = vmul.f32 %v3589_v7, %v2839_v55  ;;  %v9727_v8 = vpop.f32.mrb[128].mxu0  ;;  %v3591_v41 = vpop.permute.xlu0 %3590  ;;  %v2842_v55 = vld [vmem:[%s12063_s17 + $0x380] sm:$0xff] }
 0x328   : > { %v4477_v19 = vadd.f32 %v9727_v8, %v12997_v53  ;;  %v3864_v1 = vmul.f32 %v3591_v41, %v2840_v62  ;;  %v4471_v33 = vpop.f32.mrb[129].mxu0  ;;  %9885 = vmatmul.mubr.msk.f32.gmra.mrb[234].mxu0 %vm4016_vm2, %v3989_v32  ;;  %7566 = vrot.lane.b32.xlu1 %v14460_v4, %s10932_s8 }
 0x329   : > { %v3991_v47 = vadd.f32 %v3863_v38, %v12546_v21  ;;  %v4472_v25 = vadd.f32 %v12997_v53, %v4471_v33  ;;  %7568 = vrot.lane.b32.xlu0 %v14461_v48, %s10932_s8  ;;  %9887 = vmatprep.mubr.msk.f32.mxu0 %vm4016_vm2, %v3990_v16  ;;  %v14462_v48 = vld [vmem:[#allocation40_spill] sm:$0xff]  ;;  %v2843_v16 = vld [vmem:[%s12063_s17 + $0x388] sm:$0xff] }
 0x32a   : > { %v3992_v62 = vadd.f32 %v3864_v1, %v12571_v40  ;;  %v3593_v7 = vpop.permute.xlu1 %3592  ;;  %v5111_v11 = vmax.f32 %v4477_v19, 0.0  ;;  %v2844_v19 = vld [vmem:[%s12063_s17 + $0x390] sm:$0xff] }
 0x32b   : > { %v5110_v32 = vmax.f32 %v4472_v25, 0.0  ;;  %v3865_v8 = vmul.f32 %v3593_v7, %v2841_v22  ;;  %v9730_v41 = vpop.f32.mrb[130].mxu0  ;;  %v3595_v4 = vpop.permute.xlu0 %3594  ;;  %v14463_v25 = vld [vmem:[#allocation43_spill] sm:$0xff] }
 0x32c   : > { %v4487_v38 = vadd.f32 %v9730_v41, %v12997_v53  ;;  %v3866_v21 = vmul.f32 %v3595_v4, %v2842_v55  ;;  %v4481_v33 = vpop.f32.mrb[131].mxu0  ;;  %9888 = vmatmul.mubr.msk.f32.gmra.mrb[236].mxu0 %vm4016_vm2, %v3991_v47  ;;  %7570 = vrot.lane.b32.xlu1 %v14462_v48, %s10932_s8  ;;  %v14464_v22 = vld [vmem:[#allocation79_spill] sm:$0xff] }
 0x32d   : > { %v3993_v31 = vadd.f32 %v3865_v8, %v12568_v13  ;;  %v4482_v1 = vadd.f32 %v12997_v53, %v4481_v33  ;;  %9925 = vmatprep.mubr.msk.f32.mxu1 %vm414_vm0, %v5110_v32  ;;  %7572 = vrot.lane.b32.xlu0 %v14463_v25, %s10932_s8  ;;  %v14465_v25 = vld [vmem:[#allocation42_spill] sm:$0xff] }
 0x32e   : > { %v3994_v55 = vadd.f32 %v3866_v21, %v14464_v22  ;;  %9890 = vmatprep.mubr.msk.f32.mxu0 %vm4016_vm2, %v3992_v62  ;;  %9926 = vmatmul.mubr.msk.f32.vlgmr.msra.gmra.mrb[128].mxu1 %vm414_vm0, %v5111_v11  ;;  %v3597_v47 = vpop.permute.xlu1 %3596  ;;  %v5113_v33 = vmax.f32 %v4487_v38, 0.0  ;;  %v2845_v21 = vld [vmem:[%s12063_s17 + $0x398] sm:$0xff]  ;;  %v14466_v62 = vld [vmem:[#allocation78_spill] sm:$0xff] }
 0x32f   : > { %v5112_v7 = vmax.f32 %v4482_v1, 0.0  ;;  %v3867_v41 = vmul.f32 %v3597_v47, %v2843_v16  ;;  %v9733_v8 = vpop.f32.mrb[132].mxu0  ;;  %v3599_v4 = vpop.permute.xlu0 %3598  ;;  %v14467_v16 = vld [vmem:[#allocation45_spill] sm:$0xff]  ;;  %v2846_v38 = vld [vmem:[%s12063_s17 + $0x3a0] sm:$0xff] }
 0x330   : > { %v4497_v32 = vadd.f32 %v9733_v8, %v12997_v53  ;;  %v3868_v48 = vmul.f32 %v3599_v4, %v2844_v19  ;;  %v4491_v13 = vpop.f32.mrb[133].mxu0  ;;  %9891 = vmatmul.mubr.msk.f32.gmra.mrb[238].mxu0 %vm4016_vm2, %v3993_v31  ;;  %7574 = vrot.lane.b32.xlu1 %v14465_v25, %s10932_s8  ;;  %v14468_v1 = vld [vmem:[#allocation81_spill] sm:$0xff] }
 0x331   : > { %v3995_v22 = vadd.f32 %v3867_v41, %v14466_v62  ;;  %v4492_v11 = vadd.f32 %v12997_v53, %v4491_v13  ;;  %9928 = vmatprep.mubr.msk.f32.mxu1 %vm414_vm0, %v5112_v7  ;;  %7576 = vrot.lane.b32.xlu0 %v14467_v16, %s10932_s8  ;;  %v14469_v16 = vld [vmem:[#allocation44_spill] sm:$0xff] }
 0x332   : > { %v3996_v19 = vadd.f32 %v3868_v48, %v14468_v1  ;;  %9893 = vmatprep.mubr.msk.f32.mxu0 %vm4016_vm2, %v3994_v55  ;;  %9929 = vmatmul.mubr.msk.f32.gmra.mrb[130].mxu1 %vm414_vm0, %v5113_v33  ;;  %v3601_v31 = vpop.permute.xlu1 %3600  ;;  %v5115_v13 = vmax.f32 %v4497_v32, 0.0  ;;  %v2847_v48 = vld [vmem:[%s12063_s17 + $0x3a8] sm:$0xff]  ;;  %v14470_v55 = vld [vmem:[#allocation80_spill] sm:$0xff] }
 0x333   : > { %v5114_v47 = vmax.f32 %v4492_v11, 0.0  ;;  %v3869_v8 = vmul.f32 %v3601_v31, %v2845_v21  ;;  %v9736_v41 = vpop.f32.mrb[134].mxu0  ;;  %v3603_v4 = vpop.permute.xlu0 %3602  ;;  %v14471_v21 = vld [vmem:[#allocation47_spill] sm:$0xff]  ;;  %v2848_v32 = vld [vmem:[%s12063_s17 + $0x3b0] sm:$0xff] }
 0x334   : > { %v4507_v7 = vadd.f32 %v9736_v41, %v12997_v53  ;;  %v3870_v25 = vmul.f32 %v3603_v4, %v2846_v38  ;;  %v4501_v62 = vpop.f32.mrb[135].mxu0  ;;  %9894 = vmatmul.mubr.msk.f32.gmra.mrb[240].mxu0 %vm4016_vm2, %v3995_v22  ;;  %7578 = vrot.lane.b32.xlu1 %v14469_v16, %s10932_s8  ;;  %v14472_v11 = vld [vmem:[#allocation83_spill] sm:$0xff] }
 0x335   : > { %v3997_v1 = vadd.f32 %v3869_v8, %v14470_v55  ;;  %v4502_v33 = vadd.f32 %v12997_v53, %v4501_v62  ;;  %9931 = vmatprep.mubr.msk.f32.mxu1 %vm414_vm0, %v5114_v47  ;;  %7580 = vrot.lane.b32.xlu0 %v14471_v21, %s10932_s8  ;;  %v14473_v21 = vld [vmem:[#allocation46_spill] sm:$0xff] }
 0x336   : > { %v3998_v38 = vadd.f32 %v3870_v25, %v14472_v11  ;;  %9896 = vmatprep.mubr.msk.f32.mxu0 %vm4016_vm2, %v3996_v19  ;;  %9932 = vmatmul.mubr.msk.f32.gmra.mrb[132].mxu1 %vm414_vm0, %v5115_v13  ;;  %v3605_v22 = vpop.permute.xlu1 %3604  ;;  %v5117_v62 = vmax.f32 %v4507_v7, 0.0  ;;  %v2849_v25 = vld [vmem:[%s12063_s17 + $0x3b8] sm:$0xff]  ;;  %v14474_v19 = vld [vmem:[#allocation82_spill] sm:$0xff] }
 0x337   : > { %v5116_v31 = vmax.f32 %v4502_v33, 0.0  ;;  %v3871_v41 = vmul.f32 %v3605_v22, %v2847_v48  ;;  %v9739_v8 = vpop.f32.mrb[136].mxu0  ;;  %v3607_v4 = vpop.permute.xlu0 %3606  ;;  %v14475_v48 = vld [vmem:[#allocation49_spill] sm:$0xff]  ;;  %v2850_v7 = vld [vmem:[%s12063_s17 + $0x3c0] sm:$0xff] }
 0x338   : > { %v4517_v47 = vadd.f32 %v9739_v8, %v12997_v53  ;;  %v3872_v16 = vmul.f32 %v3607_v4, %v2848_v32  ;;  %v4511_v55 = vpop.f32.mrb[137].mxu0  ;;  %9897 = vmatmul.mubr.msk.f32.gmra.mrb[242].mxu0 %vm4016_vm2, %v3997_v1  ;;  %7582 = vrot.lane.b32.xlu1 %v14473_v21, %s10932_s8  ;;  %v14476_v33 = vld [vmem:[#allocation85_spill] sm:$0xff] }
 0x339   : > { %v3999_v11 = vadd.f32 %v3871_v41, %v14474_v19  ;;  %v4512_v13 = vadd.f32 %v12997_v53, %v4511_v55  ;;  %9934 = vmatprep.mubr.msk.f32.mxu1 %vm414_vm0, %v5116_v31  ;;  %7584 = vrot.lane.b32.xlu0 %v14475_v48, %s10932_s8  ;;  %v14477_v48 = vld [vmem:[#allocation48_spill] sm:$0xff] }
 0x33a   : > { %v4000_v32 = vadd.f32 %v3872_v16, %v14476_v33  ;;  %9899 = vmatprep.mubr.msk.f32.mxu0 %vm4016_vm2, %v3998_v38  ;;  %9935 = vmatmul.mubr.msk.f32.gmra.mrb[134].mxu1 %vm414_vm0, %v5117_v62  ;;  %v3609_v1 = vpop.permute.xlu1 %3608  ;;  %v5119_v55 = vmax.f32 %v4517_v47, 0.0  ;;  %v2851_v16 = vld [vmem:[%s12063_s17 + $0x3c8] sm:$0xff]  ;;  %v14478_v38 = vld [vmem:[#allocation84_spill] sm:$0xff] }
 0x33b   : > { %v5118_v22 = vmax.f32 %v4512_v13, 0.0  ;;  %v3873_v8 = vmul.f32 %v3609_v1, %v2849_v25  ;;  %v9742_v41 = vpop.f32.mrb[138].mxu0  ;;  %v3611_v4 = vpop.permute.xlu0 %3610  ;;  %v14479_v25 = vld [vmem:[#allocation51_spill] sm:$0xff]  ;;  %v2852_v47 = vld [vmem:[%s12063_s17 + $0x3d0] sm:$0xff] }
 0x33c   : > { %v4527_v31 = vadd.f32 %v9742_v41, %v12997_v53  ;;  %v3874_v21 = vmul.f32 %v3611_v4, %v2850_v7  ;;  %v4521_v19 = vpop.f32.mrb[139].mxu0  ;;  %9900 = vmatmul.mubr.msk.f32.gmra.mrb[244].mxu0 %vm4016_vm2, %v3999_v11  ;;  %7586 = vrot.lane.b32.xlu1 %v14477_v48, %s10932_s8  ;;  %v14480_v13 = vld [vmem:[#allocation87_spill] sm:$0xff] }
 0x33d   : > { %v4001_v33 = vadd.f32 %v3873_v8, %v14478_v38  ;;  %v4522_v62 = vadd.f32 %v12997_v53, %v4521_v19  ;;  %9937 = vmatprep.mubr.msk.f32.mxu1 %vm414_vm0, %v5118_v22  ;;  %7588 = vrot.lane.b32.xlu0 %v14479_v25, %s10932_s8  ;;  %v14481_v25 = vld [vmem:[#allocation50_spill] sm:$0xff] }
 0x33e   : > { %v4002_v7 = vadd.f32 %v3874_v21, %v14480_v13  ;;  %9902 = vmatprep.mubr.msk.f32.mxu0 %vm4016_vm2, %v4000_v32  ;;  %9938 = vmatmul.mubr.msk.f32.gmra.mrb[136].mxu1 %vm414_vm0, %v5119_v55  ;;  %v3613_v11 = vpop.permute.xlu1 %3612  ;;  %v5121_v19 = vmax.f32 %v4527_v31, 0.0  ;;  %v2853_v21 = vld [vmem:[%s12063_s17 + $0x3d8] sm:$0xff]  ;;  %v14482_v32 = vld [vmem:[#allocation86_spill] sm:$0xff] }
 0x33f   : > { %v5120_v1 = vmax.f32 %v4522_v62, 0.0  ;;  %v3875_v41 = vmul.f32 %v3613_v11, %v2851_v16  ;;  %v9745_v8 = vpop.f32.mrb[140].mxu0  ;;  %v3615_v4 = vpop.permute.xlu0 %3614  ;;  %v14483_v16 = vld [vmem:[#allocation53_spill] sm:$0xff]  ;;  %v2854_v31 = vld [vmem:[%s12063_s17 + $0x3e0] sm:$0xff] }
 0x340   : > { %v4537_v22 = vadd.f32 %v9745_v8, %v12997_v53  ;;  %v3876_v48 = vmul.f32 %v3615_v4, %v2852_v47  ;;  %v4531_v38 = vpop.f32.mrb[141].mxu0  ;;  %9903 = vmatmul.mubr.msk.f32.gmra.mrb[246].mxu0 %vm4016_vm2, %v4001_v33  ;;  %7590 = vrot.lane.b32.xlu1 %v14481_v25, %s10932_s8  ;;  %v14484_v62 = vld [vmem:[#allocation89_spill] sm:$0xff] }
 0x341   : > { %v4003_v13 = vadd.f32 %v3875_v41, %v14482_v32  ;;  %v4532_v55 = vadd.f32 %v12997_v53, %v4531_v38  ;;  %9940 = vmatprep.mubr.msk.f32.mxu1 %vm414_vm0, %v5120_v1  ;;  %7592 = vrot.lane.b32.xlu0 %v14483_v16, %s10932_s8  ;;  %v14485_v16 = vld [vmem:[#allocation52_spill] sm:$0xff] }
 0x342   : > { %v4004_v47 = vadd.f32 %v3876_v48, %v14484_v62  ;;  %9905 = vmatprep.mubr.msk.f32.mxu0 %vm4016_vm2, %v4002_v7  ;;  %9941 = vmatmul.mubr.msk.f32.gmra.mrb[138].mxu1 %vm414_vm0, %v5121_v19  ;;  %v3617_v33 = vpop.permute.xlu1 %3616  ;;  %v5123_v38 = vmax.f32 %v4537_v22, 0.0  ;;  %v2855_v48 = vld [vmem:[%s12063_s17 + $0x3e8] sm:$0xff]  ;;  %v14486_v7 = vld [vmem:[#allocation88_spill] sm:$0xff] }
 0x343   : > { %v5122_v11 = vmax.f32 %v4532_v55, 0.0  ;;  %v3877_v8 = vmul.f32 %v3617_v33, %v2853_v21  ;;  %v9748_v41 = vpop.f32.mrb[142].mxu0  ;;  %v3619_v4 = vpop.permute.xlu0 %3618  ;;  %v14487_v21 = vld [vmem:[#allocation55_spill] sm:$0xff]  ;;  %v2856_v22 = vld [vmem:[%s12063_s17 + $0x3f0] sm:$0xff] }
 0x344   : > { %v4547_v1 = vadd.f32 %v9748_v41, %v12997_v53  ;;  %v3878_v25 = vmul.f32 %v3619_v4, %v2854_v31  ;;  %v4541_v32 = vpop.f32.mrb[143].mxu0  ;;  %9906 = vmatmul.mubr.msk.f32.gmra.mrb[248].mxu0 %vm4016_vm2, %v4003_v13  ;;  %7594 = vrot.lane.b32.xlu1 %v14485_v16, %s10932_s8 }
 0x345   : > { %v4005_v62 = vadd.f32 %v3877_v8, %v14486_v7  ;;  %v4542_v19 = vadd.f32 %v12997_v53, %v4541_v32  ;;  %9943 = vmatprep.mubr.msk.f32.mxu1 %vm414_vm0, %v5122_v11  ;;  %7596 = vrot.lane.b32.xlu0 %v14487_v21, %s10932_s8  ;;  %v14488_v21 = vld [vmem:[#allocation54_spill] sm:$0xff] }
 0x346   : > { %v4006_v55 = vadd.f32 %v3878_v25, %v12725_v29  ;;  %9908 = vmatprep.mubr.msk.f32.mxu0 %vm4016_vm2, %v4004_v47  ;;  %9944 = vmatmul.mubr.msk.f32.gmra.mrb[140].mxu1 %vm414_vm0, %v5123_v38  ;;  %v3621_v13 = vpop.permute.xlu1 %3620  ;;  %v5125_v32 = vmax.f32 %v4547_v1, 0.0  ;;  %v2857_v25 = vld [vmem:[%s12063_s17 + $0x3f8] sm:$0xff]  ;;  %v14489_v47 = vld [vmem:[#allocation90_spill] sm:$0xff] }
 0x347   : > { %v5124_v31 = vmax.f32 %v4542_v19, 0.0  ;;  %v3879_v33 = vmul.f32 %v3621_v13, %v2855_v48  ;;  %v9751_v8 = vpop.f32.mrb[144].mxu0  ;;  %v3623_v41 = vpop.permute.xlu0 %3622  ;;  %v14490_v48 = vld [vmem:[#allocation57_spill] sm:$0xff] }
 0x348   : > { %v4557_v11 = vadd.f32 %v9751_v8, %v12997_v53  ;;  %v3880_v4 = vmul.f32 %v3623_v41, %v2856_v22  ;;  %v4551_v16 = vpop.f32.mrb[145].mxu0  ;;  %9909 = vmatmul.mubr.msk.f32.gmra.mrb[250].mxu0 %vm4016_vm2, %v4005_v62  ;;  %7598 = vrot.lane.b32.xlu1 %v14488_v21, %s10932_s8  ;;  %v14493_v21 = vld [vmem:[#allocation59_spill] sm:$0xff] }
 0x349   : > { %v4007_v29 = vadd.f32 %v3879_v33, %v14489_v47  ;;  %v4552_v38 = vadd.f32 %v12997_v53, %v4551_v16  ;;  %9946 = vmatprep.mubr.msk.f32.mxu1 %vm414_vm0, %v5124_v31  ;;  %7600 = vrot.lane.b32.xlu0 %v14490_v48, %s10932_s8 }
 0x34a   : > { %v4008_v62 = vadd.f32 %v3880_v4, %v12747_v28  ;;  %9911 = vmatprep.mubr.msk.f32.mxu0 %vm4016_vm2, %v4006_v55  ;;  %9947 = vmatmul.mubr.msk.f32.gmra.mrb[142].mxu1 %vm414_vm0, %v5125_v32  ;;  %v3625_v1 = vpop.permute.xlu1 %3624  ;;  %v5127_v33 = vmax.f32 %v4557_v11, 0.0  ;;  %v14491_v4 = vld [vmem:[#allocation56_spill] sm:$0xff] }
 0x34b   : > { %v5126_v19 = vmax.f32 %v4552_v38, 0.0  ;;  %v3881_v22 = vmul.f32 %v3625_v1, %v2857_v25  ;;  %v9754_v13 = vpop.f32.mrb[146].mxu0  ;;  %v7489_v31 = vpop.permute.xlu0 %7488  ;;  %v14492_v55 = vld [vmem:[#allocation92_spill] sm:$0xff] }
 0x34c   : > { %v4567_v8 = vadd.f32 %v9754_v13, %v12997_v53  ;;  %7872 = vst.msk [vmem:[%s13125_s25] sm:$0xff] %vm4016_vm2, %v7489_v31  ;;  %v4561_v41 = vpop.f32.mrb[147].mxu0  ;;  %9912 = vmatmul.mubr.msk.f32.gmra.mrb[252].mxu0 %vm4016_vm2, %v4007_v29  ;;  %7602 = vrot.lane.b32.xlu1 %v14491_v4, %s10932_s8 }
 0x34d   : > { %v4009_v32 = vadd.f32 %v3881_v22, %v14492_v55  ;;  %v4562_v16 = vadd.f32 %v12997_v53, %v4561_v41  ;;  %9949 = vmatprep.mubr.msk.f32.mxu1 %vm414_vm0, %v5126_v19  ;;  %7604 = vrot.lane.b32.xlu0 %v14493_v21, %s10932_s8 }
 0x34e   : > { %9914 = vmatprep.mubr.msk.f32.mxu0 %vm4016_vm2, %v4008_v62  ;;  %9950 = vmatmul.mubr.msk.f32.gmra.mrb[144].mxu1 %vm414_vm0, %v5127_v33  ;;  %v7491_v11 = vpop.permute.xlu1 %7490  ;;  %v5129_v48 = vmax.f32 %v4567_v8, 0.0  ;;  %v14494_v62 = vld [vmem:[#allocation58_spill] sm:$0xff] }
 0x34f   : > { %v5128_v25 = vmax.f32 %v4562_v16, 0.0  ;;  %7873 = vst.msk [vmem:[%s13125_s25 + $0x8] sm:$0xff] %vm4016_vm2, %v7491_v11  ;;  %v9757_v29 = vpop.f32.mrb[148].mxu0  ;;  %v7493_v38 = vpop.permute.xlu0 %7492  ;;  %v14495_v16 = vld [vmem:[#allocation63_spill] sm:$0xff] }
 0x350   : > { %v4577_v1 = vadd.f32 %v9757_v29, %v12997_v53  ;;  %7874 = vst.msk [vmem:[%s13125_s25 + $0x10] sm:$0xff] %vm4016_vm2, %v7493_v38  ;;  %v4571_v19 = vpop.f32.mrb[149].mxu0  ;;  %9915 = vmatmul.mubr.msk.f32.gmra.mrb[254].mxu0 %vm4016_vm2, %v4009_v32  ;;  %7606 = vrot.lane.b32.xlu1 %v14494_v62, %s10932_s8 }
 0x351   : > { %v4572_v22 = vadd.f32 %v12997_v53, %v4571_v19  ;;  %9952 = vmatprep.mubr.msk.f32.mxu1 %vm414_vm0, %v5128_v25  ;;  %7608 = vrot.lane.b32.xlu0 %v14411_v6, %s10932_s8  ;;  %v14496_v19 = vld [vmem:[#allocation65_spill] sm:$0xff] }
 0x352   : > { %9953 = vmatmul.mubr.msk.f32.gmra.mrb[146].mxu1 %vm414_vm0, %v5129_v48  ;;  %v7495_v13 = vpop.permute.xlu1 %7494  ;;  %v5131_v41 = vmax.f32 %v4577_v1, 0.0 }
 0x353   : > { %v5130_v31 = vmax.f32 %v4572_v22, 0.0  ;;  %7875 = vst.msk [vmem:[%s13125_s25 + $0x18] sm:$0xff] %vm4016_vm2, %v7495_v13  ;;  %v9760_v33 = vpop.f32.mrb[150].mxu0  ;;  %v7497_v8 = vpop.permute.xlu0 %7496 }
 0x354   : > { %v4587_v4 = vadd.f32 %v9760_v33, %v12997_v53  ;;  %7876 = vst.msk [vmem:[%s13125_s25 + $0x20] sm:$0xff] %vm4016_vm2, %v7497_v8  ;;  %v4581_v32 = vpop.f32.mrb[151].mxu0  ;;  %7610 = vrot.lane.b32.xlu1 %v14412_v42, %s10932_s8 }
 0x355   : > { %v4582_v6 = vadd.f32 %v12997_v53, %v4581_v32  ;;  %9955 = vmatprep.mubr.msk.f32.mxu1 %vm414_vm0, %v5130_v31  ;;  %7612 = vrot.lane.b32.xlu0 %v14495_v16, %s10932_s8  ;;  %v14498_v32 = vld [vmem:[#allocation67_spill] sm:$0xff] }
 0x356   : > { %9956 = vmatmul.mubr.msk.f32.gmra.mrb[148].mxu1 %vm414_vm0, %v5131_v41  ;;  %v7499_v21 = vpop.permute.xlu1 %7498  ;;  %v5133_v38 = vmax.f32 %v4587_v4, 0.0  ;;  %v14497_v41 = vld [vmem:[#allocation64_spill] sm:$0xff] }
 0x357   : > { %v5132_v11 = vmax.f32 %v4582_v6, 0.0  ;;  %7877 = vst.msk [vmem:[%s13125_s25 + $0x28] sm:$0xff] %vm4016_vm2, %v7499_v21  ;;  %v9763_v25 = vpop.f32.mrb[152].mxu0  ;;  %v7501_v29 = vpop.permute.xlu0 %7500 }
 0x358   : > { %v4597_v42 = vadd.f32 %v9763_v25, %v12997_v53  ;;  %7878 = vst.msk [vmem:[%s13125_s25 + $0x30] sm:$0xff] %vm4016_vm2, %v7501_v29  ;;  %v4591_v48 = vpop.f32.mrb[153].mxu0  ;;  %7614 = vrot.lane.b32.xlu1 %v14414_v57, %s10932_s8 }
 0x359   : > { %v4592_v1 = vadd.f32 %v12997_v53, %v4591_v48  ;;  %9958 = vmatprep.mubr.msk.f32.mxu1 %vm414_vm0, %v5132_v11  ;;  %7616 = vrot.lane.b32.xlu0 %v14496_v19, %s10932_s8  ;;  %v14499_v48 = vld [vmem:[#allocation69_spill] sm:$0xff] }
 0x35a   : > { %9959 = vmatmul.mubr.msk.f32.gmra.mrb[150].mxu1 %vm414_vm0, %v5133_v38  ;;  %v7503_v62 = vpop.permute.xlu1 %7502  ;;  %v5135_v33 = vmax.f32 %v4597_v42, 0.0 }
 0x35b   : > { %v5134_v22 = vmax.f32 %v4592_v1, 0.0  ;;  %7879 = vst.msk [vmem:[%s13125_s25 + $0x38] sm:$0xff] %vm4016_vm2, %v7503_v62  ;;  %v9766_v13 = vpop.f32.mrb[154].mxu0  ;;  %v7505_v31 = vpop.permute.xlu0 %7504 }
 0x35c   : > { %v4607_v57 = vadd.f32 %v9766_v13, %v12997_v53  ;;  %7880 = vst.msk [vmem:[%s13125_s25 + $0x40] sm:$0xff] %vm4016_vm2, %v7505_v31  ;;  %v4601_v8 = vpop.f32.mrb[155].mxu0  ;;  %7618 = vrot.lane.b32.xlu1 %v14497_v41, %s10932_s8 }
 0x35d   : > { %v4602_v4 = vadd.f32 %v12997_v53, %v4601_v8  ;;  %9961 = vmatprep.mubr.msk.f32.mxu1 %vm414_vm0, %v5134_v22  ;;  %7620 = vrot.lane.b32.xlu0 %v14498_v32, %s10932_s8 }
 0x35e   : > { %9962 = vmatmul.mubr.msk.f32.gmra.mrb[152].mxu1 %vm414_vm0, %v5135_v33  ;;  %v7507_v6 = vpop.permute.xlu1 %7506  ;;  %v5137_v25 = vmax.f32 %v4607_v57, 0.0 }
 0x35f   : > { %v5136_v16 = vmax.f32 %v4602_v4, 0.0  ;;  %7881 = vst.msk [vmem:[%s13125_s25 + $0x48] sm:$0xff] %vm4016_vm2, %v7507_v6  ;;  %v9769_v21 = vpop.f32.mrb[156].mxu0  ;;  %v7509_v11 = vpop.permute.xlu0 %7508 }
 0x360   : > { %v4617_v29 = vadd.f32 %v9769_v21, %v12997_v53  ;;  %7882 = vst.msk [vmem:[%s13125_s25 + $0x50] sm:$0xff] %vm4016_vm2, %v7509_v11  ;;  %v4611_v38 = vpop.f32.mrb[157].mxu0  ;;  %7622 = vrot.lane.b32.xlu1 %v14418_v56, %s10932_s8 }
 0x361   : > { %v4612_v42 = vadd.f32 %v12997_v53, %v4611_v38  ;;  %9964 = vmatprep.mubr.msk.f32.mxu1 %vm414_vm0, %v5136_v16  ;;  %7624 = vrot.lane.b32.xlu0 %v14499_v48, %s10932_s8 }
 0x362   : > { %9965 = vmatmul.mubr.msk.f32.gmra.mrb[154].mxu1 %vm414_vm0, %v5137_v25  ;;  %v7511_v1 = vpop.permute.xlu1 %7510  ;;  %v5139_v13 = vmax.f32 %v4617_v29, 0.0 }
 0x363   : > { %v5138_v19 = vmax.f32 %v4612_v42, 0.0  ;;  %7883 = vst.msk [vmem:[%s13125_s25 + $0x58] sm:$0xff] %vm4016_vm2, %v7511_v1  ;;  %v9772_v62 = vpop.f32.mrb[158].mxu0  ;;  %v7513_v22 = vpop.permute.xlu0 %7512 }
 0x364   : > { %v4627_v56 = vadd.f32 %v9772_v62, %v12997_v53  ;;  %7884 = vst.msk [vmem:[%s13125_s25 + $0x60] sm:$0xff] %vm4016_vm2, %v7513_v22  ;;  %v4621_v31 = vpop.f32.mrb[159].mxu0  ;;  %7626 = vrot.lane.b32.xlu1 %v14420_v3, %s10932_s8 }
 0x365   : > { %v4622_v33 = vadd.f32 %v12997_v53, %v4621_v31  ;;  %9967 = vmatprep.mubr.msk.f32.mxu1 %vm414_vm0, %v5138_v19  ;;  %7628 = vrot.lane.b32.xlu0 %v12126_v59, %s10932_s8 }
 0x366   : > { %9968 = vmatmul.mubr.msk.f32.gmra.mrb[156].mxu1 %vm414_vm0, %v5139_v13  ;;  %v7515_v57 = vpop.permute.xlu1 %7514  ;;  %v5141_v32 = vmax.f32 %v4627_v56, 0.0 }
 0x367   : > { %v5140_v8 = vmax.f32 %v4622_v33, 0.0  ;;  %7885 = vst.msk [vmem:[%s13125_s25 + $0x68] sm:$0xff] %vm4016_vm2, %v7515_v57  ;;  %v9775_v41 = vpop.f32.mrb[160].mxu0  ;;  %v7517_v4 = vpop.permute.xlu0 %7516 }
 0x368   : > { %v4637_v3 = vadd.f32 %v9775_v41, %v12997_v53  ;;  %7886 = vst.msk [vmem:[%s13125_s25 + $0x70] sm:$0xff] %vm4016_vm2, %v7517_v4  ;;  %v4631_v6 = vpop.f32.mrb[161].mxu0  ;;  %7630 = vrot.lane.b32.xlu1 %v14422_v12, %s10932_s8 }
 0x369   : > { %v4632_v59 = vadd.f32 %v12997_v53, %v4631_v6  ;;  %9970 = vmatprep.mubr.msk.f32.mxu1 %vm414_vm0, %v5140_v8  ;;  %7632 = vrot.lane.b32.xlu0 %v12148_v9, %s10932_s8 }
 0x36a   : > { %9971 = vmatmul.mubr.msk.f32.gmra.mrb[158].mxu1 %vm414_vm0, %v5141_v32  ;;  %v7519_v16 = vpop.permute.xlu1 %7518  ;;  %v5143_v29 = vmax.f32 %v4637_v3, 0.0 }
 0x36b   : > { %v5142_v21 = vmax.f32 %v4632_v59, 0.0  ;;  %7887 = vst.msk [vmem:[%s13125_s25 + $0x78] sm:$0xff] %vm4016_vm2, %v7519_v16  ;;  %v9778_v11 = vpop.f32.mrb[162].mxu0  ;;  %v7521_v25 = vpop.permute.xlu0 %7520 }
 0x36c   : > { %v4647_v12 = vadd.f32 %v9778_v11, %v12997_v53  ;;  %7888 = vst.msk [vmem:[%s13125_s25 + $0x80] sm:$0xff] %vm4016_vm2, %v7521_v25  ;;  %v4641_v38 = vpop.f32.mrb[163].mxu0  ;;  %7634 = vrot.lane.b32.xlu1 %v12145_v27, %s10932_s8 }
 0x36d   : > { %v4642_v9 = vadd.f32 %v12997_v53, %v4641_v38  ;;  %9973 = vmatprep.mubr.msk.f32.mxu1 %vm414_vm0, %v5142_v21  ;;  %7636 = vrot.lane.b32.xlu0 %v12170_v52, %s10932_s8 }
 0x36e   : > { %9974 = vmatmul.mubr.msk.f32.gmra.mrb[160].mxu1 %vm414_vm0, %v5143_v29  ;;  %v7523_v42 = vpop.permute.xlu1 %7522  ;;  %v5145_v62 = vmax.f32 %v4647_v12, 0.0 }
 0x36f   : > { %v5144_v48 = vmax.f32 %v4642_v9, 0.0  ;;  %7889 = vst.msk [vmem:[%s13125_s25 + $0x88] sm:$0xff] %vm4016_vm2, %v7523_v42  ;;  %v9781_v1 = vpop.f32.mrb[164].mxu0  ;;  %v7525_v19 = vpop.permute.xlu0 %7524 }
 0x370   : > { %v4657_v27 = vadd.f32 %v9781_v1, %v12997_v53  ;;  %7890 = vst.msk [vmem:[%s13125_s25 + $0x90] sm:$0xff] %vm4016_vm2, %v7525_v19  ;;  %v4651_v22 = vpop.f32.mrb[165].mxu0  ;;  %7638 = vrot.lane.b32.xlu1 %v12167_v34, %s10932_s8 }
 0x371   : > { %v4652_v52 = vadd.f32 %v12997_v53, %v4651_v22  ;;  %9976 = vmatprep.mubr.msk.f32.mxu1 %vm414_vm0, %v5144_v48  ;;  %7640 = vrot.lane.b32.xlu0 %v12192_v35, %s10932_s8 }
 0x372   : > { %9977 = vmatmul.mubr.msk.f32.gmra.mrb[162].mxu1 %vm414_vm0, %v5145_v62  ;;  %v7527_v13 = vpop.permute.xlu1 %7526  ;;  %v5147_v57 = vmax.f32 %v4657_v27, 0.0 }
 0x373   : > { %v5146_v56 = vmax.f32 %v4652_v52, 0.0  ;;  %7891 = vst.msk [vmem:[%s13125_s25 + $0x98] sm:$0xff] %vm4016_vm2, %v7527_v13  ;;  %v9784_v31 = vpop.f32.mrb[166].mxu0  ;;  %v7529_v33 = vpop.permute.xlu0 %7528 }
 0x374   : > { %v4667_v34 = vadd.f32 %v9784_v31, %v12997_v53  ;;  %7892 = vst.msk [vmem:[%s13125_s25 + $0xa0] sm:$0xff] %vm4016_vm2, %v7529_v33  ;;  %v4661_v8 = vpop.f32.mrb[167].mxu0  ;;  %7642 = vrot.lane.b32.xlu1 %v12189_v26, %s10932_s8 }
 0x375   : > { %v4662_v35 = vadd.f32 %v12997_v53, %v4661_v8  ;;  %9979 = vmatprep.mubr.msk.f32.mxu1 %vm414_vm0, %v5146_v56  ;;  %7644 = vrot.lane.b32.xlu0 %v12214_v44, %s10932_s8 }
 0x376   : > { %9980 = vmatmul.mubr.msk.f32.gmra.mrb[164].mxu1 %vm414_vm0, %v5147_v57  ;;  %v7531_v41 = vpop.permute.xlu1 %7530  ;;  %v5149_v6 = vmax.f32 %v4667_v34, 0.0 }
 0x377   : > { %v5148_v4 = vmax.f32 %v4662_v35, 0.0  ;;  %7893 = vst.msk [vmem:[%s13125_s25 + $0xa8] sm:$0xff] %vm4016_vm2, %v7531_v41  ;;  %v9787_v32 = vpop.f32.mrb[168].mxu0  ;;  %v7533_v3 = vpop.permute.xlu0 %7532 }
 0x378   : > { %v4677_v26 = vadd.f32 %v9787_v32, %v12997_v53  ;;  %7894 = vst.msk [vmem:[%s13125_s25 + $0xb0] sm:$0xff] %vm4016_vm2, %v7533_v3  ;;  %v4671_v59 = vpop.f32.mrb[169].mxu0  ;;  %7646 = vrot.lane.b32.xlu1 %v12211_v15, %s10932_s8 }
 0x379   : > { %v4672_v44 = vadd.f32 %v12997_v53, %v4671_v59  ;;  %9982 = vmatprep.mubr.msk.f32.mxu1 %vm414_vm0, %v5148_v4  ;;  %7648 = vrot.lane.b32.xlu0 %v12236_v2, %s10932_s8 }
 0x37a   : > { %9983 = vmatmul.mubr.msk.f32.gmra.mrb[166].mxu1 %vm414_vm0, %v5149_v6  ;;  %v7535_v16 = vpop.permute.xlu1 %7534  ;;  %v5151_v29 = vmax.f32 %v4677_v26, 0.0 }
 0x37b   : > { %v5150_v21 = vmax.f32 %v4672_v44, 0.0  ;;  %7895 = vst.msk [vmem:[%s13125_s25 + $0xb8] sm:$0xff] %vm4016_vm2, %v7535_v16  ;;  %v9790_v11 = vpop.f32.mrb[170].mxu0  ;;  %v7537_v25 = vpop.permute.xlu0 %7536 }
 0x37c   : > { %v4687_v15 = vadd.f32 %v9790_v11, %v12997_v53  ;;  %7896 = vst.msk [vmem:[%s13125_s25 + $0xc0] sm:$0xff] %vm4016_vm2, %v7537_v25  ;;  %v4681_v12 = vpop.f32.mrb[171].mxu0  ;;  %7650 = vrot.lane.b32.xlu1 %v12233_v36, %s10932_s8 }
 0x37d   : > { %v4682_v2 = vadd.f32 %v12997_v53, %v4681_v12  ;;  %9985 = vmatprep.mubr.msk.f32.mxu1 %vm414_vm0, %v5150_v21  ;;  %7652 = vrot.lane.b32.xlu0 %v12258_v37, %s10932_s8 }
 0x37e   : > { %9986 = vmatmul.mubr.msk.f32.gmra.mrb[168].mxu1 %vm414_vm0, %v5151_v29  ;;  %v7539_v38 = vpop.permute.xlu1 %7538  ;;  %v5153_v1 = vmax.f32 %v4687_v15, 0.0 }
 0x37f   : > { %v5152_v9 = vmax.f32 %v4682_v2, 0.0  ;;  %7897 = vst.msk [vmem:[%s13125_s25 + $0xc8] sm:$0xff] %vm4016_vm2, %v7539_v38  ;;  %v9793_v42 = vpop.f32.mrb[172].mxu0  ;;  %v7541_v48 = vpop.permute.xlu0 %7540 }
 0x380   : > { %v4697_v36 = vadd.f32 %v9793_v42, %v12997_v53  ;;  %7898 = vst.msk [vmem:[%s13125_s25 + $0xd0] sm:$0xff] %vm4016_vm2, %v7541_v48  ;;  %v4691_v19 = vpop.f32.mrb[173].mxu0  ;;  %7654 = vrot.lane.b32.xlu1 %v12255_v58, %s10932_s8 }
 0x381   : > { %v4692_v37 = vadd.f32 %v12997_v53, %v4691_v19  ;;  %9988 = vmatprep.mubr.msk.f32.mxu1 %vm414_vm0, %v5152_v9  ;;  %7656 = vrot.lane.b32.xlu0 %v12280_v51, %s10932_s8 }
 0x382   : > { %9989 = vmatmul.mubr.msk.f32.gmra.mrb[170].mxu1 %vm414_vm0, %v5153_v1  ;;  %v7543_v62 = vpop.permute.xlu1 %7542  ;;  %v5155_v13 = vmax.f32 %v4697_v36, 0.0 }
 0x383   : > { %v5154_v27 = vmax.f32 %v4692_v37, 0.0  ;;  %7899 = vst.msk [vmem:[%s13125_s25 + $0xd8] sm:$0xff] %vm4016_vm2, %v7543_v62  ;;  %v9796_v22 = vpop.f32.mrb[174].mxu0  ;;  %v7545_v52 = vpop.permute.xlu0 %7544 }
 0x384   : > { %v4707_v58 = vadd.f32 %v9796_v22, %v12997_v53  ;;  %7900 = vst.msk [vmem:[%s13125_s25 + $0xe0] sm:$0xff] %vm4016_vm2, %v7545_v52  ;;  %v4701_v56 = vpop.f32.mrb[175].mxu0  ;;  %7658 = vrot.lane.b32.xlu1 %v12277_v20, %s10932_s8 }
 0x385   : > { %v4702_v51 = vadd.f32 %v12997_v53, %v4701_v56  ;;  %9991 = vmatprep.mubr.msk.f32.mxu1 %vm414_vm0, %v5154_v27  ;;  %7660 = vrot.lane.b32.xlu0 %v12302_v49, %s10932_s8 }
 0x386   : > { %9992 = vmatmul.mubr.msk.f32.gmra.mrb[172].mxu1 %vm414_vm0, %v5155_v13  ;;  %v7547_v31 = vpop.permute.xlu1 %7546  ;;  %v5157_v8 = vmax.f32 %v4707_v58, 0.0 }
 0x387   : > { %v5156_v33 = vmax.f32 %v4702_v51, 0.0  ;;  %7901 = vst.msk [vmem:[%s13125_s25 + $0xe8] sm:$0xff] %vm4016_vm2, %v7547_v31  ;;  %v9799_v57 = vpop.f32.mrb[176].mxu0  ;;  %v7549_v34 = vpop.permute.xlu0 %7548 }
 0x388   : > { %v4717_v20 = vadd.f32 %v9799_v57, %v12997_v53  ;;  %7902 = vst.msk [vmem:[%s13125_s25 + $0xf0] sm:$0xff] %vm4016_vm2, %v7549_v34  ;;  %v4711_v35 = vpop.f32.mrb[177].mxu0  ;;  %7662 = vrot.lane.b32.xlu1 %v12299_v0, %s10932_s8 }
 0x389   : > { %v4712_v49 = vadd.f32 %v12997_v53, %v4711_v35  ;;  %9994 = vmatprep.mubr.msk.f32.mxu1 %vm414_vm0, %v5156_v33  ;;  %7664 = vrot.lane.b32.xlu0 %v12324_v45, %s10932_s8 }
 0x38a   : > { %9995 = vmatmul.mubr.msk.f32.gmra.mrb[174].mxu1 %vm414_vm0, %v5157_v8  ;;  %v7551_v41 = vpop.permute.xlu1 %7550  ;;  %v5159_v6 = vmax.f32 %v4717_v20, 0.0 }
 0x38b   : > { %v5158_v4 = vmax.f32 %v4712_v49, 0.0  ;;  %7903 = vst.msk [vmem:[%s13125_s25 + $0xf8] sm:$0xff] %vm4016_vm2, %v7551_v41  ;;  %v9802_v32 = vpop.f32.mrb[178].mxu0  ;;  %v7553_v3 = vpop.permute.xlu0 %7552 }
 0x38c   : > { %v4727_v0 = vadd.f32 %v9802_v32, %v12997_v53  ;;  %7904 = vst.msk [vmem:[%s13125_s25 + $0x100] sm:$0xff] %vm4016_vm2, %v7553_v3  ;;  %v4721_v26 = vpop.f32.mrb[179].mxu0  ;;  %7666 = vrot.lane.b32.xlu1 %v12321_v14, %s10932_s8 }
 0x38d   : > { %v4722_v45 = vadd.f32 %v12997_v53, %v4721_v26  ;;  %9997 = vmatprep.mubr.msk.f32.mxu1 %vm414_vm0, %v5158_v4  ;;  %7668 = vrot.lane.b32.xlu0 %v12346_v60, %s10932_s8 }
 0x38e   : > { %9998 = vmatmul.mubr.msk.f32.gmra.mrb[176].mxu1 %vm414_vm0, %v5159_v6  ;;  %v7555_v59 = vpop.permute.xlu1 %7554  ;;  %v5161_v11 = vmax.f32 %v4727_v0, 0.0 }
 0x38f   : > { %v5160_v44 = vmax.f32 %v4722_v45, 0.0  ;;  %7905 = vst.msk [vmem:[%s13125_s25 + $0x108] sm:$0xff] %vm4016_vm2, %v7555_v59  ;;  %v9805_v16 = vpop.f32.mrb[180].mxu0  ;;  %v7557_v21 = vpop.permute.xlu0 %7556 }
 0x390   : > { %v4737_v14 = vadd.f32 %v9805_v16, %v12997_v53  ;;  %7906 = vst.msk [vmem:[%s13125_s25 + $0x110] sm:$0xff] %vm4016_vm2, %v7557_v21  ;;  %v4731_v25 = vpop.f32.mrb[181].mxu0  ;;  %7670 = vrot.lane.b32.xlu1 %v12343_v30, %s10932_s8 }
 0x391   : > { %v4732_v60 = vadd.f32 %v12997_v53, %v4731_v25  ;;  %10000 = vmatprep.mubr.msk.f32.mxu1 %vm414_vm0, %v5160_v44  ;;  %7672 = vrot.lane.b32.xlu0 %v12368_v10, %s10932_s8  ;;  %v14500_v25 = vld [vmem:[#allocation72_spill] sm:$0xff] }
 0x392   : > { %10001 = vmatmul.mubr.msk.f32.gmra.mrb[178].mxu1 %vm414_vm0, %v5161_v11  ;;  %v7559_v29 = vpop.permute.xlu1 %7558  ;;  %v5163_v38 = vmax.f32 %v4737_v14, 0.0 }
 0x393   : > { %v5162_v15 = vmax.f32 %v4732_v60, 0.0  ;;  %7907 = vst.msk [vmem:[%s13125_s25 + $0x118] sm:$0xff] %vm4016_vm2, %v7559_v29  ;;  %v9808_v12 = vpop.f32.mrb[182].mxu0  ;;  %v7561_v2 = vpop.permute.xlu0 %7560  ;;  %v14501_v60 = vld [vmem:[#allocation74_spill] sm:$0xff] }
 0x394   : > { %v4747_v30 = vadd.f32 %v9808_v12, %v12997_v53  ;;  %7908 = vst.msk [vmem:[%s13125_s25 + $0x120] sm:$0xff] %vm4016_vm2, %v7561_v2  ;;  %v4741_v9 = vpop.f32.mrb[183].mxu0  ;;  %7674 = vrot.lane.b32.xlu1 %v12365_v50, %s10932_s8 }
 0x395   : > { %v4742_v10 = vadd.f32 %v12997_v53, %v4741_v9  ;;  %10003 = vmatprep.mubr.msk.f32.mxu1 %vm414_vm0, %v5162_v15  ;;  %7676 = vrot.lane.b32.xlu0 %v12390_v24, %s10932_s8 }
 0x396   : > { %10004 = vmatmul.mubr.msk.f32.gmra.mrb[180].mxu1 %vm414_vm0, %v5163_v38  ;;  %v7563_v42 = vpop.permute.xlu1 %7562  ;;  %v5165_v19 = vmax.f32 %v4747_v30, 0.0 }
 0x397   : > { %v5164_v48 = vmax.f32 %v4742_v10, 0.0  ;;  %7909 = vst.msk [vmem:[%s13125_s25 + $0x128] sm:$0xff] %vm4016_vm2, %v7563_v42  ;;  %v9811_v1 = vpop.f32.mrb[184].mxu0  ;;  %v7565_v36 = vpop.permute.xlu0 %7564  ;;  %v14502_v10 = vld [vmem:[#allocation73_spill] sm:$0xff] }
 0x398   : > { %v4757_v50 = vadd.f32 %v9811_v1, %v12997_v53  ;;  %7910 = vst.msk [vmem:[%s13125_s25 + $0x130] sm:$0xff] %vm4016_vm2, %v7565_v36  ;;  %v4751_v37 = vpop.f32.mrb[185].mxu0  ;;  %7678 = vrot.lane.b32.xlu1 %v12387_v5, %s10932_s8 }
 0x399   : > { %v4752_v24 = vadd.f32 %v12997_v53, %v4751_v37  ;;  %10006 = vmatprep.mubr.msk.f32.mxu1 %vm414_vm0, %v5164_v48  ;;  %7680 = vrot.lane.b32.xlu0 %v12412_v43, %s10932_s8  ;;  %v14503_v48 = vld [vmem:[#allocation76_spill] sm:$0xff] }
 0x39a   : > { %10007 = vmatmul.mubr.msk.f32.gmra.mrb[182].mxu1 %vm414_vm0, %v5165_v19  ;;  %v7567_v62 = vpop.permute.xlu1 %7566  ;;  %v5167_v13 = vmax.f32 %v4757_v50, 0.0 }
 0x39b   : > { %v5166_v27 = vmax.f32 %v4752_v24, 0.0  ;;  %7911 = vst.msk [vmem:[%s13125_s25 + $0x138] sm:$0xff] %vm4016_vm2, %v7567_v62  ;;  %v9814_v22 = vpop.f32.mrb[186].mxu0  ;;  %v7569_v52 = vpop.permute.xlu0 %7568 }
 0x39c   : > { %v4767_v5 = vadd.f32 %v9814_v22, %v12997_v53  ;;  %7912 = vst.msk [vmem:[%s13125_s25 + $0x140] sm:$0xff] %vm4016_vm2, %v7569_v52  ;;  %v4761_v58 = vpop.f32.mrb[187].mxu0  ;;  %7682 = vrot.lane.b32.xlu1 %v12409_v23, %s10932_s8 }
 0x39d   : > { %v4762_v43 = vadd.f32 %v12997_v53, %v4761_v58  ;;  %10009 = vmatprep.mubr.msk.f32.mxu1 %vm414_vm0, %v5166_v27  ;;  %7684 = vrot.lane.b32.xlu0 %v12434_v63, %s10932_s8  ;;  %v14504_v27 = vld [vmem:[#allocation75_spill] sm:$0xff] }
 0x39e   : > { %10010 = vmatmul.mubr.msk.f32.gmra.mrb[184].mxu1 %vm414_vm0, %v5167_v13  ;;  %v7571_v56 = vpop.permute.xlu1 %7570  ;;  %v5169_v57 = vmax.f32 %v4767_v5, 0.0 }
 0x39f   : > { %v5168_v51 = vmax.f32 %v4762_v43, 0.0  ;;  %7913 = vst.msk [vmem:[%s13125_s25 + $0x148] sm:$0xff] %vm4016_vm2, %v7571_v56  ;;  %v9817_v31 = vpop.f32.mrb[188].mxu0  ;;  %v7573_v33 = vpop.permute.xlu0 %7572 }
 0x3a0   : > { %v4777_v23 = vadd.f32 %v9817_v31, %v12997_v53  ;;  %7914 = vst.msk [vmem:[%s13125_s25 + $0x150] sm:$0xff] %vm4016_vm2, %v7573_v33  ;;  %v4771_v34 = vpop.f32.mrb[189].mxu0  ;;  %7686 = vrot.lane.b32.xlu1 %v12431_v46, %s10932_s8  ;;  %v14505_v31 = vld [vmem:[#allocation77_spill] sm:$0xff]  ;;  %v14506_v33 = vld [vmem:[#allocation79_spill] sm:$0xff] }
 0x3a1   : > { %v4772_v63 = vadd.f32 %v12997_v53, %v4771_v34  ;;  %10012 = vmatprep.mubr.msk.f32.mxu1 %vm414_vm0, %v5168_v51  ;;  %7688 = vrot.lane.b32.xlu0 %v12461_v61, %s10932_s8 }
 0x3a2   : > { %10013 = vmatmul.mubr.msk.f32.gmra.mrb[186].mxu1 %vm414_vm0, %v5169_v57  ;;  %v7575_v8 = vpop.permute.xlu1 %7574  ;;  %v5171_v41 = vmax.f32 %v4777_v23, 0.0 }
 0x3a3   : > { %v5170_v20 = vmax.f32 %v4772_v63, 0.0  ;;  %7915 = vst.msk [vmem:[%s13125_s25 + $0x158] sm:$0xff] %vm4016_vm2, %v7575_v8  ;;  %v9820_v35 = vpop.f32.mrb[190].mxu0  ;;  %v7577_v49 = vpop.permute.xlu0 %7576 }
 0x3a4   : > { %v4787_v46 = vadd.f32 %v9820_v35, %v12997_v53  ;;  %7916 = vst.msk [vmem:[%s13125_s25 + $0x160] sm:$0xff] %vm4016_vm2, %v7577_v49  ;;  %v4781_v4 = vpop.f32.mrb[191].mxu0  ;;  %7690 = vrot.lane.b32.xlu1 %v14452_v54, %s10932_s8  ;;  %v14507_v49 = vld [vmem:[#allocation78_spill] sm:$0xff] }
 0x3a5   : > { %v4782_v61 = vadd.f32 %v12997_v53, %v4781_v4  ;;  %10015 = vmatprep.mubr.msk.f32.mxu1 %vm414_vm0, %v5170_v20  ;;  %7692 = vrot.lane.b32.xlu0 %v12483_v18, %s10932_s8  ;;  %v13418_v18 = vld [vmem:[%s14169_s2 + $0x64] ss:$0 sm:$0xff] }
 0x3a6   : > { %10016 = vmatmul.mubr.msk.f32.gmra.mrb[188].mxu1 %vm414_vm0, %v5171_v41  ;;  %v7579_v32 = vpop.permute.xlu1 %7578  ;;  %v5173_v26 = vmax.f32 %v4787_v46, 0.0  ;;  %v14508_v46 = vld [vmem:[#allocation81_spill] sm:$0xff] }
 0x3a7   : > { %v5172_v3 = vmax.f32 %v4782_v61, 0.0  ;;  %7917 = vst.msk [vmem:[%s13125_s25 + $0x168] sm:$0xff] %vm4016_vm2, %v7579_v32  ;;  %v9823_v6 = vpop.f32.mrb[192].mxu0  ;;  %v7581_v0 = vpop.permute.xlu0 %7580 }
 0x3a8   : > { %v4797_v45 = vadd.f32 %v9823_v6, %v12997_v53  ;;  %7918 = vst.msk [vmem:[%s13125_s25 + $0x170] sm:$0xff] %vm4016_vm2, %v7581_v0  ;;  %v4791_v54 = vpop.f32.mrb[193].mxu0  ;;  %7694 = vrot.lane.b32.xlu1 %v12480_v17, %s10932_s8 }
 0x3a9   : > { %v4792_v59 = vadd.f32 %v13418_v18, %v4791_v54  ;;  %10018 = vmatprep.mubr.msk.f32.mxu1 %vm414_vm0, %v5172_v3  ;;  %7696 = vrot.lane.b32.xlu0 %v12505_v39, %s10932_s8 }
 0x3aa   : > { %10019 = vmatmul.mubr.msk.f32.gmra.mrb[190].mxu1 %vm414_vm0, %v5173_v26  ;;  %v7583_v53 = vpop.permute.xlu1 %7582  ;;  %v5175_v21 = vmax.f32 %v4797_v45, 0.0  ;;  %v14509_v45 = vld [vmem:[#allocation80_spill] sm:$0xff] }
 0x3ab   : > { %v5174_v44 = vmax.f32 %v4792_v59, 0.0  ;;  %7919 = vst.msk [vmem:[%s13125_s25 + $0x178] sm:$0xff] %vm4016_vm2, %v7583_v53  ;;  %v9826_v17 = vpop.f32.mrb[194].mxu0  ;;  %v7585_v16 = vpop.permute.xlu0 %7584  ;;  %v14510_v59 = vld [vmem:[#allocation83_spill] sm:$0xff] }
 0x3ac   : > { %v4807_v11 = vadd.f32 %v13418_v18, %v9826_v17  ;;  %7920 = vst.msk [vmem:[%s13125_s25 + $0x180] sm:$0xff] %vm4016_vm2, %v7585_v16  ;;  %v4801_v14 = vpop.f32.mrb[195].mxu0  ;;  %7698 = vrot.lane.b32.xlu1 %v14500_v25, %s10932_s8  ;;  %v14511_v25 = vld [vmem:[#allocation82_spill] sm:$0xff] }
 0x3ad   : > { %v4802_v39 = vadd.f32 %v13418_v18, %v4801_v14  ;;  %10021 = vmatprep.mubr.msk.f32.mxu1 %vm414_vm0, %v5174_v44  ;;  %7700 = vrot.lane.b32.xlu0 %v14501_v60, %s10932_s8  ;;  %v14512_v60 = vld [vmem:[#allocation85_spill] sm:$0xff] }
 0x3ae   : > { %10022 = vmatmul.mubr.msk.f32.gmra.mrb[192].mxu1 %vm414_vm0, %v5175_v21  ;;  %v7587_v29 = vpop.permute.xlu1 %7586  ;;  %v5177_v38 = vmax.f32 %v4807_v11, 0.0 }
 0x3af   : > { %v5176_v15 = vmax.f32 %v4802_v39, 0.0  ;;  %7921 = vst.msk [vmem:[%s13125_s25 + $0x188] sm:$0xff] %vm4016_vm2, %v7587_v29  ;;  %v9829_v12 = vpop.f32.mrb[196].mxu0  ;;  %v7589_v2 = vpop.permute.xlu0 %7588 }
 0x3b0   : > { %v4817_v30 = vadd.f32 %v13418_v18, %v9829_v12  ;;  %7922 = vst.msk [vmem:[%s13125_s25 + $0x190] sm:$0xff] %vm4016_vm2, %v7589_v2  ;;  %v4811_v9 = vpop.f32.mrb[197].mxu0  ;;  %7702 = vrot.lane.b32.xlu1 %v14502_v10, %s10932_s8  ;;  %v14513_v10 = vld [vmem:[#allocation84_spill] sm:$0xff] }
 0x3b1   : > { %v4812_v42 = vadd.f32 %v13418_v18, %v4811_v9  ;;  %10024 = vmatprep.mubr.msk.f32.mxu1 %vm414_vm0, %v5176_v15  ;;  %7704 = vrot.lane.b32.xlu0 %v14503_v48, %s10932_s8  ;;  %v14514_v48 = vld [vmem:[#allocation87_spill] sm:$0xff] }
 0x3b2   : > { %10025 = vmatmul.mubr.msk.f32.gmra.mrb[194].mxu1 %vm414_vm0, %v5177_v38  ;;  %v7591_v1 = vpop.permute.xlu1 %7590  ;;  %v5179_v37 = vmax.f32 %v4817_v30, 0.0 }
 0x3b3   : > { %v5178_v36 = vmax.f32 %v4812_v42, 0.0  ;;  %7923 = vst.msk [vmem:[%s13125_s25 + $0x198] sm:$0xff] %vm4016_vm2, %v7591_v1  ;;  %v9832_v19 = vpop.f32.mrb[198].mxu0  ;;  %v7593_v50 = vpop.permute.xlu0 %7592 }
 0x3b4   : > { %v4827_v24 = vadd.f32 %v13418_v18, %v9832_v19  ;;  %7924 = vst.msk [vmem:[%s13125_s25 + $0x1a0] sm:$0xff] %vm4016_vm2, %v7593_v50  ;;  %v4821_v62 = vpop.f32.mrb[199].mxu0  ;;  %7706 = vrot.lane.b32.xlu1 %v14504_v27, %s10932_s8  ;;  %v14515_v27 = vld [vmem:[#allocation86_spill] sm:$0xff] }
 0x3b5   : > { %v4822_v22 = vadd.f32 %v13418_v18, %v4821_v62  ;;  %10027 = vmatprep.mubr.msk.f32.mxu1 %vm414_vm0, %v5178_v36  ;;  %7708 = vrot.lane.b32.xlu0 %v12571_v40, %s10932_s8 }
 0x3b6   : > { %10028 = vmatmul.mubr.msk.f32.gmra.mrb[196].mxu1 %vm414_vm0, %v5179_v37  ;;  %v7595_v52 = vpop.permute.xlu1 %7594  ;;  %v5181_v43 = vmax.f32 %v4827_v24, 0.0 }
 0x3b7   : > { %v5180_v13 = vmax.f32 %v4822_v22, 0.0  ;;  %7925 = vst.msk [vmem:[%s13125_s25 + $0x1a8] sm:$0xff] %vm4016_vm2, %v7595_v52  ;;  %v9835_v5 = vpop.f32.mrb[200].mxu0  ;;  %v7597_v58 = vpop.permute.xlu0 %7596  ;;  %v14516_v52 = vld [vmem:[#allocation89_spill] sm:$0xff] }
 0x3b8   : > { %v4837_v56 = vadd.f32 %v13418_v18, %v9835_v5  ;;  %7926 = vst.msk [vmem:[%s13125_s25 + $0x1b0] sm:$0xff] %vm4016_vm2, %v7597_v58  ;;  %v4831_v51 = vpop.f32.mrb[201].mxu0  ;;  %7710 = vrot.lane.b32.xlu1 %v14505_v31, %s10932_s8 }
 0x3b9   : > { %v4832_v40 = vadd.f32 %v13418_v18, %v4831_v51  ;;  %10030 = vmatprep.mubr.msk.f32.mxu1 %vm414_vm0, %v5180_v13  ;;  %7712 = vrot.lane.b32.xlu0 %v14506_v33, %s10932_s8  ;;  %v14517_v33 = vld [vmem:[#allocation91_spill] sm:$0xff] }
 0x3ba   : > { %10031 = vmatmul.mubr.msk.f32.gmra.mrb[198].mxu1 %vm414_vm0, %v5181_v43  ;;  %v7599_v57 = vpop.permute.xlu1 %7598  ;;  %v5183_v8 = vmax.f32 %v4837_v56, 0.0 }
 0x3bb   : > { %v5182_v23 = vmax.f32 %v4832_v40, 0.0  ;;  %7927 = vst.msk [vmem:[%s13125_s25 + $0x1b8] sm:$0xff] %vm4016_vm2, %v7599_v57  ;;  %v9838_v34 = vpop.f32.mrb[202].mxu0  ;;  %v7601_v63 = vpop.permute.xlu0 %7600 }
 0x3bc   : > { %v4847_v20 = vadd.f32 %v13418_v18, %v9838_v34  ;;  %7928 = vst.msk [vmem:[%s13125_s25 + $0x1c0] sm:$0xff] %vm4016_vm2, %v7601_v63  ;;  %v4841_v35 = vpop.f32.mrb[203].mxu0  ;;  %7714 = vrot.lane.b32.xlu1 %v14507_v49, %s10932_s8 }
 0x3bd   : > { %v4842_v41 = vadd.f32 %v13418_v18, %v4841_v35  ;;  %10033 = vmatprep.mubr.msk.f32.mxu1 %vm414_vm0, %v5182_v23  ;;  %7716 = vrot.lane.b32.xlu0 %v14508_v46, %s10932_s8 }
 0x3be   : > { %10034 = vmatmul.mubr.msk.f32.gmra.mrb[200].mxu1 %vm414_vm0, %v5183_v8  ;;  %v7603_v4 = vpop.permute.xlu1 %7602  ;;  %v5185_v6 = vmax.f32 %v4847_v20, 0.0 }
 0x3bf   : > { %v5184_v61 = vmax.f32 %v4842_v41, 0.0  ;;  %7929 = vst.msk [vmem:[%s13125_s25 + $0x1c8] sm:$0xff] %vm4016_vm2, %v7603_v4  ;;  %v9841_v32 = vpop.f32.mrb[204].mxu0  ;;  %v7605_v3 = vpop.permute.xlu0 %7604 }
 0x3c0   : > { %v4857_v0 = vadd.f32 %v13418_v18, %v9841_v32  ;;  %7930 = vst.msk [vmem:[%s13125_s25 + $0x1d0] sm:$0xff] %vm4016_vm2, %v7605_v3  ;;  %v4851_v26 = vpop.f32.mrb[205].mxu0  ;;  %7718 = vrot.lane.b32.xlu1 %v14509_v45, %s10932_s8 }
 0x3c1   : > { %v4852_v54 = vadd.f32 %v13418_v18, %v4851_v26  ;;  %10036 = vmatprep.mubr.msk.f32.mxu1 %vm414_vm0, %v5184_v61  ;;  %7720 = vrot.lane.b32.xlu0 %v14510_v59, %s10932_s8 }
 0x3c2   : > { %10037 = vmatmul.mubr.msk.f32.gmra.mrb[202].mxu1 %vm414_vm0, %v5185_v6  ;;  %v7607_v53 = vpop.permute.xlu1 %7606  ;;  %v5187_v21 = vmax.f32 %v4857_v0, 0.0 }
 0x3c3   : > { %v5186_v44 = vmax.f32 %v4852_v54, 0.0  ;;  %7931 = vst.msk [vmem:[%s13125_s25 + $0x1d8] sm:$0xff] %vm4016_vm2, %v7607_v53  ;;  %v9844_v17 = vpop.f32.mrb[206].mxu0  ;;  %v7609_v16 = vpop.permute.xlu0 %7608 }
 0x3c4   : > { %v4867_v11 = vadd.f32 %v13418_v18, %v9844_v17  ;;  %7932 = vst.msk [vmem:[%s13125_s25 + $0x1e0] sm:$0xff] %vm4016_vm2, %v7609_v16  ;;  %v4861_v14 = vpop.f32.mrb[207].mxu0  ;;  %7722 = vrot.lane.b32.xlu1 %v14511_v25, %s10932_s8 }
 0x3c5   : > { %v4862_v39 = vadd.f32 %v13418_v18, %v4861_v14  ;;  %10039 = vmatprep.mubr.msk.f32.mxu1 %vm414_vm0, %v5186_v44  ;;  %7724 = vrot.lane.b32.xlu0 %v14512_v60, %s10932_s8 }
 0x3c6   : > { %10040 = vmatmul.mubr.msk.f32.gmra.mrb[204].mxu1 %vm414_vm0, %v5187_v21  ;;  %v7611_v29 = vpop.permute.xlu1 %7610  ;;  %v5189_v38 = vmax.f32 %v4867_v11, 0.0 }
 0x3c7   : > { %v5188_v15 = vmax.f32 %v4862_v39, 0.0  ;;  %7933 = vst.msk [vmem:[%s13125_s25 + $0x1e8] sm:$0xff] %vm4016_vm2, %v7611_v29  ;;  %v9847_v12 = vpop.f32.mrb[208].mxu0  ;;  %v7613_v2 = vpop.permute.xlu0 %7612 }
 0x3c8   : > { %v4877_v30 = vadd.f32 %v13418_v18, %v9847_v12  ;;  %7934 = vst.msk [vmem:[%s13125_s25 + $0x1f0] sm:$0xff] %vm4016_vm2, %v7613_v2  ;;  %v4871_v9 = vpop.f32.mrb[209].mxu0  ;;  %7726 = vrot.lane.b32.xlu1 %v14513_v10, %s10932_s8 }
 0x3c9   : > { %v4872_v42 = vadd.f32 %v13418_v18, %v4871_v9  ;;  %10042 = vmatprep.mubr.msk.f32.mxu1 %vm414_vm0, %v5188_v15  ;;  %7728 = vrot.lane.b32.xlu0 %v14514_v48, %s10932_s8 }
 0x3ca   : > { %10043 = vmatmul.mubr.msk.f32.gmra.mrb[206].mxu1 %vm414_vm0, %v5189_v38  ;;  %v7615_v1 = vpop.permute.xlu1 %7614  ;;  %v5191_v37 = vmax.f32 %v4877_v30, 0.0 }
 0x3cb   : > { %v5190_v36 = vmax.f32 %v4872_v42, 0.0  ;;  %7935 = vst.msk [vmem:[%s13125_s25 + $0x1f8] sm:$0xff] %vm4016_vm2, %v7615_v1  ;;  %v9850_v19 = vpop.f32.mrb[210].mxu0  ;;  %v7617_v50 = vpop.permute.xlu0 %7616 }
 0x3cc   : > { %v4887_v24 = vadd.f32 %v13418_v18, %v9850_v19  ;;  %7936 = vst.msk [vmem:[%s13125_s25 + $0x200] sm:$0xff] %vm4016_vm2, %v7617_v50  ;;  %v4881_v62 = vpop.f32.mrb[211].mxu0  ;;  %7730 = vrot.lane.b32.xlu1 %v14515_v27, %s10932_s8 }
 0x3cd   : > { %v4882_v22 = vadd.f32 %v13418_v18, %v4881_v62  ;;  %10045 = vmatprep.mubr.msk.f32.mxu1 %vm414_vm0, %v5190_v36  ;;  %7732 = vrot.lane.b32.xlu0 %v14516_v52, %s10932_s8 }
 0x3ce   : > { %10046 = vmatmul.mubr.msk.f32.gmra.mrb[208].mxu1 %vm414_vm0, %v5191_v37  ;;  %v7619_v13 = vpop.permute.xlu1 %7618  ;;  %v5193_v56 = vmax.f32 %v4887_v24, 0.0 }
 0x3cf   : > { %v5192_v5 = vmax.f32 %v4882_v22, 0.0  ;;  %7937 = vst.msk [vmem:[%s13125_s25 + $0x208] sm:$0xff] %vm4016_vm2, %v7619_v13  ;;  %v9853_v58 = vpop.f32.mrb[212].mxu0  ;;  %v7621_v43 = vpop.permute.xlu0 %7620 }
 0x3d0   : > { %v4897_v51 = vadd.f32 %v13418_v18, %v9853_v58  ;;  %7938 = vst.msk [vmem:[%s13125_s25 + $0x210] sm:$0xff] %vm4016_vm2, %v7621_v43  ;;  %v4891_v31 = vpop.f32.mrb[213].mxu0  ;;  %7734 = vrot.lane.b32.xlu1 %v14486_v7, %s10932_s8 }
 0x3d1   : > { %v4892_v40 = vadd.f32 %v13418_v18, %v4891_v31  ;;  %10048 = vmatprep.mubr.msk.f32.mxu1 %vm414_vm0, %v5192_v5  ;;  %7736 = vrot.lane.b32.xlu0 %v14517_v33, %s10932_s8 }
 0x3d2   : > { %10049 = vmatmul.mubr.msk.f32.gmra.mrb[210].mxu1 %vm414_vm0, %v5193_v56  ;;  %v7623_v57 = vpop.permute.xlu1 %7622  ;;  %v5195_v8 = vmax.f32 %v4897_v51, 0.0 }
 0x3d3   : > { %v5194_v23 = vmax.f32 %v4892_v40, 0.0  ;;  %7939 = vst.msk [vmem:[%s13125_s25 + $0x218] sm:$0xff] %vm4016_vm2, %v7623_v57  ;;  %v9856_v34 = vpop.f32.mrb[214].mxu0  ;;  %v7625_v63 = vpop.permute.xlu0 %7624 }
 0x3d4   : > { %v4907_v7 = vadd.f32 %v13418_v18, %v9856_v34  ;;  %7940 = vst.msk [vmem:[%s13125_s25 + $0x220] sm:$0xff] %vm4016_vm2, %v7625_v63  ;;  %v4901_v20 = vpop.f32.mrb[215].mxu0  ;;  %7738 = vrot.lane.b32.xlu1 %v14489_v47, %s10932_s8 }
 0x3d5   : > { %v4902_v35 = vadd.f32 %v13418_v18, %v4901_v20  ;;  %10051 = vmatprep.mubr.msk.f32.mxu1 %vm414_vm0, %v5194_v23  ;;  %7740 = vrot.lane.b32.xlu0 %v12747_v28, %s10932_s8 }
 0x3d6   : > { %10052 = vmatmul.mubr.msk.f32.gmra.mrb[212].mxu1 %vm414_vm0, %v5195_v8  ;;  %v7627_v49 = vpop.permute.xlu1 %7626  ;;  %v5197_v61 = vmax.f32 %v4907_v7, 0.0 }
 0x3d7   : > { %v5196_v41 = vmax.f32 %v4902_v35, 0.0  ;;  %7941 = vst.msk [vmem:[%s13125_s25 + $0x228] sm:$0xff] %vm4016_vm2, %v7627_v49  ;;  %v9859_v46 = vpop.f32.mrb[216].mxu0  ;;  %v7629_v4 = vpop.permute.xlu0 %7628 }
 0x3d8   : > { %v4917_v47 = vadd.f32 %v13418_v18, %v9859_v46  ;;  %7942 = vst.msk [vmem:[%s13125_s25 + $0x230] sm:$0xff] %vm4016_vm2, %v7629_v4  ;;  %v4911_v32 = vpop.f32.mrb[217].mxu0  ;;  %7742 = vrot.lane.b32.xlu1 %v14492_v55, %s10932_s8  ;;  %s13717_s8 = scalar_lea.vmem %s14170_s3, %s10983_s29 }
 0x3d9   : > { %v4912_v28 = vadd.f32 %v13418_v18, %v4911_v32  ;;  %10054 = vmatprep.mubr.msk.f32.mxu1 %vm414_vm0, %v5196_v41 }
 0x3da   : > { %10055 = vmatmul.mubr.msk.f32.gmra.mrb[214].mxu1 %vm414_vm0, %v5197_v61  ;;  %v7631_v3 = vpop.permute.xlu1 %7630  ;;  %v5199_v45 = vmax.f32 %v4917_v47, 0.0 }
 0x3db   : > { %v5198_v6 = vmax.f32 %v4912_v28, 0.0  ;;  %7943 = vst.msk [vmem:[%s13125_s25 + $0x238] sm:$0xff] %vm4016_vm2, %v7631_v3  ;;  %v9862_v0 = vpop.f32.mrb[218].mxu0  ;;  %v7633_v26 = vpop.permute.xlu0 %7632 }
 0x3dc   : > { %v4927_v54 = vadd.f32 %v13418_v18, %v9862_v0  ;;  %7944 = vst.msk [vmem:[%s13125_s25 + $0x240] sm:$0xff] %vm4016_vm2, %v7633_v26  ;;  %v4921_v55 = vpop.f32.mrb[219].mxu0 }
 0x3dd   : > { %v4922_v59 = vadd.f32 %v13418_v18, %v4921_v55  ;;  %10057 = vmatprep.mubr.msk.f32.mxu1 %vm414_vm0, %v5198_v6 }
 0x3de   : > { %10058 = vmatmul.mubr.msk.f32.gmra.mrb[216].mxu1 %vm414_vm0, %v5199_v45  ;;  %v7635_v53 = vpop.permute.xlu1 %7634  ;;  %v5201_v21 = vmax.f32 %v4927_v54, 0.0 }
 0x3df   : > { %v5200_v44 = vmax.f32 %v4922_v59, 0.0  ;;  %7945 = vst.msk [vmem:[%s13125_s25 + $0x248] sm:$0xff] %vm4016_vm2, %v7635_v53  ;;  %v9865_v17 = vpop.f32.mrb[220].mxu0  ;;  %v7637_v16 = vpop.permute.xlu0 %7636 }
 0x3e0   : > { %v4937_v11 = vadd.f32 %v13418_v18, %v9865_v17  ;;  %7946 = vst.msk [vmem:[%s13125_s25 + $0x250] sm:$0xff] %vm4016_vm2, %v7637_v16  ;;  %v4931_v14 = vpop.f32.mrb[221].mxu0 }
 0x3e1   : > { %v4932_v25 = vadd.f32 %v13418_v18, %v4931_v14  ;;  %10060 = vmatprep.mubr.msk.f32.mxu1 %vm414_vm0, %v5200_v44 }
 0x3e2   : > { %10061 = vmatmul.mubr.msk.f32.gmra.mrb[218].mxu1 %vm414_vm0, %v5201_v21  ;;  %v7639_v39 = vpop.permute.xlu1 %7638  ;;  %v5203_v12 = vmax.f32 %v4937_v11, 0.0  ;;  %v13644_v11 = vld [vmem:[%s14169_s2 + $0x65] ss:$0 sm:$0xff] }
 0x3e3   : > { %v5202_v60 = vmax.f32 %v4932_v25, 0.0  ;;  %7947 = vst.msk [vmem:[%s13125_s25 + $0x258] sm:$0xff] %vm4016_vm2, %v7639_v39  ;;  %v9868_v29 = vpop.f32.mrb[222].mxu0  ;;  %v7641_v15 = vpop.permute.xlu0 %7640 }
 0x3e4   : > { %v4947_v2 = vadd.f32 %v13418_v18, %v9868_v29  ;;  %7948 = vst.msk [vmem:[%s13125_s25 + $0x260] sm:$0xff] %vm4016_vm2, %v7641_v15  ;;  %v4941_v38 = vpop.f32.mrb[223].mxu0 }
 0x3e5   : > { %v4942_v30 = vadd.f32 %v13418_v18, %v4941_v38  ;;  %10063 = vmatprep.mubr.msk.f32.mxu1 %vm414_vm0, %v5202_v60 }
 0x3e6   : > { %10064 = vmatmul.mubr.msk.f32.gmra.mrb[220].mxu1 %vm414_vm0, %v5203_v12  ;;  %v7643_v9 = vpop.permute.xlu1 %7642  ;;  %v5205_v1 = vmax.f32 %v4947_v2, 0.0 }
 0x3e7   : > { %v5204_v10 = vmax.f32 %v4942_v30, 0.0  ;;  %7949 = vst.msk [vmem:[%s13125_s25 + $0x268] sm:$0xff] %vm4016_vm2, %v7643_v9  ;;  %v9871_v42 = vpop.f32.mrb[224].mxu0  ;;  %v7645_v48 = vpop.permute.xlu0 %7644 }
 0x3e8   : > { %v4957_v36 = vadd.f32 %v13418_v18, %v9871_v42  ;;  %7950 = vst.msk [vmem:[%s13125_s25 + $0x270] sm:$0xff] %vm4016_vm2, %v7645_v48  ;;  %v4951_v19 = vpop.f32.mrb[225].mxu0 }
 0x3e9   : > { %v4952_v50 = vadd.f32 %v13418_v18, %v4951_v19  ;;  %10066 = vmatprep.mubr.msk.f32.mxu1 %vm414_vm0, %v5204_v10 }
 0x3ea   : > { %10067 = vmatmul.mubr.msk.f32.gmra.mrb[222].mxu1 %vm414_vm0, %v5205_v1  ;;  %v7647_v37 = vpop.permute.xlu1 %7646  ;;  %v5207_v22 = vmax.f32 %v4957_v36, 0.0 }
 0x3eb   : > { %v5206_v24 = vmax.f32 %v4952_v50, 0.0  ;;  %7951 = vst.msk [vmem:[%s13125_s25 + $0x278] sm:$0xff] %vm4016_vm2, %v7647_v37  ;;  %v9874_v62 = vpop.f32.mrb[226].mxu0  ;;  %v7649_v27 = vpop.permute.xlu0 %7648 }
 0x3ec   : > { %v4967_v52 = vadd.f32 %v13418_v18, %v9874_v62  ;;  %7952 = vst.msk [vmem:[%s13125_s25 + $0x280] sm:$0xff] %vm4016_vm2, %v7649_v27  ;;  %v4961_v13 = vpop.f32.mrb[227].mxu0 }
 0x3ed   : > { %v4962_v5 = vadd.f32 %v13418_v18, %v4961_v13  ;;  %10069 = vmatprep.mubr.msk.f32.mxu1 %vm414_vm0, %v5206_v24 }
 0x3ee   : > { %10070 = vmatmul.mubr.msk.f32.gmra.mrb[224].mxu1 %vm414_vm0, %v5207_v22  ;;  %v7651_v58 = vpop.permute.xlu1 %7650  ;;  %v5209_v31 = vmax.f32 %v4967_v52, 0.0 }
 0x3ef   : > { %v5208_v43 = vmax.f32 %v4962_v5, 0.0  ;;  %7953 = vst.msk [vmem:[%s13125_s25 + $0x288] sm:$0xff] %vm4016_vm2, %v7651_v58  ;;  %v9877_v56 = vpop.f32.mrb[228].mxu0  ;;  %v7653_v51 = vpop.permute.xlu0 %7652 }
 0x3f0   : > { %v4977_v40 = vadd.f32 %v13418_v18, %v9877_v56  ;;  %7954 = vst.msk [vmem:[%s13125_s25 + $0x290] sm:$0xff] %vm4016_vm2, %v7653_v51  ;;  %v4971_v33 = vpop.f32.mrb[229].mxu0 }
 0x3f1   : > { %v4972_v57 = vadd.f32 %v13418_v18, %v4971_v33  ;;  %10072 = vmatprep.mubr.msk.f32.mxu1 %vm414_vm0, %v5208_v43 }
 0x3f2   : > { %10073 = vmatmul.mubr.msk.f32.gmra.mrb[226].mxu1 %vm414_vm0, %v5209_v31  ;;  %v7655_v23 = vpop.permute.xlu1 %7654  ;;  %v5211_v7 = vmax.f32 %v4977_v40, 0.0 }
 0x3f3   : > { %v5210_v34 = vmax.f32 %v4972_v57, 0.0  ;;  %7955 = vst.msk [vmem:[%s13125_s25 + $0x298] sm:$0xff] %vm4016_vm2, %v7655_v23  ;;  %v9880_v63 = vpop.f32.mrb[230].mxu0  ;;  %v7657_v8 = vpop.permute.xlu0 %7656 }
 0x3f4   : > { %v4987_v20 = vadd.f32 %v13418_v18, %v9880_v63  ;;  %7956 = vst.msk [vmem:[%s13125_s25 + $0x2a0] sm:$0xff] %vm4016_vm2, %v7657_v8  ;;  %v4981_v35 = vpop.f32.mrb[231].mxu0 }
 0x3f5   : > { %v4982_v49 = vadd.f32 %v13418_v18, %v4981_v35  ;;  %10075 = vmatprep.mubr.msk.f32.mxu1 %vm414_vm0, %v5210_v34 }
 0x3f6   : > { %10076 = vmatmul.mubr.msk.f32.gmra.mrb[228].mxu1 %vm414_vm0, %v5211_v7  ;;  %v7659_v41 = vpop.permute.xlu1 %7658  ;;  %v5213_v47 = vmax.f32 %v4987_v20, 0.0 }
 0x3f7   : > { %v5212_v46 = vmax.f32 %v4982_v49, 0.0  ;;  %7957 = vst.msk [vmem:[%s13125_s25 + $0x2a8] sm:$0xff] %vm4016_vm2, %v7659_v41  ;;  %v9883_v4 = vpop.f32.mrb[232].mxu0  ;;  %v7661_v61 = vpop.permute.xlu0 %7660 }
 0x3f8   : > { %v4997_v32 = vadd.f32 %v13418_v18, %v9883_v4  ;;  %7958 = vst.msk [vmem:[%s13125_s25 + $0x2b0] sm:$0xff] %vm4016_vm2, %v7661_v61  ;;  %v4991_v28 = vpop.f32.mrb[233].mxu0 }
 0x3f9   : > { %v4992_v3 = vadd.f32 %v13418_v18, %v4991_v28  ;;  %10078 = vmatprep.mubr.msk.f32.mxu1 %vm414_vm0, %v5212_v46 }
 0x3fa   : > { %10079 = vmatmul.mubr.msk.f32.gmra.mrb[230].mxu1 %vm414_vm0, %v5213_v47  ;;  %v7663_v6 = vpop.permute.xlu1 %7662  ;;  %v5215_v54 = vmax.f32 %v4997_v32, 0.0 }
 0x3fb   : > { %v5214_v0 = vmax.f32 %v4992_v3, 0.0  ;;  %7959 = vst.msk [vmem:[%s13125_s25 + $0x2b8] sm:$0xff] %vm4016_vm2, %v7663_v6  ;;  %v9886_v26 = vpop.f32.mrb[234].mxu0  ;;  %v7665_v45 = vpop.permute.xlu0 %7664 }
 0x3fc   : > { %v5007_v55 = vadd.f32 %v13418_v18, %v9886_v26  ;;  %7960 = vst.msk [vmem:[%s13125_s25 + $0x2c0] sm:$0xff] %vm4016_vm2, %v7665_v45  ;;  %v5001_v59 = vpop.f32.mrb[235].mxu0 }
 0x3fd   : > { %v5002_v53 = vadd.f32 %v13418_v18, %v5001_v59  ;;  %10081 = vmatprep.mubr.msk.f32.mxu1 %vm414_vm0, %v5214_v0 }
 0x3fe   : > { %10082 = vmatmul.mubr.msk.f32.gmra.mrb[232].mxu1 %vm414_vm0, %v5215_v54  ;;  %v7667_v44 = vpop.permute.xlu1 %7666  ;;  %v5217_v14 = vmax.f32 %v5007_v55, 0.0 }
 0x3ff   : > { %v5216_v17 = vmax.f32 %v5002_v53, 0.0  ;;  %7961 = vst.msk [vmem:[%s13125_s25 + $0x2c8] sm:$0xff] %vm4016_vm2, %v7667_v44  ;;  %v9889_v16 = vpop.f32.mrb[236].mxu0  ;;  %v7669_v21 = vpop.permute.xlu0 %7668 }
 0x400   : > { %v5017_v25 = vadd.f32 %v13418_v18, %v9889_v16  ;;  %7962 = vst.msk [vmem:[%s13125_s25 + $0x2d0] sm:$0xff] %vm4016_vm2, %v7669_v21  ;;  %v5011_v39 = vpop.f32.mrb[237].mxu0 }
 0x401   : > { %v5012_v60 = vadd.f32 %v13418_v18, %v5011_v39  ;;  %v9927_v29 = vpop.f32.mrb[128].mxu1  ;;  %10084 = vmatprep.mubr.msk.f32.mxu1 %vm414_vm0, %v5216_v17 }
 0x402   : > { %v5703_v15 = vadd.f32 %v9927_v29, %v13644_v11  ;;  %v5697_v12 = vpop.f32.mrb[129].mxu1  ;;  %10085 = vmatmul.mubr.msk.f32.gmra.mrb[234].mxu1 %vm414_vm0, %v5217_v14  ;;  %v7671_v2 = vpop.permute.xlu1 %7670  ;;  %v5219_v42 = vmax.f32 %v5017_v25, 0.0 }
 0x403   : > { %v5218_v38 = vmax.f32 %v5012_v60, 0.0  ;;  %v5698_v30 = vadd.f32 %v13644_v11, %v5697_v12  ;;  %7963 = vst.msk [vmem:[%s13125_s25 + $0x2d8] sm:$0xff] %vm4016_vm2, %v7671_v2  ;;  %v9892_v9 = vpop.f32.mrb[238].mxu0  ;;  %v7673_v10 = vpop.permute.xlu0 %7672 }
 0x404   : > { %v8669_v48 = vmul.f32 -1.442695, %v5703_v15  ;;  %v5027_v1 = vadd.f32 %v13418_v18, %v9892_v9  ;;  %7964 = vst.msk [vmem:[%s13125_s25 + $0x2e0] sm:$0xff] %vm4016_vm2, %v7673_v10  ;;  %v5021_v36 = vpop.f32.mrb[239].mxu0 }
 0x405   : > { %v8668_v19 = vmul.f32 -1.442695, %v5698_v30  ;;  %v5022_v50 = vadd.f32 %v13418_v18, %v5021_v36  ;;  %v9930_v37 = vpop.f32.mrb[130].mxu1  ;;  %10087 = vmatprep.mubr.msk.f32.mxu1 %vm414_vm0, %v5218_v38 }
 0x406   : > { %10406 = vpow2.f32 %v8669_v48  ;;  %v5713_v24 = vadd.f32 %v9930_v37, %v13644_v11  ;;  %v5707_v62 = vpop.f32.mrb[131].mxu1  ;;  %10088 = vmatmul.mubr.msk.f32.gmra.mrb[236].mxu1 %vm414_vm0, %v5219_v42  ;;  %v7675_v27 = vpop.permute.xlu1 %7674  ;;  %v5221_v58 = vmax.f32 %v5027_v1, 0.0 }
 0x407   : > { %10408 = vpow2.f32 %v8668_v19  ;;  %v5220_v22 = vmax.f32 %v5022_v50, 0.0  ;;  %v5708_v52 = vadd.f32 %v13644_v11, %v5707_v62  ;;  %7965 = vst.msk [vmem:[%s13125_s25 + $0x2e8] sm:$0xff] %vm4016_vm2, %v7675_v27  ;;  %v9895_v13 = vpop.f32.mrb[240].mxu0  ;;  %v7677_v5 = vpop.permute.xlu0 %7676 }
 0x408   : > { %v8671_v43 = vmul.f32 -1.442695, %v5713_v24  ;;  %v5037_v56 = vadd.f32 %v13418_v18, %v9895_v13  ;;  %7966 = vst.msk [vmem:[%s13125_s25 + $0x2f0] sm:$0xff] %vm4016_vm2, %v7677_v5  ;;  %v5031_v51 = vpop.f32.mrb[241].mxu0 }
 0x409   : > { %v8670_v31 = vmul.f32 -1.442695, %v5708_v52  ;;  %v5032_v40 = vadd.f32 %v13418_v18, %v5031_v51  ;;  %v9933_v33 = vpop.f32.mrb[132].mxu1  ;;  %10090 = vmatprep.mubr.msk.f32.mxu1 %vm414_vm0, %v5220_v22 }
 0x40a   : > { %10410 = vpow2.f32 %v8671_v43  ;;  %v5723_v57 = vadd.f32 %v9933_v33, %v13644_v11  ;;  %v5717_v23 = vpop.f32.mrb[133].mxu1  ;;  %10091 = vmatmul.mubr.msk.f32.gmra.mrb[238].mxu1 %vm414_vm0, %v5221_v58  ;;  %v7679_v34 = vpop.permute.xlu1 %7678  ;;  %v5223_v35 = vmax.f32 %v5037_v56, 0.0 }
 0x40b   : > { %10412 = vpow2.f32 %v8670_v31  ;;  %v5222_v63 = vmax.f32 %v5032_v40, 0.0  ;;  %v5718_v8 = vadd.f32 %v13644_v11, %v5717_v23  ;;  %7967 = vst.msk [vmem:[%s13125_s25 + $0x2f8] sm:$0xff] %vm4016_vm2, %v7679_v34  ;;  %v9898_v7 = vpop.f32.mrb[242].mxu0  ;;  %v7681_v20 = vpop.permute.xlu0 %7680 }
 0x40c   : > { %v8673_v49 = vmul.f32 -1.442695, %v5723_v57  ;;  %v5047_v41 = vadd.f32 %v13418_v18, %v9898_v7  ;;  %7968 = vst.msk [vmem:[%s13125_s25 + $0x300] sm:$0xff] %vm4016_vm2, %v7681_v20  ;;  %v5041_v46 = vpop.f32.mrb[243].mxu0 }
 0x40d   : > { %v8672_v4 = vmul.f32 -1.442695, %v5718_v8  ;;  %v5042_v61 = vadd.f32 %v13418_v18, %v5041_v46  ;;  %v9936_v47 = vpop.f32.mrb[134].mxu1  ;;  %10093 = vmatprep.mubr.msk.f32.mxu1 %vm414_vm0, %v5222_v63 }
 0x40e   : > { %10414 = vpow2.f32 %v8673_v49  ;;  %v5733_v32 = vadd.f32 %v9936_v47, %v13644_v11  ;;  %v5727_v28 = vpop.f32.mrb[135].mxu1  ;;  %10094 = vmatmul.mubr.msk.f32.gmra.mrb[240].mxu1 %vm414_vm0, %v5223_v35  ;;  %v7683_v3 = vpop.permute.xlu1 %7682  ;;  %v5225_v55 = vmax.f32 %v5047_v41, 0.0 }
 0x40f   : > { %10416 = vpow2.f32 %v8672_v4  ;;  %v5224_v6 = vmax.f32 %v5042_v61, 0.0  ;;  %v5728_v0 = vadd.f32 %v13644_v11, %v5727_v28  ;;  %7969 = vst.msk [vmem:[%s13125_s25 + $0x308] sm:$0xff] %vm4016_vm2, %v7683_v3  ;;  %v9901_v26 = vpop.f32.mrb[244].mxu0  ;;  %v7685_v45 = vpop.permute.xlu0 %7684 }
 0x410   : > { %v10407_v54 = vpop.eup %10406  ;;  %v8675_v59 = vmul.f32 -1.442695, %v5733_v32  ;;  %v5057_v53 = vadd.f32 %v13418_v18, %v9901_v26  ;;  %7970 = vst.msk [vmem:[%s13125_s25 + $0x310] sm:$0xff] %vm4016_vm2, %v7685_v45  ;;  %v5051_v44 = vpop.f32.mrb[245].mxu0 }
 0x411   : > { %v10409_v17 = vpop.eup %10408  ;;  %v6721_v16 = vadd.f32 1.0, %v10407_v54  ;;  %v8674_v21 = vmul.f32 -1.442695, %v5728_v0  ;;  %v5052_v14 = vadd.f32 %v13418_v18, %v5051_v44  ;;  %v9939_v25 = vpop.f32.mrb[136].mxu1  ;;  %10096 = vmatprep.mubr.msk.f32.mxu1 %vm414_vm0, %v5224_v6 }
 0x412   : > { %v6720_v39 = vadd.f32 1.0, %v10409_v17  ;;  %10418 = vpow2.f32 %v8675_v59  ;;  %v5743_v60 = vadd.f32 %v9939_v25, %v13644_v11  ;;  %v5737_v29 = vpop.f32.mrb[137].mxu1  ;;  %10097 = vmatmul.mubr.msk.f32.gmra.mrb[242].mxu1 %vm414_vm0, %v5225_v55  ;;  %v7687_v15 = vpop.permute.xlu1 %7686  ;;  %v5227_v10 = vmax.f32 %v5057_v53, 0.0 }
 0x413   : > { %10420 = vrcp.f32 %v6721_v16  ;;  %v5226_v12 = vmax.f32 %v5052_v14, 0.0  ;;  %v5738_v2 = vadd.f32 %v13644_v11, %v5737_v29  ;;  %7971 = vst.msk [vmem:[%s13125_s25 + $0x318] sm:$0xff] %vm4016_vm2, %v7687_v15  ;;  %v9904_v38 = vpop.f32.mrb[246].mxu0  ;;  %v7689_v30 = vpop.permute.xlu0 %7688 }
 0x414   : > { %v10411_v9 = vpop.eup %10410  ;;  %10422 = vrcp.f32 %v6720_v39  ;;  %v8677_v42 = vmul.f32 -1.442695, %v5743_v60  ;;  %v5067_v48 = vadd.f32 %v13418_v18, %v9904_v38  ;;  %7972 = vst.msk [vmem:[%s13125_s25 + $0x320] sm:$0xff] %vm4016_vm2, %v7689_v30  ;;  %v5061_v1 = vpop.f32.mrb[247].mxu0 }
 0x415   : > { %v10413_v36 = vpop.eup %10412  ;;  %v6723_v19 = vadd.f32 1.0, %v10411_v9  ;;  %10424 = vpow2.f32 %v8674_v21  ;;  %v8676_v50 = vmul.f32 -1.442695, %v5738_v2  ;;  %v5062_v37 = vadd.f32 %v13418_v18, %v5061_v1  ;;  %v9942_v24 = vpop.f32.mrb[138].mxu1  ;;  %10099 = vmatprep.mubr.msk.f32.mxu1 %vm414_vm0, %v5226_v12 }
 0x416   : > { %v6722_v62 = vadd.f32 1.0, %v10413_v36  ;;  %10426 = vpow2.f32 %v8677_v42  ;;  %v5753_v27 = vadd.f32 %v9942_v24, %v13644_v11  ;;  %v5747_v22 = vpop.f32.mrb[139].mxu1  ;;  %10100 = vmatmul.mubr.msk.f32.gmra.mrb[244].mxu1 %vm414_vm0, %v5227_v10  ;;  %v7691_v52 = vpop.permute.xlu1 %7690  ;;  %v5229_v51 = vmax.f32 %v5067_v48, 0.0 }
 0x417   : > { %10428 = vrcp.f32 %v6723_v19  ;;  %v5228_v13 = vmax.f32 %v5062_v37, 0.0  ;;  %v5748_v5 = vadd.f32 %v13644_v11, %v5747_v22  ;;  %7973 = vst.msk [vmem:[%s13125_s25 + $0x328] sm:$0xff] %vm4016_vm2, %v7691_v52  ;;  %v9907_v58 = vpop.f32.mrb[248].mxu0  ;;  %v7693_v43 = vpop.permute.xlu0 %7692 }
 0x418   : > { %v10415_v56 = vpop.eup %10414  ;;  %10430 = vrcp.f32 %v6722_v62  ;;  %v8679_v31 = vmul.f32 -1.442695, %v5753_v27  ;;  %v5077_v40 = vadd.f32 %v13418_v18, %v9907_v58  ;;  %7974 = vst.msk [vmem:[%s13125_s25 + $0x330] sm:$0xff] %vm4016_vm2, %v7693_v43  ;;  %v5071_v33 = vpop.f32.mrb[249].mxu0 }
 0x419   : > { %v10417_v57 = vpop.eup %10416  ;;  %v6725_v23 = vadd.f32 1.0, %v10415_v56  ;;  %10432 = vpow2.f32 %v8676_v50  ;;  %v8678_v34 = vmul.f32 -1.442695, %v5748_v5  ;;  %v5072_v63 = vadd.f32 %v13418_v18, %v5071_v33  ;;  %v9945_v8 = vpop.f32.mrb[140].mxu1  ;;  %10102 = vmatprep.mubr.msk.f32.mxu1 %vm414_vm0, %v5228_v13 }
 0x41a   : > { %v6724_v7 = vadd.f32 1.0, %v10417_v57  ;;  %10434 = vpow2.f32 %v8679_v31  ;;  %v5763_v20 = vadd.f32 %v9945_v8, %v13644_v11  ;;  %v5757_v35 = vpop.f32.mrb[141].mxu1  ;;  %10103 = vmatmul.mubr.msk.f32.gmra.mrb[246].mxu1 %vm414_vm0, %v5229_v51  ;;  %v7695_v49 = vpop.permute.xlu1 %7694  ;;  %v5231_v32 = vmax.f32 %v5077_v40, 0.0 }
 0x41b   : > { %10436 = vrcp.f32 %v6725_v23  ;;  %v5230_v41 = vmax.f32 %v5072_v63, 0.0  ;;  %v5758_v46 = vadd.f32 %v13644_v11, %v5757_v35  ;;  %7975 = vst.msk [vmem:[%s13125_s25 + $0x338] sm:$0xff] %vm4016_vm2, %v7695_v49  ;;  %v9910_v4 = vpop.f32.mrb[250].mxu0  ;;  %v7697_v61 = vpop.permute.xlu0 %7696 }
 0x41c   : > { %v10419_v47 = vpop.eup %10418  ;;  %10438 = vrcp.f32 %v6724_v7  ;;  %v8681_v28 = vmul.f32 -1.442695, %v5763_v20  ;;  %v5087_v3 = vadd.f32 %v13418_v18, %v9910_v4  ;;  %7976 = vst.msk [vmem:[%s13125_s25 + $0x340] sm:$0xff] %vm4016_vm2, %v7697_v61  ;;  %v5081_v6 = vpop.f32.mrb[251].mxu0 }
 0x41d   : > { %v10421_v0 = vpop.eup %10420  ;;  %v6727_v26 = vadd.f32 1.0, %v10419_v47  ;;  %10440 = vpow2.f32 %v8678_v34  ;;  %v8680_v45 = vmul.f32 -1.442695, %v5758_v46  ;;  %v5082_v54 = vadd.f32 %v13418_v18, %v5081_v6  ;;  %v9948_v55 = vpop.f32.mrb[142].mxu1  ;;  %10105 = vmatprep.mubr.msk.f32.mxu1 %vm414_vm0, %v5230_v41 }
 0x41e   : > { %v10423_v59 = vpop.eup %10422  ;;  %7105 = vst.msk [vmem:[%s13717_s8 + $0x8] sm:$0xff] %vm414_vm0, %v10421_v0  ;;  %10442 = vpow2.f32 %v8681_v28  ;;  %v5773_v53 = vadd.f32 %v9948_v55, %v13644_v11  ;;  %v5767_v44 = vpop.f32.mrb[143].mxu1  ;;  %10106 = vmatmul.mubr.msk.f32.gmra.mrb[248].mxu1 %vm414_vm0, %v5231_v32  ;;  %v5233_v21 = vmax.f32 %v5087_v3, 0.0 }
 0x41f   : > { %v7699_v17 = vpop.permute.xlu1 %7698  ;;  %v10425_v16 = vpop.eup %10424  ;;  %7104 = vst.msk [vmem:[%s13717_s8] sm:$0xff] %vm414_vm0, %v10423_v59  ;;  %10444 = vrcp.f32 %v6727_v26  ;;  %v5232_v14 = vmax.f32 %v5082_v54, 0.0  ;;  %v5768_v25 = vadd.f32 %v13644_v11, %v5767_v44 }
 0x420   : > { %7977 = vst.msk [vmem:[%s13125_s25 + $0x348] sm:$0xff] %vm4016_vm2, %v7699_v17  ;;  %v9913_v39 = vpop.f32.mrb[252].mxu0  ;;  %v7701_v60 = vpop.permute.xlu0 %7700  ;;  %v6726_v15 = vadd.f32 1.0, %v10425_v16  ;;  %10446 = vpow2.f32 %v8680_v45  ;;  %v8683_v12 = vmul.f32 -1.442695, %v5773_v53 }
 0x421   : > { %v10427_v29 = vpop.eup %10426  ;;  %v5097_v2 = vadd.f32 %v13418_v18, %v9913_v39  ;;  %7978 = vst.msk [vmem:[%s13125_s25 + $0x350] sm:$0xff] %vm4016_vm2, %v7701_v60  ;;  %v5091_v38 = vpop.f32.mrb[253].mxu0  ;;  %v8682_v10 = vmul.f32 -1.442695, %v5768_v25  ;;  %10108 = vmatprep.mubr.msk.f32.mxu1 %vm414_vm0, %v5232_v14 }
 0x422   : > { %v10429_v30 = vpop.eup %10428  ;;  %v6729_v9 = vadd.f32 1.0, %v10427_v29  ;;  %v5092_v42 = vadd.f32 %v13418_v18, %v5091_v38  ;;  %v9951_v48 = vpop.f32.mrb[144].mxu1  ;;  %10448 = vrcp.f32 %v6726_v15  ;;  %10109 = vmatmul.mubr.msk.f32.gmra.mrb[250].mxu1 %vm414_vm0, %v5233_v21 }
 0x423   : > { %v10431_v1 = vpop.eup %10430  ;;  %7107 = vst.msk [vmem:[%s13717_s8 + $0x18] sm:$0xff] %vm414_vm0, %v10429_v30  ;;  %v5783_v36 = vadd.f32 %v9951_v48, %v13644_v11  ;;  %v5777_v19 = vpop.f32.mrb[145].mxu1  ;;  %v5235_v24 = vmax.f32 %v5097_v2, 0.0 }
 0x424   : > { %v7703_v50 = vpop.permute.xlu1 %7702  ;;  %v10433_v37 = vpop.eup %10432  ;;  %7106 = vst.msk [vmem:[%s13717_s8 + $0x10] sm:$0xff] %vm414_vm0, %v10431_v1  ;;  %10450 = vrcp.f32 %v6729_v9  ;;  %v5234_v62 = vmax.f32 %v5092_v42, 0.0  ;;  %v5778_v27 = vadd.f32 %v13644_v11, %v5777_v19 }
 0x425   : > { %7979 = vst.msk [vmem:[%s13125_s25 + $0x358] sm:$0xff] %vm4016_vm2, %v7703_v50  ;;  %v9916_v22 = vpop.f32.mrb[254].mxu0  ;;  %v7705_v52 = vpop.permute.xlu0 %7704  ;;  %v6728_v5 = vadd.f32 1.0, %v10433_v37  ;;  %10452 = vpow2.f32 %v8683_v12  ;;  %v8685_v58 = vmul.f32 -1.442695, %v5783_v36 }
 0x426   : > { %v10435_v13 = vpop.eup %10434  ;;  %v5107_v43 = vadd.f32 %v13418_v18, %v9916_v22  ;;  %7980 = vst.msk [vmem:[%s13125_s25 + $0x360] sm:$0xff] %vm4016_vm2, %v7705_v52  ;;  %v5101_v56 = vpop.f32.mrb[255].mxu0  ;;  %10454 = vpow2.f32 %v8682_v10  ;;  %v8684_v40 = vmul.f32 -1.442695, %v5778_v27  ;;  %10111 = vmatprep.mubr.msk.f32.mxu1 %vm414_vm0, %v5234_v62 }
 0x427   : > { %v10437_v51 = vpop.eup %10436  ;;  %v6731_v31 = vadd.f32 1.0, %v10435_v13  ;;  %v5102_v33 = vadd.f32 %v13418_v18, %v5101_v56  ;;  %v9954_v57 = vpop.f32.mrb[146].mxu1  ;;  %10456 = vrcp.f32 %v6728_v5  ;;  %10112 = vmatmul.mubr.msk.f32.gmra.mrb[252].mxu1 %vm414_vm0, %v5235_v24 }
 0x428   : > { %v10439_v23 = vpop.eup %10438  ;;  %7109 = vst.msk [vmem:[%s13717_s8 + $0x28] sm:$0xff] %vm414_vm0, %v10437_v51  ;;  %v5793_v34 = vadd.f32 %v9954_v57, %v13644_v11  ;;  %v5787_v63 = vpop.f32.mrb[147].mxu1  ;;  %v5237_v46 = vmax.f32 %v5107_v43, 0.0 }
 0x429   : > { %v7707_v8 = vpop.permute.xlu1 %7706  ;;  %v10441_v7 = vpop.eup %10440  ;;  %7108 = vst.msk [vmem:[%s13717_s8 + $0x20] sm:$0xff] %vm414_vm0, %v10439_v23  ;;  %10458 = vrcp.f32 %v6731_v31  ;;  %v5236_v20 = vmax.f32 %v5102_v33, 0.0  ;;  %v5788_v18 = vadd.f32 %v13644_v11, %v5787_v63 }
 0x42a   : > { %7981 = vst.msk [vmem:[%s13125_s25 + $0x368] sm:$0xff] %vm4016_vm2, %v7707_v8  ;;  %v7709_v35 = vpop.permute.xlu0 %7708  ;;  %v10443_v49 = vpop.eup %10442  ;;  %v6730_v41 = vadd.f32 1.0, %v10441_v7  ;;  %10460 = vpow2.f32 %v8685_v58  ;;  %v8687_v4 = vmul.f32 -1.442695, %v5793_v34 }
 0x42b   : > { %7982 = vst.msk [vmem:[%s13125_s25 + $0x370] sm:$0xff] %vm4016_vm2, %v7709_v35  ;;  %v10445_v61 = vpop.eup %10444  ;;  %v6733_v47 = vadd.f32 1.0, %v10443_v49  ;;  %10462 = vpow2.f32 %v8684_v40  ;;  %v9957_v32 = vpop.f32.mrb[148].mxu1  ;;  %10114 = vmatprep.mubr.msk.f32.mxu1 %vm414_vm0, %v5236_v20  ;;  %v8686_v3 = vmul.f32 -1.442695, %v5788_v18 }
 0x42c   : > { %v10447_v28 = vpop.eup %10446  ;;  %7111 = vst.msk [vmem:[%s13717_s8 + $0x38] sm:$0xff] %vm414_vm0, %v10445_v61  ;;  %10464 = vrcp.f32 %v6730_v41  ;;  %v5803_v6 = vadd.f32 %v9957_v32, %v13644_v11  ;;  %v5797_v0 = vpop.f32.mrb[149].mxu1  ;;  %10115 = vmatmul.mubr.msk.f32.gmra.mrb[254].mxu1 %vm414_vm0, %v5237_v46 }
 0x42d   : > { %v7711_v26 = vpop.permute.xlu1 %7710  ;;  %10466 = vrcp.f32 %v6733_v47  ;;  %v6732_v45 = vadd.f32 1.0, %v10447_v28  ;;  %v5798_v54 = vadd.f32 %v13644_v11, %v5797_v0  ;;  %v10449_v59 = vpop.eup %10448 }
 0x42e   : > { %7983 = vst.msk [vmem:[%s13125_s25 + $0x378] sm:$0xff] %vm4016_vm2, %v7711_v26  ;;  %v7713_v55 = vpop.permute.xlu0 %7712  ;;  %10468 = vpow2.f32 %v8687_v4  ;;  %v8689_v53 = vmul.f32 -1.442695, %v5803_v6  ;;  %v10451_v44 = vpop.eup %10450 }
 0x42f   : > { %7984 = vst.msk [vmem:[%s13125_s25 + $0x380] sm:$0xff] %vm4016_vm2, %v7713_v55  ;;  %10470 = vrcp.f32 %v6732_v45  ;;  %v8688_v17 = vmul.f32 -1.442695, %v5798_v54  ;;  %v9960_v16 = vpop.f32.mrb[150].mxu1  ;;  %v10453_v21 = vpop.eup %10452 }
 0x430   : > { %7110 = vst.msk [vmem:[%s13717_s8 + $0x30] sm:$0xff] %vm414_vm0, %v10449_v59  ;;  %7113 = vst.msk [vmem:[%s13717_s8 + $0x48] sm:$0xff] %vm414_vm0, %v10451_v44  ;;  %10472 = vpow2.f32 %v8686_v3  ;;  %v5813_v14 = vadd.f32 %v9960_v16, %v13644_v11  ;;  %v5807_v25 = vpop.f32.mrb[151].mxu1  ;;  %v10455_v60 = vpop.eup %10454  ;;  %v6735_v29 = vadd.f32 1.0, %v10453_v21 }
 0x431   : > { %v7715_v39 = vpop.permute.xlu1 %7714  ;;  %10474 = vpow2.f32 %v8689_v53  ;;  %v5808_v15 = vadd.f32 %v13644_v11, %v5807_v25  ;;  %v10457_v2 = vpop.eup %10456  ;;  %v6734_v38 = vadd.f32 1.0, %v10455_v60 }
 0x432   : > { %7985 = vst.msk [vmem:[%s13125_s25 + $0x388] sm:$0xff] %vm4016_vm2, %v7715_v39  ;;  %v7717_v12 = vpop.permute.xlu0 %7716  ;;  %10476 = vpow2.f32 %v8688_v17  ;;  %v8691_v30 = vmul.f32 -1.442695, %v5813_v14  ;;  %v9963_v42 = vpop.f32.mrb[152].mxu1 }
 0x433   : > { %7986 = vst.msk [vmem:[%s13125_s25 + $0x390] sm:$0xff] %vm4016_vm2, %v7717_v12  ;;  %v10459_v9 = vpop.eup %10458  ;;  %10478 = vrcp.f32 %v6735_v29  ;;  %v8690_v10 = vmul.f32 -1.442695, %v5808_v15  ;;  %v5823_v1 = vadd.f32 %v9963_v42, %v13644_v11  ;;  %v5817_v36 = vpop.f32.mrb[153].mxu1 }
 0x434   : > { %7112 = vst.msk [vmem:[%s13717_s8 + $0x40] sm:$0xff] %vm414_vm0, %v10457_v2  ;;  %v10461_v48 = vpop.eup %10460  ;;  %7115 = vst.msk [vmem:[%s13717_s8 + $0x58] sm:$0xff] %vm414_vm0, %v10459_v9  ;;  %10480 = vrcp.f32 %v6734_v38  ;;  %v5818_v24 = vadd.f32 %v13644_v11, %v5817_v36 }
 0x435   : > { %v7719_v19 = vpop.permute.xlu1 %7718  ;;  %v10463_v50 = vpop.eup %10462  ;;  %v6737_v37 = vadd.f32 1.0, %v10461_v48  ;;  %10482 = vpow2.f32 %v8691_v30  ;;  %v8693_v52 = vmul.f32 -1.442695, %v5823_v1 }
 0x436   : > { %7987 = vst.msk [vmem:[%s13125_s25 + $0x398] sm:$0xff] %vm4016_vm2, %v7719_v19  ;;  %v7721_v62 = vpop.permute.xlu0 %7720  ;;  %v10465_v27 = vpop.eup %10464  ;;  %v6736_v22 = vadd.f32 1.0, %v10463_v50  ;;  %10484 = vpow2.f32 %v8690_v10  ;;  %v8692_v5 = vmul.f32 -1.442695, %v5818_v24 }
 0x437   : > { %7988 = vst.msk [vmem:[%s13125_s25 + $0x3a0] sm:$0xff] %vm4016_vm2, %v7721_v62  ;;  %v10467_v13 = vpop.eup %10466  ;;  %10486 = vrcp.f32 %v6737_v37  ;;  %v9966_v58 = vpop.f32.mrb[154].mxu1 }
 0x438   : > { %7114 = vst.msk [vmem:[%s13717_s8 + $0x50] sm:$0xff] %vm414_vm0, %v10465_v27  ;;  %v10469_v43 = vpop.eup %10468  ;;  %7117 = vst.msk [vmem:[%s13717_s8 + $0x68] sm:$0xff] %vm414_vm0, %v10467_v13  ;;  %10488 = vrcp.f32 %v6736_v22  ;;  %v5833_v56 = vadd.f32 %v9966_v58, %v13644_v11  ;;  %v5827_v51 = vpop.f32.mrb[155].mxu1 }
 0x439   : > { %v7723_v31 = vpop.permute.xlu1 %7722  ;;  %v10471_v40 = vpop.eup %10470  ;;  %v6739_v33 = vadd.f32 1.0, %v10469_v43  ;;  %10490 = vpow2.f32 %v8693_v52  ;;  %v5828_v57 = vadd.f32 %v13644_v11, %v5827_v51 }
 0x43a   : > { %7989 = vst.msk [vmem:[%s13125_s25 + $0x3a8] sm:$0xff] %vm4016_vm2, %v7723_v31  ;;  %v7725_v23 = vpop.permute.xlu0 %7724  ;;  %v10473_v34 = vpop.eup %10472  ;;  %10492 = vpow2.f32 %v8692_v5  ;;  %v8695_v63 = vmul.f32 -1.442695, %v5833_v56 }
 0x43b   : > { %7116 = vst.msk [vmem:[%s13717_s8 + $0x60] sm:$0xff] %vm414_vm0, %v10471_v40  ;;  %v10475_v8 = vpop.eup %10474  ;;  %10494 = vrcp.f32 %v6739_v33  ;;  %v6738_v7 = vadd.f32 1.0, %v10473_v34  ;;  %v9969_v20 = vpop.f32.mrb[156].mxu1  ;;  %v8694_v49 = vmul.f32 -1.442695, %v5828_v57 }
 0x43c   : > { %7990 = vst.msk [vmem:[%s13125_s25 + $0x3b0] sm:$0xff] %vm4016_vm2, %v7725_v23  ;;  %v10477_v18 = vpop.eup %10476  ;;  %v6741_v35 = vadd.f32 1.0, %v10475_v8  ;;  %10496 = vpow2.f32 %v8695_v63  ;;  %v5843_v41 = vadd.f32 %v9969_v20, %v13644_v11  ;;  %v5837_v46 = vpop.f32.mrb[157].mxu1 }
 0x43d   : > { %v7727_v4 = vpop.permute.xlu1 %7726  ;;  %v10479_v61 = vpop.eup %10478  ;;  %10498 = vrcp.f32 %v6738_v7  ;;  %v6740_v47 = vadd.f32 1.0, %v10477_v18  ;;  %v5838_v32 = vadd.f32 %v13644_v11, %v5837_v46 }
 0x43e   : > { %7991 = vst.msk [vmem:[%s13125_s25 + $0x3b8] sm:$0xff] %vm4016_vm2, %v7727_v4  ;;  %v7729_v28 = vpop.permute.xlu0 %7728  ;;  %v10481_v3 = vpop.eup %10480  ;;  %10500 = vrcp.f32 %v6741_v35  ;;  %v8697_v6 = vmul.f32 -1.442695, %v5843_v41 }
 0x43f   : > { %7119 = vst.msk [vmem:[%s13717_s8 + $0x78] sm:$0xff] %vm414_vm0, %v10479_v61  ;;  %v10483_v0 = vpop.eup %10482  ;;  %7118 = vst.msk [vmem:[%s13717_s8 + $0x70] sm:$0xff] %vm414_vm0, %v10481_v3  ;;  %10502 = vrcp.f32 %v6740_v47  ;;  %v9972_v26 = vpop.f32.mrb[158].mxu1  ;;  %v8696_v55 = vmul.f32 -1.442695, %v5838_v32 }
 0x440   : > { %7992 = vst.msk [vmem:[%s13125_s25 + $0x3c0] sm:$0xff] %vm4016_vm2, %v7729_v28  ;;  %v10485_v45 = vpop.eup %10484  ;;  %v6743_v54 = vadd.f32 1.0, %v10483_v0  ;;  %10504 = vpow2.f32 %v8694_v49  ;;  %v5853_v59 = vadd.f32 %v9972_v26, %v13644_v11  ;;  %v5847_v53 = vpop.f32.mrb[159].mxu1 }
 0x441   : > { %v7731_v44 = vpop.permute.xlu1 %7730  ;;  %v10487_v17 = vpop.eup %10486  ;;  %v6742_v16 = vadd.f32 1.0, %v10485_v45  ;;  %10506 = vpow2.f32 %v8697_v6  ;;  %v5848_v21 = vadd.f32 %v13644_v11, %v5847_v53 }
 0x442   : > { %7993 = vst.msk [vmem:[%s13125_s25 + $0x3c8] sm:$0xff] %vm4016_vm2, %v7731_v44  ;;  %v7733_v14 = vpop.permute.xlu0 %7732  ;;  %v10489_v25 = vpop.eup %10488  ;;  %10508 = vrcp.f32 %v6743_v54  ;;  %v8699_v39 = vmul.f32 -1.442695, %v5853_v59 }
 0x443   : > { %7121 = vst.msk [vmem:[%s13717_s8 + $0x88] sm:$0xff] %vm414_vm0, %v10487_v17  ;;  %v10491_v60 = vpop.eup %10490  ;;  %7120 = vst.msk [vmem:[%s13717_s8 + $0x80] sm:$0xff] %vm414_vm0, %v10489_v25  ;;  %10510 = vrcp.f32 %v6742_v16  ;;  %v9975_v29 = vpop.f32.mrb[160].mxu1  ;;  %v8698_v2 = vmul.f32 -1.442695, %v5848_v21 }
 0x444   : > { %7994 = vst.msk [vmem:[%s13125_s25 + $0x3d0] sm:$0xff] %vm4016_vm2, %v7733_v14  ;;  %v10493_v15 = vpop.eup %10492  ;;  %v6745_v12 = vadd.f32 1.0, %v10491_v60  ;;  %10512 = vpow2.f32 %v8696_v55  ;;  %v5863_v38 = vadd.f32 %v9975_v29, %v13644_v11  ;;  %v5857_v30 = vpop.f32.mrb[161].mxu1 }
 0x445   : > { %v7735_v9 = vpop.permute.xlu1 %7734  ;;  %v10495_v10 = vpop.eup %10494  ;;  %v6744_v42 = vadd.f32 1.0, %v10493_v15  ;;  %10514 = vpow2.f32 %v8699_v39  ;;  %v5858_v48 = vadd.f32 %v13644_v11, %v5857_v30 }
 0x446   : > { %7995 = vst.msk [vmem:[%s13125_s25 + $0x3d8] sm:$0xff] %vm4016_vm2, %v7735_v9  ;;  %v7737_v1 = vpop.permute.xlu0 %7736  ;;  %v10497_v36 = vpop.eup %10496  ;;  %10516 = vrcp.f32 %v6745_v12  ;;  %v8701_v19 = vmul.f32 -1.442695, %v5863_v38 }
 0x447   : > { %7123 = vst.msk [vmem:[%s13717_s8 + $0x98] sm:$0xff] %vm414_vm0, %v10495_v10  ;;  %v10499_v50 = vpop.eup %10498  ;;  %10518 = vrcp.f32 %v6744_v42  ;;  %v6747_v37 = vadd.f32 1.0, %v10497_v36  ;;  %v8700_v24 = vmul.f32 -1.442695, %v5858_v48  ;;  %v9978_v62 = vpop.f32.mrb[162].mxu1 }
 0x448   : > { %7996 = vst.msk [vmem:[%s13125_s25 + $0x3e0] sm:$0xff] %vm4016_vm2, %v7737_v1  ;;  %v10501_v27 = vpop.eup %10500  ;;  %10520 = vpow2.f32 %v8698_v2  ;;  %v5873_v22 = vadd.f32 %v9978_v62, %v13644_v11  ;;  %v5867_v52 = vpop.f32.mrb[163].mxu1 }
 0x449   : > { %7122 = vst.msk [vmem:[%s13717_s8 + $0x90] sm:$0xff] %vm414_vm0, %v10499_v50  ;;  %v7739_v13 = vpop.permute.xlu1 %7738  ;;  %v10503_v5 = vpop.eup %10502  ;;  %7125 = vst.msk [vmem:[%s13717_s8 + $0xa8] sm:$0xff] %vm414_vm0, %v10501_v27  ;;  %10522 = vrcp.f32 %v6747_v37  ;;  %v5868_v58 = vadd.f32 %v13644_v11, %v5867_v52 }
 0x44a   : > { %7997 = vst.msk [vmem:[%s13125_s25 + $0x3e8] sm:$0xff] %vm4016_vm2, %v7739_v13  ;;  %v7741_v43 = vpop.permute.xlu0 %7740  ;;  %v10505_v56 = vpop.eup %10504  ;;  %10524 = vpow2.f32 %v8701_v19  ;;  %v8703_v51 = vmul.f32 -1.442695, %v5873_v22 }
 0x44b   : > { %7124 = vst.msk [vmem:[%s13717_s8 + $0xa0] sm:$0xff] %vm414_vm0, %v10503_v5  ;;  %v10507_v31 = vpop.eup %10506  ;;  %v6746_v40 = vadd.f32 1.0, %v10505_v56  ;;  %10526 = vpow2.f32 %v8700_v24  ;;  %v8702_v33 = vmul.f32 -1.442695, %v5868_v58  ;;  %v9981_v57 = vpop.f32.mrb[164].mxu1 }
 0x44c   : > { %7998 = vst.msk [vmem:[%s13125_s25 + $0x3f0] sm:$0xff] %vm4016_vm2, %v7741_v43  ;;  %v10509_v23 = vpop.eup %10508  ;;  %v6749_v34 = vadd.f32 1.0, %v10507_v31  ;;  %10528 = vpow2.f32 %v8703_v51  ;;  %v5883_v63 = vadd.f32 %v9981_v57, %v13644_v11  ;;  %v5877_v8 = vpop.f32.mrb[165].mxu1 }
 0x44d   : > { %v7743_v7 = vpop.permute.xlu1 %7742  ;;  %v10511_v20 = vpop.eup %10510  ;;  %7127 = vst.msk [vmem:[%s13717_s8 + $0xb8] sm:$0xff] %vm414_vm0, %v10509_v23  ;;  %10530 = vrcp.f32 %v6746_v40  ;;  %v5878_v18 = vadd.f32 %v13644_v11, %v5877_v8  ;;  %v13883_v23 = vld [vmem:[%s14169_s2 + $0x65] ss:$0 sm:$0xff] }
 0x44e   : > { %7999 = vst.msk [vmem:[%s13125_s25 + $0x3f8] sm:$0xff] %vm4016_vm2, %v7743_v7  ;;  %v10513_v35 = vpop.eup %10512  ;;  %10532 = vrcp.f32 %v6749_v34  ;;  %v8705_v49 = vmul.f32 -1.442695, %v5883_v63  ;;  %v9984_v61 = vpop.f32.mrb[166].mxu1 }
 0x44f   : > { %7126 = vst.msk [vmem:[%s13717_s8 + $0xb0] sm:$0xff] %vm414_vm0, %v10511_v20  ;;  %v10515_v41 = vpop.eup %10514  ;;  %v6748_v46 = vadd.f32 1.0, %v10513_v35  ;;  %10534 = vpow2.f32 %v8702_v33  ;;  %v8704_v4 = vmul.f32 -1.442695, %v5878_v18  ;;  %v5893_v28 = vadd.f32 %v9984_v61, %v13644_v11  ;;  %v5887_v3 = vpop.f32.mrb[167].mxu1 }
 0x450   : > { %v10517_v47 = vpop.eup %10516  ;;  %v6751_v32 = vadd.f32 1.0, %v10515_v41  ;;  %10536 = vpow2.f32 %v8705_v49  ;;  %v5888_v0 = vadd.f32 %v13644_v11, %v5887_v3 }
 0x451   : > { %v10519_v6 = vpop.eup %10518  ;;  %7129 = vst.msk [vmem:[%s13717_s8 + $0xc8] sm:$0xff] %vm414_vm0, %v10517_v47  ;;  %10538 = vrcp.f32 %v6748_v46  ;;  %v8707_v45 = vmul.f32 -1.442695, %v5893_v28  ;;  %v9987_v53 = vpop.f32.mrb[168].mxu1 }
 0x452   : > { %v10521_v26 = vpop.eup %10520  ;;  %7128 = vst.msk [vmem:[%s13717_s8 + $0xc0] sm:$0xff] %vm414_vm0, %v10519_v6  ;;  %10540 = vrcp.f32 %v6751_v32  ;;  %v8706_v59 = vmul.f32 -1.442695, %v5888_v0  ;;  %v5903_v17 = vadd.f32 %v9987_v53, %v13644_v11  ;;  %v5897_v16 = vpop.f32.mrb[169].mxu1 }
 0x453   : > { %v10523_v54 = vpop.eup %10522  ;;  %v6750_v55 = vadd.f32 1.0, %v10521_v26  ;;  %10542 = vpow2.f32 %v8704_v4  ;;  %v5898_v25 = vadd.f32 %v13644_v11, %v5897_v16 }
 0x454   : > { %v10525_v44 = vpop.eup %10524  ;;  %7131 = vst.msk [vmem:[%s13717_s8 + $0xd8] sm:$0xff] %vm414_vm0, %v10523_v54  ;;  %10544 = vpow2.f32 %v8707_v45  ;;  %v8709_v29 = vmul.f32 -1.442695, %v5903_v17 }
 0x455   : > { %v10527_v21 = vpop.eup %10526  ;;  %10546 = vrcp.f32 %v6750_v55  ;;  %v6753_v14 = vadd.f32 1.0, %v10525_v44  ;;  %v8708_v2 = vmul.f32 -1.442695, %v5898_v25  ;;  %v9990_v38 = vpop.f32.mrb[170].mxu1 }
 0x456   : > { %v10529_v39 = vpop.eup %10528  ;;  %v6752_v60 = vadd.f32 1.0, %v10527_v21  ;;  %10548 = vpow2.f32 %v8706_v59  ;;  %v5913_v9 = vadd.f32 %v9990_v38, %v13644_v11  ;;  %v5907_v10 = vpop.f32.mrb[171].mxu1 }
 0x457   : > { %v10531_v15 = vpop.eup %10530  ;;  %10550 = vrcp.f32 %v6753_v14  ;;  %v6755_v12 = vadd.f32 1.0, %v10529_v39  ;;  %v5908_v48 = vadd.f32 %v13644_v11, %v5907_v10 }
 0x458   : > { %v10533_v30 = vpop.eup %10532  ;;  %7130 = vst.msk [vmem:[%s13717_s8 + $0xd0] sm:$0xff] %vm414_vm0, %v10531_v15  ;;  %10552 = vrcp.f32 %v6752_v60  ;;  %v8711_v19 = vmul.f32 -1.442695, %v5913_v9 }
 0x459   : > { %v10535_v42 = vpop.eup %10534  ;;  %7133 = vst.msk [vmem:[%s13717_s8 + $0xe8] sm:$0xff] %vm414_vm0, %v10533_v30  ;;  %10554 = vrcp.f32 %v6755_v12  ;;  %v8710_v24 = vmul.f32 -1.442695, %v5908_v48  ;;  %v9993_v62 = vpop.f32.mrb[172].mxu1 }
 0x45a   : > { %v10537_v1 = vpop.eup %10536  ;;  %v6754_v36 = vadd.f32 1.0, %v10535_v42  ;;  %10556 = vpow2.f32 %v8709_v29  ;;  %v5923_v22 = vadd.f32 %v9993_v62, %v13644_v11  ;;  %v5917_v52 = vpop.f32.mrb[173].mxu1 }
 0x45b   : > { %v10539_v50 = vpop.eup %10538  ;;  %v6757_v37 = vadd.f32 1.0, %v10537_v1  ;;  %10558 = vpow2.f32 %v8708_v2  ;;  %v5918_v5 = vadd.f32 %v13644_v11, %v5917_v52 }
 0x45c   : > { %v10541_v27 = vpop.eup %10540  ;;  %7132 = vst.msk [vmem:[%s13717_s8 + $0xe0] sm:$0xff] %vm414_vm0, %v10539_v50  ;;  %10560 = vrcp.f32 %v6754_v36  ;;  %v8713_v56 = vmul.f32 -1.442695, %v5923_v22 }
 0x45d   : > { %v10543_v13 = vpop.eup %10542  ;;  %7135 = vst.msk [vmem:[%s13717_s8 + $0xf8] sm:$0xff] %vm414_vm0, %v10541_v27  ;;  %10562 = vrcp.f32 %v6757_v37  ;;  %v9996_v40 = vpop.f32.mrb[174].mxu1  ;;  %v8712_v57 = vmul.f32 -1.442695, %v5918_v5 }
 0x45e   : > { %v10545_v58 = vpop.eup %10544  ;;  %v6756_v43 = vadd.f32 1.0, %v10543_v13  ;;  %10564 = vpow2.f32 %v8711_v19  ;;  %v5933_v11 = vadd.f32 %v13883_v23, %v9996_v40  ;;  %v5927_v34 = vpop.f32.mrb[175].mxu1 }
 0x45f   : > { %v10547_v51 = vpop.eup %10546  ;;  %v6759_v31 = vadd.f32 1.0, %v10545_v58  ;;  %10566 = vpow2.f32 %v8710_v24  ;;  %v5928_v7 = vadd.f32 %v13883_v23, %v5927_v34 }
 0x460   : > { %v10549_v33 = vpop.eup %10548  ;;  %7134 = vst.msk [vmem:[%s13717_s8 + $0xf0] sm:$0xff] %vm414_vm0, %v10547_v51  ;;  %10568 = vrcp.f32 %v6756_v43  ;;  %v8715_v18 = vmul.f32 -1.442695, %v5933_v11 }
 0x461   : > { %v10551_v63 = vpop.eup %10550  ;;  %10570 = vrcp.f32 %v6759_v31  ;;  %v6758_v8 = vadd.f32 1.0, %v10549_v33  ;;  %v8714_v49 = vmul.f32 -1.442695, %v5928_v7  ;;  %v9999_v41 = vpop.f32.mrb[176].mxu1 }
 0x462   : > { %v10553_v20 = vpop.eup %10552  ;;  %7137 = vst.msk [vmem:[%s13717_s8 + $0x108] sm:$0xff] %vm414_vm0, %v10551_v63  ;;  %10572 = vpow2.f32 %v8713_v56  ;;  %v5943_v4 = vadd.f32 %v13883_v23, %v9999_v41  ;;  %v5937_v61 = vpop.f32.mrb[177].mxu1 }
 0x463   : > { %v10555_v35 = vpop.eup %10554  ;;  %7136 = vst.msk [vmem:[%s13717_s8 + $0x100] sm:$0xff] %vm414_vm0, %v10553_v20  ;;  %10574 = vrcp.f32 %v6758_v8  ;;  %v5938_v28 = vadd.f32 %v13883_v23, %v5937_v61 }
 0x464   : > { %v10557_v46 = vpop.eup %10556  ;;  %7139 = vst.msk [vmem:[%s13717_s8 + $0x118] sm:$0xff] %vm414_vm0, %v10555_v35  ;;  %10576 = vpow2.f32 %v8712_v57  ;;  %v8717_v0 = vmul.f32 -1.442695, %v5943_v4 }
 0x465   : > { %v10559_v47 = vpop.eup %10558  ;;  %v6761_v32 = vadd.f32 1.0, %v10557_v46  ;;  %10578 = vpow2.f32 %v8715_v18  ;;  %v8716_v45 = vmul.f32 -1.442695, %v5938_v28  ;;  %v10002_v54 = vpop.f32.mrb[178].mxu1 }
 0x466   : > { %v10561_v3 = vpop.eup %10560  ;;  %v6760_v6 = vadd.f32 1.0, %v10559_v47  ;;  %10580 = vpow2.f32 %v8714_v49  ;;  %v5953_v59 = vadd.f32 %v13883_v23, %v10002_v54  ;;  %v5947_v53 = vpop.f32.mrb[179].mxu1 }
 0x467   : > { %v10563_v26 = vpop.eup %10562  ;;  %7138 = vst.msk [vmem:[%s13717_s8 + $0x110] sm:$0xff] %vm414_vm0, %v10561_v3  ;;  %10582 = vrcp.f32 %v6761_v32  ;;  %v5948_v16 = vadd.f32 %v13883_v23, %v5947_v53 }
 0x468   : > { %v10565_v55 = vpop.eup %10564  ;;  %7141 = vst.msk [vmem:[%s13717_s8 + $0x128] sm:$0xff] %vm414_vm0, %v10563_v26  ;;  %10584 = vrcp.f32 %v6760_v6  ;;  %v8719_v25 = vmul.f32 -1.442695, %v5953_v59 }
 0x469   : > { %v10567_v44 = vpop.eup %10566  ;;  %v6763_v17 = vadd.f32 1.0, %v10565_v55  ;;  %10586 = vpow2.f32 %v8717_v0  ;;  %v8718_v60 = vmul.f32 -1.442695, %v5948_v16  ;;  %v10005_v29 = vpop.f32.mrb[180].mxu1 }
 0x46a   : > { %v10569_v21 = vpop.eup %10568  ;;  %v6762_v14 = vadd.f32 1.0, %v10567_v44  ;;  %10588 = vpow2.f32 %v8716_v45  ;;  %v5963_v12 = vadd.f32 %v13883_v23, %v10005_v29  ;;  %v5957_v2 = vpop.f32.mrb[181].mxu1 }
 0x46b   : > { %v10571_v39 = vpop.eup %10570  ;;  %7140 = vst.msk [vmem:[%s13717_s8 + $0x120] sm:$0xff] %vm414_vm0, %v10569_v21  ;;  %10590 = vrcp.f32 %v6763_v17  ;;  %v5958_v9 = vadd.f32 %v13883_v23, %v5957_v2 }
 0x46c   : > { %v10573_v15 = vpop.eup %10572  ;;  %7143 = vst.msk [vmem:[%s13717_s8 + $0x138] sm:$0xff] %vm414_vm0, %v10571_v39  ;;  %10592 = vrcp.f32 %v6762_v14  ;;  %v8721_v42 = vmul.f32 -1.442695, %v5963_v12 }
 0x46d   : > { %v10575_v38 = vpop.eup %10574  ;;  %v6765_v30 = vadd.f32 1.0, %v10573_v15  ;;  %10594 = vpow2.f32 %v8719_v25  ;;  %v10008_v36 = vpop.f32.mrb[182].mxu1  ;;  %v8720_v37 = vmul.f32 -1.442695, %v5958_v9 }
 0x46e   : > { %v10577_v10 = vpop.eup %10576  ;;  %7142 = vst.msk [vmem:[%s13717_s8 + $0x130] sm:$0xff] %vm414_vm0, %v10575_v38  ;;  %10596 = vpow2.f32 %v8718_v60  ;;  %v5973_v24 = vadd.f32 %v13883_v23, %v10008_v36  ;;  %v5967_v62 = vpop.f32.mrb[183].mxu1 }
 0x46f   : > { %v10579_v48 = vpop.eup %10578  ;;  %10598 = vrcp.f32 %v6765_v30  ;;  %v6764_v1 = vadd.f32 1.0, %v10577_v10  ;;  %v5968_v52 = vadd.f32 %v13883_v23, %v5967_v62 }
 0x470   : > { %v10581_v19 = vpop.eup %10580  ;;  %v6767_v50 = vadd.f32 1.0, %v10579_v48  ;;  %10600 = vpow2.f32 %v8721_v42  ;;  %v8723_v5 = vmul.f32 -1.442695, %v5973_v24 }
 0x471   : > { %v10583_v27 = vpop.eup %10582  ;;  %10602 = vrcp.f32 %v6764_v1  ;;  %v6766_v22 = vadd.f32 1.0, %v10581_v19  ;;  %v10011_v43 = vpop.f32.mrb[184].mxu1  ;;  %v8722_v31 = vmul.f32 -1.442695, %v5968_v52 }
 0x472   : > { %v10585_v13 = vpop.eup %10584  ;;  %7145 = vst.msk [vmem:[%s13717_s8 + $0x148] sm:$0xff] %vm414_vm0, %v10583_v27  ;;  %10604 = vrcp.f32 %v6767_v50  ;;  %v5983_v40 = vadd.f32 %v13883_v23, %v10011_v43  ;;  %v5977_v33 = vpop.f32.mrb[185].mxu1 }
 0x473   : > { %v10587_v58 = vpop.eup %10586  ;;  %7144 = vst.msk [vmem:[%s13717_s8 + $0x140] sm:$0xff] %vm414_vm0, %v10585_v13  ;;  %10606 = vrcp.f32 %v6766_v22  ;;  %v5978_v34 = vadd.f32 %v13883_v23, %v5977_v33 }
 0x474   : > { %v10589_v56 = vpop.eup %10588  ;;  %v6769_v51 = vadd.f32 1.0, %v10587_v58  ;;  %10608 = vpow2.f32 %v8720_v37  ;;  %v8725_v8 = vmul.f32 -1.442695, %v5983_v40 }
 0x475   : > { %v10591_v57 = vpop.eup %10590  ;;  %v6768_v11 = vadd.f32 1.0, %v10589_v56  ;;  %10610 = vpow2.f32 %v8723_v5  ;;  %v10014_v20 = vpop.f32.mrb[186].mxu1  ;;  %v8724_v49 = vmul.f32 -1.442695, %v5978_v34 }
 0x476   : > { %v10593_v63 = vpop.eup %10592  ;;  %7147 = vst.msk [vmem:[%s13717_s8 + $0x158] sm:$0xff] %vm414_vm0, %v10591_v57  ;;  %10612 = vrcp.f32 %v6769_v51  ;;  %v5993_v41 = vadd.f32 %v13883_v23, %v10014_v20  ;;  %v5987_v46 = vpop.f32.mrb[187].mxu1 }
 0x477   : > { %v10595_v7 = vpop.eup %10594  ;;  %7146 = vst.msk [vmem:[%s13717_s8 + $0x150] sm:$0xff] %vm414_vm0, %v10593_v63  ;;  %10614 = vrcp.f32 %v6768_v11  ;;  %v5988_v47 = vadd.f32 %v13883_v23, %v5987_v46 }
 0x478   : > { %v10597_v18 = vpop.eup %10596  ;;  %v6771_v35 = vadd.f32 1.0, %v10595_v7  ;;  %10616 = vpow2.f32 %v8722_v31  ;;  %v8727_v28 = vmul.f32 -1.442695, %v5993_v41 }
 0x479   : > { %v10599_v4 = vpop.eup %10598  ;;  %v6770_v61 = vadd.f32 1.0, %v10597_v18  ;;  %10618 = vpow2.f32 %v8725_v8  ;;  %v8726_v0 = vmul.f32 -1.442695, %v5988_v47  ;;  %v10017_v26 = vpop.f32.mrb[188].mxu1 }
 0x47a   : > { %v10601_v32 = vpop.eup %10600  ;;  %7149 = vst.msk [vmem:[%s13717_s8 + $0x168] sm:$0xff] %vm414_vm0, %v10599_v4  ;;  %10620 = vrcp.f32 %v6771_v35  ;;  %v6003_v54 = vadd.f32 %v13883_v23, %v10017_v26  ;;  %v5997_v55 = vpop.f32.mrb[189].mxu1 }
 0x47b   : > { %v10603_v3 = vpop.eup %10602  ;;  %10622 = vrcp.f32 %v6770_v61  ;;  %v6773_v6 = vadd.f32 1.0, %v10601_v32  ;;  %v5998_v53 = vadd.f32 %v13883_v23, %v5997_v55 }
 0x47c   : > { %v10605_v45 = vpop.eup %10604  ;;  %7148 = vst.msk [vmem:[%s13717_s8 + $0x160] sm:$0xff] %vm414_vm0, %v10603_v3  ;;  %10624 = vpow2.f32 %v8724_v49  ;;  %v8729_v17 = vmul.f32 -1.442695, %v6003_v54 }
 0x47d   : > { %v10607_v59 = vpop.eup %10606  ;;  %7151 = vst.msk [vmem:[%s13717_s8 + $0x178] sm:$0xff] %vm414_vm0, %v10605_v45  ;;  %10626 = vrcp.f32 %v6773_v6  ;;  %v8728_v14 = vmul.f32 -1.442695, %v5998_v53  ;;  %v10020_v25 = vpop.f32.mrb[190].mxu1 }
 0x47e   : > { %v10609_v44 = vpop.eup %10608  ;;  %7150 = vst.msk [vmem:[%s13717_s8 + $0x170] sm:$0xff] %vm414_vm0, %v10607_v59  ;;  %10628 = vpow2.f32 %v8727_v28  ;;  %v6013_v29 = vadd.f32 %v13883_v23, %v10020_v25  ;;  %v6007_v15 = vpop.f32.mrb[191].mxu1 }
 0x47f   : > { %v10611_v16 = vpop.eup %10610  ;;  %v6772_v21 = vadd.f32 1.0, %v10609_v44  ;;  %10630 = vpow2.f32 %v8726_v0  ;;  %v6008_v2 = vadd.f32 %v13883_v23, %v6007_v15 }
 0x480   : > { %v10613_v39 = vpop.eup %10612  ;;  %v6775_v60 = vadd.f32 1.0, %v10611_v16  ;;  %10632 = vpow2.f32 %v8729_v17  ;;  %v8731_v30 = vmul.f32 -1.442695, %v6013_v29 }
 0x481   : > { %v10615_v12 = vpop.eup %10614  ;;  %7153 = vst.msk [vmem:[%s13717_s8 + $0x188] sm:$0xff] %vm414_vm0, %v10613_v39  ;;  %10634 = vrcp.f32 %v6772_v21  ;;  %v8730_v42 = vmul.f32 -1.442695, %v6008_v2  ;;  %v10023_v48 = vpop.f32.mrb[192].mxu1 }
 0x482   : > { %v10617_v38 = vpop.eup %10616  ;;  %7152 = vst.msk [vmem:[%s13717_s8 + $0x180] sm:$0xff] %vm414_vm0, %v10615_v12  ;;  %10636 = vrcp.f32 %v6775_v60  ;;  %v6023_v19 = vadd.f32 %v13883_v23, %v10023_v48  ;;  %v6017_v50 = vpop.f32.mrb[193].mxu1 }
 0x483   : > { %v10619_v9 = vpop.eup %10618  ;;  %v6774_v10 = vadd.f32 1.0, %v10617_v38  ;;  %10638 = vpow2.f32 %v8728_v14  ;;  %v6018_v24 = vadd.f32 %v13883_v23, %v6017_v50 }
 0x484   : > { %v10621_v1 = vpop.eup %10620  ;;  %v6777_v36 = vadd.f32 1.0, %v10619_v9  ;;  %10640 = vpow2.f32 %v8731_v30  ;;  %v8733_v27 = vmul.f32 -1.442695, %v6023_v19 }
 0x485   : > { %v10623_v37 = vpop.eup %10622  ;;  %7155 = vst.msk [vmem:[%s13717_s8 + $0x198] sm:$0xff] %vm414_vm0, %v10621_v1  ;;  %10642 = vrcp.f32 %v6774_v10  ;;  %v8732_v13 = vmul.f32 -1.442695, %v6018_v24  ;;  %v10026_v5 = vpop.f32.mrb[194].mxu1 }
 0x486   : > { %v10625_v62 = vpop.eup %10624  ;;  %7154 = vst.msk [vmem:[%s13717_s8 + $0x190] sm:$0xff] %vm414_vm0, %v10623_v37  ;;  %10644 = vrcp.f32 %v6777_v36  ;;  %v6033_v43 = vadd.f32 %v13883_v23, %v10026_v5  ;;  %v6027_v56 = vpop.f32.mrb[195].mxu1 }
 0x487   : > { %v10627_v22 = vpop.eup %10626  ;;  %v6776_v52 = vadd.f32 1.0, %v10625_v62  ;;  %10646 = vpow2.f32 %v8730_v42  ;;  %v6028_v40 = vadd.f32 %v13883_v23, %v6027_v56 }
 0x488   : > { %v10629_v58 = vpop.eup %10628  ;;  %7157 = vst.msk [vmem:[%s13717_s8 + $0x1a8] sm:$0xff] %vm414_vm0, %v10627_v22  ;;  %10648 = vpow2.f32 %v8733_v27  ;;  %v8735_v11 = vmul.f32 -1.442695, %v6033_v43 }
 0x489   : > { %v10631_v51 = vpop.eup %10630  ;;  %10650 = vrcp.f32 %v6776_v52  ;;  %v6779_v31 = vadd.f32 1.0, %v10629_v58  ;;  %v8734_v8 = vmul.f32 -1.442695, %v6028_v40  ;;  %v10029_v7 = vpop.f32.mrb[196].mxu1 }
 0x48a   : > { %v10633_v33 = vpop.eup %10632  ;;  %v6778_v57 = vadd.f32 1.0, %v10631_v51  ;;  %10652 = vpow2.f32 %v8732_v13  ;;  %v6043_v18 = vadd.f32 %v13883_v23, %v10029_v7  ;;  %v6037_v35 = vpop.f32.mrb[197].mxu1 }
 0x48b   : > { %v10635_v34 = vpop.eup %10634  ;;  %10654 = vrcp.f32 %v6779_v31  ;;  %v6781_v63 = vadd.f32 1.0, %v10633_v33  ;;  %v6038_v41 = vadd.f32 %v13883_v23, %v6037_v35 }
 0x48c   : > { %v10637_v20 = vpop.eup %10636  ;;  %7156 = vst.msk [vmem:[%s13717_s8 + $0x1a0] sm:$0xff] %vm414_vm0, %v10635_v34  ;;  %10656 = vrcp.f32 %v6778_v57  ;;  %v8737_v61 = vmul.f32 -1.442695, %v6043_v18 }
 0x48d   : > { %v10639_v49 = vpop.eup %10638  ;;  %7159 = vst.msk [vmem:[%s13717_s8 + $0x1b8] sm:$0xff] %vm414_vm0, %v10637_v20  ;;  %10658 = vrcp.f32 %v6781_v63  ;;  %v8736_v28 = vmul.f32 -1.442695, %v6038_v41  ;;  %v10032_v3 = vpop.f32.mrb[198].mxu1 }
 0x48e   : > { %v10641_v46 = vpop.eup %10640  ;;  %v6780_v4 = vadd.f32 1.0, %v10639_v49  ;;  %10660 = vpow2.f32 %v8735_v11  ;;  %v6053_v0 = vadd.f32 %v13883_v23, %v10032_v3  ;;  %v6047_v26 = vpop.f32.mrb[199].mxu1 }
 0x48f   : > { %v10643_v47 = vpop.eup %10642  ;;  %v6783_v32 = vadd.f32 1.0, %v10641_v46  ;;  %10662 = vpow2.f32 %v8734_v8  ;;  %v6048_v54 = vadd.f32 %v13883_v23, %v6047_v26 }
 0x490   : > { %v10645_v6 = vpop.eup %10644  ;;  %7158 = vst.msk [vmem:[%s13717_s8 + $0x1b0] sm:$0xff] %vm414_vm0, %v10643_v47  ;;  %10664 = vrcp.f32 %v6780_v4  ;;  %v8739_v53 = vmul.f32 -1.442695, %v6053_v0 }
 0x491   : > { %v10647_v45 = vpop.eup %10646  ;;  %7161 = vst.msk [vmem:[%s13717_s8 + $0x1c8] sm:$0xff] %vm414_vm0, %v10645_v6  ;;  %10666 = vrcp.f32 %v6783_v32  ;;  %v10035_v16 = vpop.f32.mrb[200].mxu1  ;;  %v8738_v14 = vmul.f32 -1.442695, %v6048_v54 }
 0x492   : > { %v10649_v55 = vpop.eup %10648  ;;  %v6782_v59 = vadd.f32 1.0, %v10647_v45  ;;  %10668 = vpow2.f32 %v8737_v61  ;;  %v6063_v25 = vadd.f32 %v13883_v23, %v10035_v16  ;;  %v6057_v39 = vpop.f32.mrb[201].mxu1 }
 0x493   : > { %v10651_v44 = vpop.eup %10650  ;;  %v6785_v17 = vadd.f32 1.0, %v10649_v55  ;;  %10670 = vpow2.f32 %v8736_v28  ;;  %v6058_v15 = vadd.f32 %v13883_v23, %v6057_v39 }
 0x494   : > { %v10653_v21 = vpop.eup %10652  ;;  %7160 = vst.msk [vmem:[%s13717_s8 + $0x1c0] sm:$0xff] %vm414_vm0, %v10651_v44  ;;  %10672 = vrcp.f32 %v6782_v59  ;;  %v8741_v2 = vmul.f32 -1.442695, %v6063_v25 }
 0x495   : > { %v10655_v60 = vpop.eup %10654  ;;  %10674 = vrcp.f32 %v6785_v17  ;;  %v6784_v29 = vadd.f32 1.0, %v10653_v21  ;;  %v8740_v30 = vmul.f32 -1.442695, %v6058_v15  ;;  %v10038_v9 = vpop.f32.mrb[202].mxu1 }
 0x496   : > { %v10657_v12 = vpop.eup %10656  ;;  %7163 = vst.msk [vmem:[%s13717_s8 + $0x1d8] sm:$0xff] %vm414_vm0, %v10655_v60  ;;  %10676 = vpow2.f32 %v8739_v53  ;;  %v6073_v42 = vadd.f32 %v13883_v23, %v10038_v9  ;;  %v6067_v48 = vpop.f32.mrb[203].mxu1 }
 0x497   : > { %v10659_v38 = vpop.eup %10658  ;;  %7162 = vst.msk [vmem:[%s13717_s8 + $0x1d0] sm:$0xff] %vm414_vm0, %v10657_v12  ;;  %10678 = vrcp.f32 %v6784_v29  ;;  %v6068_v19 = vadd.f32 %v13883_v23, %v6067_v48 }
 0x498   : > { %v10661_v10 = vpop.eup %10660  ;;  %7165 = vst.msk [vmem:[%s13717_s8 + $0x1e8] sm:$0xff] %vm414_vm0, %v10659_v38  ;;  %10680 = vpow2.f32 %v8738_v14  ;;  %v8743_v24 = vmul.f32 -1.442695, %v6073_v42 }
 0x499   : > { %v10663_v1 = vpop.eup %10662  ;;  %v6787_v36 = vadd.f32 1.0, %v10661_v10  ;;  %10682 = vpow2.f32 %v8741_v2  ;;  %v8742_v27 = vmul.f32 -1.442695, %v6068_v19  ;;  %v10041_v22 = vpop.f32.mrb[204].mxu1 }
 0x49a   : > { %v10665_v50 = vpop.eup %10664  ;;  %v6786_v37 = vadd.f32 1.0, %v10663_v1  ;;  %10684 = vpow2.f32 %v8740_v30  ;;  %v6083_v13 = vadd.f32 %v13883_v23, %v10041_v22  ;;  %v6077_v5 = vpop.f32.mrb[205].mxu1 }
 0x49b   : > { %v10667_v62 = vpop.eup %10666  ;;  %7164 = vst.msk [vmem:[%s13717_s8 + $0x1e0] sm:$0xff] %vm414_vm0, %v10665_v50  ;;  %10686 = vrcp.f32 %v6787_v36  ;;  %v6078_v56 = vadd.f32 %v13883_v23, %v6077_v5 }
 0x49c   : > { %v10669_v52 = vpop.eup %10668  ;;  %7167 = vst.msk [vmem:[%s13717_s8 + $0x1f8] sm:$0xff] %vm414_vm0, %v10667_v62  ;;  %10688 = vrcp.f32 %v6786_v37  ;;  %v8745_v40 = vmul.f32 -1.442695, %v6083_v13 }
 0x49d   : > { %v10671_v58 = vpop.eup %10670  ;;  %v6789_v43 = vadd.f32 1.0, %v10669_v52  ;;  %10690 = vpow2.f32 %v8743_v24  ;;  %v8744_v57 = vmul.f32 -1.442695, %v6078_v56  ;;  %v10044_v11 = vpop.f32.mrb[206].mxu1 }
 0x49e   : > { %v10673_v51 = vpop.eup %10672  ;;  %v6788_v31 = vadd.f32 1.0, %v10671_v58  ;;  %10692 = vpow2.f32 %v8742_v27  ;;  %v6093_v63 = vadd.f32 %v13883_v23, %v10044_v11  ;;  %v6087_v8 = vpop.f32.mrb[207].mxu1 }
 0x49f   : > { %v10675_v33 = vpop.eup %10674  ;;  %7166 = vst.msk [vmem:[%s13717_s8 + $0x1f0] sm:$0xff] %vm414_vm0, %v10673_v51  ;;  %10694 = vrcp.f32 %v6789_v43  ;;  %v6088_v18 = vadd.f32 %v13883_v23, %v6087_v8 }
 0x4a0   : > { %v10677_v34 = vpop.eup %10676  ;;  %7169 = vst.msk [vmem:[%s13717_s8 + $0x208] sm:$0xff] %vm414_vm0, %v10675_v33  ;;  %10696 = vrcp.f32 %v6788_v31  ;;  %v8747_v49 = vmul.f32 -1.442695, %v6093_v63 }
 0x4a1   : > { %v10679_v7 = vpop.eup %10678  ;;  %v6791_v20 = vadd.f32 1.0, %v10677_v34  ;;  %10698 = vpow2.f32 %v8745_v40  ;;  %v10047_v4 = vpop.f32.mrb[208].mxu1  ;;  %v8746_v32 = vmul.f32 -1.442695, %v6088_v18 }
 0x4a2   : > { %v10681_v35 = vpop.eup %10680  ;;  %7168 = vst.msk [vmem:[%s13717_s8 + $0x200] sm:$0xff] %vm414_vm0, %v10679_v7  ;;  %10700 = vpow2.f32 %v8744_v57  ;;  %v6103_v28 = vadd.f32 %v13883_v23, %v10047_v4  ;;  %v6097_v3 = vpop.f32.mrb[209].mxu1 }
 0x4a3   : > { %v10683_v41 = vpop.eup %10682  ;;  %10702 = vrcp.f32 %v6791_v20  ;;  %v6790_v46 = vadd.f32 1.0, %v10681_v35  ;;  %v6098_v26 = vadd.f32 %v13883_v23, %v6097_v3 }
 0x4a4   : > { %v10685_v61 = vpop.eup %10684  ;;  %v6793_v47 = vadd.f32 1.0, %v10683_v41  ;;  %10704 = vpow2.f32 %v8747_v49  ;;  %v8749_v54 = vmul.f32 -1.442695, %v6103_v28 }
 0x4a5   : > { %v10687_v6 = vpop.eup %10686  ;;  %10706 = vrcp.f32 %v6790_v46  ;;  %v6792_v0 = vadd.f32 1.0, %v10685_v61  ;;  %v10050_v59 = vpop.f32.mrb[210].mxu1  ;;  %v8748_v17 = vmul.f32 -1.442695, %v6098_v26 }
 0x4a6   : > { %v10689_v45 = vpop.eup %10688  ;;  %7171 = vst.msk [vmem:[%s13717_s8 + $0x218] sm:$0xff] %vm414_vm0, %v10687_v6  ;;  %10708 = vrcp.f32 %v6793_v47  ;;  %v6113_v16 = vadd.f32 %v13883_v23, %v10050_v59  ;;  %v6107_v21 = vpop.f32.mrb[211].mxu1 }
 0x4a7   : > { %v10691_v55 = vpop.eup %10690  ;;  %7170 = vst.msk [vmem:[%s13717_s8 + $0x210] sm:$0xff] %vm414_vm0, %v10689_v45  ;;  %10710 = vrcp.f32 %v6792_v0  ;;  %v6108_v39 = vadd.f32 %v13883_v23, %v6107_v21 }
 0x4a8   : > { %v10693_v53 = vpop.eup %10692  ;;  %v6795_v44 = vadd.f32 1.0, %v10691_v55  ;;  %10712 = vpow2.f32 %v8746_v32  ;;  %v8751_v29 = vmul.f32 -1.442695, %v6113_v16 }
 0x4a9   : > { %v10695_v14 = vpop.eup %10694  ;;  %v6794_v25 = vadd.f32 1.0, %v10693_v53  ;;  %10714 = vpow2.f32 %v8749_v54  ;;  %v10053_v12 = vpop.f32.mrb[212].mxu1  ;;  %v8750_v30 = vmul.f32 -1.442695, %v6108_v39 }
 0x4aa   : > { %v10697_v60 = vpop.eup %10696  ;;  %7173 = vst.msk [vmem:[%s13717_s8 + $0x228] sm:$0xff] %vm414_vm0, %v10695_v14  ;;  %10716 = vrcp.f32 %v6795_v44  ;;  %v6123_v9 = vadd.f32 %v13883_v23, %v10053_v12  ;;  %v6117_v10 = vpop.f32.mrb[213].mxu1 }
 0x4ab   : > { %v10699_v15 = vpop.eup %10698  ;;  %7172 = vst.msk [vmem:[%s13717_s8 + $0x220] sm:$0xff] %vm414_vm0, %v10697_v60  ;;  %10718 = vrcp.f32 %v6794_v25  ;;  %v6118_v1 = vadd.f32 %v13883_v23, %v6117_v10 }
 0x4ac   : > { %v10701_v2 = vpop.eup %10700  ;;  %v6797_v38 = vadd.f32 1.0, %v10699_v15  ;;  %10720 = vpow2.f32 %v8748_v17  ;;  %v8753_v19 = vmul.f32 -1.442695, %v6123_v9 }
 0x4ad   : > { %v10703_v42 = vpop.eup %10702  ;;  %v6796_v48 = vadd.f32 1.0, %v10701_v2  ;;  %10722 = vpow2.f32 %v8751_v29  ;;  %v8752_v24 = vmul.f32 -1.442695, %v6118_v1  ;;  %v10056_v62 = vpop.f32.mrb[214].mxu1 }
 0x4ae   : > { %v10705_v36 = vpop.eup %10704  ;;  %7175 = vst.msk [vmem:[%s13717_s8 + $0x238] sm:$0xff] %vm414_vm0, %v10703_v42  ;;  %10724 = vrcp.f32 %v6797_v38  ;;  %v6133_v22 = vadd.f32 %v13883_v23, %v10056_v62  ;;  %v6127_v52 = vpop.f32.mrb[215].mxu1 }
 0x4af   : > { %v10707_v50 = vpop.eup %10706  ;;  %10726 = vrcp.f32 %v6796_v48  ;;  %v6799_v37 = vadd.f32 1.0, %v10705_v36  ;;  %v6128_v5 = vadd.f32 %v13883_v23, %v6127_v52 }
 0x4b0   : > { %v10709_v27 = vpop.eup %10708  ;;  %7174 = vst.msk [vmem:[%s13717_s8 + $0x230] sm:$0xff] %vm414_vm0, %v10707_v50  ;;  %10728 = vpow2.f32 %v8750_v30  ;;  %v8755_v43 = vmul.f32 -1.442695, %v6133_v22 }
 0x4b1   : > { %v10711_v13 = vpop.eup %10710  ;;  %7177 = vst.msk [vmem:[%s13717_s8 + $0x248] sm:$0xff] %vm414_vm0, %v10709_v27  ;;  %10730 = vrcp.f32 %v6799_v37  ;;  %v8754_v31 = vmul.f32 -1.442695, %v6128_v5  ;;  %v10059_v40 = vpop.f32.mrb[216].mxu1 }
 0x4b2   : > { %v10713_v58 = vpop.eup %10712  ;;  %7176 = vst.msk [vmem:[%s13717_s8 + $0x240] sm:$0xff] %vm414_vm0, %v10711_v13  ;;  %10732 = vpow2.f32 %v8753_v19  ;;  %v6143_v11 = vadd.f32 %v13883_v23, %v10059_v40  ;;  %v6137_v34 = vpop.f32.mrb[217].mxu1 }
 0x4b3   : > { %v10715_v56 = vpop.eup %10714  ;;  %v6798_v51 = vadd.f32 1.0, %v10713_v58  ;;  %10734 = vpow2.f32 %v8752_v24  ;;  %v6138_v8 = vadd.f32 %v13883_v23, %v6137_v34 }
 0x4b4   : > { %v10717_v33 = vpop.eup %10716  ;;  %v6801_v57 = vadd.f32 1.0, %v10715_v56  ;;  %10736 = vpow2.f32 %v8755_v43  ;;  %v8757_v20 = vmul.f32 -1.442695, %v6143_v11 }
 0x4b5   : > { %v10719_v63 = vpop.eup %10718  ;;  %7179 = vst.msk [vmem:[%s13717_s8 + $0x258] sm:$0xff] %vm414_vm0, %v10717_v33  ;;  %10738 = vrcp.f32 %v6798_v51  ;;  %v8756_v49 = vmul.f32 -1.442695, %v6138_v8  ;;  %v10062_v41 = vpop.f32.mrb[218].mxu1 }
 0x4b6   : > { %v10721_v7 = vpop.eup %10720  ;;  %7178 = vst.msk [vmem:[%s13717_s8 + $0x250] sm:$0xff] %vm414_vm0, %v10719_v63  ;;  %10740 = vrcp.f32 %v6801_v57  ;;  %v6153_v61 = vadd.f32 %v13883_v23, %v10062_v41  ;;  %v6147_v47 = vpop.f32.mrb[219].mxu1 }
 0x4b7   : > { %v10723_v18 = vpop.eup %10722  ;;  %v6800_v35 = vadd.f32 1.0, %v10721_v7  ;;  %10742 = vpow2.f32 %v8754_v31  ;;  %v6148_v28 = vadd.f32 %v13883_v23, %v6147_v47 }
 0x4b8   : > { %v10725_v46 = vpop.eup %10724  ;;  %v6803_v4 = vadd.f32 1.0, %v10723_v18  ;;  %10744 = vpow2.f32 %v8757_v20  ;;  %v8759_v6 = vmul.f32 -1.442695, %v6153_v61 }
 0x4b9   : > { %v10727_v32 = vpop.eup %10726  ;;  %7181 = vst.msk [vmem:[%s13717_s8 + $0x268] sm:$0xff] %vm414_vm0, %v10725_v46  ;;  %10746 = vrcp.f32 %v6800_v35  ;;  %v8758_v45 = vmul.f32 -1.442695, %v6148_v28  ;;  %v10065_v54 = vpop.f32.mrb[220].mxu1 }
 0x4ba   : > { %v10729_v3 = vpop.eup %10728  ;;  %7180 = vst.msk [vmem:[%s13717_s8 + $0x260] sm:$0xff] %vm414_vm0, %v10727_v32  ;;  %10748 = vrcp.f32 %v6803_v4  ;;  %v6163_v59 = vadd.f32 %v13883_v23, %v10065_v54  ;;  %v6157_v53 = vpop.f32.mrb[221].mxu1 }
 0x4bb   : > { %v10731_v0 = vpop.eup %10730  ;;  %v6802_v26 = vadd.f32 1.0, %v10729_v3  ;;  %10750 = vpow2.f32 %v8756_v49  ;;  %v6158_v16 = vadd.f32 %v13883_v23, %v6157_v53 }
 0x4bc   : > { %v10733_v55 = vpop.eup %10732  ;;  %7183 = vst.msk [vmem:[%s13717_s8 + $0x278] sm:$0xff] %vm414_vm0, %v10731_v0  ;;  %10752 = vpow2.f32 %v8759_v6  ;;  %v8761_v25 = vmul.f32 -1.442695, %v6163_v59 }
 0x4bd   : > { %v10735_v44 = vpop.eup %10734  ;;  %10754 = vrcp.f32 %v6802_v26  ;;  %v6805_v17 = vadd.f32 1.0, %v10733_v55  ;;  %v8760_v29 = vmul.f32 -1.442695, %v6158_v16  ;;  %v10068_v15 = vpop.f32.mrb[222].mxu1 }
 0x4be   : > { %v10737_v21 = vpop.eup %10736  ;;  %v6804_v14 = vadd.f32 1.0, %v10735_v44  ;;  %10756 = vpow2.f32 %v8758_v45  ;;  %v6173_v2 = vadd.f32 %v13883_v23, %v10068_v15  ;;  %v6167_v38 = vpop.f32.mrb[223].mxu1 }
 0x4bf   : > { %v10739_v39 = vpop.eup %10738  ;;  %10758 = vrcp.f32 %v6805_v17  ;;  %v6807_v60 = vadd.f32 1.0, %v10737_v21  ;;  %v6168_v9 = vadd.f32 %v13883_v23, %v6167_v38 }
 0x4c0   : > { %v10741_v12 = vpop.eup %10740  ;;  %7182 = vst.msk [vmem:[%s13717_s8 + $0x270] sm:$0xff] %vm414_vm0, %v10739_v39  ;;  %10760 = vrcp.f32 %v6804_v14  ;;  %v8763_v48 = vmul.f32 -1.442695, %v6173_v2 }
 0x4c1   : > { %v10743_v30 = vpop.eup %10742  ;;  %7185 = vst.msk [vmem:[%s13717_s8 + $0x288] sm:$0xff] %vm414_vm0, %v10741_v12  ;;  %10762 = vrcp.f32 %v6807_v60  ;;  %v8762_v19 = vmul.f32 -1.442695, %v6168_v9  ;;  %v10071_v50 = vpop.f32.mrb[224].mxu1  ;;  %v14064_v60 = vld [vmem:[%s14169_s2 + $0x65] ss:$0 sm:$0xff] }
 0x4c2   : > { %v10745_v10 = vpop.eup %10744  ;;  %v6806_v42 = vadd.f32 1.0, %v10743_v30  ;;  %10764 = vpow2.f32 %v8761_v25  ;;  %v6183_v24 = vadd.f32 %v13883_v23, %v10071_v50  ;;  %v6177_v62 = vpop.f32.mrb[225].mxu1 }
 0x4c3   : > { %v10747_v1 = vpop.eup %10746  ;;  %v6809_v36 = vadd.f32 1.0, %v10745_v10  ;;  %10766 = vpow2.f32 %v8760_v29  ;;  %v6178_v22 = vadd.f32 %v13883_v23, %v6177_v62 }
 0x4c4   : > { %v10749_v37 = vpop.eup %10748  ;;  %7184 = vst.msk [vmem:[%s13717_s8 + $0x280] sm:$0xff] %vm414_vm0, %v10747_v1  ;;  %10768 = vrcp.f32 %v6806_v42  ;;  %v8765_v5 = vmul.f32 -1.442695, %v6183_v24 }
 0x4c5   : > { %v10751_v27 = vpop.eup %10750  ;;  %7187 = vst.msk [vmem:[%s13717_s8 + $0x298] sm:$0xff] %vm414_vm0, %v10749_v37  ;;  %10770 = vrcp.f32 %v6809_v36  ;;  %v10074_v56 = vpop.f32.mrb[226].mxu1  ;;  %v8764_v31 = vmul.f32 -1.442695, %v6178_v22 }
 0x4c6   : > { %v10753_v52 = vpop.eup %10752  ;;  %v6808_v13 = vadd.f32 1.0, %v10751_v27  ;;  %10772 = vpow2.f32 %v8763_v48  ;;  %v6193_v40 = vadd.f32 %v13883_v23, %v10074_v56  ;;  %v6187_v33 = vpop.f32.mrb[227].mxu1 }
 0x4c7   : > { %v10755_v58 = vpop.eup %10754  ;;  %v6811_v43 = vadd.f32 1.0, %v10753_v52  ;;  %10774 = vpow2.f32 %v8762_v19  ;;  %v6188_v34 = vadd.f32 %v13883_v23, %v6187_v33 }
 0x4c8   : > { %v10757_v51 = vpop.eup %10756  ;;  %7186 = vst.msk [vmem:[%s13717_s8 + $0x290] sm:$0xff] %vm414_vm0, %v10755_v58  ;;  %10776 = vrcp.f32 %v6808_v13  ;;  %v8767_v8 = vmul.f32 -1.442695, %v6193_v40 }
 0x4c9   : > { %v10759_v57 = vpop.eup %10758  ;;  %10778 = vrcp.f32 %v6811_v43  ;;  %v6810_v11 = vadd.f32 1.0, %v10757_v51  ;;  %v8766_v20 = vmul.f32 -1.442695, %v6188_v34  ;;  %v10077_v18 = vpop.f32.mrb[228].mxu1 }
 0x4ca   : > { %v10761_v63 = vpop.eup %10760  ;;  %7189 = vst.msk [vmem:[%s13717_s8 + $0x2a8] sm:$0xff] %vm414_vm0, %v10759_v57  ;;  %10780 = vpow2.f32 %v8765_v5  ;;  %v6203_v49 = vadd.f32 %v13883_v23, %v10077_v18  ;;  %v6197_v41 = vpop.f32.mrb[229].mxu1 }
 0x4cb   : > { %v10763_v7 = vpop.eup %10762  ;;  %7188 = vst.msk [vmem:[%s13717_s8 + $0x2a0] sm:$0xff] %vm414_vm0, %v10761_v63  ;;  %10782 = vrcp.f32 %v6810_v11  ;;  %v6198_v61 = vadd.f32 %v13883_v23, %v6197_v41 }
 0x4cc   : > { %v10765_v35 = vpop.eup %10764  ;;  %7191 = vst.msk [vmem:[%s13717_s8 + $0x2b8] sm:$0xff] %vm414_vm0, %v10763_v7  ;;  %10784 = vpow2.f32 %v8764_v31  ;;  %v8769_v28 = vmul.f32 -1.442695, %v6203_v49 }
 0x4cd   : > { %v10767_v46 = vpop.eup %10766  ;;  %v6813_v4 = vadd.f32 1.0, %v10765_v35  ;;  %10786 = vpow2.f32 %v8767_v8  ;;  %v8768_v6 = vmul.f32 -1.442695, %v6198_v61  ;;  %v10080_v0 = vpop.f32.mrb[230].mxu1 }
 0x4ce   : > { %v10769_v47 = vpop.eup %10768  ;;  %v6812_v32 = vadd.f32 1.0, %v10767_v46  ;;  %10788 = vpow2.f32 %v8766_v20  ;;  %v6213_v45 = vadd.f32 %v13883_v23, %v10080_v0  ;;  %v6207_v54 = vpop.f32.mrb[231].mxu1 }
 0x4cf   : > { %v10771_v3 = vpop.eup %10770  ;;  %7190 = vst.msk [vmem:[%s13717_s8 + $0x2b0] sm:$0xff] %vm414_vm0, %v10769_v47  ;;  %10790 = vrcp.f32 %v6813_v4  ;;  %v6208_v53 = vadd.f32 %v13883_v23, %v6207_v54 }
 0x4d0   : > { %v10773_v26 = vpop.eup %10772  ;;  %7193 = vst.msk [vmem:[%s13717_s8 + $0x2c8] sm:$0xff] %vm414_vm0, %v10771_v3  ;;  %10792 = vrcp.f32 %v6812_v32  ;;  %v8771_v16 = vmul.f32 -1.442695, %v6213_v45 }
 0x4d1   : > { %v10775_v55 = vpop.eup %10774  ;;  %v6815_v59 = vadd.f32 1.0, %v10773_v26  ;;  %10794 = vpow2.f32 %v8769_v28  ;;  %v8770_v14 = vmul.f32 -1.442695, %v6208_v53  ;;  %v10083_v25 = vpop.f32.mrb[232].mxu1 }
 0x4d2   : > { %v10777_v44 = vpop.eup %10776  ;;  %v6814_v17 = vadd.f32 1.0, %v10775_v55  ;;  %10796 = vpow2.f32 %v8768_v6  ;;  %v6223_v23 = vadd.f32 %v14064_v60, %v10083_v25  ;;  %v6217_v29 = vpop.f32.mrb[233].mxu1 }
 0x4d3   : > { %v10779_v21 = vpop.eup %10778  ;;  %7192 = vst.msk [vmem:[%s13717_s8 + $0x2c0] sm:$0xff] %vm414_vm0, %v10777_v44  ;;  %10798 = vrcp.f32 %v6815_v59  ;;  %v6218_v2 = vadd.f32 %v14064_v60, %v6217_v29 }
 0x4d4   : > { %v10781_v39 = vpop.eup %10780  ;;  %7195 = vst.msk [vmem:[%s13717_s8 + $0x2d8] sm:$0xff] %vm414_vm0, %v10779_v21  ;;  %10800 = vrcp.f32 %v6814_v17  ;;  %v8773_v30 = vmul.f32 -1.442695, %v6223_v23 }
 0x4d5   : > { %v10783_v15 = vpop.eup %10782  ;;  %v6817_v12 = vadd.f32 1.0, %v10781_v39  ;;  %10802 = vpow2.f32 %v8771_v16  ;;  %v10086_v42 = vpop.f32.mrb[234].mxu1  ;;  %v8772_v36 = vmul.f32 -1.442695, %v6218_v2 }
 0x4d6   : > { %v10785_v38 = vpop.eup %10784  ;;  %7194 = vst.msk [vmem:[%s13717_s8 + $0x2d0] sm:$0xff] %vm414_vm0, %v10783_v15  ;;  %10804 = vpow2.f32 %v8770_v14  ;;  %v6233_v19 = vadd.f32 %v14064_v60, %v10086_v42  ;;  %v6227_v50 = vpop.f32.mrb[235].mxu1 }
 0x4d7   : > { %v10787_v9 = vpop.eup %10786  ;;  %10806 = vrcp.f32 %v6817_v12  ;;  %v6816_v10 = vadd.f32 1.0, %v10785_v38  ;;  %v6228_v62 = vadd.f32 %v14064_v60, %v6227_v50 }
 0x4d8   : > { %v10789_v48 = vpop.eup %10788  ;;  %v6819_v1 = vadd.f32 1.0, %v10787_v9  ;;  %10808 = vpow2.f32 %v8773_v30  ;;  %v8775_v22 = vmul.f32 -1.442695, %v6233_v19 }
 0x4d9   : > { %v10791_v37 = vpop.eup %10790  ;;  %10810 = vrcp.f32 %v6816_v10  ;;  %v6818_v24 = vadd.f32 1.0, %v10789_v48  ;;  %v10089_v13 = vpop.f32.mrb[236].mxu1  ;;  %v8774_v43 = vmul.f32 -1.442695, %v6228_v62 }
 0x4da   : > { %v10793_v27 = vpop.eup %10792  ;;  %7197 = vst.msk [vmem:[%s13717_s8 + $0x2e8] sm:$0xff] %vm414_vm0, %v10791_v37  ;;  %10812 = vrcp.f32 %v6819_v1  ;;  %v6243_v56 = vadd.f32 %v14064_v60, %v10089_v13  ;;  %v6237_v51 = vpop.f32.mrb[237].mxu1 }
 0x4db   : > { %v10795_v52 = vpop.eup %10794  ;;  %7196 = vst.msk [vmem:[%s13717_s8 + $0x2e0] sm:$0xff] %vm414_vm0, %v10793_v27  ;;  %10814 = vrcp.f32 %v6818_v24  ;;  %v6238_v33 = vadd.f32 %v14064_v60, %v6237_v51 }
 0x4dc   : > { %v10797_v5 = vpop.eup %10796  ;;  %v6821_v58 = vadd.f32 1.0, %v10795_v52  ;;  %10816 = vpow2.f32 %v8772_v36  ;;  %v8777_v11 = vmul.f32 -1.442695, %v6243_v56 }
 0x4dd   : > { %v10799_v31 = vpop.eup %10798  ;;  %v6820_v40 = vadd.f32 1.0, %v10797_v5  ;;  %10818 = vpow2.f32 %v8775_v22  ;;  %v10092_v63 = vpop.f32.mrb[238].mxu1  ;;  %v8776_v20 = vmul.f32 -1.442695, %v6238_v33 }
 0x4de   : > { %v10801_v57 = vpop.eup %10800  ;;  %7199 = vst.msk [vmem:[%s13717_s8 + $0x2f8] sm:$0xff] %vm414_vm0, %v10799_v31  ;;  %10820 = vrcp.f32 %v6821_v58  ;;  %v6253_v18 = vadd.f32 %v14064_v60, %v10092_v63  ;;  %v6247_v35 = vpop.f32.mrb[239].mxu1 }
 0x4df   : > { %v10803_v34 = vpop.eup %10802  ;;  %7198 = vst.msk [vmem:[%s13717_s8 + $0x2f0] sm:$0xff] %vm414_vm0, %v10801_v57  ;;  %10822 = vrcp.f32 %v6820_v40  ;;  %v6248_v46 = vadd.f32 %v14064_v60, %v6247_v35 }
 0x4e0   : > { %v10805_v8 = vpop.eup %10804  ;;  %v6823_v7 = vadd.f32 1.0, %v10803_v34  ;;  %10824 = vpow2.f32 %v8774_v43  ;;  %v8779_v61 = vmul.f32 -1.442695, %v6253_v18 }
 0x4e1   : > { %v10807_v49 = vpop.eup %10806  ;;  %v6822_v41 = vadd.f32 1.0, %v10805_v8  ;;  %10826 = vpow2.f32 %v8777_v11  ;;  %v8778_v28 = vmul.f32 -1.442695, %v6248_v46  ;;  %v10095_v3 = vpop.f32.mrb[240].mxu1 }
 0x4e2   : > { %v10809_v4 = vpop.eup %10808  ;;  %7201 = vst.msk [vmem:[%s13717_s8 + $0x308] sm:$0xff] %vm414_vm0, %v10807_v49  ;;  %10828 = vrcp.f32 %v6823_v7  ;;  %v6263_v0 = vadd.f32 %v14064_v60, %v10095_v3  ;;  %v6257_v26 = vpop.f32.mrb[241].mxu1 }
 0x4e3   : > { %v10811_v47 = vpop.eup %10810  ;;  %10830 = vrcp.f32 %v6822_v41  ;;  %v6825_v32 = vadd.f32 1.0, %v10809_v4  ;;  %v6258_v54 = vadd.f32 %v14064_v60, %v6257_v26 }
 0x4e4   : > { %v10813_v6 = vpop.eup %10812  ;;  %7200 = vst.msk [vmem:[%s13717_s8 + $0x300] sm:$0xff] %vm414_vm0, %v10811_v47  ;;  %10832 = vpow2.f32 %v8776_v20  ;;  %v8781_v59 = vmul.f32 -1.442695, %v6263_v0 }
 0x4e5   : > { %v10815_v45 = vpop.eup %10814  ;;  %7203 = vst.msk [vmem:[%s13717_s8 + $0x318] sm:$0xff] %vm414_vm0, %v10813_v6  ;;  %10834 = vrcp.f32 %v6825_v32  ;;  %v8780_v17 = vmul.f32 -1.442695, %v6258_v54  ;;  %v10098_v16 = vpop.f32.mrb[242].mxu1 }
 0x4e6   : > { %v10817_v55 = vpop.eup %10816  ;;  %7202 = vst.msk [vmem:[%s13717_s8 + $0x310] sm:$0xff] %vm414_vm0, %v10815_v45  ;;  %10836 = vpow2.f32 %v8779_v61  ;;  %v6273_v25 = vadd.f32 %v14064_v60, %v10098_v16  ;;  %v6267_v39 = vpop.f32.mrb[243].mxu1 }
 0x4e7   : > { %v10819_v53 = vpop.eup %10818  ;;  %v6824_v44 = vadd.f32 1.0, %v10817_v55  ;;  %10838 = vpow2.f32 %v8778_v28  ;;  %v6268_v29 = vadd.f32 %v14064_v60, %v6267_v39 }
 0x4e8   : > { %v10821_v21 = vpop.eup %10820  ;;  %v6827_v14 = vadd.f32 1.0, %v10819_v53  ;;  %10840 = vpow2.f32 %v8781_v59  ;;  %v8783_v12 = vmul.f32 -1.442695, %v6273_v25 }
 0x4e9   : > { %v10823_v23 = vpop.eup %10822  ;;  %7205 = vst.msk [vmem:[%s13717_s8 + $0x328] sm:$0xff] %vm414_vm0, %v10821_v21  ;;  %10842 = vrcp.f32 %v6824_v44  ;;  %v8782_v30 = vmul.f32 -1.442695, %v6268_v29  ;;  %v10101_v9 = vpop.f32.mrb[244].mxu1 }
 0x4ea   : > { %v10825_v15 = vpop.eup %10824  ;;  %7204 = vst.msk [vmem:[%s13717_s8 + $0x320] sm:$0xff] %vm414_vm0, %v10823_v23  ;;  %10844 = vrcp.f32 %v6827_v14  ;;  %v6283_v48 = vadd.f32 %v14064_v60, %v10101_v9  ;;  %v6277_v1 = vpop.f32.mrb[245].mxu1 }
 0x4eb   : > { %v10827_v2 = vpop.eup %10826  ;;  %v6826_v38 = vadd.f32 1.0, %v10825_v15  ;;  %10846 = vpow2.f32 %v8780_v17  ;;  %v6278_v19 = vadd.f32 %v14064_v60, %v6277_v1 }
 0x4ec   : > { %v10829_v10 = vpop.eup %10828  ;;  %v6829_v42 = vadd.f32 1.0, %v10827_v2  ;;  %10848 = vpow2.f32 %v8783_v12  ;;  %v8785_v37 = vmul.f32 -1.442695, %v6283_v48 }
 0x4ed   : > { %v10831_v36 = vpop.eup %10830  ;;  %7207 = vst.msk [vmem:[%s13717_s8 + $0x338] sm:$0xff] %vm414_vm0, %v10829_v10  ;;  %10850 = vrcp.f32 %v6826_v38  ;;  %v8784_v27 = vmul.f32 -1.442695, %v6278_v19  ;;  %v10104_v22 = vpop.f32.mrb[246].mxu1 }
 0x4ee   : > { %v10833_v50 = vpop.eup %10832  ;;  %7206 = vst.msk [vmem:[%s13717_s8 + $0x330] sm:$0xff] %vm414_vm0, %v10831_v36  ;;  %10852 = vrcp.f32 %v6829_v42  ;;  %v6293_v13 = vadd.f32 %v14064_v60, %v10104_v22  ;;  %v6287_v5 = vpop.f32.mrb[247].mxu1 }
 0x4ef   : > { %v10835_v24 = vpop.eup %10834  ;;  %v6828_v62 = vadd.f32 1.0, %v10833_v50  ;;  %10854 = vpow2.f32 %v8782_v30  ;;  %v6288_v56 = vadd.f32 %v14064_v60, %v6287_v5 }
 0x4f0   : > { %v10837_v52 = vpop.eup %10836  ;;  %7209 = vst.msk [vmem:[%s13717_s8 + $0x348] sm:$0xff] %vm414_vm0, %v10835_v24  ;;  %10856 = vpow2.f32 %v8785_v37  ;;  %v8787_v40 = vmul.f32 -1.442695, %v6293_v13 }
 0x4f1   : > { %v10839_v58 = vpop.eup %10838  ;;  %10858 = vrcp.f32 %v6828_v62  ;;  %v6831_v43 = vadd.f32 1.0, %v10837_v52  ;;  %v8786_v11 = vmul.f32 -1.442695, %v6288_v56  ;;  %v10107_v34 = vpop.f32.mrb[248].mxu1 }
 0x4f2   : > { %v10841_v51 = vpop.eup %10840  ;;  %v6830_v31 = vadd.f32 1.0, %v10839_v58  ;;  %10860 = vpow2.f32 %v8784_v27  ;;  %v6303_v8 = vadd.f32 %v14064_v60, %v10107_v34  ;;  %v6297_v7 = vpop.f32.mrb[249].mxu1 }
 0x4f3   : > { %v10843_v33 = vpop.eup %10842  ;;  %10862 = vrcp.f32 %v6831_v43  ;;  %v6833_v57 = vadd.f32 1.0, %v10841_v51  ;;  %v6298_v18 = vadd.f32 %v14064_v60, %v6297_v7 }
 0x4f4   : > { %v10845_v63 = vpop.eup %10844  ;;  %7208 = vst.msk [vmem:[%s13717_s8 + $0x340] sm:$0xff] %vm414_vm0, %v10843_v33  ;;  %10864 = vrcp.f32 %v6830_v31  ;;  %v8789_v41 = vmul.f32 -1.442695, %v6303_v8 }
 0x4f5   : > { %v10847_v20 = vpop.eup %10846  ;;  %7211 = vst.msk [vmem:[%s13717_s8 + $0x358] sm:$0xff] %vm414_vm0, %v10845_v63  ;;  %10866 = vrcp.f32 %v6833_v57  ;;  %v8788_v61 = vmul.f32 -1.442695, %v6298_v18  ;;  %v10110_v47 = vpop.f32.mrb[250].mxu1 }
 0x4f6   : > { %v10849_v35 = vpop.eup %10848  ;;  %v6832_v49 = vadd.f32 1.0, %v10847_v20  ;;  %10868 = vpow2.f32 %v8787_v40  ;;  %v6313_v28 = vadd.f32 %v14064_v60, %v10110_v47  ;;  %v6307_v3 = vpop.f32.mrb[251].mxu1 }
 0x4f7   : > { %v10851_v46 = vpop.eup %10850  ;;  %v6835_v4 = vadd.f32 1.0, %v10849_v35  ;;  %10870 = vpow2.f32 %v8786_v11  ;;  %v6308_v0 = vadd.f32 %v14064_v60, %v6307_v3 }
 0x4f8   : > { %v10853_v32 = vpop.eup %10852  ;;  %7210 = vst.msk [vmem:[%s13717_s8 + $0x350] sm:$0xff] %vm414_vm0, %v10851_v46  ;;  %10872 = vrcp.f32 %v6832_v49  ;;  %v8791_v54 = vmul.f32 -1.442695, %v6313_v28 }
 0x4f9   : > { %v10855_v6 = vpop.eup %10854  ;;  %7213 = vst.msk [vmem:[%s13717_s8 + $0x368] sm:$0xff] %vm414_vm0, %v10853_v32  ;;  %10874 = vrcp.f32 %v6835_v4  ;;  %v8790_v17 = vmul.f32 -1.442695, %v6308_v0 }
 0x4fa   : > { %v10857_v26 = vpop.eup %10856  ;;  %v6834_v45 = vadd.f32 1.0, %v10855_v6  ;;  %10876 = vpow2.f32 %v8789_v41  ;;  %v10113_v53 = vpop.f32.mrb[252].mxu1 }
 0x4fb   : > { %v10859_v55 = vpop.eup %10858  ;;  %v6837_v59 = vadd.f32 1.0, %v10857_v26  ;;  %10878 = vpow2.f32 %v8788_v61  ;;  %v6323_v16 = vadd.f32 %v14064_v60, %v10113_v53  ;;  %v6317_v21 = vpop.f32.mrb[253].mxu1 }
 0x4fc   : > { %v10861_v44 = vpop.eup %10860  ;;  %7212 = vst.msk [vmem:[%s13717_s8 + $0x360] sm:$0xff] %vm414_vm0, %v10859_v55  ;;  %10880 = vrcp.f32 %v6834_v45  ;;  %v6318_v39 = vadd.f32 %v14064_v60, %v6317_v21 }
 0x4fd   : > { %v10863_v14 = vpop.eup %10862  ;;  %10882 = vrcp.f32 %v6837_v59  ;;  %v6836_v25 = vadd.f32 1.0, %v10861_v44  ;;  %v8793_v29 = vmul.f32 -1.442695, %v6323_v16 }
 0x4fe   : > { %v10865_v23 = vpop.eup %10864  ;;  %7215 = vst.msk [vmem:[%s13717_s8 + $0x378] sm:$0xff] %vm414_vm0, %v10863_v14  ;;  %10884 = vpow2.f32 %v8791_v54  ;;  %v8792_v12 = vmul.f32 -1.442695, %v6318_v39 }
 0x4ff   : > { %v10867_v15 = vpop.eup %10866  ;;  %7214 = vst.msk [vmem:[%s13717_s8 + $0x370] sm:$0xff] %vm414_vm0, %v10865_v23  ;;  %10886 = vrcp.f32 %v6836_v25  ;;  %v10116_v2 = vpop.f32.mrb[254].mxu1 }
 0x500   : > { %v10869_v38 = vpop.eup %10868  ;;  %7217 = vst.msk [vmem:[%s13717_s8 + $0x388] sm:$0xff] %vm414_vm0, %v10867_v15  ;;  %10888 = vpow2.f32 %v8790_v17  ;;  %v6333_v30 = vadd.f32 %v14064_v60, %v10116_v2  ;;  %v6327_v9 = vpop.f32.mrb[255].mxu1 }
 0x501   : > { %v10871_v10 = vpop.eup %10870  ;;  %v6839_v42 = vadd.f32 1.0, %v10869_v38  ;;  %10890 = vpow2.f32 %v8793_v29  ;;  %v6328_v48 = vadd.f32 %v14064_v60, %v6327_v9 }
 0x502   : > { %v10873_v1 = vpop.eup %10872  ;;  %v6838_v36 = vadd.f32 1.0, %v10871_v10  ;;  %10892 = vpow2.f32 %v8792_v12  ;;  %v8795_v19 = vmul.f32 -1.442695, %v6333_v30 }
 0x503   : > { %v10875_v50 = vpop.eup %10874  ;;  %7216 = vst.msk [vmem:[%s13717_s8 + $0x380] sm:$0xff] %vm414_vm0, %v10873_v1  ;;  %10894 = vrcp.f32 %v6839_v42  ;;  %v8794_v37 = vmul.f32 -1.442695, %v6328_v48 }
 0x504   : > { %v10877_v24 = vpop.eup %10876  ;;  %7219 = vst.msk [vmem:[%s13717_s8 + $0x398] sm:$0xff] %vm414_vm0, %v10875_v50  ;;  %10896 = vrcp.f32 %v6838_v36 }
 0x505   : > { %v10879_v62 = vpop.eup %10878  ;;  %v6841_v27 = vadd.f32 1.0, %v10877_v24  ;;  %10898 = vpow2.f32 %v8795_v19 }
 0x506   : > { %v10881_v60 = vpop.eup %10880  ;;  %v6840_v22 = vadd.f32 1.0, %v10879_v62  ;;  %10900 = vpow2.f32 %v8794_v37 }
 0x507   : > { %v10883_v52 = vpop.eup %10882  ;;  %7218 = vst.msk [vmem:[%s13717_s8 + $0x390] sm:$0xff] %vm414_vm0, %v10881_v60  ;;  %10902 = vrcp.f32 %v6841_v27 }
 0x508   : > { %v10885_v13 = vpop.eup %10884  ;;  %7221 = vst.msk [vmem:[%s13717_s8 + $0x3a8] sm:$0xff] %vm414_vm0, %v10883_v52  ;;  %10904 = vrcp.f32 %v6840_v22 }
 0x509   : > { %v10887_v5 = vpop.eup %10886  ;;  %v6843_v58 = vadd.f32 1.0, %v10885_v13 }
 0x50a   : > { %v10889_v43 = vpop.eup %10888  ;;  %7220 = vst.msk [vmem:[%s13717_s8 + $0x3a0] sm:$0xff] %vm414_vm0, %v10887_v5 }
 0x50b   : > { %v10891_v56 = vpop.eup %10890  ;;  %10906 = vrcp.f32 %v6843_v58  ;;  %v6842_v51 = vadd.f32 1.0, %v10889_v43 }
 0x50c   : > { %v10893_v31 = vpop.eup %10892  ;;  %v6845_v40 = vadd.f32 1.0, %v10891_v56 }
 0x50d   : > { %v10895_v33 = vpop.eup %10894  ;;  %10908 = vrcp.f32 %v6842_v51  ;;  %v6844_v57 = vadd.f32 1.0, %v10893_v31 }
 0x50e   : > { %v10897_v11 = vpop.eup %10896  ;;  %7223 = vst.msk [vmem:[%s13717_s8 + $0x3b8] sm:$0xff] %vm414_vm0, %v10895_v33  ;;  %10910 = vrcp.f32 %v6845_v40 }
 0x50f   : > { %v10899_v34 = vpop.eup %10898  ;;  %7222 = vst.msk [vmem:[%s13717_s8 + $0x3b0] sm:$0xff] %vm414_vm0, %v10897_v11  ;;  %10912 = vrcp.f32 %v6844_v57 }
 0x510   : > { %v10901_v63 = vpop.eup %10900  ;;  %v6847_v8 = vadd.f32 1.0, %v10899_v34 }
 0x511   : > { %v10903_v7 = vpop.eup %10902  ;;  %v6846_v20 = vadd.f32 1.0, %v10901_v63 }
 0x512   : > { %v10905_v18 = vpop.eup %10904  ;;  %7225 = vst.msk [vmem:[%s13717_s8 + $0x3c8] sm:$0xff] %vm414_vm0, %v10903_v7  ;;  %10914 = vrcp.f32 %v6847_v8 }
 0x513   : > { %7224 = vst.msk [vmem:[%s13717_s8 + $0x3c0] sm:$0xff] %vm414_vm0, %v10905_v18  ;;  %10916 = vrcp.f32 %v6846_v20 }
 0x515   : > { %v10907_v35 = vpop.eup %10906 }
 0x516   : > { %7227 = vst.msk [vmem:[%s13717_s8 + $0x3d8] sm:$0xff] %vm414_vm0, %v10907_v35 }
 0x517   : > { %v10909_v49 = vpop.eup %10908 }
 0x518   : > { %v10911_v41 = vpop.eup %10910  ;;  %7226 = vst.msk [vmem:[%s13717_s8 + $0x3d0] sm:$0xff] %vm414_vm0, %v10909_v49 }
 0x519   : > { %v10913_v46 = vpop.eup %10912  ;;  %7229 = vst.msk [vmem:[%s13717_s8 + $0x3e8] sm:$0xff] %vm414_vm0, %v10911_v41 }
 0x51a   : > { %7228 = vst.msk [vmem:[%s13717_s8 + $0x3e0] sm:$0xff] %vm414_vm0, %v10913_v46 }
 0x51c   : > { %v10915_v4 = vpop.eup %10914 }
 0x51d   : > { %v10917_v61 = vpop.eup %10916  ;;  %7231 = vst.msk [vmem:[%s13717_s8 + $0x3f8] sm:$0xff] %vm414_vm0, %v10915_v4 }
 0x51e   : > { %7230 = vst.msk [vmem:[%s13717_s8 + $0x3f0] sm:$0xff] %vm414_vm0, %v10917_v61 }
 0x51f PF: > { %s16_s18 = sadd.s32 1, %s10930_s18  }
 0x520   : > { %p13_p4 = scmp.ge.s32.totalorder %s16_s18, 4  }
 0x522   :  { %15 = sbr.rel (!%p13_p4) target bundleno = 1 (0x1), region = 89 }

</bundles_post_ra>
